<compile_context>
chip_gen: v6e
topology: v6e:2x2x1
jax: 0.10.0
libtpu: 0.0.40
codegen_flags: <defaults>
</compile_context>

<pallas_src>
import jax
import jax.numpy as jnp
from jax.experimental import pallas as pl
from jax.experimental.pallas import tpu as pltpu


def _cdiv(a, b):
    return (a + b - 1) // b


def _round_up(x, m):
    return _cdiv(x, m) * m


# ---------------------------------------------------------------------------
# VMEM budgeting (generation aware; tile search and vmem_limit use one number)
# ---------------------------------------------------------------------------
def _vmem_limit_bytes():
    try:
        cap = int(pltpu.get_tpu_info().vmem_capacity_bytes)
    except Exception:                       # older API / interpret mode
        cap = 64 * 1024 * 1024              # assume the smallest (v7x) part
    # v5e/v6e (128 MiB) -> 96 MiB ; v7x (64 MiB) -> 48 MiB
    return min(cap * 3 // 4, 100 * 1024 * 1024)


def _footprint_bytes(tile_h, H, W, cin_p, cout_p, fused):
    h_pad = _cdiv(H, tile_h) * tile_h
    in_b = 2 * (h_pad + 2) * (W + 2) * cin_p * 2       # resident bf16 image, 2 pipeline bufs
    out_b = 2 * tile_h * W * cout_p * 2                # bf16 output tile, 2 pipeline bufs
    w_b = 2 * 9 * cin_p * cout_p * 2 + 2 * cout_p * 4  # weights + bias (worst case 2 bufs)
    if fused:
        scr = tile_h * W * 9 * cin_p * 2 + tile_h * W * cout_p * 4  # im2col patch + f32 temp
    else:
        scr = 2 * tile_h * W * cout_p * 4                           # f32 acc scratch + temp
    return in_b + out_b + w_b + scr


def _pick_tiling(H, W, cin_p, cout_p, n_batch, fused, budget):
    tile_h = min(H, 1024)
    while tile_h > 8 and _footprint_bytes(tile_h, H, W, cin_p, cout_p, fused) > budget:
        tile_h -= 8
    while tile_h > 1 and _footprint_bytes(tile_h, H, W, cin_p, cout_p, fused) > budget:
        tile_h -= 1
    if _footprint_bytes(tile_h, H, W, cin_p, cout_p, fused) > budget:
        # TODO(synk): windowed-DMA variant (pl.ANY + pltpu.make_async_copy) for feature
        #             maps too large to keep one padded image resident in VMEM.
        raise ValueError("feature map too large for the resident-image conv kernel")
    num_tiles = _cdiv(H, tile_h)
    # v7x has 2 TensorCores: for batch-1 inference make the parallel extent even/>=2.
    if n_batch == 1 and num_tiles % 2 == 1 and H >= 2:
        num_tiles = 2 if num_tiles == 1 else num_tiles + 1
        tile_h = _cdiv(H, num_tiles)
        num_tiles = _cdiv(H, tile_h)
    return tile_h, num_tiles


# ---------------------------------------------------------------------------
# Kernels
# ---------------------------------------------------------------------------
def _make_fused_kernel(tile_h, W, cin_p):
    """cin_p >= 128: build a (tile_h*W, 9*cin_p) im2col patch in VMEM scratch
    (lane-dense 128-aligned column slabs) and run ONE MXU matmul with K=9*cin_p."""

    def kernel(x_ref, w_ref, b_ref, o_ref, patch_ref):
        # x_ref: (h_pad+2, W+2, cin_p) bf16 (whole padded image, resident per batch elem)
        # w_ref: (9*cin_p, cout_p) bf16 ; b_ref: (1, cout_p) f32
        # o_ref: (tile_h*W, cout_p) bf16 ; patch_ref: VMEM (tile_h*W, 9*cin_p) bf16
        m = pl.program_id(1)
        row0 = m * tile_h
        if tile_h % 8 == 0:
            row0 = pl.multiple_of(row0, 8)
        for kh in range(3):
            rows = x_ref[pl.ds(row0 + kh, tile_h), :, :]          # (tile_h, W+2, cin_p)
            for kw in range(3):
                tap = kh * 3 + kw
                patch_ref[:, tap * cin_p:(tap + 1) * cin_p] = (
                    rows[:, kw:kw + W, :].reshape(tile_h * W, cin_p))
        acc = jnp.dot(patch_ref[...], w_ref[...],
                      preferred_element_type=jnp.float32)          # single K=9*cin_p matmul
        acc = acc + b_ref[...]
        o_ref[...] = (acc * jax.nn.sigmoid(acc)).astype(o_ref.dtype)   # SiLU f32, bf16 store

    return kernel


def _make_split_kernel(tile_h, W, cin_p):
    """cin_p < 128 (stem): 9 shifted matmuls with K=cin_p accumulated into an f32 VMEM
    scratch (keeps the big accumulator out of vregs; no narrow-lane im2col writes)."""

    def kernel(x_ref, w_ref, b_ref, o_ref, acc_ref):
        # x_ref: (h_pad+2, W+2, cin_p) bf16 ; w_ref: (9, cin_p, cout_p) bf16
        # b_ref: (1, cout_p) f32 ; o_ref: (tile_h*W, cout_p) bf16
        # acc_ref: VMEM (tile_h*W, cout_p) f32
        m = pl.program_id(1)
        row0 = m * tile_h
        if tile_h % 8 == 0:
            row0 = pl.multiple_of(row0, 8)
        for kh in range(3):
            rows = x_ref[pl.ds(row0 + kh, tile_h), :, :]          # (tile_h, W+2, cin_p)
            for kw in range(3):
                tap2d = rows[:, kw:kw + W, :].reshape(tile_h * W, cin_p)
                part = jnp.dot(tap2d, w_ref[kh * 3 + kw],
                               preferred_element_type=jnp.float32)
                if kh == 0 and kw == 0:
                    acc_ref[...] = part
                else:
                    acc_ref[...] += part
        acc = acc_ref[...] + b_ref[...]
        o_ref[...] = (acc * jax.nn.sigmoid(acc)).astype(o_ref.dtype)

    return kernel


# ---------------------------------------------------------------------------
# Wrappers
# ---------------------------------------------------------------------------
def conv3x3_silu_nhwc(x_nchw, weight, bias, tile_h=None):
    """Conv2d(3x3, stride=1, pad=1) + bias + SiLU.

    Returns (N, H, W, cout_p) bf16 with Cout zero-padded to cout_p, so successive
    layers can stay in padded-NHWC bf16 without per-layer slice/transpose glue.
    """
    N, Cin, H, W = x_nchw.shape
    Cout = weight.shape[0]

    # Only pad Cin to 128 when it is already >= 128 (stem stays narrow).
    cin_p = _round_up(Cin, 128) if Cin >= 128 else _round_up(Cin, 8)
    # 128 for small layers; multiple of 256 for wide layers (256-wide MXU on v6e/v7x).
    cout_p = 128 if Cout <= 128 else _round_up(Cout, 256)
    fused = cin_p >= 128

    limit = _vmem_limit_bytes()
    budget = limit * 17 // 20          # leave ~15% headroom for compiler scratch
    if tile_h is None:
        tile_h, num_tiles = _pick_tiling(H, W, cin_p, cout_p, N, fused, budget)
    else:
        num_tiles = _cdiv(H, tile_h)
    h_pad = num_tiles * tile_h

    # ---- layout glue (a multi-layer network would stay in padded-NHWC bf16) ----
    x = jnp.transpose(x_nchw, (0, 2, 3, 1)).astype(jnp.bfloat16)       # NHWC bf16
    xp = jnp.pad(x, ((0, 0), (1, 1 + h_pad - H), (1, 1), (0, cin_p - Cin)))
    # xp: (N, h_pad+2, W+2, cin_p) — no halo duplication in HBM.

    wk = jnp.transpose(weight, (2, 3, 1, 0)).reshape(9, Cin, Cout)
    wk = jnp.pad(wk, ((0, 0), (0, cin_p - Cin), (0, cout_p - Cout))).astype(jnp.bfloat16)
    bk = jnp.pad(bias, (0, cout_p - Cout)).reshape(1, cout_p).astype(jnp.float32)

    if fused:
        wk = wk.reshape(9 * cin_p, cout_p)          # K = 9*cin_p matches the im2col patch
        kernel = _make_fused_kernel(tile_h, W, cin_p)
        scratch = [pltpu.VMEM((tile_h * W, 9 * cin_p), jnp.bfloat16)]
        w_shape = (9 * cin_p, cout_p)
        w_index = lambda n, m: (0, 0)
    else:
        kernel = _make_split_kernel(tile_h, W, cin_p)
        scratch = [pltpu.VMEM((tile_h * W, cout_p), jnp.float32)]
        w_shape = (9, cin_p, cout_p)
        w_index = lambda n, m: (0, 0, 0)

    # Advisory cost estimate (unpadded flops).
    flops = 2 * N * H * W * 9 * Cin * Cout
    transcendentals = N * H * W * Cout
    bytes_accessed = int(xp.size * 2 + wk.size * 2 + bk.size * 4
                         + N * num_tiles * tile_h * W * cout_p * 2)

    def build(use_buffered):
        def resident_spec(shape, index_map):
            # Weights/bias are constant across the grid: a single buffer is enough.
            if use_buffered and hasattr(pl, "Buffered"):
                try:
                    return pl.BlockSpec(shape, index_map, pipeline_mode=pl.Buffered(1))
                except TypeError:
                    pass
            return pl.BlockSpec(shape, index_map)

        return pl.pallas_call(
            kernel,
            out_shape=jax.ShapeDtypeStruct(
                (N, num_tiles, tile_h * W, cout_p), jnp.bfloat16),
            grid=(N, num_tiles),
            in_specs=[
                # Whole padded image of batch element n stays resident in VMEM across
                # its row tiles (block index depends only on n): each input byte is
                # fetched from HBM once per layer, halo handled by in-kernel slicing.
                pl.BlockSpec((None, h_pad + 2, W + 2, cin_p),
                             lambda n, m: (n, 0, 0, 0)),
                resident_spec(w_shape, w_index),
                resident_spec((1, cout_p), lambda n, m: (0, 0)),
            ],
            out_specs=pl.BlockSpec((None, None, tile_h * W, cout_p),
                                   lambda n, m: (n, m, 0, 0)),
            scratch_shapes=scratch,
            compiler_params=pltpu.CompilerParams(
                dimension_semantics=("parallel", "parallel"),
                vmem_limit_bytes=limit),
            cost_estimate=pl.CostEstimate(flops=flops,
                                          transcendentals=transcendentals,
                                          bytes_accessed=bytes_accessed),
        )

    try:
        out = build(True)(xp, wk, bk)
    except Exception:
        # pipeline_mode / Buffered(1) unsupported on this JAX build -> default buffering.
        out = build(False)(xp, wk, bk)

    out = out.reshape(N, h_pad, W, cout_p)[:, :H]        # drop row padding
    return out


def conv3x3_silu(x_nchw, weight, bias, tile_h=None):
    """Test-facing interface: NCHW f32 in / NCHW f32 out (matches the PyTorch block).
    A real multi-layer network would skip this glue and chain conv3x3_silu_nhwc."""
    Cout = weight.shape[0]
    y = conv3x3_silu_nhwc(x_nchw, weight, bias, tile_h=tile_h)
    y = y[..., :Cout].astype(jnp.float32)
    return jnp.transpose(y, (0, 3, 1, 2))


def reference_conv3x3_silu(x_nchw, weight, bias):
    """Pure-JAX reference (lax conv) for correctness checking."""
    y = jax.lax.conv_general_dilated(
        x_nchw, weight, window_strides=(1, 1), padding="SAME",
        dimension_numbers=("NCHW", "OIHW", "NCHW"))
    y = y + bias.reshape(1, -1, 1, 1)
    return y * jax.nn.sigmoid(y)


if __name__ == "__main__":
    key = jax.random.PRNGKey(0)
    k_x1, k_w1, k_b1, k_x2, k_w2, k_b2 = jax.random.split(key, 6)

    # -- Case 1: stem-like layer (yaml={'channels': 3}) -> small-cin path -------------
    N, Cin, H, W, Cout = 2, 3, 16, 16, 16
    x1 = jax.random.normal(k_x1, (N, Cin, H, W), dtype=jnp.float32)
    w1 = jax.random.normal(k_w1, (Cout, Cin, 3, 3), dtype=jnp.float32) * 0.1
    b1 = jax.random.normal(k_b1, (Cout,), dtype=jnp.float32) * 0.1

    x1q = x1.astype(jnp.bfloat16).astype(jnp.float32)   # ref sees the same bf16 inputs
    w1q = w1.astype(jnp.bfloat16).astype(jnp.float32)
    ref1 = jax.block_until_ready(reference_conv3x3_silu(x1q, w1q, b1))

    out1 = jax.block_until_ready(conv3x3_silu(x1, w1, b1))
    assert out1.shape == (N, Cout, H, W)
    assert jnp.allclose(out1, ref1, atol=1e-2, rtol=1e-2)

    # cdiv tiling path: tile_h=6 does not divide H=16 (h_pad=18, padded tail rows sliced).
    out1b = jax.block_until_ready(conv3x3_silu(x1, w1, b1, tile_h=6))
    assert jnp.allclose(out1b, ref1, atol=1e-2, rtol=1e-2)

    # -- Case 2: mid-network layer (Cin=128) -> fused K=9*128 im2col matmul path;
    #    batch=1 exercises the even row-tile split for v7x's two TensorCores. ---------
    N2, Cin2, H2, W2, Cout2 = 1, 128, 8, 8, 32
    x2 = jax.random.normal(k_x2, (N2, Cin2, H2, W2), dtype=jnp.float32)
    w2 = jax.random.normal(k_w2, (Cout2, Cin2, 3, 3), dtype=jnp.float32) * 0.05
    b2 = jax.random.normal(k_b2, (Cout2,), dtype=jnp.float32) * 0.05

    x2q = x2.astype(jnp.bfloat16).astype(jnp.float32)
    w2q = w2.astype(jnp.bfloat16).astype(jnp.float32)
    ref2 = jax.block_until_ready(reference_conv3x3_silu(x2q, w2q, b2))

    out2 = jax.block_until_ready(conv3x3_silu(x2, w2, b2))
    assert out2.shape == (N2, Cout2, H2, W2)
    assert jnp.allclose(out2, ref2, atol=2e-2, rtol=2e-2)

    print("KERNEL_OK")
</pallas_src>

<mosaic_0001>
module attributes {stable_mosaic.version = 11 : i64} {
  func.func @kernel(%arg0: i32, %arg1: i32, %arg2: memref<1x18x18x8xbf16, #tpu.memory_space<vmem>>, %arg3: memref<9x8x128xbf16, #tpu.memory_space<vmem>>, %arg4: memref<1x128xf32, #tpu.memory_space<vmem>>, %arg5: memref<1x1x256x128xbf16, #tpu.memory_space<vmem>>, %arg6: memref<256x128xf32, #tpu.memory_space<vmem>>) attributes {dimension_semantics = [#tpu.dimension_semantics<parallel>, #tpu.dimension_semantics<parallel>], iteration_bounds = array<i64: 2, 1>, scalar_prefetch = 0 : i64, scratch_operands = 1 : i64, tpu.core_type = #tpu.core_type<tc>, window_params = [{transform_indices = @transform_0, window_bounds = array<i64: 1, 18, 18, 8>}, {pipeline_mode = #tpu.pipeline_mode<synchronous>, transform_indices = @transform_1, window_bounds = array<i64: 9, 8, 128>}, {pipeline_mode = #tpu.pipeline_mode<synchronous>, transform_indices = @transform_2, window_bounds = array<i64: 1, 128>}, {transform_indices = @transform_3, window_bounds = array<i64: 1, 1, 256, 128>}]} {
    %c16_i32 = arith.constant 16 : i32
    %0 = arith.muli %arg1, %c16_i32 : i32
    %1 = tpu.assume_multiple %0, 8 : i32
    %c0_i32 = arith.constant 0 : i32
    %2 = arith.addi %1, %c0_i32 : i32
    %c0 = arith.constant 0 : index
    %3 = arith.index_cast %2 : i32 to index
    %c0_0 = arith.constant 0 : index
    %c0_1 = arith.constant 0 : index
    %4 = vector.load %arg2[%c0, %3, %c0_0, %c0_1] : memref<1x18x18x8xbf16, #tpu.memory_space<vmem>>, vector<1x16x18x8xbf16>
    %5 = vector.shape_cast %4 : vector<1x16x18x8xbf16> to vector<16x18x8xbf16>
    %6 = vector.extract_strided_slice %5 {offsets = [0, 0, 0], sizes = [16, 16, 8], strides = [1, 1, 1]} : vector<16x18x8xbf16> to vector<16x16x8xbf16>
    %7 = vector.shape_cast %6 : vector<16x16x8xbf16> to vector<256x8xbf16>
    %c0_2 = arith.constant 0 : index
    %c0_3 = arith.constant 0 : index
    %c0_4 = arith.constant 0 : index
    %8 = vector.load %arg3[%c0_2, %c0_3, %c0_4] : memref<9x8x128xbf16, #tpu.memory_space<vmem>>, vector<1x8x128xbf16>
    %9 = vector.shape_cast %8 : vector<1x8x128xbf16> to vector<8x128xbf16>
    %cst = arith.constant dense<0.000000e+00> : vector<256x128xf32>
    %10 = tpu.matmul %7, %9, %cst {dimension_numbers = #tpu.dot_dimension_numbers<[1], [0], [0], [1], [0, 0, 1, 1], [], []>} : vector<256x8xbf16>, vector<8x128xbf16>, vector<256x128xf32> -> vector<256x128xf32>
    %c0_5 = arith.constant 0 : index
    %c0_6 = arith.constant 0 : index
    %11 = vector.load %arg6[%c0_5, %c0_6] : memref<256x128xf32, #tpu.memory_space<vmem>>, vector<256x128xf32>
    tpu.vector_store %arg6[%c0_5, %c0_6], %10 {strides = array<i32>} : memref<256x128xf32, #tpu.memory_space<vmem>>, vector<256x128xf32>,
    %12 = vector.extract_strided_slice %5 {offsets = [0, 1, 0], sizes = [16, 16, 8], strides = [1, 1, 1]} : vector<16x18x8xbf16> to vector<16x16x8xbf16>
    %13 = vector.shape_cast %12 : vector<16x16x8xbf16> to vector<256x8xbf16>
    %c1 = arith.constant 1 : index
    %c0_7 = arith.constant 0 : index
    %c0_8 = arith.constant 0 : index
    %14 = vector.load %arg3[%c1, %c0_7, %c0_8] : memref<9x8x128xbf16, #tpu.memory_space<vmem>>, vector<1x8x128xbf16>
    %15 = vector.shape_cast %14 : vector<1x8x128xbf16> to vector<8x128xbf16>
    %cst_9 = arith.constant dense<0.000000e+00> : vector<256x128xf32>
    %16 = tpu.matmul %13, %15, %cst_9 {dimension_numbers = #tpu.dot_dimension_numbers<[1], [0], [0], [1], [0, 0, 1, 1], [], []>} : vector<256x8xbf16>, vector<8x128xbf16>, vector<256x128xf32> -> vector<256x128xf32>
    %c0_10 = arith.constant 0 : index
    %c0_11 = arith.constant 0 : index
    %17 = vector.load %arg6[%c0_10, %c0_11] : memref<256x128xf32, #tpu.memory_space<vmem>>, vector<256x128xf32>
    %18 = arith.addf %17, %16 : vector<256x128xf32>
    %c0_12 = arith.constant 0 : index
    %c0_13 = arith.constant 0 : index
    %19 = vector.load %arg6[%c0_12, %c0_13] : memref<256x128xf32, #tpu.memory_space<vmem>>, vector<256x128xf32>
    tpu.vector_store %arg6[%c0_12, %c0_13], %18 {strides = array<i32>} : memref<256x128xf32, #tpu.memory_space<vmem>>, vector<256x128xf32>,
    %20 = vector.extract_strided_slice %5 {offsets = [0, 2, 0], sizes = [16, 16, 8], strides = [1, 1, 1]} : vector<16x18x8xbf16> to vector<16x16x8xbf16>
    %21 = vector.shape_cast %20 : vector<16x16x8xbf16> to vector<256x8xbf16>
    %c2 = arith.constant 2 : index
    %c0_14 = arith.constant 0 : index
    %c0_15 = arith.constant 0 : index
    %22 = vector.load %arg3[%c2, %c0_14, %c0_15] : memref<9x8x128xbf16, #tpu.memory_space<vmem>>, vector<1x8x128xbf16>
    %23 = vector.shape_cast %22 : vector<1x8x128xbf16> to vector<8x128xbf16>
    %cst_16 = arith.constant dense<0.000000e+00> : vector<256x128xf32>
    %24 = tpu.matmul %21, %23, %cst_16 {dimension_numbers = #tpu.dot_dimension_numbers<[1], [0], [0], [1], [0, 0, 1, 1], [], []>} : vector<256x8xbf16>, vector<8x128xbf16>, vector<256x128xf32> -> vector<256x128xf32>
    %c0_17 = arith.constant 0 : index
    %c0_18 = arith.constant 0 : index
    %25 = vector.load %arg6[%c0_17, %c0_18] : memref<256x128xf32, #tpu.memory_space<vmem>>, vector<256x128xf32>
    %26 = arith.addf %25, %24 : vector<256x128xf32>
    %c0_19 = arith.constant 0 : index
    %c0_20 = arith.constant 0 : index
    %27 = vector.load %arg6[%c0_19, %c0_20] : memref<256x128xf32, #tpu.memory_space<vmem>>, vector<256x128xf32>
    tpu.vector_store %arg6[%c0_19, %c0_20], %26 {strides = array<i32>} : memref<256x128xf32, #tpu.memory_space<vmem>>, vector<256x128xf32>,
    %c1_i32 = arith.constant 1 : i32
    %28 = arith.addi %1, %c1_i32 : i32
    %c0_21 = arith.constant 0 : index
    %29 = arith.index_cast %28 : i32 to index
    %c0_22 = arith.constant 0 : index
    %c0_23 = arith.constant 0 : index
    %30 = vector.load %arg2[%c0_21, %29, %c0_22, %c0_23] : memref<1x18x18x8xbf16, #tpu.memory_space<vmem>>, vector<1x16x18x8xbf16>
    %31 = vector.shape_cast %30 : vector<1x16x18x8xbf16> to vector<16x18x8xbf16>
    %32 = vector.extract_strided_slice %31 {offsets = [0, 0, 0], sizes = [16, 16, 8], strides = [1, 1, 1]} : vector<16x18x8xbf16> to vector<16x16x8xbf16>
    %33 = vector.shape_cast %32 : vector<16x16x8xbf16> to vector<256x8xbf16>
    %c3 = arith.constant 3 : index
    %c0_24 = arith.constant 0 : index
    %c0_25 = arith.constant 0 : index
    %34 = vector.load %arg3[%c3, %c0_24, %c0_25] : memref<9x8x128xbf16, #tpu.memory_space<vmem>>, vector<1x8x128xbf16>
    %35 = vector.shape_cast %34 : vector<1x8x128xbf16> to vector<8x128xbf16>
    %cst_26 = arith.constant dense<0.000000e+00> : vector<256x128xf32>
    %36 = tpu.matmul %33, %35, %cst_26 {dimension_numbers = #tpu.dot_dimension_numbers<[1], [0], [0], [1], [0, 0, 1, 1], [], []>} : vector<256x8xbf16>, vector<8x128xbf16>, vector<256x128xf32> -> vector<256x128xf32>
    %c0_27 = arith.constant 0 : index
    %c0_28 = arith.constant 0 : index
    %37 = vector.load %arg6[%c0_27, %c0_28] : memref<256x128xf32, #tpu.memory_space<vmem>>, vector<256x128xf32>
    %38 = arith.addf %37, %36 : vector<256x128xf32>
    %c0_29 = arith.constant 0 : index
    %c0_30 = arith.constant 0 : index
    %39 = vector.load %arg6[%c0_29, %c0_30] : memref<256x128xf32, #tpu.memory_space<vmem>>, vector<256x128xf32>
    tpu.vector_store %arg6[%c0_29, %c0_30], %38 {strides = array<i32>} : memref<256x128xf32, #tpu.memory_space<vmem>>, vector<256x128xf32>,
    %40 = vector.extract_strided_slice %31 {offsets = [0, 1, 0], sizes = [16, 16, 8], strides = [1, 1, 1]} : vector<16x18x8xbf16> to vector<16x16x8xbf16>
    %41 = vector.shape_cast %40 : vector<16x16x8xbf16> to vector<256x8xbf16>
    %c4 = arith.constant 4 : index
    %c0_31 = arith.constant 0 : index
    %c0_32 = arith.constant 0 : index
    %42 = vector.load %arg3[%c4, %c0_31, %c0_32] : memref<9x8x128xbf16, #tpu.memory_space<vmem>>, vector<1x8x128xbf16>
    %43 = vector.shape_cast %42 : vector<1x8x128xbf16> to vector<8x128xbf16>
    %cst_33 = arith.constant dense<0.000000e+00> : vector<256x128xf32>
    %44 = tpu.matmul %41, %43, %cst_33 {dimension_numbers = #tpu.dot_dimension_numbers<[1], [0], [0], [1], [0, 0, 1, 1], [], []>} : vector<256x8xbf16>, vector<8x128xbf16>, vector<256x128xf32> -> vector<256x128xf32>
    %c0_34 = arith.constant 0 : index
    %c0_35 = arith.constant 0 : index
    %45 = vector.load %arg6[%c0_34, %c0_35] : memref<256x128xf32, #tpu.memory_space<vmem>>, vector<256x128xf32>
    %46 = arith.addf %45, %44 : vector<256x128xf32>
    %c0_36 = arith.constant 0 : index
    %c0_37 = arith.constant 0 : index
    %47 = vector.load %arg6[%c0_36, %c0_37] : memref<256x128xf32, #tpu.memory_space<vmem>>, vector<256x128xf32>
    tpu.vector_store %arg6[%c0_36, %c0_37], %46 {strides = array<i32>} : memref<256x128xf32, #tpu.memory_space<vmem>>, vector<256x128xf32>,
    %48 = vector.extract_strided_slice %31 {offsets = [0, 2, 0], sizes = [16, 16, 8], strides = [1, 1, 1]} : vector<16x18x8xbf16> to vector<16x16x8xbf16>
    %49 = vector.shape_cast %48 : vector<16x16x8xbf16> to vector<256x8xbf16>
    %c5 = arith.constant 5 : index
    %c0_38 = arith.constant 0 : index
    %c0_39 = arith.constant 0 : index
    %50 = vector.load %arg3[%c5, %c0_38, %c0_39] : memref<9x8x128xbf16, #tpu.memory_space<vmem>>, vector<1x8x128xbf16>
    %51 = vector.shape_cast %50 : vector<1x8x128xbf16> to vector<8x128xbf16>
    %cst_40 = arith.constant dense<0.000000e+00> : vector<256x128xf32>
    %52 = tpu.matmul %49, %51, %cst_40 {dimension_numbers = #tpu.dot_dimension_numbers<[1], [0], [0], [1], [0, 0, 1, 1], [], []>} : vector<256x8xbf16>, vector<8x128xbf16>, vector<256x128xf32> -> vector<256x128xf32>
    %c0_41 = arith.constant 0 : index
    %c0_42 = arith.constant 0 : index
    %53 = vector.load %arg6[%c0_41, %c0_42] : memref<256x128xf32, #tpu.memory_space<vmem>>, vector<256x128xf32>
    %54 = arith.addf %53, %52 : vector<256x128xf32>
    %c0_43 = arith.constant 0 : index
    %c0_44 = arith.constant 0 : index
    %55 = vector.load %arg6[%c0_43, %c0_44] : memref<256x128xf32, #tpu.memory_space<vmem>>, vector<256x128xf32>
    tpu.vector_store %arg6[%c0_43, %c0_44], %54 {strides = array<i32>} : memref<256x128xf32, #tpu.memory_space<vmem>>, vector<256x128xf32>,
    %c2_i32 = arith.constant 2 : i32
    %56 = arith.addi %1, %c2_i32 : i32
    %c0_45 = arith.constant 0 : index
    %57 = arith.index_cast %56 : i32 to index
    %c0_46 = arith.constant 0 : index
    %c0_47 = arith.constant 0 : index
    %58 = vector.load %arg2[%c0_45, %57, %c0_46, %c0_47] : memref<1x18x18x8xbf16, #tpu.memory_space<vmem>>, vector<1x16x18x8xbf16>
    %59 = vector.shape_cast %58 : vector<1x16x18x8xbf16> to vector<16x18x8xbf16>
    %60 = vector.extract_strided_slice %59 {offsets = [0, 0, 0], sizes = [16, 16, 8], strides = [1, 1, 1]} : vector<16x18x8xbf16> to vector<16x16x8xbf16>
    %61 = vector.shape_cast %60 : vector<16x16x8xbf16> to vector<256x8xbf16>
    %c6 = arith.constant 6 : index
    %c0_48 = arith.constant 0 : index
    %c0_49 = arith.constant 0 : index
    %62 = vector.load %arg3[%c6, %c0_48, %c0_49] : memref<9x8x128xbf16, #tpu.memory_space<vmem>>, vector<1x8x128xbf16>
    %63 = vector.shape_cast %62 : vector<1x8x128xbf16> to vector<8x128xbf16>
    %cst_50 = arith.constant dense<0.000000e+00> : vector<256x128xf32>
    %64 = tpu.matmul %61, %63, %cst_50 {dimension_numbers = #tpu.dot_dimension_numbers<[1], [0], [0], [1], [0, 0, 1, 1], [], []>} : vector<256x8xbf16>, vector<8x128xbf16>, vector<256x128xf32> -> vector<256x128xf32>
    %c0_51 = arith.constant 0 : index
    %c0_52 = arith.constant 0 : index
    %65 = vector.load %arg6[%c0_51, %c0_52] : memref<256x128xf32, #tpu.memory_space<vmem>>, vector<256x128xf32>
    %66 = arith.addf %65, %64 : vector<256x128xf32>
    %c0_53 = arith.constant 0 : index
    %c0_54 = arith.constant 0 : index
    %67 = vector.load %arg6[%c0_53, %c0_54] : memref<256x128xf32, #tpu.memory_space<vmem>>, vector<256x128xf32>
    tpu.vector_store %arg6[%c0_53, %c0_54], %66 {strides = array<i32>} : memref<256x128xf32, #tpu.memory_space<vmem>>, vector<256x128xf32>,
    %68 = vector.extract_strided_slice %59 {offsets = [0, 1, 0], sizes = [16, 16, 8], strides = [1, 1, 1]} : vector<16x18x8xbf16> to vector<16x16x8xbf16>
    %69 = vector.shape_cast %68 : vector<16x16x8xbf16> to vector<256x8xbf16>
    %c7 = arith.constant 7 : index
    %c0_55 = arith.constant 0 : index
    %c0_56 = arith.constant 0 : index
    %70 = vector.load %arg3[%c7, %c0_55, %c0_56] : memref<9x8x128xbf16, #tpu.memory_space<vmem>>, vector<1x8x128xbf16>
    %71 = vector.shape_cast %70 : vector<1x8x128xbf16> to vector<8x128xbf16>
    %cst_57 = arith.constant dense<0.000000e+00> : vector<256x128xf32>
    %72 = tpu.matmul %69, %71, %cst_57 {dimension_numbers = #tpu.dot_dimension_numbers<[1], [0], [0], [1], [0, 0, 1, 1], [], []>} : vector<256x8xbf16>, vector<8x128xbf16>, vector<256x128xf32> -> vector<256x128xf32>
    %c0_58 = arith.constant 0 : index
    %c0_59 = arith.constant 0 : index
    %73 = vector.load %arg6[%c0_58, %c0_59] : memref<256x128xf32, #tpu.memory_space<vmem>>, vector<256x128xf32>
    %74 = arith.addf %73, %72 : vector<256x128xf32>
    %c0_60 = arith.constant 0 : index
    %c0_61 = arith.constant 0 : index
    %75 = vector.load %arg6[%c0_60, %c0_61] : memref<256x128xf32, #tpu.memory_space<vmem>>, vector<256x128xf32>
    tpu.vector_store %arg6[%c0_60, %c0_61], %74 {strides = array<i32>} : memref<256x128xf32, #tpu.memory_space<vmem>>, vector<256x128xf32>,
    %76 = vector.extract_strided_slice %59 {offsets = [0, 2, 0], sizes = [16, 16, 8], strides = [1, 1, 1]} : vector<16x18x8xbf16> to vector<16x16x8xbf16>
    %77 = vector.shape_cast %76 : vector<16x16x8xbf16> to vector<256x8xbf16>
    %c8 = arith.constant 8 : index
    %c0_62 = arith.constant 0 : index
    %c0_63 = arith.constant 0 : index
    %78 = vector.load %arg3[%c8, %c0_62, %c0_63] : memref<9x8x128xbf16, #tpu.memory_space<vmem>>, vector<1x8x128xbf16>
    %79 = vector.shape_cast %78 : vector<1x8x128xbf16> to vector<8x128xbf16>
    %cst_64 = arith.constant dense<0.000000e+00> : vector<256x128xf32>
    %80 = tpu.matmul %77, %79, %cst_64 {dimension_numbers = #tpu.dot_dimension_numbers<[1], [0], [0], [1], [0, 0, 1, 1], [], []>} : vector<256x8xbf16>, vector<8x128xbf16>, vector<256x128xf32> -> vector<256x128xf32>
    %c0_65 = arith.constant 0 : index
    %c0_66 = arith.constant 0 : index
    %81 = vector.load %arg6[%c0_65, %c0_66] : memref<256x128xf32, #tpu.memory_space<vmem>>, vector<256x128xf32>
    %82 = arith.addf %81, %80 : vector<256x128xf32>
    %c0_67 = arith.constant 0 : index
    %c0_68 = arith.constant 0 : index
    %83 = vector.load %arg6[%c0_67, %c0_68] : memref<256x128xf32, #tpu.memory_space<vmem>>, vector<256x128xf32>
    tpu.vector_store %arg6[%c0_67, %c0_68], %82 {strides = array<i32>} : memref<256x128xf32, #tpu.memory_space<vmem>>, vector<256x128xf32>,
    %c0_69 = arith.constant 0 : index
    %c0_70 = arith.constant 0 : index
    %84 = vector.load %arg6[%c0_69, %c0_70] : memref<256x128xf32, #tpu.memory_space<vmem>>, vector<256x128xf32>
    %c0_71 = arith.constant 0 : index
    %c0_72 = arith.constant 0 : index
    %85 = vector.load %arg4[%c0_71, %c0_72] : memref<1x128xf32, #tpu.memory_space<vmem>>, vector<1x128xf32>
    %86 = vector.broadcast %85 : vector<1x128xf32> to vector<256x128xf32>
    %87 = arith.addf %84, %86 : vector<256x128xf32>
    %88 = arith.negf %87 : vector<256x128xf32>
    %89 = math.exp %88 : vector<256x128xf32>
    %cst_73 = arith.constant 1.000000e+00 : f32
    %90 = vector.broadcast %cst_73 : f32 to vector<256x128xf32>
    %91 = arith.addf %90, %89 : vector<256x128xf32>
    %92 = arith.divf %90, %91 : vector<256x128xf32>
    %93 = arith.mulf %87, %92 : vector<256x128xf32>
    %94 = arith.truncf %93 : vector<256x128xf32> to vector<256x128xbf16>
    %c0_74 = arith.constant 0 : index
    %c0_75 = arith.constant 0 : index
    %c0_76 = arith.constant 0 : index
    %c0_77 = arith.constant 0 : index
    %95 = vector.load %arg5[%c0_74, %c0_75, %c0_76, %c0_77] : memref<1x1x256x128xbf16, #tpu.memory_space<vmem>>, vector<1x1x256x128xbf16>
    %96 = vector.shape_cast %95 : vector<1x1x256x128xbf16> to vector<256x128xbf16>
    %97 = vector.shape_cast %94 : vector<256x128xbf16> to vector<1x1x256x128xbf16>
    tpu.vector_store %arg5[%c0_74, %c0_75, %c0_76, %c0_77], %97 {strides = array<i32>} : memref<1x1x256x128xbf16, #tpu.memory_space<vmem>>, vector<1x1x256x128xbf16>,
    return
  }
  func.func @transform_0(%arg0: i32, %arg1: i32) -> (i32, i32, i32, i32) {
    %c0_i32 = arith.constant 0 : i32
    %c0_i32_0 = arith.constant 0 : i32
    %c0_i32_1 = arith.constant 0 : i32
    %c0_i32_2 = arith.constant 0 : i32
    return %arg0, %c0_i32, %c0_i32_0, %c0_i32_1 : i32, i32, i32, i32
  }
  func.func @transform_1(%arg0: i32, %arg1: i32) -> (i32, i32, i32) {
    %c0_i32 = arith.constant 0 : i32
    %c0_i32_0 = arith.constant 0 : i32
    %c0_i32_1 = arith.constant 0 : i32
    %c0_i32_2 = arith.constant 0 : i32
    return %c0_i32, %c0_i32_0, %c0_i32_1 : i32, i32, i32
  }
  func.func @transform_2(%arg0: i32, %arg1: i32) -> (i32, i32) {
    %c0_i32 = arith.constant 0 : i32
    %c0_i32_0 = arith.constant 0 : i32
    %c0_i32_1 = arith.constant 0 : i32
    return %c0_i32, %c0_i32_0 : i32, i32
  }
  func.func @transform_3(%arg0: i32, %arg1: i32) -> (i32, i32, i32, i32) {
    %c0_i32 = arith.constant 0 : i32
    %c0_i32_0 = arith.constant 0 : i32
    %c0_i32_1 = arith.constant 0 : i32
    return %arg0, %arg1, %c0_i32, %c0_i32_0 : i32, i32, i32, i32
  }
}

module attributes {stable_mosaic.version = 11 : i64} {
  func.func @kernel(%arg0: i32, %arg1: i32, %arg2: memref<1x18x18x8xbf16, #tpu.memory_space<vmem>>, %arg3: memref<9x8x128xbf16, #tpu.memory_space<vmem>>, %arg4: memref<1x128xf32, #tpu.memory_space<vmem>>, %arg5: memref<1x1x256x128xbf16, #tpu.memory_space<vmem>>, %arg6: memref<256x128xf32, #tpu.memory_space<vmem>>) attributes {dimension_semantics = [#tpu.dimension_semantics<parallel>, #tpu.dimension_semantics<parallel>], iteration_bounds = array<i64: 2, 1>, scalar_prefetch = 0 : i64, scratch_operands = 1 : i64, tpu.core_type = #tpu.core_type<tc>, window_params = [{transform_indices = @transform_0, window_bounds = array<i64: 1, 18, 18, 8>}, {pipeline_mode = #tpu.pipeline_mode<synchronous>, transform_indices = @transform_1, window_bounds = array<i64: 9, 8, 128>}, {pipeline_mode = #tpu.pipeline_mode<synchronous>, transform_indices = @transform_2, window_bounds = array<i64: 1, 128>}, {transform_indices = @transform_3, window_bounds = array<i64: 1, 1, 256, 128>}]} {
    %c16_i32 = arith.constant 16 : i32
    %0 = arith.muli %arg1, %c16_i32 : i32
    %1 = tpu.assume_multiple %0, 8 : i32
    %c0_i32 = arith.constant 0 : i32
    %2 = arith.addi %1, %c0_i32 : i32
    %c0 = arith.constant 0 : index
    %3 = arith.index_cast %2 : i32 to index
    %c0_0 = arith.constant 0 : index
    %c0_1 = arith.constant 0 : index
    %4 = vector.load %arg2[%c0, %3, %c0_0, %c0_1] : memref<1x18x18x8xbf16, #tpu.memory_space<vmem>>, vector<1x16x18x8xbf16>
    %5 = vector.shape_cast %4 : vector<1x16x18x8xbf16> to vector<16x18x8xbf16>
    %6 = vector.extract_strided_slice %5 {offsets = [0, 0, 0], sizes = [16, 16, 8], strides = [1, 1, 1]} : vector<16x18x8xbf16> to vector<16x16x8xbf16>
    %7 = vector.shape_cast %6 : vector<16x16x8xbf16> to vector<256x8xbf16>
    %c0_2 = arith.constant 0 : index
    %c0_3 = arith.constant 0 : index
    %c0_4 = arith.constant 0 : index
    %8 = vector.load %arg3[%c0_2, %c0_3, %c0_4] : memref<9x8x128xbf16, #tpu.memory_space<vmem>>, vector<1x8x128xbf16>
    %9 = vector.shape_cast %8 : vector<1x8x128xbf16> to vector<8x128xbf16>
    %cst = arith.constant dense<0.000000e+00> : vector<256x128xf32>
    %10 = tpu.matmul %7, %9, %cst {dimension_numbers = #tpu.dot_dimension_numbers<[1], [0], [0], [1], [0, 0, 1, 1], [], []>} : vector<256x8xbf16>, vector<8x128xbf16>, vector<256x128xf32> -> vector<256x128xf32>
    %c0_5 = arith.constant 0 : index
    %c0_6 = arith.constant 0 : index
    %11 = vector.load %arg6[%c0_5, %c0_6] : memref<256x128xf32, #tpu.memory_space<vmem>>, vector<256x128xf32>
    tpu.vector_store %arg6[%c0_5, %c0_6], %10 {strides = array<i32>} : memref<256x128xf32, #tpu.memory_space<vmem>>, vector<256x128xf32>,
    %12 = vector.extract_strided_slice %5 {offsets = [0, 1, 0], sizes = [16, 16, 8], strides = [1, 1, 1]} : vector<16x18x8xbf16> to vector<16x16x8xbf16>
    %13 = vector.shape_cast %12 : vector<16x16x8xbf16> to vector<256x8xbf16>
    %c1 = arith.constant 1 : index
    %c0_7 = arith.constant 0 : index
    %c0_8 = arith.constant 0 : index
    %14 = vector.load %arg3[%c1, %c0_7, %c0_8] : memref<9x8x128xbf16, #tpu.memory_space<vmem>>, vector<1x8x128xbf16>
    %15 = vector.shape_cast %14 : vector<1x8x128xbf16> to vector<8x128xbf16>
    %cst_9 = arith.constant dense<0.000000e+00> : vector<256x128xf32>
    %16 = tpu.matmul %13, %15, %cst_9 {dimension_numbers = #tpu.dot_dimension_numbers<[1], [0], [0], [1], [0, 0, 1, 1], [], []>} : vector<256x8xbf16>, vector<8x128xbf16>, vector<256x128xf32> -> vector<256x128xf32>
    %c0_10 = arith.constant 0 : index
    %c0_11 = arith.constant 0 : index
    %17 = vector.load %arg6[%c0_10, %c0_11] : memref<256x128xf32, #tpu.memory_space<vmem>>, vector<256x128xf32>
    %18 = arith.addf %17, %16 : vector<256x128xf32>
    %c0_12 = arith.constant 0 : index
    %c0_13 = arith.constant 0 : index
    %19 = vector.load %arg6[%c0_12, %c0_13] : memref<256x128xf32, #tpu.memory_space<vmem>>, vector<256x128xf32>
    tpu.vector_store %arg6[%c0_12, %c0_13], %18 {strides = array<i32>} : memref<256x128xf32, #tpu.memory_space<vmem>>, vector<256x128xf32>,
    %20 = vector.extract_strided_slice %5 {offsets = [0, 2, 0], sizes = [16, 16, 8], strides = [1, 1, 1]} : vector<16x18x8xbf16> to vector<16x16x8xbf16>
    %21 = vector.shape_cast %20 : vector<16x16x8xbf16> to vector<256x8xbf16>
    %c2 = arith.constant 2 : index
    %c0_14 = arith.constant 0 : index
    %c0_15 = arith.constant 0 : index
    %22 = vector.load %arg3[%c2, %c0_14, %c0_15] : memref<9x8x128xbf16, #tpu.memory_space<vmem>>, vector<1x8x128xbf16>
    %23 = vector.shape_cast %22 : vector<1x8x128xbf16> to vector<8x128xbf16>
    %cst_16 = arith.constant dense<0.000000e+00> : vector<256x128xf32>
    %24 = tpu.matmul %21, %23, %cst_16 {dimension_numbers = #tpu.dot_dimension_numbers<[1], [0], [0], [1], [0, 0, 1, 1], [], []>} : vector<256x8xbf16>, vector<8x128xbf16>, vector<256x128xf32> -> vector<256x128xf32>
    %c0_17 = arith.constant 0 : index
    %c0_18 = arith.constant 0 : index
    %25 = vector.load %arg6[%c0_17, %c0_18] : memref<256x128xf32, #tpu.memory_space<vmem>>, vector<256x128xf32>
    %26 = arith.addf %25, %24 : vector<256x128xf32>
    %c0_19 = arith.constant 0 : index
    %c0_20 = arith.constant 0 : index
    %27 = vector.load %arg6[%c0_19, %c0_20] : memref<256x128xf32, #tpu.memory_space<vmem>>, vector<256x128xf32>
    tpu.vector_store %arg6[%c0_19, %c0_20], %26 {strides = array<i32>} : memref<256x128xf32, #tpu.memory_space<vmem>>, vector<256x128xf32>,
    %c1_i32 = arith.constant 1 : i32
    %28 = arith.addi %1, %c1_i32 : i32
    %c0_21 = arith.constant 0 : index
    %29 = arith.index_cast %28 : i32 to index
    %c0_22 = arith.constant 0 : index
    %c0_23 = arith.constant 0 : index
    %30 = vector.load %arg2[%c0_21, %29, %c0_22, %c0_23] : memref<1x18x18x8xbf16, #tpu.memory_space<vmem>>, vector<1x16x18x8xbf16>
    %31 = vector.shape_cast %30 : vector<1x16x18x8xbf16> to vector<16x18x8xbf16>
    %32 = vector.extract_strided_slice %31 {offsets = [0, 0, 0], sizes = [16, 16, 8], strides = [1, 1, 1]} : vector<16x18x8xbf16> to vector<16x16x8xbf16>
    %33 = vector.shape_cast %32 : vector<16x16x8xbf16> to vector<256x8xbf16>
    %c3 = arith.constant 3 : index
    %c0_24 = arith.constant 0 : index
    %c0_25 = arith.constant 0 : index
    %34 = vector.load %arg3[%c3, %c0_24, %c0_25] : memref<9x8x128xbf16, #tpu.memory_space<vmem>>, vector<1x8x128xbf16>
    %35 = vector.shape_cast %34 : vector<1x8x128xbf16> to vector<8x128xbf16>
    %cst_26 = arith.constant dense<0.000000e+00> : vector<256x128xf32>
    %36 = tpu.matmul %33, %35, %cst_26 {dimension_numbers = #tpu.dot_dimension_numbers<[1], [0], [0], [1], [0, 0, 1, 1], [], []>} : vector<256x8xbf16>, vector<8x128xbf16>, vector<256x128xf32> -> vector<256x128xf32>
    %c0_27 = arith.constant 0 : index
    %c0_28 = arith.constant 0 : index
    %37 = vector.load %arg6[%c0_27, %c0_28] : memref<256x128xf32, #tpu.memory_space<vmem>>, vector<256x128xf32>
    %38 = arith.addf %37, %36 : vector<256x128xf32>
    %c0_29 = arith.constant 0 : index
    %c0_30 = arith.constant 0 : index
    %39 = vector.load %arg6[%c0_29, %c0_30] : memref<256x128xf32, #tpu.memory_space<vmem>>, vector<256x128xf32>
    tpu.vector_store %arg6[%c0_29, %c0_30], %38 {strides = array<i32>} : memref<256x128xf32, #tpu.memory_space<vmem>>, vector<256x128xf32>,
    %40 = vector.extract_strided_slice %31 {offsets = [0, 1, 0], sizes = [16, 16, 8], strides = [1, 1, 1]} : vector<16x18x8xbf16> to vector<16x16x8xbf16>
    %41 = vector.shape_cast %40 : vector<16x16x8xbf16> to vector<256x8xbf16>
    %c4 = arith.constant 4 : index
    %c0_31 = arith.constant 0 : index
    %c0_32 = arith.constant 0 : index
    %42 = vector.load %arg3[%c4, %c0_31, %c0_32] : memref<9x8x128xbf16, #tpu.memory_space<vmem>>, vector<1x8x128xbf16>
    %43 = vector.shape_cast %42 : vector<1x8x128xbf16> to vector<8x128xbf16>
    %cst_33 = arith.constant dense<0.000000e+00> : vector<256x128xf32>
    %44 = tpu.matmul %41, %43, %cst_33 {dimension_numbers = #tpu.dot_dimension_numbers<[1], [0], [0], [1], [0, 0, 1, 1], [], []>} : vector<256x8xbf16>, vector<8x128xbf16>, vector<256x128xf32> -> vector<256x128xf32>
    %c0_34 = arith.constant 0 : index
    %c0_35 = arith.constant 0 : index
    %45 = vector.load %arg6[%c0_34, %c0_35] : memref<256x128xf32, #tpu.memory_space<vmem>>, vector<256x128xf32>
    %46 = arith.addf %45, %44 : vector<256x128xf32>
    %c0_36 = arith.constant 0 : index
    %c0_37 = arith.constant 0 : index
    %47 = vector.load %arg6[%c0_36, %c0_37] : memref<256x128xf32, #tpu.memory_space<vmem>>, vector<256x128xf32>
    tpu.vector_store %arg6[%c0_36, %c0_37], %46 {strides = array<i32>} : memref<256x128xf32, #tpu.memory_space<vmem>>, vector<256x128xf32>,
    %48 = vector.extract_strided_slice %31 {offsets = [0, 2, 0], sizes = [16, 16, 8], strides = [1, 1, 1]} : vector<16x18x8xbf16> to vector<16x16x8xbf16>
    %49 = vector.shape_cast %48 : vector<16x16x8xbf16> to vector<256x8xbf16>
    %c5 = arith.constant 5 : index
    %c0_38 = arith.constant 0 : index
    %c0_39 = arith.constant 0 : index
    %50 = vector.load %arg3[%c5, %c0_38, %c0_39] : memref<9x8x128xbf16, #tpu.memory_space<vmem>>, vector<1x8x128xbf16>
    %51 = vector.shape_cast %50 : vector<1x8x128xbf16> to vector<8x128xbf16>
    %cst_40 = arith.constant dense<0.000000e+00> : vector<256x128xf32>
    %52 = tpu.matmul %49, %51, %cst_40 {dimension_numbers = #tpu.dot_dimension_numbers<[1], [0], [0], [1], [0, 0, 1, 1], [], []>} : vector<256x8xbf16>, vector<8x128xbf16>, vector<256x128xf32> -> vector<256x128xf32>
    %c0_41 = arith.constant 0 : index
    %c0_42 = arith.constant 0 : index
    %53 = vector.load %arg6[%c0_41, %c0_42] : memref<256x128xf32, #tpu.memory_space<vmem>>, vector<256x128xf32>
    %54 = arith.addf %53, %52 : vector<256x128xf32>
    %c0_43 = arith.constant 0 : index
    %c0_44 = arith.constant 0 : index
    %55 = vector.load %arg6[%c0_43, %c0_44] : memref<256x128xf32, #tpu.memory_space<vmem>>, vector<256x128xf32>
    tpu.vector_store %arg6[%c0_43, %c0_44], %54 {strides = array<i32>} : memref<256x128xf32, #tpu.memory_space<vmem>>, vector<256x128xf32>,
    %c2_i32 = arith.constant 2 : i32
    %56 = arith.addi %1, %c2_i32 : i32
    %c0_45 = arith.constant 0 : index
    %57 = arith.index_cast %56 : i32 to index
    %c0_46 = arith.constant 0 : index
    %c0_47 = arith.constant 0 : index
    %58 = vector.load %arg2[%c0_45, %57, %c0_46, %c0_47] : memref<1x18x18x8xbf16, #tpu.memory_space<vmem>>, vector<1x16x18x8xbf16>
    %59 = vector.shape_cast %58 : vector<1x16x18x8xbf16> to vector<16x18x8xbf16>
    %60 = vector.extract_strided_slice %59 {offsets = [0, 0, 0], sizes = [16, 16, 8], strides = [1, 1, 1]} : vector<16x18x8xbf16> to vector<16x16x8xbf16>
    %61 = vector.shape_cast %60 : vector<16x16x8xbf16> to vector<256x8xbf16>
    %c6 = arith.constant 6 : index
    %c0_48 = arith.constant 0 : index
    %c0_49 = arith.constant 0 : index
    %62 = vector.load %arg3[%c6, %c0_48, %c0_49] : memref<9x8x128xbf16, #tpu.memory_space<vmem>>, vector<1x8x128xbf16>
    %63 = vector.shape_cast %62 : vector<1x8x128xbf16> to vector<8x128xbf16>
    %cst_50 = arith.constant dense<0.000000e+00> : vector<256x128xf32>
    %64 = tpu.matmul %61, %63, %cst_50 {dimension_numbers = #tpu.dot_dimension_numbers<[1], [0], [0], [1], [0, 0, 1, 1], [], []>} : vector<256x8xbf16>, vector<8x128xbf16>, vector<256x128xf32> -> vector<256x128xf32>
    %c0_51 = arith.constant 0 : index
    %c0_52 = arith.constant 0 : index
    %65 = vector.load %arg6[%c0_51, %c0_52] : memref<256x128xf32, #tpu.memory_space<vmem>>, vector<256x128xf32>
    %66 = arith.addf %65, %64 : vector<256x128xf32>
    %c0_53 = arith.constant 0 : index
    %c0_54 = arith.constant 0 : index
    %67 = vector.load %arg6[%c0_53, %c0_54] : memref<256x128xf32, #tpu.memory_space<vmem>>, vector<256x128xf32>
    tpu.vector_store %arg6[%c0_53, %c0_54], %66 {strides = array<i32>} : memref<256x128xf32, #tpu.memory_space<vmem>>, vector<256x128xf32>,
    %68 = vector.extract_strided_slice %59 {offsets = [0, 1, 0], sizes = [16, 16, 8], strides = [1, 1, 1]} : vector<16x18x8xbf16> to vector<16x16x8xbf16>
    %69 = vector.shape_cast %68 : vector<16x16x8xbf16> to vector<256x8xbf16>
    %c7 = arith.constant 7 : index
    %c0_55 = arith.constant 0 : index
    %c0_56 = arith.constant 0 : index
    %70 = vector.load %arg3[%c7, %c0_55, %c0_56] : memref<9x8x128xbf16, #tpu.memory_space<vmem>>, vector<1x8x128xbf16>
    %71 = vector.shape_cast %70 : vector<1x8x128xbf16> to vector<8x128xbf16>
    %cst_57 = arith.constant dense<0.000000e+00> : vector<256x128xf32>
    %72 = tpu.matmul %69, %71, %cst_57 {dimension_numbers = #tpu.dot_dimension_numbers<[1], [0], [0], [1], [0, 0, 1, 1], [], []>} : vector<256x8xbf16>, vector<8x128xbf16>, vector<256x128xf32> -> vector<256x128xf32>
    %c0_58 = arith.constant 0 : index
    %c0_59 = arith.constant 0 : index
    %73 = vector.load %arg6[%c0_58, %c0_59] : memref<256x128xf32, #tpu.memory_space<vmem>>, vector<256x128xf32>
    %74 = arith.addf %73, %72 : vector<256x128xf32>
    %c0_60 = arith.constant 0 : index
    %c0_61 = arith.constant 0 : index
    %75 = vector.load %arg6[%c0_60, %c0_61] : memref<256x128xf32, #tpu.memory_space<vmem>>, vector<256x128xf32>
    tpu.vector_store %arg6[%c0_60, %c0_61], %74 {strides = array<i32>} : memref<256x128xf32, #tpu.memory_space<vmem>>, vector<256x128xf32>,
    %76 = vector.extract_strided_slice %59 {offsets = [0, 2, 0], sizes = [16, 16, 8], strides = [1, 1, 1]} : vector<16x18x8xbf16> to vector<16x16x8xbf16>
    %77 = vector.shape_cast %76 : vector<16x16x8xbf16> to vector<256x8xbf16>
    %c8 = arith.constant 8 : index
    %c0_62 = arith.constant 0 : index
    %c0_63 = arith.constant 0 : index
    %78 = vector.load %arg3[%c8, %c0_62, %c0_63] : memref<9x8x128xbf16, #tpu.memory_space<vmem>>, vector<1x8x128xbf16>
    %79 = vector.shape_cast %78 : vector<1x8x128xbf16> to vector<8x128xbf16>
    %cst_64 = arith.constant dense<0.000000e+00> : vector<256x128xf32>
    %80 = tpu.matmul %77, %79, %cst_64 {dimension_numbers = #tpu.dot_dimension_numbers<[1], [0], [0], [1], [0, 0, 1, 1], [], []>} : vector<256x8xbf16>, vector<8x128xbf16>, vector<256x128xf32> -> vector<256x128xf32>
    %c0_65 = arith.constant 0 : index
    %c0_66 = arith.constant 0 : index
    %81 = vector.load %arg6[%c0_65, %c0_66] : memref<256x128xf32, #tpu.memory_space<vmem>>, vector<256x128xf32>
    %82 = arith.addf %81, %80 : vector<256x128xf32>
    %c0_67 = arith.constant 0 : index
    %c0_68 = arith.constant 0 : index
    %83 = vector.load %arg6[%c0_67, %c0_68] : memref<256x128xf32, #tpu.memory_space<vmem>>, vector<256x128xf32>
    tpu.vector_store %arg6[%c0_67, %c0_68], %82 {strides = array<i32>} : memref<256x128xf32, #tpu.memory_space<vmem>>, vector<256x128xf32>,
    %c0_69 = arith.constant 0 : index
    %c0_70 = arith.constant 0 : index
    %84 = vector.load %arg6[%c0_69, %c0_70] : memref<256x128xf32, #tpu.memory_space<vmem>>, vector<256x128xf32>
    %c0_71 = arith.constant 0 : index
    %c0_72 = arith.constant 0 : index
    %85 = vector.load %arg4[%c0_71, %c0_72] : memref<1x128xf32, #tpu.memory_space<vmem>>, vector<1x128xf32>
    %86 = vector.broadcast %85 : vector<1x128xf32> to vector<256x128xf32>
    %87 = arith.addf %84, %86 : vector<256x128xf32>
    %88 = arith.negf %87 : vector<256x128xf32>
    %89 = math.exp %88 : vector<256x128xf32>
    %cst_73 = arith.constant 1.000000e+00 : f32
    %90 = vector.broadcast %cst_73 : f32 to vector<256x128xf32>
    %91 = arith.addf %90, %89 : vector<256x128xf32>
    %92 = arith.divf %90, %91 : vector<256x128xf32>
    %93 = arith.mulf %87, %92 : vector<256x128xf32>
    %94 = arith.truncf %93 : vector<256x128xf32> to vector<256x128xbf16>
    %c0_74 = arith.constant 0 : index
    %c0_75 = arith.constant 0 : index
    %c0_76 = arith.constant 0 : index
    %c0_77 = arith.constant 0 : index
    %95 = vector.load %arg5[%c0_74, %c0_75, %c0_76, %c0_77] : memref<1x1x256x128xbf16, #tpu.memory_space<vmem>>, vector<1x1x256x128xbf16>
    %96 = vector.shape_cast %95 : vector<1x1x256x128xbf16> to vector<256x128xbf16>
    %97 = vector.shape_cast %94 : vector<256x128xbf16> to vector<1x1x256x128xbf16>
    tpu.vector_store %arg5[%c0_74, %c0_75, %c0_76, %c0_77], %97 {strides = array<i32>} : memref<1x1x256x128xbf16, #tpu.memory_space<vmem>>, vector<1x1x256x128xbf16>,
    return
  }
  func.func @transform_0(%arg0: i32, %arg1: i32) -> (i32, i32, i32, i32) {
    %c0_i32 = arith.constant 0 : i32
    %c0_i32_0 = arith.constant 0 : i32
    %c0_i32_1 = arith.constant 0 : i32
    %c0_i32_2 = arith.constant 0 : i32
    return %arg0, %c0_i32, %c0_i32_0, %c0_i32_1 : i32, i32, i32, i32
  }
  func.func @transform_1(%arg0: i32, %arg1: i32) -> (i32, i32, i32) {
    %c0_i32 = arith.constant 0 : i32
    %c0_i32_0 = arith.constant 0 : i32
    %c0_i32_1 = arith.constant 0 : i32
    %c0_i32_2 = arith.constant 0 : i32
    return %c0_i32, %c0_i32_0, %c0_i32_1 : i32, i32, i32
  }
  func.func @transform_2(%arg0: i32, %arg1: i32) -> (i32, i32) {
    %c0_i32 = arith.constant 0 : i32
    %c0_i32_0 = arith.constant 0 : i32
    %c0_i32_1 = arith.constant 0 : i32
    return %c0_i32, %c0_i32_0 : i32, i32
  }
  func.func @transform_3(%arg0: i32, %arg1: i32) -> (i32, i32, i32, i32) {
    %c0_i32 = arith.constant 0 : i32
    %c0_i32_0 = arith.constant 0 : i32
    %c0_i32_1 = arith.constant 0 : i32
    return %arg0, %arg1, %c0_i32, %c0_i32_0 : i32, i32, i32, i32
  }
}

</mosaic_0001>

<bundles_post_ra>
// kernel: tpu_custom_call.1
= control target key start
LH: loop header
LB: loop body
LE: loop exit
PB: predicated region body
PF: predicated region fallthrough
CT: control target
= control target key end

     0   :  { %8 = vsyncpa [#allocation4], 0  ;;  %s9711_s0 = inlined_call_operand.vmem [shape: bf16[2,18,18,8], index: 0, kind: input, shape index: {}]   ;;  %s9712_s1 = inlined_call_operand.vmem [shape: bf16[9,8,128], index: 1, kind: input, shape index: {}]   ;;  %s9713_s2 = inlined_call_operand.vmem [shape: f32[1,128], index: 2, kind: input, shape index: {}]   ;;  %s9714_s3 = inlined_call_operand.hbm [shape: bf16[2,1,256,128], index: 3, kind: output, shape index: {}]  }
   0x1   :  { %10 = vsyncpa [#allocation4 + $0x1], 0  ;;  %s7142_s12 = smov 0   ;;  %s7144_s13 = smov 0  }
   0x2   :  { %s7146_s14 = smov 0   ;;  %s7148_s15 = smov 0  }
   0x3   :  { %s7150_s16 = smov 0   ;;  %s7152_s17 = smov 0  }
   0x4 LB: > { %s5691_s18 = sadd.s32 4294967295, %s7117_s17   ;;  %s5692_s19 = sadd.s32 4294967294, %s7117_s17   ;;  %s7117_s17 = sphi %s7152_s17, %s16_s17   ;;  %s7113_s16 = sphi %s7150_s16, %s10015_s16   ;;  %s7109_s15 = sphi %s7148_s15, %s10014_s15   ;;  %s7105_s14 = sphi %s7146_s14, %s10013_s14   ;;  %s7101_s13 = sphi %s7144_s13, %s10012_s13   ;;  %s7097_s12 = sphi %s7142_s12, %s10011_s12  }
   0x5   : > { %s28_s20 = sadd.s32 1, %s7113_s16  ;;  %s105_s21 = sadd.s32 1, %s7105_s14 }
   0x6   : > { %p30_p0 = scmp.ge.s32.totalorder %s28_s20, 2  ;;  %p115_p1 = scmp.ne.s32.totalorder %s7105_s14, %s7101_s13 }
   0x7   : > { %p116_p2 = scmp.eq.s32.totalorder %s5691_s18, 1  ;;  %p121_p3 = scmp.ne.s32.totalorder %s7101_s13, %s7097_s12 }
   0x8   : > { %s10017_s20 = smov (%p30_p0, %s28_s20), 0  ;;  %p122_p5 = scmp.eq.s32.totalorder %s5692_s19, 1 }
   0x9   : > { %p7182_p4 = por %p116_p2, %p115_p1  ;;  %s100_s23 = ssub.s32 %s7113_s16, %s10017_s20 }
   0xa   : > { %p5695_p6 = scmp.ge.s32.totalorder %s7117_s17, 1  ;;  %p103_p7 = scmp.eq.s32.totalorder %s100_s23, 0 }
   0xb   : > { %p7189_p8 = por %p122_p5, %p121_p3  ;;  %p154_p9 = scmp.lt.s32.totalorder %s7117_s17, 3 }
   0xc   : > { %s7195_s25 = scalar_select %p103_p7, %s7105_s14, %s105_s21  }
   0xd   : > { %p155_p10 = pnand %p5695_p6, %p154_p9 }
   0xf   : > { %158 = sbr.rel (%p155_p10) target bundleno = 613 (0x265), region = 32 }
  0x14   : > { %v236_v0 = vld [vmem:[%s9712_s1] sm:$0xf]  ;;  %vm366_vm0 = vcmask 1043456   ;;  %p178_p11 = scmp.lt.s32.totalorder %s7109_s15, 1  ;;  %v5730_v2 = vld [vmem:[%s9712_s1 + $0x4] sm:$0xf] }
  0x15   : > { %6798 = vmatprep.subr.msk.bf16.mxu1 %vm366_vm0, %v236_v0  ;;  %6797 = vmatprep.subr.msk.bf16.mxu0 %vm366_vm0, %v236_v0  ;;  %v368_v1 = vsel %vm366_vm0, %v236_v0, 0  ;;  %v5779_v3 = vld [vmem:[%s9712_s1 + $0x8] sm:$0xf]  ;;  %v7216_v4 = vld [vmem:[%s9712_s1 + $0xc] sm:$0xf]  ;;  %vm317_vm1 = vcmask 64512  }
  0x16   : > { %6796 = vmatpush3.bf16.msra.mxu1 %v368_v1  ;;  %6490 = vmatpush3.bf16.msra.mxu0 %v368_v1  ;;  %s179_s5 = scalar_select %p178_p11, %s7109_s15, 1  ;;  %v7221_v5 = vld [vmem:[%s9712_s1 + $0x10] sm:$0xf]  ;;  %v7226_v6 = vld [vmem:[%s9712_s1 + $0x14] sm:$0xf]  ;;  %v7229_v7 = vsel %vm366_vm0, %v5730_v2, 0 }
  0x17   : > { %6799 = vmatprep.subr.msk.bf16.mxu1 %vm366_vm0, %v5730_v2  ;;  %6800 = vmatprep.subr.msk.bf16.mxu0 %vm366_vm0, %v5779_v3  ;;  %v7232_v8 = vsel %vm366_vm0, %v5779_v3, 0  ;;  %v7237_v9 = vld [vmem:[%s9712_s1 + $0x18] sm:$0xf]  ;;  %v7246_v10 = vsel %vm366_vm0, %v7216_v4, 0  ;;  %v7250_v11 = vsel %vm366_vm0, %v7221_v5, 0  ;;  %v7254_v12 = vsel %vm366_vm0, %v7226_v6, 0 }
  0x18   : > { %s6807_s10 = smul.u32 216, %s179_s5  ;;  %9767 = vst [vmem:[#allocation6_spill] sm:$0xff] %v7254_v12  ;;  %v7258_v13 = vsel %vm366_vm0, %v7237_v9, 0  ;;  %vm1324_vm2 = vcmask 1042432   ;;  %vm1325_vm3 = vcmask 1046532   ;;  %s175_s7 = sand.u32 1, %s7101_s13  }
  0x19   : > { %9768 = vst [vmem:[#allocation7_spill] sm:$0xff] %v7258_v13  ;;  %vm563_vm4 = vsmask.f32 3328  ;;  %vm564_vm5 = vsmask.f32 7440  ;;  %vm7428_vm6 = vmor %vm1324_vm2, %vm1325_vm3  ;;  %s9523_s8 = sshll.u32 %s175_s7, 7 }
  0x1a   : > { %s7242_s27 = scalar_lea.vmem %s9711_s0, %s6807_s10  ;;  %vm7442_vm7 = vmor %vm563_vm4, %vm564_vm5  ;;  %s9540_s9 = scalar_lea.vmem [#allocation3], %s9523_s8 }
  0x1b   : > { %v7261_v14 = vld [vmem:[%s7242_s27] sm:$0xf]  ;;  %v7264_v15 = vld [vmem:[%s7242_s27 + $0x4] sm:$0xf]  ;;  %v7287_v30 = vld [vmem:[%s7242_s27 + $0xc] sm:$0xf] }
  0x1c   : > { %v7267_v16 = vld [vmem:[%s7242_s27 + $0x60] sm:$0xf]  ;;  %v5698_v17 = vcombine.low %v7261_v14, %v7264_v15  ;;  %v567_v18 = vshrl.u32 %v7261_v14, 16  ;;  %v570_v19 = vshll.u32 %v7261_v14, 16  ;;  %v576_v20 = vshll.u32 %v7264_v15, 16  ;;  %s6240_s10 = sshll.u32 %s7109_s15, 11 }
  0x1d   : > { %v7275_v21 = vld [vmem:[%s7242_s27 + $0x64] sm:$0xf]  ;;  %v580_v22 = vshrl.u32 %v7264_v15, 16  ;;  %v5763_v23 = vrot.slane %v7261_v14, 9  ;;  %v1329_v24 = vrot.slane %v7264_v15, 5  ;;  %v759_v29 = vshrl.u32 %v7267_v16, 16  ;;  %s9658_s21 = scalar_lea.hbm %s9714_s3, %s6240_s10 }
  0x1e   : > { %v5706_v25 = vcombine.low %v7267_v16, %v7275_v21  ;;  %6491 = vmatprep.mubr.msk.bf16.mxu0 %vm317_vm1, %v5698_v17  ;;  %v569_v26 = vrot.slane %v567_v18, 4  ;;  %v572_v27 = vrot.slane %v570_v19, 5  ;;  %v7283_v28 = vrot.slane %v576_v20, 5  ;;  %v7297_v35 = vld [vmem:[%s7242_s27 + $0x10] sm:$0xf]  ;;  %s5608_s11 = sshll.u32 %s9540_s9, 4  ;;  %s9660_s11 = int_to_ptr.vmem [resolvable:$true] %s5608_s11 }
  0x1f   : > { %v582_v31 = vrot.slane %v580_v22, 4  ;;  %v7291_v32 = vrot.slane %v1329_v24, 4  ;;  %v762_v33 = vshll.u32 %v7267_v16, 16  ;;  %v768_v34 = vshll.u32 %v7275_v21, 16  ;;  %v7306_v44 = vld [vmem:[%s7242_s27 + $0x6c] sm:$0xf] }
  0x20   : > { %6507 = vmatprep.mubr.msk.bf16.mxu1 %vm317_vm1, %v5706_v25  ;;  %v573_v36 = vor.u32 %v572_v27, %v569_v26  ;;  %v761_v37 = vrot.slane %v759_v29, 4  ;;  %v772_v38 = vshrl.u32 %v7275_v21, 16  ;;  %v5771_v39 = vrot.slane %v7267_v16, 9  ;;  %v7314_v49 = vld [vmem:[%s7242_s27 + $0x70] sm:$0xf]  ;;  %s9666_s15 = scalar_lea.sflag [#allocation4], %s175_s7 }
  0x21   : > { %v583_v40 = vor.u32 %v582_v31, %v7283_v28  ;;  %v764_v41 = vrot.slane %v762_v33, 5  ;;  %v7302_v42 = vrot.slane %v768_v34, 5  ;;  %v1385_v43 = vrot.slane %v7275_v21, 5  ;;  %v7324_v54 = vld [vmem:[%s7242_s27 + $0x18] sm:$0xf]  ;;  %s7041_s23 = scalar_lea.vmem %s9660_s11, 2048 }
  0x22   : > { %v7308_v45 = vrot.slane %v573_v36, 4  ;;  %v774_v46 = vrot.slane %v772_v38, 4  ;;  %v5699_v47 = vcombine.low %v7287_v30, %v7297_v35  ;;  %v591_v48 = vshrl.u32 %v7287_v30, 16  ;;  %v7327_v55 = vld [vmem:[%s7242_s27 + $0x1c] sm:$0xf]  ;;  %p7042_p12 = scmp.ne.s32.totalorder %s9660_s11, %s7041_s23  ;;  %s7119_s26 = smov [#allocation3]  }
  0x23   : > { %v7316_v50 = vrot.slane %v583_v40, 4  ;;  %v765_v51 = vor.u32 %v764_v41, %v761_v37  ;;  %v7320_v52 = vrot.slane %v1385_v43, 4  ;;  %v594_v53 = vshll.u32 %v7287_v30, 16  ;;  %v7334_v60 = vld [vmem:[%s7242_s27 + $0x78] sm:$0xf] }
  0x24   : > { %v775_v56 = vor.u32 %v774_v46, %v7302_v42  ;;  %6492 = vmatmul.mubr.msk.bf16.vlgmr.msra.gmra.mxu0 %vm317_vm1, %v5699_v47  ;;  %v593_v57 = vrot.slane %v591_v48, 4  ;;  %v600_v58 = vshll.u32 %v7297_v35, 16  ;;  %v604_v59 = vshrl.u32 %v7297_v35, 16  ;;  %v7342_v1 = vld [vmem:[%s7242_s27 + $0x7c] sm:$0xf]  ;;  %p7043_p13 = pnand %p7042_p12, %p7182_p4 }
  0x25   : > { %v7336_v61 = vrot.slane %v765_v51, 4  ;;  %v596_v62 = vrot.slane %v594_v53, 5  ;;  %v5764_v63 = vrot.slane %v7287_v30, 9  ;;  %v1336_v0 = vrot.slane %v7297_v35, 5  ;;  %6558 = vmatpush3.bf16.msra.mxu0 %v7232_v8  ;;  %v7351_v19 = vld [vmem:[%s7242_s27 + $0x24] sm:$0xf] }
  0x26   : > { %v7344_v2 = vrot.slane %v775_v56, 4  ;;  %v7346_v3 = vrot.slane %v600_v58, 5  ;;  %v606_v17 = vrot.slane %v604_v59, 4  ;;  %v5707_v18 = vcombine.low %v7306_v44, %v7314_v49  ;;  %v7354_v20 = vld [vmem:[%s7242_s27 + $0x28] sm:$0xf]  ;;  %6802 = vmatprep.subr.msk.bf16.mxu0 %vm366_vm0, %v7221_v5  ;;  %p7044_p0 = pneg %p7043_p13 }
  0x27   : > { %v597_v8 = vor.u32 %v596_v62, %v593_v57  ;;  %v7360_v22 = vrot.slane %v1336_v0, 4  ;;  %v7365_v27 = vld [vmem:[%s7242_s27 + $0x84] sm:$0xf]  ;;  %v5700_v5 = vcombine.low %v7324_v54, %v7327_v55  ;;  %v7374_v34 = vld [vmem:[%s7242_s27 + $0x88] sm:$0xf]  ;;  %v5708_v41 = vcombine.low %v7334_v60, %v7342_v1 }
  0x28   : > { %v607_v29 = vor.u32 %v606_v17, %v7346_v3  ;;  %6508 = vmatmul.mubr.msk.bf16.vlgmr.msra.gmra.mxu1 %vm317_vm1, %v5707_v18  ;;  %v7377_v36 = vld [vmem:[%s7242_s27 + $0x30] sm:$0xf]  ;;  %v7387_v46 = vld [vmem:[%s7242_s27 + $0x34] sm:$0xf]  ;;  %v5701_v56 = vcombine.low %v7351_v19, %v7354_v20  ;;  %v5709_v17 = vcombine.low %v7365_v27, %v7374_v34  ;;  %v7424_v48 = vld [vmem:[%s7242_s27 + $0x40] sm:$0xf]  ;;  %v579_v59 = vsel %vm7442_vm7, %v7308_v45, %v7283_v28 }
  0x29   : > { %v7379_v37 = vrot.slane %v597_v8, 4  ;;  %6524 = vmatpush3.bf16.msra.mxu1 %v7229_v7  ;;  %6495 = vmatprep.mubr.msk.bf16.mxu0 %vm317_vm1, %v5700_v5  ;;  %v7396_v53 = vld [vmem:[%s7242_s27 + $0x90] sm:$0xf]  ;;  %v7407_v62 = vld [vmem:[%s7242_s27 + $0x94] sm:$0xf]  ;;  %v5702_v5 = vcombine.low %v7377_v36, %v7387_v46  ;;  %v7512_v28 = vsel %vm7428_vm6, %v5764_v63, %v1336_v0  ;;  %v9775_v21 = vshrl.u32 %v7324_v54, 16 }
  0x2a   : > { %v7389_v47 = vrot.slane %v607_v29, 4  ;;  %6801 = vmatprep.subr.msk.bf16.mxu1 %vm366_vm0, %v7216_v4  ;;  %6511 = vmatprep.mubr.msk.bf16.mxu1 %vm317_vm1, %v5708_v41  ;;  %v7415_v29 = vld [vmem:[%s7242_s27 + $0x3c] sm:$0xf]  ;;  %v7453_v7 = vld [vmem:[%s7242_s27 + $0xa0] sm:$0xf]  ;;  %v9776_v13 = vshll.u32 %v7324_v54, 16 }
  0x2b   : > { %v7438_v26 = vld [vmem:[%s7242_s27 + $0x9c] sm:$0xf]  ;;  %v5703_v18 = vcombine.low %v7415_v29, %v7424_v48  ;;  %v7462_v51 = vld [vmem:[%s7242_s27 + $0x48] sm:$0xf]  ;;  %v7466_v31 = vld [vmem:[%s7242_s27 + $0x4c] sm:$0xf]  ;;  %v603_v45 = vsel %vm7442_vm7, %v7379_v37, %v7346_v3  ;;  %v7539_v37 = vsel %vm7428_vm6, %v5771_v39, %v1385_v43 }
  0x2c   : > { %6496 = vmatmul.mubr.msk.bf16.gmra.mxu0 %vm317_vm1, %v5701_v56  ;;  %v5710_v56 = vcombine.low %v7396_v53, %v7407_v62  ;;  %v5711_v41 = vcombine.low %v7438_v26, %v7453_v7  ;;  %v7471_v57 = vld [vmem:[%s7242_s27 + $0xa8] sm:$0xf]  ;;  %v5704_v58 = vcombine.low %v7462_v51, %v7466_v31  ;;  %v7520_v38 = vld [vmem:[%s7242_s27 + $0xb4] sm:$0xf]  ;;  %v7524_v30 = vld [vmem:[%s7242_s27 + $0xb8] sm:$0xf] }
  0x2d   : > { %6499 = vmatprep.mubr.msk.bf16.mxu0 %vm317_vm1, %v5702_v5  ;;  %9773 = vst [vmem:[#allocation8_spill] sm:$0xff] %v7520_v38  ;;  %9774 = vst [vmem:[#allocation9_spill] sm:$0xff] %v7524_v30  ;;  %v190_v0 = vld [vmem:[%s7242_s27 + $0x8] sm:$0x1]  ;;  %v193_v5 = vld [vmem:[%s7242_s27 + $0x14] sm:$0x1] }
  0x2e   : > { %v586_v35 = vshll.u32 %v190_v0, 16  ;;  %v1332_v40 = vrot.slane %v190_v0, 5  ;;  %v610_v4 = vshll.u32 %v193_v5, 16  ;;  %v1339_v3 = vrot.slane %v193_v5, 5  ;;  %v196_v33 = vld [vmem:[%s7242_s27 + $0x20] sm:$0x1] }
  0x2f   : > { %v617_v16 = vrot.slane %v9775_v21, 4  ;;  %v620_v39 = vrot.slane %v9776_v13, 5  ;;  %v624_v63 = vshll.u32 %v7327_v55, 16  ;;  %v9777_v0 = vshrl.u32 %v7327_v55, 16 }
  0x30   : > { %6512 = vmatmul.mubr.msk.bf16.gmra.mxu1 %vm317_vm1, %v5709_v17  ;;  %v7489_v17 = vld [vmem:[%s7242_s27 + $0xac] sm:$0xf]  ;;  %v588_v43 = vrot.slane %v586_v35, 5  ;;  %v612_v21 = vrot.slane %v610_v4, 5  ;;  %v1340_v13 = vsel %vm7428_vm6, %v7360_v22, %v1339_v3  ;;  %v5765_v4 = vrot.slane %v7324_v54, 9 }
  0x31   : > { %6515 = vmatprep.mubr.msk.bf16.mxu1 %vm317_vm1, %v5710_v56  ;;  %v7483_v56 = vsel %vm7428_vm6, %v5763_v23, %v1329_v24  ;;  %v5712_v14 = vcombine.low %v7471_v57, %v7489_v17  ;;  %v7497_v23 = vld [vmem:[%s7242_s27 + $0x54] sm:$0xf]  ;;  %v7500_v24 = vld [vmem:[%s7242_s27 + $0x58] sm:$0xf]  ;;  %v630_v12 = vrot.slane %v9777_v0, 4  ;;  %v626_v35 = vrot.slane %v624_v63, 5 }
  0x32   : > { %v5705_v15 = vcombine.low %v7497_v23, %v7500_v24  ;;  %v1343_v3 = vrot.slane %v7327_v55, 5 }
  0x34   : > { %6500 = vmatmul.mubr.msk.bf16.gmra.mxu0 %vm317_vm1, %v5703_v18  ;;  %v5713_v18 = vcombine.low %v7520_v38, %v7524_v30  ;;  %v634_v30 = vshll.u32 %v196_v33, 16  ;;  %v631_v38 = vor.u32 %v630_v12, %v626_v35  ;;  %v1344_v12 = vsel %vm7428_vm6, %v5765_v4, %v1343_v3  ;;  %v202_v4 = vld [vmem:[%s7242_s27 + $0x38] sm:$0x1] }
  0x35   : > { %6503 = vmatprep.mubr.msk.bf16.mxu0 %vm317_vm1, %v5704_v58  ;;  %v1333_v58 = vsel %vm7428_vm6, %v7291_v32, %v1332_v40  ;;  %v589_v32 = vsel %vm7442_vm7, %v7316_v50, %v588_v43  ;;  %v5781_v40 = vcombine.low %v7512_v28, %v1340_v13  ;;  %v1346_v28 = vrot.slane %v196_v33, 5 }
  0x36   : > { %v5780_v5 = vcombine.low %v7483_v56, %v1333_v58  ;;  %v5731_v0 = vcombine.low %v579_v59, %v589_v32  ;;  %v613_v56 = vsel %vm7442_vm7, %v7389_v47, %v612_v21  ;;  %v636_v22 = vrot.slane %v634_v30, 5 }
  0x37   : > { %v5732_v58 = vcombine.low %v603_v45, %v613_v56  ;;  %v9778_v59 = vshrl.u32 %v7351_v19, 16  ;;  %v9779_v47 = vshll.u32 %v7351_v19, 16  ;;  %v632_v54 = vrot.slane %v631_v38, 4 }
  0x38   : > { %6516 = vmatmul.mubr.msk.bf16.gmra.mxu1 %vm317_vm1, %v5711_v41  ;;  %v621_v41 = vor.u32 %v620_v39, %v617_v16  ;;  %v199_v16 = vld [vmem:[%s7242_s27 + $0x2c] sm:$0x1]  ;;  %v1345_v55 = vrot.slane %v1343_v3, 4  ;;  %v9780_v30 = vshrl.u32 %v7354_v20, 16  ;;  %v5766_v21 = vrot.slane %v7351_v19, 9 }
  0x39   : > { %6519 = vmatprep.mubr.msk.bf16.mxu1 %vm317_vm1, %v5712_v14  ;;  %v641_v63 = vrot.slane %v9778_v59, 4  ;;  %v644_v39 = vrot.slane %v9779_v47, 5  ;;  %v658_v43 = vshll.u32 %v199_v16, 16  ;;  %v1353_v59 = vrot.slane %v199_v16, 5 }
  0x3a   : > { %v622_v14 = vrot.slane %v621_v41, 4  ;;  %v654_v33 = vrot.slane %v9780_v30, 4  ;;  %v1347_v38 = vsel %vm7428_vm6, %v1345_v55, %v1346_v28  ;;  %v1350_v41 = vrot.slane %v7354_v20, 5 }
  0x3b   : > { %v645_v45 = vor.u32 %v644_v39, %v641_v63  ;;  %v9781_v28 = vshrl.u32 %v7377_v36, 16  ;;  %v682_v16 = vshll.u32 %v202_v4, 16  ;;  %v5767_v30 = vrot.slane %v7377_v36, 9 }
  0x3c   : > { %6504 = vmatmul.mubr.msk.bf16.gmra.mxu0 %vm317_vm1, %v5705_v15  ;;  %v627_v50 = vsel %vm7442_vm7, %v622_v14, %v626_v35  ;;  %v648_v15 = vshll.u32 %v7354_v20, 16  ;;  %v5782_v35 = vcombine.low %v1344_v12, %v1347_v38  ;;  %v660_v14 = vrot.slane %v658_v43, 5  ;;  %v205_v38 = vld [vmem:[%s7242_s27 + $0x44] sm:$0x1] }
  0x3d   : > { %6559 = vmatprep.mubr.msk.bf16.mxu0 %vm317_vm1, %v5780_v5  ;;  %v637_v5 = vsel %vm7442_vm7, %v632_v54, %v636_v22  ;;  %v646_v56 = vrot.slane %v645_v45, 4  ;;  %v1351_v19 = vsel %vm7428_vm6, %v5766_v21, %v1350_v41  ;;  %v665_v63 = vrot.slane %v9781_v28, 4 }
  0x3e   : > { %v650_v13 = vrot.slane %v648_v15, 5  ;;  %v5733_v32 = vcombine.low %v627_v50, %v637_v5  ;;  %v9782_v20 = vshll.u32 %v7377_v36, 16  ;;  %v672_v50 = vshll.u32 %v7387_v46, 16 }
  0x3f   : > { %v9783_v54 = vshrl.u32 %v7387_v46, 16  ;;  %v684_v43 = vrot.slane %v682_v16, 5  ;;  %v1357_v21 = vrot.slane %v7387_v46, 5  ;;  %v1360_v5 = vrot.slane %v202_v4, 5 }
  0x40   : > { %6520 = vmatmul.mubr.msk.bf16.gmra.mxu1 %vm317_vm1, %v5713_v18  ;;  %v655_v3 = vor.u32 %v654_v33, %v650_v13  ;;  %v1352_v18 = vrot.slane %v1350_v41, 4  ;;  %v651_v22 = vsel %vm7442_vm7, %v646_v56, %v650_v13  ;;  %v674_v45 = vrot.slane %v672_v50, 5 }
  0x41   : > { %6525 = vmatprep.mubr.msk.bf16.mxu1 %vm317_vm1, %v5731_v0  ;;  %v668_v0 = vrot.slane %v9782_v20, 5  ;;  %v678_v12 = vrot.slane %v9783_v54, 4  ;;  %v9784_v56 = vshrl.u32 %v7415_v29, 16  ;;  %v1359_v36 = vrot.slane %v1357_v21, 4 }
  0x42   : > { %v656_v47 = vrot.slane %v655_v3, 4  ;;  %v1354_v39 = vsel %vm7428_vm6, %v1352_v18, %v1353_v59  ;;  %v706_v18 = vshll.u32 %v205_v38, 16  ;;  %v1367_v54 = vrot.slane %v205_v38, 5 }
  0x43   : > { %v5783_v55 = vcombine.low %v1351_v19, %v1354_v39  ;;  %v669_v15 = vor.u32 %v668_v0, %v665_v63  ;;  %v689_v3 = vrot.slane %v9784_v56, 4  ;;  %v1361_v59 = vsel %vm7428_vm6, %v1359_v36, %v1360_v5 }
  0x44   : > { %6560 = vmatmul.mubr.msk.bf16.vlgmr.msra.gmra.mxu0 %vm317_vm1, %v5781_v40  ;;  %v661_v33 = vsel %vm7442_vm7, %v656_v47, %v660_v14  ;;  %v679_v40 = vor.u32 %v678_v12, %v674_v45  ;;  %v696_v14 = vshll.u32 %v7424_v48, 16  ;;  %v5768_v63 = vrot.slane %v7415_v29, 9  ;;  %v208_v12 = vld [vmem:[%s7242_s27 + $0x50] sm:$0x1] }
  0x45   : > { %6626 = vmatpush3.bf16.msra.mxu0 %v7250_v11  ;;  %6563 = vmatprep.mubr.msk.bf16.mxu0 %vm317_vm1, %v5782_v35  ;;  %v5734_v13 = vcombine.low %v651_v22, %v661_v33  ;;  %v670_v41 = vrot.slane %v669_v15, 4  ;;  %v1358_v11 = vsel %vm7428_vm6, %v5767_v30, %v1357_v21  ;;  %v9785_v35 = vshll.u32 %v7415_v29, 16 }
  0x46   : > { %6804 = vmatprep.subr.msk.bf16.mxu0 %vm366_vm0, %v7237_v9  ;;  %v680_v19 = vrot.slane %v679_v40, 4  ;;  %v9786_v9 = vshrl.u32 %v7424_v48, 16  ;;  %v698_v28 = vrot.slane %v696_v14, 5  ;;  %v708_v20 = vrot.slane %v706_v18, 5 }
  0x47   : > { %v692_v46 = vrot.slane %v9785_v35, 5  ;;  %v675_v4 = vsel %vm7442_vm7, %v670_v41, %v674_v45  ;;  %v1364_v0 = vrot.slane %v7424_v48, 5  ;;  %v9788_v45 = vshll.u32 %v7462_v51, 16 }
  0x48   : > { %6526 = vmatmul.mubr.msk.bf16.vlgmr.msra.gmra.mxu1 %vm317_vm1, %v5732_v58  ;;  %v702_v58 = vrot.slane %v9786_v9, 4  ;;  %v730_v41 = vshll.u32 %v208_v12, 16  ;;  %v5769_v40 = vrot.slane %v7462_v51, 9  ;;  %v1371_v36 = vrot.slane %v7466_v31, 5 }
  0x49   : > { %6592 = vmatpush3.bf16.msra.mxu1 %v7246_v10  ;;  %6529 = vmatprep.mubr.msk.bf16.mxu1 %vm317_vm1, %v5733_v32  ;;  %v693_v22 = vor.u32 %v692_v46, %v689_v3  ;;  %v685_v10 = vsel %vm7442_vm7, %v680_v19, %v684_v43  ;;  %v5784_v32 = vcombine.low %v1358_v11, %v1361_v59  ;;  %v1366_v16 = vrot.slane %v1364_v0, 4  ;;  %v211_v19 = vld [vmem:[%s7242_s27 + $0x5c] sm:$0x1] }
  0x4a   : > { %6803 = vmatprep.subr.msk.bf16.mxu1 %vm366_vm0, %v7226_v6  ;;  %v5735_v50 = vcombine.low %v675_v4, %v685_v10  ;;  %v703_v39 = vor.u32 %v702_v58, %v698_v28  ;;  %v1365_v29 = vsel %vm7428_vm6, %v5768_v63, %v1364_v0  ;;  %v9787_v6 = vshrl.u32 %v7462_v51, 16 }
  0x4b   : > { %v694_v47 = vrot.slane %v693_v22, 4  ;;  %v716_v30 = vrot.slane %v9788_v45, 5  ;;  %v720_v43 = vshll.u32 %v7466_v31, 16  ;;  %v1368_v5 = vsel %vm7428_vm6, %v1366_v16, %v1367_v54 }
  0x4c   : > { %6564 = vmatmul.mubr.msk.bf16.gmra.mxu0 %vm317_vm1, %v5783_v55  ;;  %v713_v15 = vrot.slane %v9787_v6, 4  ;;  %v704_v33 = vrot.slane %v703_v39, 4  ;;  %v9789_v55 = vshrl.u32 %v7466_v31, 16  ;;  %v5785_v3 = vcombine.low %v1365_v29, %v1368_v5 }
  0x4d   : > { %6567 = vmatprep.mubr.msk.bf16.mxu0 %vm317_vm1, %v5784_v32  ;;  %v699_v48 = vsel %vm7442_vm7, %v694_v47, %v698_v28  ;;  %v722_v11 = vrot.slane %v720_v43, 5  ;;  %v732_v14 = vrot.slane %v730_v41, 5  ;;  %v1374_v4 = vrot.slane %v208_v12, 5  ;;  %v214_v32 = vld [vmem:[%s7242_s27 + $0x68] sm:$0x1] }
  0x4e   : > { %v726_v21 = vrot.slane %v9789_v55, 4  ;;  %v717_v38 = vor.u32 %v716_v30, %v713_v15  ;;  %v709_v56 = vsel %vm7442_vm7, %v704_v33, %v708_v20  ;;  %v1372_v51 = vsel %vm7428_vm6, %v5769_v40, %v1371_v36  ;;  %v217_v40 = vld [vmem:[%s7242_s27 + $0x74] sm:$0x1] }
  0x4f   : > { %v5736_v35 = vcombine.low %v699_v48, %v709_v56  ;;  %v9790_v58 = vshrl.u32 %v7497_v23, 16  ;;  %v9791_v31 = vshll.u32 %v7497_v23, 16  ;;  %v744_v28 = vshll.u32 %v7500_v24, 16 }
  0x50   : > { %6530 = vmatmul.mubr.msk.bf16.gmra.mxu1 %vm317_vm1, %v5734_v13  ;;  %v718_v46 = vrot.slane %v717_v38, 4  ;;  %v727_v9 = vor.u32 %v726_v21, %v722_v11  ;;  %v1373_v13 = vrot.slane %v1371_v36, 4  ;;  %v9792_v63 = vshrl.u32 %v7500_v24, 16 }
  0x51   : > { %6533 = vmatprep.mubr.msk.bf16.mxu1 %vm317_vm1, %v5735_v50  ;;  %v737_v18 = vrot.slane %v9790_v58, 4  ;;  %v740_v22 = vrot.slane %v9791_v31, 5  ;;  %v754_v50 = vshll.u32 %v211_v19, 16  ;;  %v5770_v47 = vrot.slane %v7497_v23, 9 }
  0x52   : > { %v723_v59 = vsel %vm7442_vm7, %v718_v46, %v722_v11  ;;  %v750_v10 = vrot.slane %v9792_v63, 4  ;;  %v728_v20 = vrot.slane %v727_v9, 4  ;;  %v1375_v0 = vsel %vm7428_vm6, %v1373_v13, %v1374_v4  ;;  %v220_v63 = vld [vmem:[%s7242_s27 + $0x80] sm:$0x1] }
  0x53   : > { %v5786_v39 = vcombine.low %v1372_v51, %v1375_v0  ;;  %v741_v54 = vor.u32 %v740_v22, %v737_v18  ;;  %v746_v12 = vrot.slane %v744_v28, 5  ;;  %v1378_v29 = vrot.slane %v7500_v24, 5 }
  0x54   : > { %6568 = vmatmul.mubr.msk.bf16.gmra.mxu0 %vm317_vm1, %v5785_v3  ;;  %v733_v16 = vsel %vm7442_vm7, %v728_v20, %v732_v14  ;;  %v756_v6 = vrot.slane %v754_v50, 5  ;;  %v1381_v15 = vrot.slane %v211_v19, 5  ;;  %v778_v45 = vshll.u32 %v214_v32, 16 }
  0x55   : > { %v5737_v30 = vcombine.low %v723_v59, %v733_v16  ;;  %6571 = vmatprep.mubr.msk.bf16.mxu0 %vm317_vm1, %v5786_v39  ;;  %v742_v48 = vrot.slane %v741_v54, 4  ;;  %v751_v33 = vor.u32 %v750_v10, %v746_v12  ;;  %v1379_v23 = vsel %vm7428_vm6, %v5770_v47, %v1378_v29 }
  0x56   : > { %v1380_v43 = vrot.slane %v1378_v29, 4  ;;  %v780_v55 = vrot.slane %v778_v45, 5  ;;  %v1388_v24 = vrot.slane %v214_v32, 5  ;;  %v9793_v21 = vshrl.u32 %v7306_v44, 16 }
  0x57   : > { %v747_v38 = vsel %vm7442_vm7, %v742_v48, %v746_v12  ;;  %v752_v41 = vrot.slane %v751_v33, 4  ;;  %v9794_v56 = vshll.u32 %v7306_v44, 16  ;;  %v792_v11 = vshll.u32 %v7314_v49, 16 }
  0x58   : > { %6534 = vmatmul.mubr.msk.bf16.gmra.mxu1 %vm317_vm1, %v5736_v35  ;;  %v785_v5 = vrot.slane %v9793_v21, 4  ;;  %v1382_v36 = vsel %vm7428_vm6, %v1380_v43, %v1381_v15  ;;  %v781_v35 = vsel %vm7442_vm7, %v7344_v2, %v780_v55  ;;  %v1389_v46 = vsel %vm7428_vm6, %v7320_v52, %v1388_v24  ;;  %v223_v55 = vld [vmem:[%s7242_s27 + $0x8c] sm:$0x1] }
  0x59   : > { %6537 = vmatprep.mubr.msk.bf16.mxu1 %vm317_vm1, %v5737_v30  ;;  %v788_v3 = vrot.slane %v9794_v56, 5  ;;  %v9795_v14 = vshrl.u32 %v7314_v49, 16  ;;  %v757_v19 = vsel %vm7442_vm7, %v752_v41, %v756_v6  ;;  %v5787_v9 = vcombine.low %v1379_v23, %v1382_v36 }
  0x5a   : > { %v9796_v51 = vsel %vm7442_vm7, %v7336_v61, %v7302_v42  ;;  %v5788_v58 = vcombine.low %v7539_v37, %v1389_v46  ;;  %v5738_v2 = vcombine.low %v747_v38, %v757_v19  ;;  %v794_v59 = vrot.slane %v792_v11, 5 }
  0x5b   : > { %v798_v4 = vrot.slane %v9795_v14, 4  ;;  %v5739_v13 = vcombine.low %v9796_v51, %v781_v35  ;;  %v789_v18 = vor.u32 %v788_v3, %v785_v5  ;;  %v802_v31 = vshll.u32 %v217_v40, 16 }
  0x5c   : > { %6572 = vmatmul.mubr.msk.bf16.gmra.mxu0 %vm317_vm1, %v5787_v9  ;;  %v5772_v52 = vrot.slane %v7306_v44, 9  ;;  %v1392_v22 = vrot.slane %v7314_v49, 5  ;;  %v1395_v28 = vrot.slane %v217_v40, 5  ;;  %v9797_v10 = vshrl.u32 %v7334_v60, 16 }
  0x5d   : > { %6575 = vmatprep.mubr.msk.bf16.mxu0 %vm317_vm1, %v5788_v58  ;;  %v790_v42 = vrot.slane %v789_v18, 4  ;;  %v799_v61 = vor.u32 %v798_v4, %v794_v59  ;;  %v804_v37 = vrot.slane %v802_v31, 5  ;;  %v9798_v20 = vshll.u32 %v7334_v60, 16 }
  0x5e   : > { %v809_v32 = vrot.slane %v9797_v10, 4  ;;  %v1393_v50 = vsel %vm7428_vm6, %v5772_v52, %v1392_v22  ;;  %v1394_v47 = vrot.slane %v1392_v22, 4  ;;  %v816_v44 = vshll.u32 %v7342_v1, 16 }
  0x5f   : > { %v812_v0 = vrot.slane %v9798_v20, 5  ;;  %v9799_v49 = vshrl.u32 %v7342_v1, 16  ;;  %v795_v54 = vsel %vm7442_vm7, %v790_v42, %v794_v59  ;;  %v800_v12 = vrot.slane %v799_v61, 4  ;;  %v226_v59 = vld [vmem:[%s7242_s27 + $0x98] sm:$0x1] }
  0x60   : > { %6538 = vmatmul.mubr.msk.bf16.gmra.mxu1 %vm317_vm1, %v5738_v2  ;;  %v826_v16 = vshll.u32 %v220_v63, 16  ;;  %v1396_v6 = vsel %vm7428_vm6, %v1394_v47, %v1395_v28  ;;  %v818_v15 = vrot.slane %v816_v44, 5  ;;  %v5773_v45 = vrot.slane %v7334_v60, 9 }
  0x61   : > { %v822_v39 = vrot.slane %v9799_v49, 4  ;;  %v813_v29 = vor.u32 %v812_v0, %v809_v32  ;;  %6541 = vmatprep.mubr.msk.bf16.mxu1 %vm317_vm1, %v5739_v13  ;;  %v1399_v30 = vrot.slane %v7342_v1, 5  ;;  %v805_v48 = vsel %vm7442_vm7, %v800_v12, %v804_v37 }
  0x62   : > { %v5789_v33 = vcombine.low %v1393_v50, %v1396_v6  ;;  %v828_v43 = vrot.slane %v826_v16, 5  ;;  %v5740_v24 = vcombine.low %v795_v54, %v805_v48  ;;  %v1402_v40 = vrot.slane %v220_v63, 5 }
  0x63   : > { %v814_v23 = vrot.slane %v813_v29, 4  ;;  %v823_v21 = vor.u32 %v822_v39, %v818_v15  ;;  %v1400_v5 = vsel %vm7428_vm6, %v5773_v45, %v1399_v30  ;;  %v1401_v38 = vrot.slane %v1399_v30, 4  ;;  %v229_v30 = vld [vmem:[%s7242_s27 + $0xa4] sm:$0x1] }
  0x64   : > { %v9800_v60 = vshrl.u32 %v7365_v27, 16  ;;  %v9801_v56 = vshll.u32 %v7365_v27, 16  ;;  %6576 = vmatmul.mubr.msk.bf16.gmra.mxu0 %vm317_vm1, %v5789_v33  ;;  %v840_v36 = vshll.u32 %v7374_v34, 16  ;;  %v9802_v35 = vshrl.u32 %v7374_v34, 16 }
  0x65   : > { %v819_v41 = vsel %vm7442_vm7, %v814_v23, %v818_v15  ;;  %v824_v11 = vrot.slane %v823_v21, 4  ;;  %v850_v14 = vshll.u32 %v223_v55, 16  ;;  %v1403_v4 = vsel %vm7428_vm6, %v1401_v38, %v1402_v40 }
  0x66   : > { %v833_v1 = vrot.slane %v9800_v60, 4  ;;  %v836_v3 = vrot.slane %v9801_v56, 5  ;;  %v846_v46 = vrot.slane %v9802_v35, 4  ;;  %v5774_v9 = vrot.slane %v7365_v27, 9 }
  0x67   : > { %v1406_v51 = vrot.slane %v7374_v34, 5  ;;  %v829_v13 = vsel %vm7442_vm7, %v824_v11, %v828_v43  ;;  %v5790_v58 = vcombine.low %v1400_v5, %v1403_v4  ;;  %v842_v2 = vrot.slane %v840_v36, 5 }
  0x68   : > { %v837_v19 = vor.u32 %v836_v3, %v833_v1  ;;  %v852_v18 = vrot.slane %v850_v14, 5  ;;  %6542 = vmatmul.mubr.msk.bf16.gmra.mxu1 %vm317_vm1, %v5740_v24  ;;  %v5741_v31 = vcombine.low %v819_v41, %v829_v13  ;;  %v1409_v63 = vrot.slane %v223_v55, 5 }
  0x69   : > { %v1407_v22 = vsel %vm7428_vm6, %v5774_v9, %v1406_v51  ;;  %v1408_v28 = vrot.slane %v1406_v51, 4  ;;  %6579 = vmatprep.mubr.msk.bf16.mxu0 %vm317_vm1, %v5790_v58  ;;  %v847_v27 = vor.u32 %v846_v46, %v842_v2  ;;  %v9803_v34 = vshrl.u32 %v7396_v53, 16 }
  0x6a   : > { %v838_v52 = vrot.slane %v837_v19, 4  ;;  %v9804_v32 = vshll.u32 %v7396_v53, 16  ;;  %6545 = vmatprep.mubr.msk.bf16.mxu1 %vm317_vm1, %v5741_v31  ;;  %v864_v37 = vshll.u32 %v7407_v62, 16  ;;  %v9805_v20 = vshrl.u32 %v7407_v62, 16  ;;  %v232_v19 = vld [vmem:[%s7242_s27 + $0xb0] sm:$0x1] }
  0x6b   : > { %v857_v10 = vrot.slane %v9803_v34, 4  ;;  %v874_v50 = vshll.u32 %v226_v59, 16  ;;  %v848_v47 = vrot.slane %v847_v27, 4  ;;  %v1410_v44 = vsel %vm7428_vm6, %v1408_v28, %v1409_v63 }
  0x6c   : > { %v860_v42 = vrot.slane %v9804_v32, 5  ;;  %v843_v61 = vsel %vm7442_vm7, %v838_v52, %v842_v2  ;;  %v870_v0 = vrot.slane %v9805_v20, 4  ;;  %v5775_v39 = vrot.slane %v7396_v53, 9 }
  0x6d   : > { %v5791_v54 = vcombine.low %v1407_v22, %v1410_v44  ;;  %v866_v12 = vrot.slane %v864_v37, 5  ;;  %v876_v29 = vrot.slane %v874_v50, 5  ;;  %v1413_v16 = vrot.slane %v7407_v62, 5 }
  0x6e   : > { %v861_v49 = vor.u32 %v860_v42, %v857_v10  ;;  %v853_v6 = vsel %vm7442_vm7, %v848_v47, %v852_v18  ;;  %v1416_v45 = vrot.slane %v226_v59, 5  ;;  %v9806_v48 = vshrl.u32 %v7438_v26, 16  ;;  %v235_v47 = vld [vmem:[%s7242_s27 + $0xbc] sm:$0x1] }
  0x6f   : > { %v5742_v23 = vcombine.low %v843_v61, %v853_v6  ;;  %6580 = vmatmul.mubr.msk.bf16.gmra.mxu0 %vm317_vm1, %v5791_v54  ;;  %v871_v43 = vor.u32 %v870_v0, %v866_v12  ;;  %v1414_v53 = vsel %vm7428_vm6, %v5775_v39, %v1413_v16  ;;  %v1415_v55 = vrot.slane %v1413_v16, 4 }
  0x70   : > { %v862_v15 = vrot.slane %v861_v49, 4  ;;  %v881_v33 = vrot.slane %v9806_v48, 4  ;;  %v9807_v24 = vshll.u32 %v7438_v26, 16  ;;  %v888_v5 = vshll.u32 %v7453_v7, 16 }
  0x71   : > { %v9808_v38 = vshrl.u32 %v7453_v7, 16  ;;  %6546 = vmatmul.mubr.msk.bf16.gmra.mxu1 %vm317_vm1, %v5742_v23  ;;  %v872_v40 = vrot.slane %v871_v43, 4  ;;  %v1417_v60 = vsel %vm7428_vm6, %v1415_v55, %v1416_v45  ;;  %v898_v1 = vshll.u32 %v229_v30, 16 }
  0x72   : > { %v867_v62 = vsel %vm7442_vm7, %v862_v15, %v866_v12  ;;  %v884_v21 = vrot.slane %v9807_v24, 5  ;;  %v5776_v56 = vrot.slane %v7438_v26, 9  ;;  %v5792_v3 = vcombine.low %v1414_v53, %v1417_v60  ;;  %v9812_v12 = vld [vmem:[#allocation8_spill] sm:$0xff]  ;;  %v9815_v15 = vld [vmem:[#allocation9_spill] sm:$0xff] }
  0x73   : > { %v894_v41 = vrot.slane %v9808_v38, 4  ;;  %v890_v36 = vrot.slane %v888_v5, 5  ;;  %v1420_v35 = vrot.slane %v7453_v7, 5  ;;  %v877_v46 = vsel %vm7442_vm7, %v872_v40, %v876_v29  ;;  %v7841_v60 = vld [vmem:[%s7242_s27 + $0x10] sm:$0xf] }
  0x74   : > { %v885_v11 = vor.u32 %v884_v21, %v881_v33  ;;  %v900_v14 = vrot.slane %v898_v1, 5  ;;  %v1423_v4 = vrot.slane %v229_v30, 5  ;;  %v9809_v9 = vshrl.u32 %v7471_v57, 16  ;;  %6583 = vmatprep.mubr.msk.bf16.mxu0 %vm317_vm1, %v5792_v3  ;;  %v7835_v21 = vld [vmem:[%s7242_s27 + $0xc] sm:$0xf] }
  0x75   : > { %v5743_v13 = vcombine.low %v867_v62, %v877_v46  ;;  %v895_v2 = vor.u32 %v894_v41, %v890_v36  ;;  %v1421_v26 = vsel %vm7428_vm6, %v5776_v56, %v1420_v35  ;;  %v1422_v18 = vrot.slane %v1420_v35, 4 }
  0x76   : > { %v905_v51 = vrot.slane %v9809_v9, 4  ;;  %v886_v58 = vrot.slane %v885_v11, 4  ;;  %v9810_v7 = vshll.u32 %v7471_v57, 16  ;;  %v912_v31 = vshll.u32 %v7489_v17, 16 }
  0x77   : > { %v9811_v52 = vshrl.u32 %v7489_v17, 16  ;;  %6549 = vmatprep.mubr.msk.bf16.mxu1 %vm317_vm1, %v5743_v13  ;;  %v896_v27 = vrot.slane %v895_v2, 4  ;;  %v922_v63 = vshll.u32 %v232_v19, 16  ;;  %v5777_v34 = vrot.slane %v7471_v57, 9 }
  0x78   : > { %v908_v59 = vrot.slane %v9810_v7, 5  ;;  %v891_v28 = vsel %vm7442_vm7, %v886_v58, %v890_v36  ;;  %v1424_v10 = vsel %vm7428_vm6, %v1422_v18, %v1423_v4  ;;  %v914_v42 = vrot.slane %v912_v31, 5  ;;  %v7844_v36 = vld [vmem:[%s7242_s27 + $0x14] sm:$0x1]  ;;  %v7858_v58 = vld [vmem:[%s7242_s27 + $0x18] sm:$0xf] }
  0x79   : > { %v918_v22 = vrot.slane %v9811_v52, 4  ;;  %v1427_v61 = vrot.slane %v7489_v17, 5  ;;  %v901_v37 = vsel %vm7442_vm7, %v896_v27, %v900_v14  ;;  %v5793_v20 = vcombine.low %v1421_v26, %v1424_v10  ;;  %v7870_v27 = vld [vmem:[%s7242_s27 + $0x20] sm:$0x1] }
  0x7a   : > { %v909_v32 = vor.u32 %v908_v59, %v905_v51  ;;  %v924_v0 = vrot.slane %v922_v63, 5  ;;  %v1430_v50 = vrot.slane %v232_v19, 5  ;;  %v5744_v44 = vcombine.low %v891_v28, %v901_v37  ;;  %v7865_v59 = vld [vmem:[%s7242_s27 + $0x1c] sm:$0xf] }
  0x7b   : > { %v919_v39 = vor.u32 %v918_v22, %v914_v42  ;;  %v1428_v57 = vsel %vm7428_vm6, %v5777_v34, %v1427_v61  ;;  %6584 = vmatmul.mubr.msk.bf16.gmra.mxu0 %vm317_vm1, %v5793_v20  ;;  %v1429_v54 = vrot.slane %v1427_v61, 4  ;;  %v9813_v29 = vshrl.u32 %v9812_v12, 16 }
  0x7c   : > { %v910_v49 = vrot.slane %v909_v32, 4  ;;  %v9814_v16 = vshll.u32 %v9812_v12, 16  ;;  %v936_v45 = vshll.u32 %v9815_v15, 16  ;;  %6550 = vmatmul.mubr.msk.bf16.gmra.mxu1 %vm317_vm1, %v5744_v44  ;;  %v9816_v33 = vshrl.u32 %v9815_v15, 16 }
  0x7d   : > { %v929_v17 = vrot.slane %v9813_v29, 4  ;;  %v920_v48 = vrot.slane %v919_v39, 4  ;;  %v946_v43 = vshll.u32 %v235_v47, 16  ;;  %v1431_v53 = vsel %vm7428_vm6, %v1429_v54, %v1430_v50  ;;  %v7882_v50 = vld [vmem:[%s7242_s27 + $0x28] sm:$0xf] }
  0x7e   : > { %v932_v6 = vrot.slane %v9814_v16, 5  ;;  %v915_v30 = vsel %vm7442_vm7, %v910_v49, %v914_v42  ;;  %v942_v23 = vrot.slane %v9816_v33, 4  ;;  %v938_v62 = vrot.slane %v936_v45, 5  ;;  %v7875_v42 = vld [vmem:[%s7242_s27 + $0x24] sm:$0xf] }
  0x7f   : > { %v5778_v24 = vrot.slane %v9812_v12, 9  ;;  %v925_v5 = vsel %vm7442_vm7, %v920_v48, %v924_v0  ;;  %v5794_v38 = vcombine.low %v1428_v57, %v1431_v53  ;;  %v948_v41 = vrot.slane %v946_v43, 5 }
  0x80   : > { %v933_v55 = vor.u32 %v932_v6, %v929_v17  ;;  %v1434_v40 = vrot.slane %v9815_v15, 5  ;;  %v5745_v1 = vcombine.low %v915_v30, %v925_v5  ;;  %v943_v3 = vor.u32 %v942_v23, %v938_v62  ;;  %v7896_v23 = vld [vmem:[%s7242_s27 + $0x2c] sm:$0x1] }
  0x81   : > { %v1437_v11 = vrot.slane %v235_v47, 5  ;;  %6587 = vmatprep.mubr.msk.bf16.mxu0 %vm317_vm1, %v5794_v38  ;;  %v5861_v14 = vcombine.low %v7835_v21, %v7841_v60  ;;  %v2240_v4 = vshrl.u32 %v7835_v21, 16  ;;  %v2243_v51 = vshll.u32 %v7835_v21, 16 }
  0x82   : > { %v934_v56 = vrot.slane %v933_v55, 4  ;;  %v1435_v35 = vsel %vm7428_vm6, %v5778_v24, %v1434_v40  ;;  %v1436_v46 = vrot.slane %v1434_v40, 4  ;;  %6553 = vmatprep.mubr.msk.bf16.mxu1 %vm317_vm1, %v5745_v1  ;;  %v944_v9 = vrot.slane %v943_v3, 4  ;;  %v7902_v24 = vld [vmem:[%s7242_s27 + $0x30] sm:$0xf] }
  0x83   : > { %v2253_v13 = vshrl.u32 %v7841_v60, 16  ;;  %v2242_v26 = vrot.slane %v2240_v4, 4  ;;  %v2249_v18 = vshll.u32 %v7841_v60, 16  ;;  %v2259_v7 = vshll.u32 %v7844_v36, 16  ;;  %v7905_v1 = vld [vmem:[%s7242_s27 + $0x34] sm:$0xf] }
  0x84   : > { %v939_v19 = vsel %vm7442_vm7, %v934_v56, %v938_v62  ;;  %v1438_v2 = vsel %vm7428_vm6, %v1436_v46, %v1437_v11  ;;  %v949_v31 = vsel %vm7442_vm7, %v944_v9, %v948_v41  ;;  %v2245_v22 = vrot.slane %v2243_v51, 5  ;;  %v7916_v9 = vld [vmem:[%s7242_s27 + $0x38] sm:$0x1]  ;;  %v7921_v51 = vld [vmem:[%s9712_s1 + $0x1c] sm:$0xf] }
  0x85   : > { %v5795_v52 = vcombine.low %v1435_v35, %v1438_v2  ;;  %v2255_v28 = vrot.slane %v2253_v13, 4  ;;  %v5746_v63 = vcombine.low %v939_v19, %v949_v31  ;;  %v2251_v34 = vrot.slane %v2249_v18, 5 }
  0x86   : > { %v2261_v10 = vrot.slane %v2259_v7, 5  ;;  %v5862_v32 = vcombine.low %v7858_v58, %v7865_v59  ;;  %v2246_v61 = vor.u32 %v2245_v22, %v2242_v26  ;;  %v2264_v37 = vshrl.u32 %v7858_v58, 16  ;;  %v7928_v7 = vld [vmem:[%s7242_s27 + $0x3c] sm:$0xf] }
  0x87   : > { %6588 = vmatmul.mubr.msk.bf16.gmra.mxu0 %vm317_vm1, %v5795_v52  ;;  %v2267_v20 = vshll.u32 %v7858_v58, 16  ;;  %v2277_v0 = vshrl.u32 %v7865_v59, 16  ;;  %6554 = vmatmul.mubr.msk.bf16.gmra.mxu1 %vm317_vm1, %v5746_v63  ;;  %v2256_v47 = vor.u32 %v2255_v28, %v2251_v34  ;;  %v2273_v44 = vshll.u32 %v7865_v59, 16  ;;  %v9817_v52 = vld [vmem:[#allocation6_spill] sm:$0xff] }
  0x88   : > { %v2283_v49 = vshll.u32 %v7870_v27, 16  ;;  %v5863_v39 = vcombine.low %v7875_v42, %v7882_v50  ;;  %6593 = vmatprep.mubr.msk.bf16.mxu1 %vm317_vm1, %v5861_v14  ;;  %v2247_v57 = vrot.slane %v2246_v61, 4  ;;  %v2266_v54 = vrot.slane %v2264_v37, 4 }
  0x89   : > { %v2269_v12 = vrot.slane %v2267_v20, 5  ;;  %v2279_v29 = vrot.slane %v2277_v0, 4  ;;  %v2257_v17 = vrot.slane %v2256_v47, 4  ;;  %v2275_v16 = vrot.slane %v2273_v44, 5  ;;  %v7942_v20 = vld [vmem:[%s9712_s1 + $0x20] sm:$0xf] }
  0x8a   : > { %v2285_v6 = vrot.slane %v2283_v49, 5  ;;  %v2288_v15 = vshrl.u32 %v7875_v42, 16  ;;  %v2252_v45 = vsel %vm7442_vm7, %v2247_v57, %v2251_v34  ;;  %v2291_v48 = vshll.u32 %v7875_v42, 16  ;;  %v7933_v34 = vld [vmem:[%s7242_s27 + $0x40] sm:$0xf]  ;;  %v9818_v57 = vld [vmem:[#allocation7_spill] sm:$0xff] }
  0x8b   : > { %v2270_v30 = vor.u32 %v2269_v12, %v2266_v54  ;;  %v2301_v33 = vshrl.u32 %v7882_v50, 16  ;;  %v2262_v43 = vsel %vm7442_vm7, %v2257_v17, %v2261_v10  ;;  %v2280_v53 = vor.u32 %v2279_v29, %v2275_v16 }
  0x8c   : > { %v2290_v55 = vrot.slane %v2288_v15, 4  ;;  %v2297_v62 = vshll.u32 %v7882_v50, 16  ;;  %v5894_v5 = vcombine.low %v2252_v45, %v2262_v43  ;;  %v2293_v41 = vrot.slane %v2291_v48, 5 }
  0x8d   : > { %v2271_v38 = vrot.slane %v2270_v30, 4  ;;  %v2303_v40 = vrot.slane %v2301_v33, 4  ;;  %v2281_v56 = vrot.slane %v2280_v53, 4  ;;  %v2307_v11 = vshll.u32 %v7896_v23, 16 }
  0x8e   : > { %v2299_v3 = vrot.slane %v2297_v62, 5  ;;  %v5864_v35 = vcombine.low %v7902_v24, %v7905_v1  ;;  %6627 = vmatprep.mubr.msk.bf16.mxu0 %vm317_vm1, %v5894_v5  ;;  %v2294_v14 = vor.u32 %v2293_v41, %v2290_v55  ;;  %v2312_v4 = vshrl.u32 %v7902_v24, 16  ;;  %v7966_v55 = vld [vmem:[%s7242_s27 + $0x4c] sm:$0xf] }
  0x8f   : > { %v2276_v46 = vsel %vm7442_vm7, %v2271_v38, %v2275_v16  ;;  %v2315_v19 = vshll.u32 %v7902_v24, 16  ;;  %6594 = vmatmul.mubr.msk.bf16.vlgmr.msra.gmra.mxu1 %vm317_vm1, %v5862_v32  ;;  %v2286_v13 = vsel %vm7442_vm7, %v2281_v56, %v2285_v6  ;;  %v2309_v26 = vrot.slane %v2307_v11, 5  ;;  %v7958_v16 = vld [vmem:[%s7242_s27 + $0x48] sm:$0xf] }
  0x90   : > { %v2304_v2 = vor.u32 %v2303_v40, %v2299_v3  ;;  %v2325_v18 = vshrl.u32 %v7905_v1, 16  ;;  %v5895_v31 = vcombine.low %v2276_v46, %v2286_v13  ;;  %6660 = vmatpush3.bf16.msra.mxu1 %v9817_v52  ;;  %6597 = vmatprep.mubr.msk.bf16.mxu1 %vm317_vm1, %v5863_v39  ;;  %v2295_v22 = vrot.slane %v2294_v14, 4  ;;  %v7951_v39 = vld [vmem:[%s7242_s27 + $0x44] sm:$0x1]  ;;  %v7975_v40 = vld [vmem:[%s7242_s27 + $0x50] sm:$0x1] }
  0x91   : > { %v2314_v28 = vrot.slane %v2312_v4, 4  ;;  %v2317_v63 = vrot.slane %v2315_v19, 5  ;;  %v2321_v32 = vshll.u32 %v7905_v1, 16  ;;  %v2331_v37 = vshll.u32 %v7916_v9, 16  ;;  %6805 = vmatprep.subr.msk.bf16.mxu1 %vm366_vm0, %v7921_v51  ;;  %v7989_v52 = vld [vmem:[%s7242_s27 + $0x58] sm:$0xf] }
  0x92   : > { %v2305_v10 = vrot.slane %v2304_v2, 4  ;;  %v2327_v61 = vrot.slane %v2325_v18, 4  ;;  %6628 = vmatmul.mubr.msk.bf16.vlgmr.msra.gmra.mxu0 %vm317_vm1, %v5895_v31  ;;  %v2300_v0 = vsel %vm7442_vm7, %v2295_v22, %v2299_v3  ;;  %v5865_v44 = vcombine.low %v7928_v7, %v7933_v34  ;;  %v7986_v31 = vld [vmem:[%s7242_s27 + $0x54] sm:$0xf] }
  0x93   : > { %v2318_v47 = vor.u32 %v2317_v63, %v2314_v28  ;;  %v2336_v49 = vshrl.u32 %v7928_v7, 16  ;;  %6694 = vmatpush3.bf16.msra.mxu0 %v9818_v57  ;;  %v2323_v12 = vrot.slane %v2321_v32, 5  ;;  %v2333_v29 = vrot.slane %v2331_v37, 5  ;;  %v7992_v32 = vld [vmem:[%s7242_s27 + $0x5c] sm:$0x1] }
  0x94   : > { %v2310_v54 = vsel %vm7442_vm7, %v2305_v10, %v2309_v26  ;;  %v2339_v17 = vshll.u32 %v7928_v7, 16  ;;  %v2349_v45 = vshrl.u32 %v7933_v34, 16  ;;  %6806 = vmatprep.subr.msk.bf16.mxu0 %vm366_vm0, %v7942_v20  ;;  %v2345_v43 = vshll.u32 %v7933_v34, 16 }
  0x95   : > { %v5896_v6 = vcombine.low %v2300_v0, %v2310_v54  ;;  %v2319_v15 = vrot.slane %v2318_v47, 4  ;;  %v2338_v30 = vrot.slane %v2336_v49, 4  ;;  %v2328_v48 = vor.u32 %v2327_v61, %v2323_v12 }
  0x96   : > { %v2341_v33 = vrot.slane %v2339_v17, 5  ;;  %v2355_v53 = vshll.u32 %v7951_v39, 16  ;;  %v2351_v5 = vrot.slane %v2349_v45, 4  ;;  %v5866_v38 = vcombine.low %v7958_v16, %v7966_v55 }
  0x97   : > { %6631 = vmatprep.mubr.msk.bf16.mxu0 %vm317_vm1, %v5896_v6  ;;  %v2324_v62 = vsel %vm7442_vm7, %v2319_v15, %v2323_v12  ;;  %v2360_v41 = vshrl.u32 %v7958_v16, 16  ;;  %6598 = vmatmul.mubr.msk.bf16.gmra.mxu1 %vm317_vm1, %v5864_v35  ;;  %v2329_v56 = vrot.slane %v2328_v48, 4  ;;  %v2347_v11 = vrot.slane %v2345_v43, 5  ;;  %v8007_v15 = vld [vmem:[%s7242_s27 + $0x60] sm:$0xf] }
  0x98   : > { %v2342_v3 = vor.u32 %v2341_v33, %v2338_v30  ;;  %v2357_v46 = vrot.slane %v2355_v53, 5  ;;  %6601 = vmatprep.mubr.msk.bf16.mxu1 %vm317_vm1, %v5865_v44  ;;  %v2363_v14 = vshll.u32 %v7958_v16, 16  ;;  %v2373_v4 = vshrl.u32 %v7966_v55, 16  ;;  %v8010_v43 = vld [vmem:[%s7242_s27 + $0x64] sm:$0xf] }
  0x99   : > { %v2362_v19 = vrot.slane %v2360_v41, 4  ;;  %v2369_v13 = vshll.u32 %v7966_v55, 16  ;;  %v2334_v2 = vsel %vm7442_vm7, %v2329_v56, %v2333_v29  ;;  %v2352_v18 = vor.u32 %v2351_v5, %v2347_v11  ;;  %v8014_v56 = vld [vmem:[%s7242_s27 + $0x68] sm:$0x1] }
  0x9a   : > { %v2343_v26 = vrot.slane %v2342_v3, 4  ;;  %v2379_v35 = vshll.u32 %v7975_v40, 16  ;;  %v5897_v22 = vcombine.low %v2324_v62, %v2334_v2  ;;  %v2365_v28 = vrot.slane %v2363_v14, 5  ;;  %v8027_v2 = vld [vmem:[%s7242_s27 + $0x6c] sm:$0xf] }
  0x9b   : > { %v2371_v63 = vrot.slane %v2369_v13, 5  ;;  %v2375_v10 = vrot.slane %v2373_v4, 4  ;;  %v2353_v37 = vrot.slane %v2352_v18, 4  ;;  %v5867_v47 = vcombine.low %v7986_v31, %v7989_v52 }
  0x9c   : > { %v2348_v61 = vsel %vm7442_vm7, %v2343_v26, %v2347_v11  ;;  %v2381_v0 = vrot.slane %v2379_v35, 5  ;;  %6632 = vmatmul.mubr.msk.bf16.gmra.mxu0 %vm317_vm1, %v5897_v22  ;;  %v2366_v44 = vor.u32 %v2365_v28, %v2362_v19  ;;  %v2384_v57 = vshrl.u32 %v7986_v31, 16  ;;  %v8033_v28 = vld [vmem:[%s7242_s27 + $0x70] sm:$0xf] }
  0x9d   : > { %v2376_v49 = vor.u32 %v2375_v10, %v2371_v63  ;;  %v2387_v54 = vshll.u32 %v7986_v31, 16  ;;  %v2358_v12 = vsel %vm7442_vm7, %v2353_v37, %v2357_v46  ;;  %v2397_v29 = vshrl.u32 %v7989_v52, 16 }
  0x9e   : > { %v2393_v17 = vshll.u32 %v7989_v52, 16  ;;  %v2403_v6 = vshll.u32 %v7992_v32, 16  ;;  %v5898_v45 = vcombine.low %v2348_v61, %v2358_v12  ;;  %v2367_v30 = vrot.slane %v2366_v44, 4 }
  0x9f   : > { %v2377_v48 = vrot.slane %v2376_v49, 4  ;;  %v2386_v33 = vrot.slane %v2384_v57, 4  ;;  %6602 = vmatmul.mubr.msk.bf16.gmra.mxu1 %vm317_vm1, %v5866_v38  ;;  %v2389_v53 = vrot.slane %v2387_v54, 5  ;;  %v2399_v5 = vrot.slane %v2397_v29, 4  ;;  %v8040_v57 = vld [vmem:[%s7242_s27 + $0x74] sm:$0x1] }
  0xa0   : > { %v2395_v62 = vrot.slane %v2393_v17, 5  ;;  %v2405_v41 = vrot.slane %v2403_v6, 5  ;;  %6635 = vmatprep.mubr.msk.bf16.mxu0 %vm317_vm1, %v5898_v45  ;;  %v2372_v3 = vsel %vm7442_vm7, %v2367_v30, %v2371_v63  ;;  %6605 = vmatprep.mubr.msk.bf16.mxu1 %vm317_vm1, %v5867_v47  ;;  %v5868_v38 = vcombine.low %v8007_v15, %v8010_v43  ;;  %v8048_v6 = vld [vmem:[%s7242_s27 + $0x78] sm:$0xf] }
  0xa1   : > { %v2382_v11 = vsel %vm7442_vm7, %v2377_v48, %v2381_v0  ;;  %v2408_v46 = vshrl.u32 %v8007_v15, 16  ;;  %v2390_v4 = vor.u32 %v2389_v53, %v2386_v33  ;;  %v2411_v13 = vshll.u32 %v8007_v15, 16 }
  0xa2   : > { %v5899_v14 = vcombine.low %v2372_v3, %v2382_v11  ;;  %v2400_v19 = vor.u32 %v2399_v5, %v2395_v62  ;;  %v2421_v26 = vshrl.u32 %v8010_v43, 16  ;;  %v2417_v35 = vshll.u32 %v8010_v43, 16 }
  0xa3   : > { %v2410_v18 = vrot.slane %v2408_v46, 4  ;;  %v2427_v22 = vshll.u32 %v8014_v56, 16  ;;  %v2391_v63 = vrot.slane %v2390_v4, 4  ;;  %v2413_v61 = vrot.slane %v2411_v13, 5 }
  0xa4   : > { %v2401_v10 = vrot.slane %v2400_v19, 4  ;;  %v5869_v37 = vcombine.low %v8027_v2, %v8033_v28  ;;  %6636 = vmatmul.mubr.msk.bf16.gmra.mxu0 %vm317_vm1, %v5899_v14  ;;  %v2419_v0 = vrot.slane %v2417_v35, 5  ;;  %v2423_v47 = vrot.slane %v2421_v26, 4 }
  0xa5   : > { %v2429_v44 = vrot.slane %v2427_v22, 5  ;;  %v2432_v49 = vshrl.u32 %v8027_v2, 16  ;;  %v2396_v54 = vsel %vm7442_vm7, %v2391_v63, %v2395_v62  ;;  %v2414_v29 = vor.u32 %v2413_v61, %v2410_v18  ;;  %v8065_v18 = vld [vmem:[%s7242_s27 + $0x80] sm:$0x1]  ;;  %v8072_v61 = vld [vmem:[%s7242_s27 + $0x84] sm:$0xf] }
  0xa6   : > { %v2406_v12 = vsel %vm7442_vm7, %v2401_v10, %v2405_v41  ;;  %v2435_v17 = vshll.u32 %v8027_v2, 16  ;;  %v2424_v30 = vor.u32 %v2423_v47, %v2419_v0  ;;  %v2445_v48 = vshrl.u32 %v8033_v28, 16  ;;  %v8055_v41 = vld [vmem:[%s7242_s27 + $0x7c] sm:$0xf] }
  0xa7   : > { %v5900_v45 = vcombine.low %v2396_v54, %v2406_v12  ;;  %v2434_v33 = vrot.slane %v2432_v49, 4  ;;  %6606 = vmatmul.mubr.msk.bf16.gmra.mxu1 %vm317_vm1, %v5868_v38  ;;  %v2415_v53 = vrot.slane %v2414_v29, 4  ;;  %v2441_v62 = vshll.u32 %v8033_v28, 16  ;;  %v8076_v54 = vld [vmem:[%s7242_s27 + $0x88] sm:$0xf] }
  0xa8   : > { %v2437_v5 = vrot.slane %v2435_v17, 5  ;;  %v2451_v3 = vshll.u32 %v8040_v57, 16  ;;  %v2425_v11 = vrot.slane %v2424_v30, 4  ;;  %6609 = vmatprep.mubr.msk.bf16.mxu1 %vm317_vm1, %v5869_v37  ;;  %v2447_v46 = vrot.slane %v2445_v48, 4 }
  0xa9   : > { %6639 = vmatprep.mubr.msk.bf16.mxu0 %vm317_vm1, %v5900_v45  ;;  %v5870_v14 = vcombine.low %v8048_v6, %v8055_v41  ;;  %v2456_v38 = vshrl.u32 %v8048_v6, 16  ;;  %v2420_v4 = vsel %vm7442_vm7, %v2415_v53, %v2419_v0  ;;  %v2443_v13 = vrot.slane %v2441_v62, 5 }
  0xaa   : > { %v2438_v19 = vor.u32 %v2437_v5, %v2434_v33  ;;  %v2453_v26 = vrot.slane %v2451_v3, 5  ;;  %v2430_v35 = vsel %vm7442_vm7, %v2425_v11, %v2429_v44  ;;  %v2459_v22 = vshll.u32 %v8048_v6, 16  ;;  %v8088_v11 = vld [vmem:[%s7242_s27 + $0x8c] sm:$0x1] }
  0xab   : > { %v2469_v63 = vshrl.u32 %v8055_v41, 16  ;;  %v2458_v10 = vrot.slane %v2456_v38, 4  ;;  %v5901_v37 = vcombine.low %v2420_v4, %v2430_v35  ;;  %v2448_v49 = vor.u32 %v2447_v46, %v2443_v13 }
  0xac   : > { %v2439_v47 = vrot.slane %v2438_v19, 4  ;;  %v2465_v0 = vshll.u32 %v8055_v41, 16  ;;  %v2461_v12 = vrot.slane %v2459_v22, 5  ;;  %v2475_v17 = vshll.u32 %v8065_v18, 16 }
  0xad   : > { %v2471_v29 = vrot.slane %v2469_v63, 4  ;;  %v5871_v44 = vcombine.low %v8072_v61, %v8076_v54  ;;  %6640 = vmatmul.mubr.msk.bf16.gmra.mxu0 %vm317_vm1, %v5901_v37  ;;  %v2449_v30 = vrot.slane %v2448_v49, 4  ;;  %v2480_v33 = vshrl.u32 %v8072_v61, 16  ;;  %v8099_v37 = vld [vmem:[%s7242_s27 + $0x94] sm:$0xf] }
  0xae   : > { %v2444_v45 = vsel %vm7442_vm7, %v2439_v47, %v2443_v13  ;;  %v2467_v48 = vrot.slane %v2465_v0, 5  ;;  %v2462_v53 = vor.u32 %v2461_v12, %v2458_v10  ;;  %v2477_v5 = vrot.slane %v2475_v17, 5  ;;  %v8095_v13 = vld [vmem:[%s7242_s27 + $0x90] sm:$0xf]  ;;  %9819 = vst [vmem:[#allocation8_spill] sm:$0xff] %v8099_v37 }
  0xaf   : > { %v2483_v62 = vshll.u32 %v8072_v61, 16  ;;  %v2493_v3 = vshrl.u32 %v8076_v54, 16  ;;  %v2454_v46 = vsel %vm7442_vm7, %v2449_v30, %v2453_v26  ;;  %6610 = vmatmul.mubr.msk.bf16.gmra.mxu1 %vm317_vm1, %v5870_v14  ;;  %v2482_v4 = vrot.slane %v2480_v33, 4 }
  0xb0   : > { %v2472_v38 = vor.u32 %v2471_v29, %v2467_v48  ;;  %v2489_v19 = vshll.u32 %v8076_v54, 16  ;;  %v5902_v35 = vcombine.low %v2444_v45, %v2454_v46  ;;  %v2463_v22 = vrot.slane %v2462_v53, 4  ;;  %6613 = vmatprep.mubr.msk.bf16.mxu1 %vm317_vm1, %v5871_v44  ;;  %v8110_v44 = vld [vmem:[%s7242_s27 + $0x98] sm:$0x1] }
  0xb1   : > { %v2485_v63 = vrot.slane %v2483_v62, 5  ;;  %v2495_v10 = vrot.slane %v2493_v3, 4  ;;  %v2499_v14 = vshll.u32 %v8088_v11, 16  ;;  %v5872_v49 = vcombine.low %v8095_v13, %v8099_v37  ;;  %9820 = vst [vmem:[#allocation9_spill] sm:$0xff] %v8110_v44  ;;  %v8116_v62 = vld [vmem:[%s7242_s27 + $0x9c] sm:$0xf] }
  0xb2   : > { %v2473_v47 = vrot.slane %v2472_v38, 4  ;;  %v2491_v26 = vrot.slane %v2489_v19, 5  ;;  %6643 = vmatprep.mubr.msk.bf16.mxu0 %vm317_vm1, %v5902_v35  ;;  %v2468_v0 = vsel %vm7442_vm7, %v2463_v22, %v2467_v48  ;;  %v2504_v29 = vshrl.u32 %v8095_v13, 16  ;;  %9821 = vst [vmem:[#allocation6_spill] sm:$0xff] %v8116_v62 }
  0xb3   : > { %v2486_v12 = vor.u32 %v2485_v63, %v2482_v4  ;;  %v2507_v17 = vshll.u32 %v8095_v13, 16  ;;  %v2501_v33 = vrot.slane %v2499_v14, 5  ;;  %v2517_v53 = vshrl.u32 %v8099_v37, 16  ;;  %v8121_v63 = vld [vmem:[%s7242_s27 + $0xa0] sm:$0xf] }
  0xb4   : > { %v2478_v45 = vsel %vm7442_vm7, %v2473_v47, %v2477_v5  ;;  %v2496_v30 = vor.u32 %v2495_v10, %v2491_v26  ;;  %v2506_v46 = vrot.slane %v2504_v29, 4  ;;  %v2513_v19 = vshll.u32 %v8099_v37, 16  ;;  %9822 = vst [vmem:[#allocation7_spill] sm:$0xff] %v8121_v63  ;;  %v8162_v37 = vld [vmem:[%s7242_s27 + $0xb4] sm:$0xf] }
  0xb5   : > { %v5903_v3 = vcombine.low %v2468_v0, %v2478_v45  ;;  %v2487_v48 = vrot.slane %v2486_v12, 4  ;;  %v2509_v38 = vrot.slane %v2507_v17, 5  ;;  %v2519_v35 = vrot.slane %v2517_v53, 4  ;;  %v8130_v0 = vld [vmem:[%s7242_s27 + $0xa4] sm:$0x1]  ;;  %9826 = vst [vmem:[#allocation13_spill] sm:$0xff] %v8162_v37 }
  0xb6   : > { %v2497_v4 = vrot.slane %v2496_v30, 4  ;;  %v2523_v22 = vshll.u32 %v8110_v44, 16  ;;  %v5873_v47 = vcombine.low %v8116_v62, %v8121_v63  ;;  %v2528_v14 = vshrl.u32 %v8116_v62, 16  ;;  %9823 = vst [vmem:[#allocation10_spill] sm:$0xff] %v8130_v0  ;;  %v8137_v30 = vld [vmem:[%s7242_s27 + $0xa8] sm:$0xf] }
  0xb7   : > { %6644 = vmatmul.mubr.msk.bf16.gmra.mxu0 %vm317_vm1, %v5903_v3  ;;  %v2492_v5 = vsel %vm7442_vm7, %v2487_v48, %v2491_v26  ;;  %v2510_v10 = vor.u32 %v2509_v38, %v2506_v46  ;;  %6614 = vmatmul.mubr.msk.bf16.gmra.mxu1 %vm317_vm1, %v5872_v49  ;;  %v2515_v29 = vrot.slane %v2513_v19, 5  ;;  %v2531_v45 = vshll.u32 %v8116_v62, 16  ;;  %9824 = vst [vmem:[#allocation11_spill] sm:$0xff] %v8137_v30 }
  0xb8   : > { %v2502_v12 = vsel %vm7442_vm7, %v2497_v4, %v2501_v33  ;;  %v2525_v17 = vrot.slane %v2523_v22, 5  ;;  %6617 = vmatprep.mubr.msk.bf16.mxu1 %vm317_vm1, %v5873_v47  ;;  %v2541_v3 = vshrl.u32 %v8121_v63, 16  ;;  %v2530_v48 = vrot.slane %v2528_v14, 4  ;;  %v8144_v4 = vld [vmem:[%s7242_s27 + $0xac] sm:$0xf] }
  0xb9   : > { %v5904_v26 = vcombine.low %v2492_v5, %v2502_v12  ;;  %v2511_v53 = vrot.slane %v2510_v10, 4  ;;  %v2520_v46 = vor.u32 %v2519_v35, %v2515_v29  ;;  %v2533_v38 = vrot.slane %v2531_v45, 5  ;;  %9825 = vst [vmem:[#allocation12_spill] sm:$0xff] %v8144_v4  ;;  %v8153_v10 = vld [vmem:[%s7242_s27 + $0xb0] sm:$0x1] }
  0xba   : > { %v2537_v33 = vshll.u32 %v8121_v63, 16  ;;  %v2547_v49 = vshll.u32 %v8130_v0, 16  ;;  %v2543_v22 = vrot.slane %v2541_v3, 4  ;;  %v5874_v5 = vcombine.low %v8137_v30, %v8144_v4 }
  0xbb   : > { %6647 = vmatprep.mubr.msk.bf16.mxu0 %vm317_vm1, %v5904_v26  ;;  %v2516_v19 = vsel %vm7442_vm7, %v2511_v53, %v2515_v29  ;;  %v2552_v35 = vshrl.u32 %v8137_v30, 16  ;;  %v2521_v47 = vrot.slane %v2520_v46, 4  ;;  %v2534_v14 = vor.u32 %v2533_v38, %v2530_v48  ;;  %v8165_v48 = vld [vmem:[%s7242_s27 + $0xb8] sm:$0xf] }
  0xbc   : > { %v2539_v12 = vrot.slane %v2537_v33, 5  ;;  %v2549_v45 = vrot.slane %v2547_v49, 5  ;;  %v2555_v26 = vshll.u32 %v8137_v30, 16  ;;  %v2565_v0 = vshrl.u32 %v8144_v4, 16  ;;  %v8168_v30 = vld [vmem:[%s7242_s27 + $0xbc] sm:$0x1] }
  0xbd   : > { %v2554_v29 = vrot.slane %v2552_v35, 4  ;;  %v2561_v53 = vshll.u32 %v8144_v4, 16  ;;  %v2526_v3 = vsel %vm7442_vm7, %v2521_v47, %v2525_v17  ;;  %v2535_v63 = vrot.slane %v2534_v14, 4  ;;  %9827 = vst [vmem:[#allocation14_spill] sm:$0xff] %v8168_v30 }
  0xbe   : > { %v2544_v62 = vor.u32 %v2543_v22, %v2539_v12  ;;  %v2571_v44 = vshll.u32 %v8153_v10, 16  ;;  %v5905_v46 = vcombine.low %v2516_v19, %v2526_v3  ;;  %v2557_v38 = vrot.slane %v2555_v26, 5 }
  0xbf   : > { %v2563_v33 = vrot.slane %v2561_v53, 5  ;;  %v2567_v49 = vrot.slane %v2565_v0, 4  ;;  %v2540_v35 = vsel %vm7442_vm7, %v2535_v63, %v2539_v12  ;;  %6618 = vmatmul.mubr.msk.bf16.gmra.mxu1 %vm317_vm1, %v5874_v5  ;;  %v5875_v22 = vcombine.low %v8162_v37, %v8165_v48  ;;  %v8185_v12 = vld [vmem:[%s7242_s27 + $0xc0] sm:$0xf] }
  0xc0   : > { %v2545_v4 = vrot.slane %v2544_v62, 4  ;;  %v2573_v17 = vrot.slane %v2571_v44, 5  ;;  %6648 = vmatmul.mubr.msk.bf16.gmra.mxu0 %vm317_vm1, %v5905_v46  ;;  %v2558_v19 = vor.u32 %v2557_v38, %v2554_v29  ;;  %v2576_v0 = vshrl.u32 %v8162_v37, 16  ;;  %v8188_v46 = vld [vmem:[%s7242_s27 + $0xc4] sm:$0xf] }
  0xc1   : > { %v2568_v47 = vor.u32 %v2567_v49, %v2563_v33  ;;  %v2579_v14 = vshll.u32 %v8162_v37, 16  ;;  %6621 = vmatprep.mubr.msk.bf16.mxu1 %vm317_vm1, %v5875_v22  ;;  %v2589_v44 = vshrl.u32 %v8165_v48, 16  ;;  %v2585_v62 = vshll.u32 %v8165_v48, 16 }
  0xc2   : > { %v2550_v63 = vsel %vm7442_vm7, %v2545_v4, %v2549_v45  ;;  %v2595_v5 = vshll.u32 %v8168_v30, 16  ;;  %v2559_v29 = vrot.slane %v2558_v19, 4  ;;  %v2578_v3 = vrot.slane %v2576_v0, 4  ;;  %v8191_v45 = vld [vmem:[%s7242_s27 + $0xc8] sm:$0x1] }
  0xc3   : > { %v5906_v26 = vcombine.low %v2540_v35, %v2550_v63  ;;  %v2569_v53 = vrot.slane %v2568_v47, 4  ;;  %v2581_v38 = vrot.slane %v2579_v14, 5  ;;  %v2587_v49 = vrot.slane %v2585_v62, 5  ;;  %9828 = vst [vmem:[#allocation15_spill] sm:$0xff] %v8191_v45 }
  0xc4   : > { %v2591_v37 = vrot.slane %v2589_v44, 4  ;;  %v2597_v4 = vrot.slane %v2595_v5, 5  ;;  %v2564_v22 = vsel %vm7442_vm7, %v2559_v29, %v2563_v33  ;;  %v5876_v35 = vcombine.low %v8185_v12, %v8188_v46 }
  0xc5   : > { %6651 = vmatprep.mubr.msk.bf16.mxu0 %vm317_vm1, %v5906_v26  ;;  %v2574_v30 = vsel %vm7442_vm7, %v2569_v53, %v2573_v17  ;;  %v2600_v19 = vshrl.u32 %v8185_v12, 16  ;;  %v2582_v0 = vor.u32 %v2581_v38, %v2578_v3  ;;  %v2603_v63 = vshll.u32 %v8185_v12, 16 }
  0xc6   : > { %v5907_v47 = vcombine.low %v2564_v22, %v2574_v30  ;;  %v2592_v14 = vor.u32 %v2591_v37, %v2587_v49  ;;  %v2613_v44 = vshrl.u32 %v8188_v46, 16  ;;  %v2609_v33 = vshll.u32 %v8188_v46, 16  ;;  %v8208_v30 = vld [vmem:[%s7242_s27 + $0x18] sm:$0xf] }
  0xc7   : > { %v2602_v62 = vrot.slane %v2600_v19, 4  ;;  %v2619_v5 = vshll.u32 %v8191_v45, 16  ;;  %v2583_v17 = vrot.slane %v2582_v0, 4  ;;  %6622 = vmatmul.mubr.msk.bf16.gmra.mxu1 %vm317_vm1, %v5876_v35  ;;  %v2605_v29 = vrot.slane %v2603_v63, 5  ;;  %v8213_v19 = vld [vmem:[%s7242_s27 + $0x1c] sm:$0xf] }
  0xc8   : > { %v2593_v26 = vrot.slane %v2592_v14, 4  ;;  %v5926_v53 = vrot.slane %v7835_v21, 9  ;;  %6652 = vmatmul.mubr.msk.bf16.gmra.mxu0 %vm317_vm1, %v5907_v47  ;;  %v2611_v37 = vrot.slane %v2609_v33, 5  ;;  %v2615_v3 = vrot.slane %v2613_v44, 4  ;;  %v8223_v33 = vld [vmem:[%s7242_s27 + $0x24] sm:$0xf] }
  0xc9   : > { %v2621_v38 = vrot.slane %v2619_v5, 5  ;;  %v2999_v22 = vrot.slane %v7841_v60, 5  ;;  %v2588_v0 = vsel %vm7442_vm7, %v2583_v17, %v2587_v49  ;;  %v2606_v21 = vor.u32 %v2605_v29, %v2602_v62  ;;  %v8368_v17 = vld [vmem:[%s7242_s27 + $0x64] sm:$0xf]  ;;  %v8417_v49 = vld [vmem:[%s7242_s27 + $0x7c] sm:$0xf] }
  0xca   : > { %v2598_v35 = vsel %vm7442_vm7, %v2593_v26, %v2597_v4  ;;  %v3002_v14 = vrot.slane %v7844_v36, 5  ;;  %v2616_v45 = vor.u32 %v2615_v3, %v2611_v37  ;;  %v6024_v5 = vcombine.low %v8208_v30, %v8213_v19  ;;  %v8230_v4 = vld [vmem:[%s7242_s27 + $0x28] sm:$0xf]  ;;  %9830 = vst [vmem:[#allocation17_spill] sm:$0xff] %v8368_v17  ;;  %9835 = vst [vmem:[#allocation22_spill] sm:$0xff] %v8417_v49 }
  0xcb   : > { %v5908_v63 = vcombine.low %v2588_v0, %v2598_v35  ;;  %v3000_v47 = vsel %vm7428_vm6, %v5926_v53, %v2999_v22  ;;  %v3001_v44 = vrot.slane %v2999_v22, 4  ;;  %v2607_v60 = vrot.slane %v2606_v21, 4 }
  0xcc   : > { %v2617_v36 = vrot.slane %v2616_v45, 4  ;;  %v5927_v29 = vrot.slane %v7858_v58, 9  ;;  %v3006_v22 = vrot.slane %v7865_v59, 5  ;;  %v3009_v0 = vrot.slane %v7870_v27, 5 }
  0xcd   : > { %6655 = vmatprep.mubr.msk.bf16.mxu0 %vm317_vm1, %v5908_v63  ;;  %v3003_v62 = vsel %vm7428_vm6, %v3001_v44, %v3002_v14  ;;  %v2612_v53 = vsel %vm7442_vm7, %v2607_v60, %v2611_v37  ;;  %v6025_v45 = vcombine.low %v8223_v33, %v8230_v4  ;;  %v3934_v21 = vshrl.u32 %v8223_v33, 16  ;;  %v8254_v60 = vld [vmem:[%s7242_s27 + $0x30] sm:$0xf] }
  0xce   : > { %v5943_v3 = vcombine.low %v3000_v47, %v3003_v62  ;;  %v2622_v35 = vsel %vm7442_vm7, %v2617_v36, %v2621_v38  ;;  %v3937_v14 = vshll.u32 %v8223_v33, 16  ;;  %v3007_v37 = vsel %vm7428_vm6, %v5927_v29, %v3006_v22 }
  0xcf   : > { %v5909_v58 = vcombine.low %v2612_v53, %v2622_v35  ;;  %v3008_v59 = vrot.slane %v3006_v22, 4  ;;  %v3943_v27 = vshll.u32 %v8230_v4, 16  ;;  %v3936_v63 = vrot.slane %v3934_v21, 4 }
  0xd0   : > { %6661 = vmatprep.mubr.msk.bf16.mxu1 %vm317_vm1, %v5943_v3  ;;  %v3939_v47 = vrot.slane %v3937_v14, 5  ;;  %v3947_v38 = vshrl.u32 %v8230_v4, 16  ;;  %v9729_v29 = vrot.slane %v8230_v4, 5  ;;  %v4392_v53 = vsel %vm366_vm0, %v7921_v51, 0  ;;  %v8265_v3 = vld [vmem:[%s7242_s27 + $0x34] sm:$0xf] }
  0xd1   : > { %6656 = vmatmul.mubr.msk.bf16.gmra.mxu0 %vm317_vm1, %v5909_v58  ;;  %v3010_v36 = vsel %vm7428_vm6, %v3008_v59, %v3009_v0  ;;  %v8259_v62 = vrot.slane %v3943_v27, 5  ;;  %v4878_v14 = vsel %vm366_vm0, %v7942_v20, 0  ;;  %v5928_v58 = vrot.slane %v7875_v42, 9  ;;  %v8309_v20 = vld [vmem:[%s7242_s27 + $0x48] sm:$0xf] }
  0xd2   : > { %6695 = vmatprep.mubr.msk.bf16.mxu0 %vm317_vm1, %v6024_v5  ;;  %v5944_v22 = vcombine.low %v3007_v37, %v3010_v36  ;;  %v3940_v35 = vor.u32 %v3939_v47, %v3936_v63  ;;  %v3949_v21 = vrot.slane %v3947_v38, 4  ;;  %v8272_v0 = vrot.slane %v9729_v29, 4  ;;  %v8285_v63 = vld [vmem:[%s7242_s27 + $0x3c] sm:$0xf]  ;;  %v8288_v47 = vld [vmem:[%s7242_s27 + $0x40] sm:$0xf] }
  0xd3   : > { %v3013_v51 = vrot.slane %v7882_v50, 5  ;;  %v3016_v59 = vrot.slane %v7896_v23, 5  ;;  %v6026_v37 = vcombine.low %v8254_v60, %v8265_v3  ;;  %v3985_v23 = vshll.u32 %v8285_v63, 16  ;;  %v8337_v29 = vld [vmem:[%s7242_s27 + $0x58] sm:$0xf] }
  0xd4   : > { %6662 = vmatmul.mubr.msk.bf16.vlgmr.msra.gmra.mxu1 %vm317_vm1, %v5944_v22  ;;  %v8278_v27 = vrot.slane %v3940_v35, 4  ;;  %v3950_v5 = vor.u32 %v3949_v21, %v8259_v62  ;;  %v5929_v22 = vrot.slane %v7902_v24, 9  ;;  %v3020_v35 = vrot.slane %v7905_v1, 5 }
  0xd5   : > { %6728 = vmatpush3.bf16.msra.mxu1 %v4392_v53  ;;  %v3014_v42 = vsel %vm7428_vm6, %v5928_v58, %v3013_v51  ;;  %v3015_v50 = vrot.slane %v3013_v51, 4  ;;  %v3023_v21 = vrot.slane %v7916_v9, 5  ;;  %v6027_v58 = vcombine.low %v8285_v63, %v8288_v47 }
  0xd6   : > { %v8294_v36 = vrot.slane %v3950_v5, 4  ;;  %v3982_v51 = vshrl.u32 %v8285_v63, 16  ;;  %v3021_v5 = vsel %vm7428_vm6, %v5929_v22, %v3020_v35  ;;  %v3022_v24 = vrot.slane %v3020_v35, 4 }
  0xd7   : > { %v3017_v53 = vsel %vm7428_vm6, %v3015_v50, %v3016_v59  ;;  %v3991_v1 = vshll.u32 %v8288_v47, 16  ;;  %v8314_v59 = vrot.slane %v3985_v23, 5  ;;  %v3995_v50 = vshrl.u32 %v8288_v47, 16 }
  0xd8   : > { %v5945_v38 = vcombine.low %v3014_v42, %v3017_v53  ;;  %v8312_v9 = vrot.slane %v3982_v51, 4  ;;  %v8319_v53 = vld [vmem:[%s7242_s27 + $0x4c] sm:$0xf]  ;;  %v3024_v22 = vsel %vm7428_vm6, %v3022_v24, %v3023_v21  ;;  %v5930_v23 = vrot.slane %v7928_v7, 9  ;;  %v8329_v51 = vld [vmem:[%s7242_s27 + $0x54] sm:$0xf] }
  0xd9   : > { %6696 = vmatmul.mubr.msk.bf16.vlgmr.msra.gmra.mxu0 %vm317_vm1, %v6025_v45  ;;  %v8324_v35 = vrot.slane %v3991_v1, 5  ;;  %v5946_v44 = vcombine.low %v3021_v5, %v3024_v22  ;;  %v8332_v42 = vrot.slane %v3995_v50, 4  ;;  %v6028_v21 = vcombine.low %v8309_v20, %v8319_v53 }
  0xda   : > { %6762 = vmatpush3.bf16.msra.mxu0 %v4878_v14  ;;  %6665 = vmatprep.mubr.msk.bf16.mxu1 %vm317_vm1, %v5945_v38  ;;  %v3027_v14 = vrot.slane %v7933_v34, 5  ;;  %v3030_v38 = vrot.slane %v7951_v39, 5  ;;  %v5931_v39 = vrot.slane %v7958_v16, 9  ;;  %v3034_v5 = vrot.slane %v7966_v55, 5  ;;  %v8360_v55 = vld [vmem:[%s7242_s27 + $0x60] sm:$0xf] }
  0xdb   : > { %6699 = vmatprep.mubr.msk.bf16.mxu0 %vm317_vm1, %v6026_v37  ;;  %v3037_v50 = vrot.slane %v7975_v40, 5  ;;  %v6029_v22 = vcombine.low %v8329_v51, %v8337_v29  ;;  %v4030_v7 = vshrl.u32 %v8329_v51, 16  ;;  %v4033_v1 = vshll.u32 %v8329_v51, 16  ;;  %9829 = vst [vmem:[#allocation16_spill] sm:$0xff] %v8360_v55 }
  0xdc   : > { %6666 = vmatmul.mubr.msk.bf16.gmra.mxu1 %vm317_vm1, %v5946_v44  ;;  %v3028_v37 = vsel %vm7428_vm6, %v5930_v23, %v3027_v14  ;;  %v3029_v34 = vrot.slane %v3027_v14, 4  ;;  %v3035_v23 = vsel %vm7428_vm6, %v5931_v39, %v3034_v5  ;;  %v3036_v14 = vrot.slane %v3034_v5, 4 }
  0xdd   : > { %v4039_v16 = vshll.u32 %v8337_v29, 16  ;;  %v8362_v24 = vrot.slane %v4030_v7, 4  ;;  %v8364_v45 = vrot.slane %v4033_v1, 5  ;;  %v4043_v26 = vshrl.u32 %v8337_v29, 16  ;;  %v8378_v7 = vld [vmem:[%s7242_s27 + $0x6c] sm:$0xf] }
  0xde   : > { %v3031_v44 = vsel %vm7428_vm6, %v3029_v34, %v3030_v38  ;;  %v3038_v38 = vsel %vm7428_vm6, %v3036_v14, %v3037_v50  ;;  %9831 = vst [vmem:[#allocation18_spill] sm:$0xff] %v8378_v7  ;;  %v8387_v50 = vld [vmem:[%s7242_s27 + $0x70] sm:$0xf]  ;;  %v3044_v14 = vrot.slane %v7992_v32, 5  ;;  %v3048_v32 = vrot.slane %v8010_v43, 5 }
  0xdf   : > { %v5947_v40 = vcombine.low %v3028_v37, %v3031_v44  ;;  %v8373_v34 = vrot.slane %v4039_v16, 5  ;;  %v5948_v1 = vcombine.low %v3035_v23, %v3038_v38  ;;  %v8382_v5 = vrot.slane %v4043_v26, 4  ;;  %9832 = vst [vmem:[#allocation19_spill] sm:$0xff] %v8387_v50  ;;  %v8414_v37 = vld [vmem:[%s7242_s27 + $0x78] sm:$0xf] }
  0xe0   : > { %v3041_v44 = vrot.slane %v7989_v52, 5  ;;  %v6030_v16 = vcombine.low %v8360_v55, %v8368_v17  ;;  %v5933_v52 = vrot.slane %v8007_v15, 9  ;;  %v3051_v23 = vrot.slane %v8014_v56, 5  ;;  %9834 = vst [vmem:[#allocation21_spill] sm:$0xff] %v8414_v37 }
  0xe1   : > { %6700 = vmatmul.mubr.msk.bf16.gmra.mxu0 %vm317_vm1, %v6027_v58  ;;  %6669 = vmatprep.mubr.msk.bf16.mxu1 %vm317_vm1, %v5947_v40  ;;  %v5932_v58 = vrot.slane %v7986_v31, 9  ;;  %v4078_v40 = vshrl.u32 %v8378_v7, 16  ;;  %v4087_v31 = vshll.u32 %v8387_v50, 16  ;;  %v4091_v15 = vshrl.u32 %v8387_v50, 16 }
  0xe2   : > { %6703 = vmatprep.mubr.msk.bf16.mxu0 %vm317_vm1, %v6028_v21  ;;  %v3043_v26 = vrot.slane %v3041_v44, 4  ;;  %v3049_v43 = vsel %vm7428_vm6, %v5933_v52, %v3048_v32  ;;  %v3050_v56 = vrot.slane %v3048_v32, 4  ;;  %v5934_v32 = vrot.slane %v8027_v2, 9 }
  0xe3   : > { %v3042_v21 = vsel %vm7428_vm6, %v5932_v58, %v3041_v44  ;;  %v4081_v44 = vshll.u32 %v8378_v7, 16  ;;  %v8411_v39 = vrot.slane %v4078_v40, 4  ;;  %v8425_v17 = vrot.slane %v4091_v15, 4 }
  0xe4   : > { %6670 = vmatmul.mubr.msk.bf16.gmra.mxu1 %vm317_vm1, %v5948_v1  ;;  %v3045_v58 = vsel %vm7428_vm6, %v3043_v26, %v3044_v14  ;;  %v8419_v38 = vpop.f32.mrf.mxu0  ;;  %v8423_v26 = vrot.slane %v4087_v31, 5  ;;  %v3052_v40 = vsel %vm7428_vm6, %v3050_v56, %v3051_v23  ;;  %v3055_v31 = vrot.slane %v8033_v28, 5 }
  0xe5   : > { %v5949_v1 = vcombine.low %v3042_v21, %v3045_v58  ;;  %9833 = vst [vmem:[#allocation20_spill] sm:$0xff] %v8411_v39  ;;  %v8421_v14 = vrot.slane %v4081_v44, 5  ;;  %9838 = vst [vmem:[#allocation25_spill] sm:$0xff] %v8425_v17  ;;  %v8429_v58 = vld [vmem:[%s7242_s27 + $0x84] sm:$0xf]  ;;  %v5950_v21 = vcombine.low %v3049_v43, %v3052_v40  ;;  %v3065_v43 = vrot.slane %v8065_v18, 5 }
  0xe6   : > { %9837 = vst [vmem:[#allocation24_spill] sm:$0xff] %v8423_v26  ;;  %9839 = vst [vmem:[#allocation26_spill] sm:$0xff] %v8429_v58  ;;  %v8439_v44 = vld [vmem:[%s7242_s27 + $0x88] sm:$0xf]  ;;  %v8441_v15 = vpop.f32.mrf.mxu0  ;;  %v3056_v56 = vsel %vm7428_vm6, %v5934_v32, %v3055_v31  ;;  %v3057_v2 = vrot.slane %v3055_v31, 4  ;;  %v4126_v31 = vshrl.u32 %v8429_v58, 16 }
  0xe7   : > { %9836 = vst [vmem:[#allocation23_spill] sm:$0xff] %v8421_v14  ;;  %6673 = vmatprep.mubr.msk.bf16.mxu1 %vm317_vm1, %v5949_v1  ;;  %9840 = vst [vmem:[#allocation27_spill] sm:$0xff] %v8439_v44  ;;  %v6032_v1 = vcombine.low %v8414_v37, %v8417_v49  ;;  %v4129_v52 = vshll.u32 %v8429_v58, 16  ;;  %v4135_v28 = vshll.u32 %v8439_v44, 16  ;;  %v9868_v14 = vld [vmem:[#allocation10_spill] sm:$0xff] }
  0xe8   : > { %v8452_v17 = vpop.f32.mrf.mxu1  ;;  %v8454_v26 = vpop.f32.mrf.mxu0  ;;  %v3086_v39 = vrot.slane %v9868_v14, 5 }
  0xe9   : > { %6704 = vmatmul.mubr.msk.bf16.gmra.mxu0 %vm317_vm1, %v6029_v22  ;;  %v3058_v22 = vrot.slane %v8040_v57, 5  ;;  %9841 = vst [vmem:[#allocation28_spill] sm:$0xff] %v8452_v17  ;;  %v5935_v57 = vrot.slane %v8048_v6, 9  ;;  %v8475_v17 = vld [vmem:[%s7242_s27 + $0x90] sm:$0xf]  ;;  %v8482_v49 = vrot.slane %v4129_v52, 5 }
  0xea   : > { %6707 = vmatprep.mubr.msk.bf16.mxu0 %vm317_vm1, %v6030_v16  ;;  %v3062_v16 = vrot.slane %v8055_v41, 5  ;;  %v8467_v6 = vpop.f32.mrf.mxu1  ;;  %v8469_v23 = vpop.f32.mrf.mxu0  ;;  %9843 = vst [vmem:[#allocation30_spill] sm:$0xff] %v8475_v17  ;;  %v8484_v37 = vrot.slane %v4135_v28, 5  ;;  %v5936_v52 = vrot.slane %v8072_v61, 9  ;;  %v9850_v28 = vcombine.low %v8378_v7, %v8387_v50  ;;  %v8512_v61 = vld [vmem:[%s7242_s27 + $0xa0] sm:$0xf] }
  0xeb   : > { %v3059_v32 = vsel %vm7428_vm6, %v3057_v2, %v3058_v22  ;;  %9842 = vst [vmem:[#allocation29_spill] sm:$0xff] %v8467_v6  ;;  %v8478_v22 = vld [vmem:[%s7242_s27 + $0x94] sm:$0xf]  ;;  %v8480_v2 = vrot.slane %v4126_v31, 4  ;;  %9846 = vst [vmem:[#allocation33_spill] sm:$0xff] %v8482_v49  ;;  %v4183_v31 = vshll.u32 %v8512_v61, 16 }
  0xec   : > { %6674 = vmatmul.mubr.msk.bf16.gmra.mxu1 %vm317_vm1, %v5950_v21  ;;  %v5951_v41 = vcombine.low %v3056_v56, %v3059_v32  ;;  %v3063_v18 = vsel %vm7428_vm6, %v5935_v57, %v3062_v16  ;;  %v3064_v40 = vrot.slane %v3062_v16, 4  ;;  %v4139_v21 = vshrl.u32 %v8439_v44, 16  ;;  %9844 = vst [vmem:[#allocation31_spill] sm:$0xff] %v8478_v22  ;;  %9847 = vst [vmem:[#allocation34_spill] sm:$0xff] %v8484_v37  ;;  %v8487_v32 = vpop.f32.mrf.mxu1  ;;  %v8496_v6 = vpop.f32.mrf.mxu0  ;;  %v9855_v37 = vld [vmem:[#allocation8_spill] sm:$0xff] }
  0xed   : > { %9845 = vst [vmem:[#allocation32_spill] sm:$0xff] %v8480_v2  ;;  %9848 = vst [vmem:[#allocation35_spill] sm:$0xff] %v8487_v32  ;;  %v3076_v49 = vrot.slane %v9855_v37, 5 }
  0xee   : > { %6677 = vmatprep.mubr.msk.bf16.mxu1 %vm317_vm1, %v5951_v41  ;;  %v3066_v57 = vsel %vm7428_vm6, %v3064_v40, %v3065_v43  ;;  %v8492_v16 = vrot.slane %v4139_v21, 4  ;;  %v8502_v32 = vpop.f32.mrf.mxu1  ;;  %v3069_v41 = vrot.slane %v8076_v54, 5  ;;  %v3072_v43 = vrot.slane %v8088_v11, 5  ;;  %v8509_v21 = vld [vmem:[%s7242_s27 + $0x9c] sm:$0xf]  ;;  %9853 = vst [vmem:[#allocation39_spill] sm:$0xff] %v8512_v61  ;;  %v8519_v54 = vpop.f32.mrf.mxu0 }
  0xef   : > { %v5952_v56 = vcombine.low %v3063_v18, %v3066_v57  ;;  %9851 = vst [vmem:[#allocation37_spill] sm:$0xff] %v8502_v32  ;;  %v6034_v40 = vcombine.low %v8475_v17, %v8478_v22  ;;  %9852 = vst [vmem:[#allocation38_spill] sm:$0xff] %v8509_v21  ;;  %v5937_v57 = vrot.slane %v8095_v13, 9  ;;  %v4174_v18 = vshrl.u32 %v8509_v21, 16 }
  0xf0   : > { %9849 = vst [vmem:[#allocation36_spill] sm:$0xff] %v8492_v16  ;;  %v3070_v11 = vsel %vm7428_vm6, %v5936_v52, %v3069_v41  ;;  %v3071_v32 = vrot.slane %v3069_v41, 4  ;;  %v8523_v16 = vpop.f32.mrf.mxu1  ;;  %v4177_v13 = vshll.u32 %v8509_v21, 16  ;;  %v8532_v22 = vpop.f32.mrf.mxu0  ;;  %v3078_v41 = vrot.slane %v3076_v49, 4 }
  0xf1   : > { %6708 = vmatmul.mubr.msk.bf16.gmra.mxu0 %vm317_vm1, %v9850_v28  ;;  %9854 = vst [vmem:[#allocation40_spill] sm:$0xff] %v8523_v16  ;;  %v3077_v37 = vsel %vm7428_vm6, %v5937_v57, %v3076_v49  ;;  %v8543_v16 = vld [vmem:[%s7242_s27 + $0xa8] sm:$0xf]  ;;  %v8545_v7 = vrot.slane %v4174_v18, 4 }
  0xf2   : > { %6711 = vmatprep.mubr.msk.bf16.mxu0 %vm317_vm1, %v6032_v1  ;;  %v9856_v1 = vld [vmem:[#allocation9_spill] sm:$0xff]  ;;  %v3073_v52 = vsel %vm7428_vm6, %v3071_v32, %v3072_v43  ;;  %v8540_v28 = vpop.f32.mrf.mxu1  ;;  %v8547_v50 = vrot.slane %v4177_v13, 5  ;;  %v8551_v32 = vpop.f32.mrf.mxu0  ;;  %v8554_v43 = vld [vmem:[%s7242_s27 + $0xac] sm:$0xf]  ;;  %v8565_v13 = vld [vmem:[%s7242_s27 + $0xb4] sm:$0xf] }
  0xf3   : > { %v3079_v2 = vrot.slane %v9856_v1, 5  ;;  %v4187_v1 = vshrl.u32 %v8512_v61, 16  ;;  %9857 = vst [vmem:[#allocation8_spill] sm:$0xff] %v8540_v28  ;;  %9858 = vst [vmem:[#allocation9_spill] sm:$0xff] %v8543_v16  ;;  %v5953_v17 = vcombine.low %v3070_v11, %v3073_v52  ;;  %v9866_v52 = vld [vmem:[#allocation6_spill] sm:$0xff]  ;;  %v9871_v11 = vld [vmem:[#allocation11_spill] sm:$0xff] }
  0xf4   : > { %6678 = vmatmul.mubr.msk.bf16.gmra.mxu1 %vm317_vm1, %v5952_v56  ;;  %9859 = vst [vmem:[#allocation41_spill] sm:$0xff] %v8545_v7  ;;  %9860 = vst [vmem:[#allocation42_spill] sm:$0xff] %v8547_v50  ;;  %v8549_v56 = vrot.slane %v4183_v31, 5  ;;  %v8562_v18 = vpop.f32.mrf.mxu1  ;;  %v9867_v50 = vld [vmem:[#allocation7_spill] sm:$0xff] }
  0xf5   : > { %9862 = vst [vmem:[#allocation44_spill] sm:$0xff] %v8554_v43  ;;  %v3080_v49 = vsel %vm7428_vm6, %v3078_v41, %v3079_v2  ;;  %v8558_v57 = vrot.slane %v4187_v1, 4  ;;  %9864 = vst [vmem:[#allocation46_spill] sm:$0xff] %v8562_v18  ;;  %6681 = vmatprep.mubr.msk.bf16.mxu1 %vm317_vm1, %v5953_v17  ;;  %v3083_v7 = vrot.slane %v9867_v50, 5  ;;  %v8571_v2 = vpop.f32.mrf.mxu0  ;;  %v8574_v41 = vld [vmem:[%s7242_s27 + $0xb8] sm:$0xf]  ;;  %v9869_v1 = vcombine.low %v8429_v58, %v8439_v44 }
  0xf6   : > { %9861 = vst [vmem:[#allocation43_spill] sm:$0xff] %v8549_v56  ;;  %9865 = vst [vmem:[#allocation47_spill] sm:$0xff] %v8565_v13  ;;  %v5954_v31 = vcombine.low %v3077_v37, %v3080_v49  ;;  %v5938_v56 = vrot.slane %v9866_v52, 9  ;;  %v8580_v28 = vpop.f32.mrf.mxu1  ;;  %v6036_v17 = vcombine.low %v8543_v16, %v8554_v43  ;;  %v9872_v18 = vld [vmem:[#allocation12_spill] sm:$0xff]  ;;  %v3093_v37 = vrot.slane %v8153_v10, 5 }
  0xf7   : > { %9863 = vst [vmem:[#allocation45_spill] sm:$0xff] %v8558_v57  ;;  %9870 = vst [vmem:[#allocation6_spill] sm:$0xff] %v8580_v28  ;;  %v3085_v52 = vrot.slane %v3083_v7, 4  ;;  %v3090_v28 = vrot.slane %v9872_v18, 5  ;;  %v8592_v57 = vpop.f32.mrf.mxu0  ;;  %v4225_v50 = vshll.u32 %v8565_v13, 16  ;;  %v4231_v18 = vshll.u32 %v8574_v41, 16 }
  0xf8   : > { %v3084_v49 = vsel %vm7428_vm6, %v5938_v56, %v3083_v7  ;;  %v8594_v58 = vpop.f32.mrf.mxu1  ;;  %v8609_v10 = vld [vmem:[%s7242_s27 + $0xc0] sm:$0xf] }
  0xf9   : > { %6712 = vmatmul.mubr.msk.bf16.gmra.mxu0 %vm317_vm1, %v9869_v1  ;;  %v5939_v1 = vrot.slane %v9871_v11, 9  ;;  %9873 = vst [vmem:[#allocation7_spill] sm:$0xff] %v8594_v58  ;;  %v3087_v7 = vsel %vm7428_vm6, %v3085_v52, %v3086_v39  ;;  %v3092_v11 = vrot.slane %v3090_v28, 4  ;;  %v8606_v58 = vpop.f32.mrf.mxu0  ;;  %9874 = vst [vmem:[#allocation10_spill] sm:$0xff] %v8609_v10  ;;  %v8614_v16 = vrot.slane %v4225_v50, 5 }
  0xfa   : > { %6715 = vmatprep.mubr.msk.bf16.mxu0 %vm317_vm1, %v6034_v40  ;;  %v4222_v40 = vshrl.u32 %v8565_v13, 16  ;;  %v5955_v14 = vcombine.low %v3084_v49, %v3087_v7  ;;  %v4235_v39 = vshrl.u32 %v8574_v41, 16  ;;  %v8617_v52 = vpop.f32.mrf.mxu1  ;;  %v8624_v44 = vrot.slane %v4231_v18, 5  ;;  %v8631_v50 = vld [vmem:[%s7242_s27 + $0xcc] sm:$0xf]  ;;  %v9883_v18 = vld [vmem:[#allocation14_spill] sm:$0xff] }
  0xfb   : > { %v3091_v56 = vsel %vm7428_vm6, %v5939_v1, %v3090_v28  ;;  %9876 = vst [vmem:[#allocation12_spill] sm:$0xff] %v8614_v16  ;;  %9877 = vst [vmem:[#allocation48_spill] sm:$0xff] %v8617_v52  ;;  %v8620_v28 = vld [vmem:[%s7242_s27 + $0xc4] sm:$0xf]  ;;  %v3094_v1 = vsel %vm7428_vm6, %v3092_v11, %v3093_v37  ;;  %v8628_v49 = vpop.f32.mrf.mxu0  ;;  %v9882_v16 = vld [vmem:[#allocation13_spill] sm:$0xff]  ;;  %v3097_v37 = vrot.slane %v8165_v48, 5 }
  0xfc   : > { %6682 = vmatmul.mubr.msk.bf16.gmra.mxu1 %vm317_vm1, %v5954_v31  ;;  %v8612_v43 = vrot.slane %v4222_v40, 4  ;;  %9878 = vst [vmem:[#allocation49_spill] sm:$0xff] %v8620_v28  ;;  %9879 = vst [vmem:[#allocation50_spill] sm:$0xff] %v8624_v44  ;;  %v5956_v40 = vcombine.low %v3091_v56, %v3094_v1  ;;  %v8634_v7 = vrot.slane %v4235_v39, 4  ;;  %v8636_v52 = vpop.f32.mrf.mxu1  ;;  %v8641_v11 = vld [vmem:[%s7242_s27 + $0xd0] sm:$0xf]  ;;  %v6038_v31 = vcombine.low %v8609_v10, %v8620_v28 }
  0xfd   : > { %6685 = vmatprep.mubr.msk.bf16.mxu1 %vm317_vm1, %v5955_v14  ;;  %9881 = vst [vmem:[#allocation52_spill] sm:$0xff] %v8636_v52  ;;  %v3100_v55 = vrot.slane %v9883_v18, 5  ;;  %v8648_v56 = vpop.f32.mrf.mxu0  ;;  %v9884_v39 = vcombine.low %v8509_v21, %v8512_v61  ;;  %v3099_v1 = vrot.slane %v3097_v37, 4  ;;  %v5941_v52 = vrot.slane %v8185_v12, 9  ;;  %v9886_v44 = vld [vmem:[#allocation15_spill] sm:$0xff] }
  0xfe   : > { %9875 = vst [vmem:[#allocation11_spill] sm:$0xff] %v8612_v43  ;;  %9880 = vst [vmem:[#allocation51_spill] sm:$0xff] %v8634_v7  ;;  %v5940_v43 = vrot.slane %v9882_v16, 9  ;;  %v8654_v16 = vpop.f32.mrf.mxu1  ;;  %v3104_v14 = vrot.slane %v8188_v46, 5  ;;  %v3107_v10 = vrot.slane %v9886_v44, 5  ;;  %v4273_v12 = vshll.u32 %v8631_v50, 16 }
  0xff   : > { %9885 = vst [vmem:[#allocation13_spill] sm:$0xff] %v8654_v16  ;;  %v4270_v16 = vshrl.u32 %v8631_v50, 16  ;;  %v8666_v7 = vpop.f32.mrf.mxu0  ;;  %v4283_v46 = vshrl.u32 %v8641_v11, 16  ;;  %v5977_v61 = vld [vmem:[%s7242_s27 + $0x20] sm:$0x1] }
 0x100   : > { %v3098_v48 = vsel %vm7428_vm6, %v5940_v43, %v3097_v37  ;;  %v3101_v43 = vsel %vm7428_vm6, %v3099_v1, %v3100_v55  ;;  %v8670_v37 = vpop.f32.mrf.mxu1  ;;  %v3105_v44 = vsel %vm7428_vm6, %v5941_v52, %v3104_v14  ;;  %v8683_v55 = vrot.slane %v4273_v12, 5 }
 0x101   : > { %6716 = vmatmul.mubr.msk.bf16.gmra.mxu0 %vm317_vm1, %v9884_v39  ;;  %9887 = vst [vmem:[#allocation14_spill] sm:$0xff] %v8670_v37  ;;  %v5957_v18 = vcombine.low %v3098_v48, %v3101_v43  ;;  %v3106_v39 = vrot.slane %v3104_v14, 4  ;;  %v8677_v28 = vrot.slane %v4270_v16, 4  ;;  %v8679_v21 = vpop.f32.mrf.mxu0  ;;  %v8687_v37 = vrot.slane %v4283_v46, 4 }
 0x102   : > { %6719 = vmatprep.mubr.msk.bf16.mxu0 %vm317_vm1, %v6036_v17  ;;  %v4279_v17 = vshll.u32 %v8641_v11, 16  ;;  %9889 = vst [vmem:[#allocation53_spill] sm:$0xff] %v8683_v55  ;;  %v8690_v43 = vpop.f32.mrf.mxu1  ;;  %v6089_v14 = vrot.slane %v8208_v30, 9 }
 0x103   : > { %9888 = vst [vmem:[#allocation15_spill] sm:$0xff] %v8677_v28  ;;  %9891 = vst [vmem:[#allocation55_spill] sm:$0xff] %v8687_v37  ;;  %v3108_v52 = vsel %vm7428_vm6, %v3106_v39, %v3107_v10  ;;  %v8696_v16 = vpop.f32.mrf.mxu0  ;;  %v5980_v37 = vld [vmem:[%s7242_s27 + $0x2c] sm:$0x1]  ;;  %v3929_v10 = vshll.u32 %v5977_v61, 16  ;;  %v4669_v28 = vrot.slane %v8213_v19, 5 }
 0x104   : > { %6686 = vmatmul.mubr.msk.bf16.gmra.mxu1 %vm317_vm1, %v5956_v40  ;;  %v8685_v1 = vrot.slane %v4279_v17, 5  ;;  %9892 = vst [vmem:[#allocation56_spill] sm:$0xff] %v8690_v43  ;;  %9893 = vst [vmem:[#allocation57_spill] sm:$0xff] %v8696_v16  ;;  %v9894_v40 = vshrl.u32 %v8208_v30, 16  ;;  %v9895_v17 = vshll.u32 %v8208_v30, 16  ;;  %v8703_v48 = vpop.f32.mrf.mxu1  ;;  %v3919_v43 = vshll.u32 %v8213_v19, 16 }
 0x105   : > { %6689 = vmatprep.mubr.msk.bf16.mxu1 %vm317_vm1, %v5957_v18  ;;  %9896 = vst [vmem:[#allocation58_spill] sm:$0xff] %v8703_v48  ;;  %v9897_v18 = vshrl.u32 %v8213_v19, 16  ;;  %v4672_v16 = vrot.slane %v5977_v61, 5  ;;  %v3931_v48 = vrot.slane %v3929_v10, 5  ;;  %v4670_v19 = vsel %vm7428_vm6, %v6089_v14, %v4669_v28 }
 0x106   : > { %9890 = vst [vmem:[#allocation54_spill] sm:$0xff] %v8685_v1  ;;  %v3912_v12 = vrot.slane %v9894_v40, 4  ;;  %v3915_v46 = vrot.slane %v9895_v17, 5  ;;  %v5958_v1 = vcombine.low %v3105_v44, %v3108_v52  ;;  %v6561_v40 = vpop.f32.mrf.mxu0  ;;  %v9898_v17 = vcombine.low %v8565_v13, %v8574_v41  ;;  %v8714_v44 = vpop.f32.mrf.mxu1 }
 0x107   : > { %v3925_v55 = vrot.slane %v9897_v18, 4  ;;  %9899 = vst [vmem:[#allocation59_spill] sm:$0xff] %v8714_v44  ;;  %v3921_v52 = vrot.slane %v3919_v43, 5  ;;  %v4671_v61 = vrot.slane %v4669_v28, 4  ;;  %v9900_v18 = vrot.slane %v8230_v4, 5 }
 0x108   : > { %v3916_v39 = vor.u32 %v3915_v46, %v3912_v12  ;;  %v3946_v12 = vsel %vm7442_vm7, %v8278_v27, %v8259_v62  ;;  %v3953_v46 = vshll.u32 %v5980_v37, 16  ;;  %v1574_v10 = vpop.f32.mrf.mxu0  ;;  %v6527_v62 = vpop.f32.mrf.mxu1  ;;  %v4679_v13 = vrot.slane %v5980_v37, 5 }
 0x109   : > { %6720 = vmatmul.mubr.msk.bf16.gmra.mxu0 %vm317_vm1, %v9898_v17  ;;  %v9901_v17 = vrot.slane %v8223_v33, 9  ;;  %v3926_v44 = vor.u32 %v3925_v55, %v3921_v52  ;;  %v4673_v4 = vsel %vm7428_vm6, %v4671_v61, %v4672_v16  ;;  %v1246_v33 = vadd.f32 %v6527_v62, %v8419_v38 }
 0x10a   : > { %6723 = vmatprep.mubr.msk.bf16.mxu0 %vm317_vm1, %v6038_v31  ;;  %v3917_v30 = vrot.slane %v3916_v39, 4  ;;  %v3955_v27 = vrot.slane %v3953_v46, 5  ;;  %v9902_v31 = vshrl.u32 %v8254_v60, 16  ;;  %v6562_v14 = vpop.f32.mrf.mxu0  ;;  %v6106_v46 = vcombine.low %v4670_v19, %v4673_v4  ;;  %v1085_v16 = vpop.f32.mrf.mxu1 }
 0x10b   : > { %v8729_v43 = vsel %vm7428_vm6, %v9901_v17, %v9900_v18  ;;  %v9903_v18 = vshll.u32 %v8254_v60, 16  ;;  %v3927_v55 = vrot.slane %v3926_v44, 4  ;;  %v8750_v38 = vadd.f32 %v6561_v40, %v1246_v33 }
 0x10c   : > { %v3960_v39 = vrot.slane %v9902_v31, 4  ;;  %v3922_v28 = vsel %vm7442_vm7, %v3917_v30, %v3921_v52  ;;  %6690 = vmatmul.mubr.msk.bf16.gmra.mxu1 %vm317_vm1, %v5958_v1  ;;  %v3956_v37 = vsel %vm7442_vm7, %v8294_v36, %v3955_v27  ;;  %v8747_v52 = vsel %vm7428_vm6, %v8272_v0, %v4679_v13  ;;  %v5983_v30 = vld [vmem:[%s7242_s27 + $0x38] sm:$0x1]  ;;  %v1577_v44 = vpop.f32.mrf.mxu0  ;;  %v6528_v36 = vpop.f32.mrf.mxu1 }
 0x10d   : > { %v3963_v17 = vrot.slane %v9903_v18, 5  ;;  %v6058_v61 = vcombine.low %v3946_v12, %v3956_v37  ;;  %v6107_v62 = vcombine.low %v8729_v43, %v8747_v52  ;;  %v1244_v1 = vadd.f32 %v1085_v16, %v8441_v15  ;;  %v5986_v52 = vld [vmem:[%s7242_s27 + $0x44] sm:$0x1] }
 0x10e   : > { %v3932_v19 = vsel %vm7442_vm7, %v3927_v55, %v3931_v48  ;;  %v3967_v31 = vshll.u32 %v8265_v3, 16  ;;  %v9904_v0 = vshrl.u32 %v8265_v3, 16  ;;  %v1247_v12 = vadd.f32 %v6528_v36, %v8454_v26  ;;  %v6565_v33 = vpop.f32.mrf.mxu0  ;;  %v1088_v48 = vpop.f32.mrf.mxu1 }
 0x10f   : > { %v3964_v27 = vor.u32 %v3963_v17, %v3960_v39  ;;  %v6057_v4 = vcombine.low %v3922_v28, %v3932_v19  ;;  %v8760_v40 = vadd.f32 %v1574_v10, %v1244_v1  ;;  %v3977_v43 = vshll.u32 %v5983_v30, 16 }
 0x110   : > { %v3973_v13 = vrot.slane %v9904_v0, 4  ;;  %v9905_v15 = vcombine.low %v8631_v50, %v8641_v11  ;;  %v3969_v18 = vrot.slane %v3967_v31, 5  ;;  %v6091_v17 = vrot.slane %v8254_v60, 9  ;;  %v1590_v16 = vpop.f32.mrf.mxu0  ;;  %v6531_v36 = vpop.f32.mrf.mxu1 }
 0x111   : > { %v3965_v39 = vrot.slane %v3964_v27, 4  ;;  %v4683_v55 = vrot.slane %v8265_v3, 5  ;;  %6729 = vmatprep.mubr.msk.bf16.mxu1 %vm317_vm1, %v6057_v4  ;;  %v8771_v10 = vadd.f32 %v6562_v14, %v1247_v12  ;;  %v1245_v26 = vadd.f32 %v1088_v48, %v8469_v23 }
 0x112   : > { %6724 = vmatmul.mubr.msk.bf16.gmra.mxu0 %vm317_vm1, %v9905_v15  ;;  %v3979_v28 = vrot.slane %v3977_v43, 5  ;;  %v4686_v37 = vrot.slane %v5983_v30, 5  ;;  %v3974_v19 = vor.u32 %v3973_v13, %v3969_v18  ;;  %v1250_v14 = vadd.f32 %v6531_v36, %v8496_v6  ;;  %v6566_v30 = vpop.f32.mrf.mxu0 }
 0x113   : > { %6763 = vmatprep.mubr.msk.bf16.mxu0 %vm317_vm1, %v6106_v46  ;;  %v3970_v1 = vsel %vm7442_vm7, %v3965_v39, %v3969_v18  ;;  %v4684_v60 = vsel %vm7428_vm6, %v6091_v17, %v4683_v55  ;;  %v4685_v3 = vrot.slane %v4683_v55, 4  ;;  %v8779_v27 = vadd.f32 %v1577_v44, %v1245_v26 }
 0x114   : > { %v3988_v23 = vor.u32 %v8314_v59, %v8312_v9  ;;  %v3998_v46 = vor.u32 %v8332_v42, %v8324_v35  ;;  %6730 = vmatmul.mubr.msk.bf16.vlgmr.msra.gmra.mxu1 %vm317_vm1, %v6058_v61  ;;  %v3975_v31 = vrot.slane %v3974_v19, 4  ;;  %v4001_v13 = vshll.u32 %v5986_v52, 16  ;;  %v1101_v9 = vpop.f32.mrf.mxu1  ;;  %v1593_v61 = vpop.f32.mrf.mxu0 }
 0x115   : > { %v4687_v0 = vsel %vm7428_vm6, %v4685_v3, %v4686_v37  ;;  %v9906_v4 = vrot.slane %v8288_v47, 5  ;;  %v9907_v44 = vrot.slane %v8285_v63, 9  ;;  %v8797_v12 = vadd.f32 %v6565_v33, %v1250_v14 }
 0x116   : > { %v6108_v59 = vcombine.low %v4684_v60, %v4687_v0  ;;  %v3989_v42 = vrot.slane %v3988_v23, 4  ;;  %v3999_v43 = vrot.slane %v3998_v46, 4  ;;  %v3980_v15 = vsel %vm7442_vm7, %v3975_v31, %v3979_v28  ;;  %v6532_v17 = vpop.f32.mrf.mxu1  ;;  %v6569_v19 = vpop.f32.mrf.mxu0  ;;  %v5989_v60 = vld [vmem:[%s7242_s27 + $0x50] sm:$0x1] }
 0x117   : > { %v8795_v6 = vsel %vm7428_vm6, %v9907_v44, %v9906_v4  ;;  %v4003_v48 = vrot.slane %v4001_v13, 5  ;;  %v9908_v39 = vmov %v9906_v4  ;;  %v4693_v63 = vrot.slane %v5986_v52, 5 }
 0x118   : > { %v4692_v18 = vrot.slane %v9908_v39, 4  ;;  %v6059_v55 = vcombine.low %v3970_v1, %v3980_v15  ;;  %v3994_v26 = vsel %vm7442_vm7, %v3989_v42, %v8324_v35  ;;  %v1248_v33 = vadd.f32 %v1101_v9, %v8519_v54  ;;  %v1104_v52 = vpop.f32.mrf.mxu1  ;;  %v1606_v23 = vpop.f32.mrf.mxu0 }
 0x119   : > { %v1251_v37 = vadd.f32 %v6532_v17, %v8532_v22  ;;  %v4004_v28 = vsel %vm7442_vm7, %v3999_v43, %v4003_v48  ;;  %v9909_v1 = vshrl.u32 %v8309_v20, 16  ;;  %v9910_v35 = vshll.u32 %v8309_v20, 16  ;;  %v5992_v48 = vld [vmem:[%s7242_s27 + $0x5c] sm:$0x1] }
 0x11a   : > { %6764 = vmatmul.mubr.msk.bf16.vlgmr.msra.gmra.mxu0 %vm317_vm1, %v6107_v62  ;;  %v4694_v47 = vsel %vm7428_vm6, %v4692_v18, %v4693_v63  ;;  %6733 = vmatprep.mubr.msk.bf16.mxu1 %vm317_vm1, %v6059_v55  ;;  %v6060_v22 = vcombine.low %v3994_v26, %v4004_v28  ;;  %v8821_v62 = vadd.f32 %v1590_v16, %v1248_v33  ;;  %v4015_v14 = vshll.u32 %v8319_v53, 16  ;;  %v6535_v44 = vpop.f32.mrf.mxu1 }
 0x11b   : > { %v4008_v3 = vrot.slane %v9909_v1, 4  ;;  %v4011_v36 = vrot.slane %v9910_v35, 5  ;;  %6767 = vmatprep.mubr.msk.bf16.mxu0 %vm317_vm1, %v6108_v59  ;;  %v6109_v54 = vcombine.low %v8795_v6, %v4694_v47  ;;  %v8824_v46 = vadd.f32 %v6566_v30, %v1251_v37  ;;  %v6570_v6 = vpop.f32.mrf.mxu0 }
 0x11c   : > { %v1249_v31 = vadd.f32 %v1104_v52, %v8551_v32  ;;  %v9911_v13 = vshrl.u32 %v8319_v53, 16  ;;  %v4017_v9 = vrot.slane %v4015_v14, 5  ;;  %v4025_v59 = vshll.u32 %v5989_v60, 16  ;;  %6734 = vmatmul.mubr.msk.bf16.gmra.mxu1 %vm317_vm1, %v6060_v22  ;;  %v1117_v39 = vpop.f32.mrf.mxu1 }
 0x11d   : > { %v4012_v0 = vor.u32 %v4011_v36, %v4008_v3  ;;  %v6093_v42 = vrot.slane %v8309_v20, 9  ;;  %v4697_v16 = vrot.slane %v8319_v53, 5  ;;  %v4700_v15 = vrot.slane %v5989_v60, 5  ;;  %v1609_v20 = vpop.f32.mrf.mxu0 }
 0x11e   : > { %v4021_v4 = vrot.slane %v9911_v13, 4  ;;  %v8832_v43 = vadd.f32 %v1593_v61, %v1249_v31  ;;  %v1254_v32 = vadd.f32 %v6535_v44, %v8571_v2  ;;  %v4027_v63 = vrot.slane %v4025_v59, 5  ;;  %v6536_v33 = vpop.f32.mrf.mxu1  ;;  %v5995_v44 = vld [vmem:[%s7242_s27 + $0x68] sm:$0x1] }
 0x11f   : > { %v4013_v30 = vrot.slane %v4012_v0, 4  ;;  %v4698_v17 = vsel %vm7428_vm6, %v6093_v42, %v4697_v16  ;;  %v4699_v55 = vrot.slane %v4697_v16, 4  ;;  %v4036_v61 = vor.u32 %v8364_v45, %v8362_v24  ;;  %v6573_v1 = vpop.f32.mrf.mxu0  ;;  %v9915_v16 = vld [vmem:[#allocation16_spill] sm:$0xff] }
 0x120   : > { %v4022_v18 = vor.u32 %v4021_v4, %v4017_v9  ;;  %v8840_v26 = vadd.f32 %v6569_v19, %v1254_v32  ;;  %v4046_v2 = vor.u32 %v8382_v5, %v8373_v34  ;;  %v4049_v47 = vshll.u32 %v5992_v48, 16  ;;  %v1120_v36 = vpop.f32.mrf.mxu1 }
 0x121   : > { %v4018_v53 = vsel %vm7442_vm7, %v4013_v30, %v4017_v9  ;;  %v4701_v28 = vsel %vm7428_vm6, %v4699_v55, %v4700_v15  ;;  %v9912_v52 = vrot.slane %v8337_v29, 5  ;;  %v9913_v60 = vrot.slane %v8329_v51, 9  ;;  %v8860_v0 = vpop.f32.mrf.mxu0 }
 0x122   : > { %v4023_v37 = vrot.slane %v4022_v18, 4  ;;  %6768 = vmatmul.mubr.msk.bf16.gmra.mxu0 %vm317_vm1, %v6109_v54  ;;  %v6110_v45 = vcombine.low %v4698_v17, %v4701_v28  ;;  %v4037_v24 = vrot.slane %v4036_v61, 4  ;;  %v4047_v5 = vrot.slane %v4046_v2, 4  ;;  %v6539_v9 = vpop.f32.mrf.mxu1  ;;  %v5998_v28 = vld [vmem:[%s7242_s27 + $0x74] sm:$0x1] }
 0x123   : > { %v4705_v19 = vsel %vm7428_vm6, %v9913_v60, %v9912_v52  ;;  %v9914_v3 = vmov %v9912_v52  ;;  %v4051_v14 = vrot.slane %v4049_v47, 5  ;;  %v4707_v31 = vrot.slane %v5992_v48, 5  ;;  %v8877_v32 = vpop.f32.mrf.mxu0 }
 0x124   : > { %v4706_v35 = vrot.slane %v9914_v3, 4  ;;  %v4028_v22 = vsel %vm7442_vm7, %v4023_v37, %v4027_v63  ;;  %v1252_v51 = vadd.f32 %v1117_v39, %v8592_v57  ;;  %6771 = vmatprep.mubr.msk.bf16.mxu0 %vm317_vm1, %v6110_v45  ;;  %v4042_v54 = vsel %vm7442_vm7, %v4037_v24, %v8373_v34  ;;  %v1133_v39 = vpop.f32.mrf.mxu1  ;;  %v9920_v45 = vld [vmem:[#allocation20_spill] sm:$0xff]  ;;  %v9921_v24 = vld [vmem:[#allocation23_spill] sm:$0xff] }
 0x125   : > { %v6061_v13 = vcombine.low %v4018_v53, %v4028_v22  ;;  %v1255_v29 = vadd.f32 %v6536_v33, %v8606_v58  ;;  %v1253_v4 = vadd.f32 %v1120_v36, %v8628_v49  ;;  %v4052_v59 = vsel %vm7442_vm7, %v4047_v5, %v4051_v14  ;;  %v1625_v2 = vpop.f32.mrf.mxu0  ;;  %v9922_v14 = vld [vmem:[#allocation24_spill] sm:$0xff] }
 0x126   : > { %v4708_v57 = vsel %vm7428_vm6, %v4706_v35, %v4707_v31  ;;  %v8873_v42 = vadd.f32 %v1606_v23, %v1252_v51  ;;  %v9916_v30 = vshrl.u32 %v9915_v16, 16  ;;  %v6062_v34 = vcombine.low %v4042_v54, %v4052_v59  ;;  %v9918_v23 = vld [vmem:[#allocation17_spill] sm:$0xff]  ;;  %v6540_v47 = vpop.f32.mrf.mxu1 }
 0x127   : > { %6737 = vmatprep.mubr.msk.bf16.mxu1 %vm317_vm1, %v6061_v13  ;;  %v6111_v58 = vcombine.low %v4705_v19, %v4708_v57  ;;  %v8880_v49 = vadd.f32 %v6570_v6, %v1255_v29  ;;  %v8882_v48 = vadd.f32 %v1609_v20, %v1253_v4  ;;  %v9917_v18 = vshll.u32 %v9915_v16, 16  ;;  %v8896_v3 = vpop.f32.mrf.mxu0  ;;  %v9924_v57 = vld [vmem:[#allocation19_spill] sm:$0xff] }
 0x128   : > { %v4056_v15 = vrot.slane %v9916_v30, 4  ;;  %v4063_v17 = vshll.u32 %v9918_v23, 16  ;;  %v9919_v55 = vshrl.u32 %v9918_v23, 16  ;;  %v4073_v61 = vshll.u32 %v5995_v44, 16  ;;  %6738 = vmatmul.mubr.msk.bf16.gmra.mxu1 %vm317_vm1, %v6062_v34  ;;  %v1136_v51 = vpop.f32.mrf.mxu1  ;;  %v9926_v30 = vld [vmem:[#allocation18_spill] sm:$0xff] }
 0x129   : > { %v4059_v63 = vrot.slane %v9917_v18, 5  ;;  %v6095_v33 = vrot.slane %v9915_v16, 9  ;;  %v4711_v6 = vrot.slane %v9918_v23, 5  ;;  %v4714_v37 = vrot.slane %v5995_v44, 5  ;;  %v8905_v44 = vpop.f32.mrf.mxu0 }
 0x12a   : > { %v4069_v53 = vrot.slane %v9919_v55, 4  ;;  %v1258_v20 = vadd.f32 %v6539_v9, %v8648_v56  ;;  %v4065_v60 = vrot.slane %v4063_v17, 5  ;;  %v4075_v19 = vrot.slane %v4073_v61, 5  ;;  %6772 = vmatmul.mubr.msk.bf16.gmra.mxu0 %vm317_vm1, %v6111_v58  ;;  %v9923_v56 = vld [vmem:[#allocation25_spill] sm:$0xff]  ;;  %v6543_v18 = vpop.f32.mrf.mxu1 }
 0x12b   : > { %v4060_v52 = vor.u32 %v4059_v63, %v4056_v15  ;;  %v4084_v5 = vor.u32 %v9921_v24, %v9920_v45  ;;  %v4712_v35 = vsel %vm7428_vm6, %v6095_v33, %v4711_v6  ;;  %v4713_v36 = vrot.slane %v4711_v6, 4  ;;  %v6001_v24 = vld [vmem:[%s7242_s27 + $0x80] sm:$0x1] }
 0x12c   : > { %v8901_v22 = vadd.f32 %v6573_v1, %v1258_v20  ;;  %v4094_v31 = vor.u32 %v9923_v56, %v9922_v14  ;;  %v4070_v54 = vor.u32 %v4069_v53, %v4065_v60  ;;  %v4097_v4 = vshll.u32 %v5998_v28, 16  ;;  %v8922_v53 = vpop.f32.mrf.mxu0  ;;  %v1149_v20 = vpop.f32.mrf.mxu1 }
 0x12d   : > { %v4061_v13 = vrot.slane %v4060_v52, 4  ;;  %v4085_v29 = vrot.slane %v4084_v5, 4  ;;  %v4715_v9 = vsel %vm7428_vm6, %v4713_v36, %v4714_v37  ;;  %v9925_v16 = vrot.slane %v9924_v57, 5  ;;  %v9930_v5 = vld [vmem:[#allocation21_spill] sm:$0xff] }
 0x12e   : > { %v4095_v59 = vrot.slane %v4094_v31, 4  ;;  %v9927_v15 = vrot.slane %v9926_v30, 9  ;;  %v4071_v23 = vrot.slane %v4070_v54, 4  ;;  %v6112_v17 = vcombine.low %v4712_v35, %v4715_v9 }
 0x12f   : > { %v9928_v34 = vmov %v9925_v16  ;;  %v4066_v63 = vsel %vm7442_vm7, %v4061_v13, %v4065_v60  ;;  %v4090_v55 = vsel %vm7442_vm7, %v4085_v29, %v9922_v14  ;;  %v4099_v61 = vrot.slane %v4097_v4, 5  ;;  %v9929_v60 = vld [vmem:[#allocation57_spill] sm:$0xff]  ;;  %v9933_v4 = vld [vmem:[#allocation22_spill] sm:$0xff] }
 0x130   : > { %v4719_v1 = vsel %vm7428_vm6, %v9927_v15, %v9925_v16  ;;  %v4720_v58 = vrot.slane %v9928_v34, 4  ;;  %v4721_v33 = vrot.slane %v5998_v28, 5  ;;  %v1256_v6 = vadd.f32 %v1133_v39, %v8666_v7  ;;  %6775 = vmatprep.mubr.msk.bf16.mxu0 %vm317_vm1, %v6112_v17  ;;  %v8935_v28 = vpop.f32.mrf.mxu0 }
 0x131   : > { %v1259_v37 = vadd.f32 %v6540_v47, %v8679_v21  ;;  %v4076_v52 = vsel %vm7442_vm7, %v4071_v23, %v4075_v19  ;;  %v1257_v45 = vadd.f32 %v1136_v51, %v9929_v60  ;;  %v9931_v35 = vshrl.u32 %v9930_v5, 16  ;;  %v6544_v19 = vpop.f32.mrf.mxu1 }
 0x132   : > { %v9932_v14 = vshll.u32 %v9930_v5, 16  ;;  %v6063_v7 = vcombine.low %v4066_v63, %v4076_v52  ;;  %v4100_v21 = vsel %vm7442_vm7, %v4095_v59, %v4099_v61  ;;  %v4722_v39 = vsel %vm7428_vm6, %v4720_v58, %v4721_v33  ;;  %v8953_v30 = vpop.f32.mrf.mxu0  ;;  %v6004_v58 = vld [vmem:[%s7242_s27 + $0x8c] sm:$0x1]  ;;  %v9937_v61 = vld [vmem:[#allocation33_spill] sm:$0xff] }
 0x133   : > { %v4104_v36 = vrot.slane %v9931_v35, 4  ;;  %v8942_v47 = vadd.f32 %v8860_v0, %v1256_v6  ;;  %v6064_v31 = vcombine.low %v4090_v55, %v4100_v21  ;;  %v6113_v51 = vcombine.low %v4719_v1, %v4722_v39  ;;  %v1152_v0 = vpop.f32.mrf.mxu1  ;;  %v9935_v1 = vld [vmem:[#allocation28_spill] sm:$0xff] }
 0x134   : > { %v4107_v56 = vrot.slane %v9932_v14, 5  ;;  %v8945_v13 = vadd.f32 %v8877_v32, %v1259_v37  ;;  %v8947_v54 = vadd.f32 %v1625_v2, %v1257_v45  ;;  %6741 = vmatprep.mubr.msk.bf16.mxu1 %vm317_vm1, %v6063_v7  ;;  %v4111_v9 = vshll.u32 %v9933_v4, 16  ;;  %v9936_v55 = vld [vmem:[#allocation32_spill] sm:$0xff]  ;;  %v8963_v37 = vpop.f32.mrf.mxu0 }
 0x135   : > { %v9934_v59 = vshrl.u32 %v9933_v4, 16  ;;  %v4121_v16 = vshll.u32 %v6001_v24, 16  ;;  %6742 = vmatmul.mubr.msk.bf16.gmra.mxu1 %vm317_vm1, %v6064_v31  ;;  %6776 = vmatmul.mubr.msk.bf16.gmra.mxu0 %vm317_vm1, %v6113_v51  ;;  %v6097_v32 = vrot.slane %v9930_v5, 9  ;;  %v4725_v2 = vrot.slane %v9933_v4, 5  ;;  %v6547_v6 = vpop.f32.mrf.mxu1  ;;  %v9939_v5 = vld [vmem:[#allocation36_spill] sm:$0xff]  ;;  %v9940_v51 = vld [vmem:[#allocation27_spill] sm:$0xff] }
 0x136   : > { %v4108_v29 = vor.u32 %v4107_v56, %v4104_v36  ;;  %v4728_v15 = vrot.slane %v6001_v24, 5  ;;  %v1262_v34 = vadd.f32 %v6543_v18, %v9935_v1  ;;  %v4113_v23 = vrot.slane %v4111_v9, 5  ;;  %v9938_v24 = vld [vmem:[#allocation34_spill] sm:$0xff]  ;;  %v8976_v21 = vpop.f32.mrf.mxu0 }
 0x137   : > { %v4117_v57 = vrot.slane %v9934_v59, 4  ;;  %v4123_v17 = vrot.slane %v4121_v16, 5  ;;  %v4132_v33 = vor.u32 %v9937_v61, %v9936_v55  ;;  %v4726_v52 = vsel %vm7428_vm6, %v6097_v32, %v4725_v2  ;;  %v8974_v7 = vpop.f32.mrf.mxu1  ;;  %v9946_v55 = vld [vmem:[#allocation35_spill] sm:$0xff] }
 0x138   : > { %v4109_v63 = vrot.slane %v4108_v29, 4  ;;  %v4727_v60 = vrot.slane %v4725_v2, 4  ;;  %v8968_v45 = vadd.f32 %v8896_v3, %v1262_v34  ;;  %v4142_v18 = vor.u32 %v9939_v5, %v9938_v24  ;;  %v9942_v29 = vld [vmem:[#allocation26_spill] sm:$0xff]  ;;  %v8994_v5 = vpop.f32.mrf.mxu0 }
 0x139   : > { %v4118_v36 = vor.u32 %v4117_v57, %v4113_v23  ;;  %v4133_v14 = vrot.slane %v4132_v33, 4  ;;  %v4145_v56 = vshll.u32 %v6004_v58, 16  ;;  %v9941_v3 = vrot.slane %v9940_v51, 5  ;;  %v9947_v33 = vld [vmem:[#allocation37_spill] sm:$0xff] }
 0x13a   : > { %v4114_v35 = vsel %vm7442_vm7, %v4109_v63, %v4113_v23  ;;  %v4729_v39 = vsel %vm7428_vm6, %v4727_v60, %v4728_v15  ;;  %v4143_v31 = vrot.slane %v4142_v18, 4  ;;  %v9943_v4 = vrot.slane %v9942_v29, 9  ;;  %v6548_v15 = vpop.f32.mrf.mxu1  ;;  %v9945_v63 = vld [vmem:[#allocation29_spill] sm:$0xff] }
 0x13b   : > { %v9944_v59 = vmov %v9941_v3  ;;  %v4119_v16 = vrot.slane %v4118_v36, 4  ;;  %v6114_v32 = vcombine.low %v4726_v52, %v4729_v39  ;;  %v4138_v2 = vsel %vm7442_vm7, %v4133_v14, %v9938_v24  ;;  %v6007_v24 = vld [vmem:[%s7242_s27 + $0x98] sm:$0x1]  ;;  %v9948_v36 = vld [vmem:[#allocation30_spill] sm:$0xff] }
 0x13c   : > { %v4733_v9 = vsel %vm7428_vm6, %v9943_v4, %v9941_v3  ;;  %v4734_v57 = vrot.slane %v9944_v59, 4  ;;  %v4147_v1 = vrot.slane %v4145_v56, 5  ;;  %v4735_v34 = vrot.slane %v6004_v58, 5  ;;  %v1168_v56 = vpop.f32.mrf.mxu1  ;;  %v9951_v59 = vld [vmem:[#allocation31_spill] sm:$0xff] }
 0x13d   : > { %v1260_v23 = vadd.f32 %v1149_v20, %v9945_v63  ;;  %v1263_v61 = vadd.f32 %v6544_v19, %v9946_v55  ;;  %v1261_v60 = vadd.f32 %v1152_v0, %v9947_v33  ;;  %v4124_v18 = vsel %vm7442_vm7, %v4119_v16, %v4123_v17  ;;  %6779 = vmatprep.mubr.msk.bf16.mxu0 %vm317_vm1, %v6114_v32  ;;  %v9954_v33 = vld [vmem:[#allocation41_spill] sm:$0xff] }
 0x13e   : > { %v4148_v52 = vsel %vm7442_vm7, %v4143_v31, %v4147_v1  ;;  %v9949_v14 = vshrl.u32 %v9948_v36, 16  ;;  %v9950_v20 = vshll.u32 %v9948_v36, 16  ;;  %v6065_v0 = vcombine.low %v4114_v35, %v4124_v18  ;;  %v9023_v1 = vpop.f32.mrf.mxu0 }
 0x13f   : > { %v6066_v39 = vcombine.low %v4138_v2, %v4148_v52  ;;  %v4736_v51 = vsel %vm7428_vm6, %v4734_v57, %v4735_v34  ;;  %v9009_v17 = vadd.f32 %v8905_v44, %v1260_v23  ;;  %v9012_v31 = vadd.f32 %v8922_v53, %v1263_v61  ;;  %v6010_v44 = vld [vmem:[%s7242_s27 + $0xa4] sm:$0x1]  ;;  %v9953_v34 = vld [vmem:[#allocation40_spill] sm:$0xff]  ;;  %v6551_v23 = vpop.f32.mrf.mxu1  ;;  %v9956_v52 = vld [vmem:[#allocation43_spill] sm:$0xff] }
 0x140   : > { %v4152_v58 = vrot.slane %v9949_v14, 4  ;;  %v4155_v19 = vrot.slane %v9950_v20, 5  ;;  %v6115_v3 = vcombine.low %v4733_v9, %v4736_v51  ;;  %v9015_v29 = vadd.f32 %v8935_v28, %v1261_v60  ;;  %6745 = vmatprep.mubr.msk.bf16.mxu1 %vm317_vm1, %v6065_v0  ;;  %v9955_v60 = vld [vmem:[#allocation42_spill] sm:$0xff] }
 0x141   : > { %v4159_v16 = vshll.u32 %v9951_v59, 16  ;;  %v9952_v35 = vshrl.u32 %v9951_v59, 16  ;;  %v4169_v2 = vshll.u32 %v6007_v24, 16  ;;  %v6099_v57 = vrot.slane %v9948_v36, 9  ;;  %6746 = vmatmul.mubr.msk.bf16.gmra.mxu1 %vm317_vm1, %v6066_v39  ;;  %v9957_v36 = vld [vmem:[#allocation45_spill] sm:$0xff] }
 0x142   : > { %v4156_v4 = vor.u32 %v4155_v19, %v4152_v58  ;;  %6780 = vmatmul.mubr.msk.bf16.gmra.mxu0 %vm317_vm1, %v6115_v3  ;;  %v4739_v28 = vrot.slane %v9951_v59, 5  ;;  %v4742_v9 = vrot.slane %v6007_v24, 5  ;;  %v1266_v63 = vadd.f32 %v6547_v6, %v9953_v34  ;;  %v9033_v58 = vpop.f32.mrf.mxu0  ;;  %v9040_v6 = vpop.f32.mrf.mxu1 }
 0x143   : > { %v4165_v32 = vrot.slane %v9952_v35, 4  ;;  %v4161_v55 = vrot.slane %v4159_v16, 5  ;;  %v4171_v61 = vrot.slane %v4169_v2, 5  ;;  %v4180_v18 = vor.u32 %v9955_v60, %v9954_v33  ;;  %v9958_v2 = vld [vmem:[#allocation39_spill] sm:$0xff] }
 0x144   : > { %v4157_v53 = vrot.slane %v4156_v4, 4  ;;  %v4190_v14 = vor.u32 %v9957_v36, %v9956_v52  ;;  %v4740_v20 = vsel %vm7428_vm6, %v6099_v57, %v4739_v28  ;;  %v4741_v19 = vrot.slane %v4739_v28, 4  ;;  %v9044_v59 = vpop.f32.mrf.mxu0  ;;  %v9960_v28 = vld [vmem:[#allocation38_spill] sm:$0xff] }
 0x145   : > { %v9038_v0 = vadd.f32 %v8953_v30, %v1266_v63  ;;  %v4193_v24 = vshll.u32 %v6010_v44, 16  ;;  %v4166_v51 = vor.u32 %v4165_v32, %v4161_v55  ;;  %v4181_v3 = vrot.slane %v4180_v18, 4  ;;  %v9056_v32 = vpop.f32.mrf.mxu1 }
 0x146   : > { %v4162_v39 = vsel %vm7442_vm7, %v4157_v53, %v4161_v55  ;;  %v4191_v4 = vrot.slane %v4190_v14, 4  ;;  %v4743_v16 = vsel %vm7428_vm6, %v4741_v19, %v4742_v9  ;;  %v9959_v57 = vrot.slane %v9958_v2, 5  ;;  %v9061_v18 = vpop.f32.mrf.mxu0  ;;  %v9963_v14 = vld [vmem:[#allocation8_spill] sm:$0xff] }
 0x147   : > { %v4195_v35 = vrot.slane %v4193_v24, 5  ;;  %v9961_v30 = vrot.slane %v9960_v28, 9  ;;  %v4167_v53 = vrot.slane %v4166_v51, 4  ;;  %v6116_v55 = vcombine.low %v4740_v20, %v4743_v16  ;;  %v9964_v24 = vld [vmem:[#allocation46_spill] sm:$0xff]  ;;  %v6013_v51 = vld [vmem:[%s7242_s27 + $0xb0] sm:$0x1] }
 0x148   : > { %v9962_v63 = vmov %v9959_v57  ;;  %v4186_v9 = vsel %vm7442_vm7, %v4181_v3, %v9956_v52  ;;  %v4749_v60 = vrot.slane %v6010_v44, 5  ;;  %v1264_v19 = vadd.f32 %v8974_v7, %v9963_v14  ;;  %v9966_v3 = vld [vmem:[#allocation9_spill] sm:$0xff] }
 0x149   : > { %v4747_v34 = vsel %vm7428_vm6, %v9961_v30, %v9959_v57  ;;  %v4748_v33 = vrot.slane %v9962_v63, 4  ;;  %v4196_v36 = vsel %vm7442_vm7, %v4191_v4, %v4195_v35  ;;  %v1267_v2 = vadd.f32 %v6548_v15, %v9964_v24  ;;  %v9965_v57 = vld [vmem:[#allocation6_spill] sm:$0xff]  ;;  %v1184_v30 = vpop.f32.mrf.mxu1  ;;  %6783 = vmatprep.mubr.msk.bf16.mxu0 %vm317_vm1, %v6116_v55  ;;  %v9972_v24 = vld [vmem:[#allocation7_spill] sm:$0xff] }
 0x14a   : > { %v1265_v28 = vadd.f32 %v1168_v56, %v9965_v57  ;;  %v4172_v20 = vsel %vm7442_vm7, %v4167_v53, %v4171_v61  ;;  %v6068_v52 = vcombine.low %v4186_v9, %v4196_v36  ;;  %v9967_v4 = vshrl.u32 %v9966_v3, 16  ;;  %v6016_v57 = vld [vmem:[%s7242_s27 + $0xbc] sm:$0x1] }
 0x14b   : > { %v4750_v44 = vsel %vm7428_vm6, %v4748_v33, %v4749_v60  ;;  %v6067_v35 = vcombine.low %v4162_v39, %v4172_v20  ;;  %v9078_v15 = vadd.f32 %v8963_v37, %v1264_v19  ;;  %v9081_v56 = vadd.f32 %v8976_v21, %v1267_v2  ;;  %v9970_v33 = vld [vmem:[#allocation44_spill] sm:$0xff]  ;;  %v9091_v39 = vpop.f32.mrf.mxu0  ;;  %v6555_v36 = vpop.f32.mrf.mxu1 }
 0x14c   : > { %v4200_v16 = vrot.slane %v9967_v4, 4  ;;  %v6117_v7 = vcombine.low %v4747_v34, %v4750_v44  ;;  %v9084_v61 = vadd.f32 %v8994_v5, %v1265_v28  ;;  %v9969_v63 = vshll.u32 %v9966_v3, 16  ;;  %v9973_v28 = vld [vmem:[#allocation11_spill] sm:$0xff]  ;;  %v9974_v20 = vld [vmem:[#allocation12_spill] sm:$0xff] }
 0x14d   : > { %v4207_v55 = vshll.u32 %v9970_v33, 16  ;;  %v9971_v9 = vshrl.u32 %v9970_v33, 16  ;;  %6749 = vmatprep.mubr.msk.bf16.mxu1 %vm317_vm1, %v6067_v35  ;;  %v4217_v37 = vshll.u32 %v6013_v51, 16  ;;  %v6101_v21 = vrot.slane %v9966_v3, 9  ;;  %v9102_v4 = vpop.f32.mrf.mxu0 }
 0x14e   : > { %9968 = vst [vmem:[#allocation16_spill] sm:$0xff] %v9084_v61  ;;  %v4203_v53 = vrot.slane %v9969_v63, 5  ;;  %6784 = vmatmul.mubr.msk.bf16.gmra.mxu0 %vm317_vm1, %v6117_v7  ;;  %v4753_v5 = vrot.slane %v9970_v33, 5  ;;  %v4756_v34 = vrot.slane %v6013_v51, 5  ;;  %6750 = vmatmul.mubr.msk.bf16.gmra.mxu1 %vm317_vm1, %v6068_v52  ;;  %v1270_v2 = vadd.f32 %v6551_v23, %v9972_v24  ;;  %v9975_v63 = vld [vmem:[#allocation50_spill] sm:$0xff]  ;;  %v9976_v51 = vld [vmem:[#allocation51_spill] sm:$0xff] }
 0x14f   : > { %v4213_v60 = vrot.slane %v9971_v9, 4  ;;  %v4209_v19 = vrot.slane %v4207_v55, 5  ;;  %v4228_v44 = vor.u32 %v9974_v20, %v9973_v28  ;;  %v4219_v35 = vrot.slane %v4217_v37, 5  ;;  %v9108_v9 = vpop.f32.mrf.mxu1  ;;  %v9113_v55 = vpop.f32.mrf.mxu0 }
 0x150   : > { %v4204_v14 = vor.u32 %v4203_v53, %v4200_v16  ;;  %v4754_v3 = vsel %vm7428_vm6, %v6101_v21, %v4753_v5  ;;  %v4755_v7 = vrot.slane %v4753_v5, 4  ;;  %v4238_v33 = vor.u32 %v9976_v51, %v9975_v63  ;;  %v9979_v5 = vld [vmem:[#allocation47_spill] sm:$0xff] }
 0x151   : > { %v4214_v16 = vor.u32 %v4213_v60, %v4209_v19  ;;  %v9111_v23 = vadd.f32 %v9023_v1, %v1270_v2  ;;  %v4229_v53 = vrot.slane %v4228_v44, 4  ;;  %v4241_v28 = vshll.u32 %v6016_v57, 16  ;;  %v9123_v60 = vpop.f32.mrf.mxu1 }
 0x152   : > { %v4205_v52 = vrot.slane %v4204_v14, 4  ;;  %v4757_v37 = vsel %vm7428_vm6, %v4755_v7, %v4756_v34  ;;  %v4239_v24 = vrot.slane %v4238_v33, 4  ;;  %v9978_v21 = vrot.slane %v8574_v41, 5 }
 0x153   : > { %9977 = vst [vmem:[#allocation17_spill] sm:$0xff] %v9111_v23  ;;  %v9980_v20 = vrot.slane %v9979_v5, 9  ;;  %v4215_v2 = vrot.slane %v4214_v16, 4  ;;  %v6118_v44 = vcombine.low %v4754_v3, %v4757_v37  ;;  %v4234_v34 = vsel %vm7442_vm7, %v4229_v53, %v9975_v63  ;;  %v9982_v23 = vld [vmem:[#allocation48_spill] sm:$0xff]  ;;  %v6019_v16 = vld [vmem:[%s7242_s27 + $0xc8] sm:$0x1] }
 0x154   : > { %v4210_v1 = vsel %vm7442_vm7, %v4205_v52, %v4209_v19  ;;  %v4243_v7 = vrot.slane %v4241_v28, 5  ;;  %v9981_v51 = vmov %v9978_v21  ;;  %v4763_v5 = vrot.slane %v6016_v57, 5  ;;  %v9983_v19 = vld [vmem:[#allocation52_spill] sm:$0xff]  ;;  %v9984_v52 = vld [vmem:[#allocation13_spill] sm:$0xff]  ;;  %v9985_v53 = vld [vmem:[#allocation10_spill] sm:$0xff]  ;;  %v9145_v57 = vpop.f32.mrf.mxu0 }
 0x155   : > { %v4761_v14 = vsel %vm7428_vm6, %v9980_v20, %v9978_v21  ;;  %v4762_v33 = vrot.slane %v9981_v51, 4  ;;  %v1268_v61 = vadd.f32 %v9040_v6, %v9982_v23  ;;  %v9134_v21 = vpop.f32.mrf.mxu1  ;;  %v4220_v20 = vsel %vm7442_vm7, %v4215_v2, %v4219_v35  ;;  %6787 = vmatprep.mubr.msk.bf16.mxu0 %vm317_vm1, %v6118_v44 }
 0x156   : > { %v1271_v3 = vadd.f32 %v9056_v32, %v9983_v19  ;;  %v1269_v63 = vadd.f32 %v1184_v30, %v9984_v52  ;;  %v9986_v41 = vshrl.u32 %v9985_v53, 16  ;;  %v6069_v28 = vcombine.low %v4210_v1, %v4220_v20  ;;  %v9993_v20 = vld [vmem:[#allocation14_spill] sm:$0xff]  ;;  %v6629_v52 = vpop.f32.mrf.mxu0 }
 0x157   : > { %v4244_v6 = vsel %vm7442_vm7, %v4239_v24, %v4243_v7  ;;  %v4764_v35 = vsel %vm7428_vm6, %v4762_v33, %v4763_v5  ;;  %v9152_v23 = vadd.f32 %v9033_v58, %v1268_v61  ;;  %v6595_v2 = vpop.f32.mrf.mxu1  ;;  %v9990_v24 = vshll.u32 %v9985_v53, 16  ;;  %v9991_v7 = vld [vmem:[#allocation49_spill] sm:$0xff] }
 0x158   : > { %v4248_v37 = vrot.slane %v9986_v41, 4  ;;  %v6070_v32 = vcombine.low %v4234_v34, %v4244_v6  ;;  %v6119_v30 = vcombine.low %v4761_v14, %v4764_v35  ;;  %v9155_v44 = vadd.f32 %v9044_v59, %v1271_v3  ;;  %6753 = vmatprep.mubr.msk.bf16.mxu1 %vm317_vm1, %v6069_v28  ;;  %v6022_v3 = vld [vmem:[%s7242_s27 + $0xd4] sm:$0x1]  ;;  %v9994_v6 = vld [vmem:[#allocation15_spill] sm:$0xff]  ;;  %v9995_v35 = vld [vmem:[#allocation53_spill] sm:$0xff]  ;;  %s7045_s27 = sshll.u32 %s7119_s26, 4  ;;  %s7046_s27 = int_to_ptr.vmem [resolvable:$false] %s7045_s27 }
 0x159   : > { %9987 = vst [vmem:[#allocation20_spill] sm:$0xff] %v9152_v23  ;;  %v9158_v51 = vadd.f32 %v9061_v18, %v1269_v63  ;;  %v4251_v1 = vrot.slane %v9990_v24, 5  ;;  %v4255_v33 = vshll.u32 %v9991_v7, 16  ;;  %v9992_v58 = vshrl.u32 %v9991_v7, 16  ;;  %v2016_v34 = vpop.f32.mrf.mxu1  ;;  %s7047_s28 = scalar_lea.vmem %s7046_s27, 4096  ;;  %p7048_p1 = scmp.lt.s32.totalorder %s9660_s11, %s7046_s27 }
 0x15a   : > { %9988 = vst [vmem:[#allocation23_spill] sm:$0xff] %v9155_v44  ;;  %v4265_v5 = vshll.u32 %v6019_v16, 16  ;;  %6754 = vmatmul.mubr.msk.bf16.gmra.mxu1 %vm317_vm1, %v6070_v32  ;;  %6788 = vmatmul.mubr.msk.bf16.gmra.mxu0 %vm317_vm1, %v6119_v30  ;;  %v6103_v59 = vrot.slane %v9985_v53, 9  ;;  %v4767_v18 = vrot.slane %v9991_v7, 5  ;;  %v4770_v14 = vrot.slane %v6019_v16, 5  ;;  %v9997_v7 = vld [vmem:[#allocation54_spill] sm:$0xff]  ;;  %p7049_p2 = scmp.lt.s32.totalorder %s7047_s28, %s7041_s23 }
 0x15b   : > { %9989 = vst [vmem:[#allocation24_spill] sm:$0xff] %v9158_v51  ;;  %v4261_v61 = vrot.slane %v9992_v58, 4  ;;  %v1274_v19 = vadd.f32 %v6555_v36, %v9993_v20  ;;  %v4252_v63 = vor.u32 %v4251_v1, %v4248_v37  ;;  %v4257_v41 = vrot.slane %v4255_v33, 5  ;;  %v6596_v58 = vpop.f32.mrf.mxu1  ;;  %v9998_v16 = vld [vmem:[#allocation55_spill] sm:$0xff]  ;;  %v2758_v36 = vpop.f32.mrf.mxu0 }
 0x15c   : > { %v4267_v28 = vrot.slane %v4265_v5, 5  ;;  %v4276_v24 = vor.u32 %v9995_v35, %v9994_v6  ;;  %v4768_v32 = vsel %vm7428_vm6, %v6103_v59, %v4767_v18  ;;  %v4769_v30 = vrot.slane %v4767_v18, 4  ;;  %p7050_p3 = por %p7049_p2, %p7048_p1 }
 0x15d   : > { %v9177_v53 = vadd.f32 %v9091_v39, %v1274_v19  ;;  %v4286_v51 = vor.u32 %v9998_v16, %v9997_v7  ;;  %v4253_v20 = vrot.slane %v4252_v63, 4  ;;  %v4262_v44 = vor.u32 %v4261_v61, %v4257_v41  ;;  %v2019_v33 = vpop.f32.mrf.mxu1  ;;  %v6630_v16 = vpop.f32.mrf.mxu0 }
 0x15e   : > { %v4277_v37 = vrot.slane %v4276_v24, 4  ;;  %v4289_v1 = vshll.u32 %v6022_v3, 16  ;;  %v4771_v5 = vsel %vm7428_vm6, %v4769_v30, %v4770_v14  ;;  %v9999_v35 = vrot.slane %v8641_v11, 5  ;;  %p7051_p5 = pnand %p7050_p3, %p7044_p0 }
 0x15f   : > { %9996 = vst [vmem:[#allocation25_spill] sm:$0xff] %v9177_v53  ;;  %v4287_v6 = vrot.slane %v4286_v51, 4  ;;  %v10000_v59 = vrot.slane %v8631_v50, 9  ;;  %v4258_v61 = vsel %vm7442_vm7, %v4253_v20, %v4257_v41  ;;  %v4263_v63 = vrot.slane %v4262_v44, 4  ;;  %v6599_v14 = vpop.f32.mrf.mxu1  ;;  %v10002_v50 = vld [vmem:[#allocation56_spill] sm:$0xff]  ;;  %v10004_v44 = vld [vmem:[#allocation59_spill] sm:$0xff] }
 0x160   : > { %v10001_v18 = vmov %v9999_v35  ;;  %v6120_v24 = vcombine.low %v4768_v32, %v4771_v5  ;;  %v4282_v51 = vsel %vm7442_vm7, %v4277_v37, %v9997_v7  ;;  %v4291_v30 = vrot.slane %v4289_v1, 5 }
 0x161   : > { %v4775_v39 = vsel %vm7428_vm6, %v10000_v59, %v9999_v35  ;;  %v4776_v19 = vrot.slane %v10001_v18, 4  ;;  %v4777_v53 = vrot.slane %v6022_v3, 5  ;;  %v1272_v23 = vadd.f32 %v9108_v9, %v10002_v50  ;;  %v10003_v35 = vld [vmem:[#allocation58_spill] sm:$0xff]  ;;  %v2761_v59 = vpop.f32.mrf.mxu0  ;;  %v2032_v3 = vpop.f32.mrf.mxu1 }
 0x162   : > { %v1275_v11 = vadd.f32 %v9123_v60, %v10003_v35  ;;  %v4268_v18 = vsel %vm7442_vm7, %v4263_v63, %v4267_v28  ;;  %6791 = vmatprep.mubr.msk.bf16.mxu0 %vm317_vm1, %v6120_v24  ;;  %v1273_v41 = vadd.f32 %v9134_v21, %v10004_v44  ;;  %v2177_v32 = vadd.f32 %v6595_v2, %v8750_v38 }
 0x163   : > { %v2175_v7 = vadd.f32 %v2016_v34, %v8760_v40  ;;  %v6071_v20 = vcombine.low %v4258_v61, %v4268_v18  ;;  %v4292_v9 = vsel %vm7442_vm7, %v4287_v6, %v4291_v30  ;;  %v4778_v60 = vsel %vm7428_vm6, %v4776_v19, %v4777_v53  ;;  %v6600_v40 = vpop.f32.mrf.mxu1 }
 0x164   : > { %v9212_v37 = vadd.f32 %v9102_v4, %v1272_v23  ;;  %v6072_v28 = vcombine.low %v4282_v51, %v4292_v9  ;;  %v6121_v1 = vcombine.low %v4775_v39, %v4778_v60  ;;  %v9215_v5 = vadd.f32 %v9113_v55, %v1275_v11  ;;  %v6633_v23 = vpop.f32.mrf.mxu0 }
 0x165   : > { %v9218_v38 = vadd.f32 %v9145_v57, %v1273_v41  ;;  %6757 = vmatprep.mubr.msk.bf16.mxu1 %vm317_vm1, %v6071_v20  ;;  %v9221_v21 = vadd.f32 %v6629_v52, %v2177_v32  ;;  %v9223_v25 = vadd.f32 %v2758_v36, %v2175_v7  ;;  %v2178_v8 = vadd.f32 %v6596_v58, %v8771_v10  ;;  %v2035_v34 = vpop.f32.mrf.mxu1 }
 0x166   : > { %v2176_v4 = vadd.f32 %v2019_v33, %v8779_v27  ;;  %6758 = vmatmul.mubr.msk.bf16.gmra.mxu1 %vm317_vm1, %v6072_v28  ;;  %6792 = vmatmul.mubr.msk.bf16.gmra.mxu0 %vm317_vm1, %v6121_v1  ;;  %v2181_v55 = vadd.f32 %v6599_v14, %v8797_v12  ;;  %v2179_v57 = vadd.f32 %v2032_v3, %v8821_v62  ;;  %v2774_v36 = vpop.f32.mrf.mxu0 }
 0x167   : > { %v2182_v2 = vadd.f32 %v6600_v40, %v8824_v46  ;;  %v9232_v52 = vadd.f32 %v6630_v16, %v2178_v8  ;;  %v2180_v10 = vadd.f32 %v2035_v34, %v8832_v43  ;;  %v6603_v33 = vpop.f32.mrf.mxu1 }
 0x168   : > { %v9234_v53 = vadd.f32 %v2761_v59, %v2176_v4  ;;  %v9237_v27 = vadd.f32 %v6633_v23, %v2181_v55  ;;  %v9239_v58 = vadd.f32 %v2774_v36, %v2179_v57  ;;  %v6634_v6 = vpop.f32.mrf.mxu0  ;;  %v2185_v12 = vadd.f32 %v6603_v33, %v8840_v26 }
 0x169   : > { %v9242_v39 = vadd.f32 %v6634_v6, %v2182_v2  ;;  %v2048_v62 = vpop.f32.mrf.mxu1 }
 0x16a   : > { %v2777_v46 = vpop.f32.mrf.mxu0  ;;  %v2183_v19 = vadd.f32 %v2048_v62, %v8873_v42 }
 0x16b   : > { %v9245_v16 = vadd.f32 %v2777_v46, %v2180_v10  ;;  %v6604_v61 = vpop.f32.mrf.mxu1 }
 0x16c   : > { %v6637_v63 = vpop.f32.mrf.mxu0  ;;  %v2186_v43 = vadd.f32 %v6604_v61, %v8880_v49 }
 0x16d   : > { %v9248_v24 = vadd.f32 %v6637_v63, %v2185_v12  ;;  %v2051_v51 = vpop.f32.mrf.mxu1  ;;  %v10005_v63 = vld [vmem:[#allocation16_spill] sm:$0xff] }
 0x16e   : > { %v2790_v14 = vpop.f32.mrf.mxu0  ;;  %v2184_v30 = vadd.f32 %v2051_v51, %v8882_v48 }
 0x16f   : > { %v9251_v50 = vadd.f32 %v2790_v14, %v2183_v19  ;;  %v6607_v26 = vpop.f32.mrf.mxu1 }
 0x170   : > { %v6638_v35 = vpop.f32.mrf.mxu0  ;;  %v2189_v11 = vadd.f32 %v6607_v26, %v8901_v22 }
 0x171   : > { %v9254_v59 = vadd.f32 %v6638_v35, %v2186_v43  ;;  %v2064_v42 = vpop.f32.mrf.mxu1 }
 0x172   : > { %v2793_v18 = vpop.f32.mrf.mxu0  ;;  %v2187_v44 = vadd.f32 %v2064_v42, %v8942_v47 }
 0x173   : > { %v9257_v41 = vadd.f32 %v2793_v18, %v2184_v30  ;;  %v6608_v49 = vpop.f32.mrf.mxu1 }
 0x174   : > { %v2190_v32 = vadd.f32 %v6608_v49, %v8945_v13  ;;  %v6641_v7 = vpop.f32.mrf.mxu0 }
 0x175   : > { %v2067_v3 = vpop.f32.mrf.mxu1  ;;  %v9260_v48 = vadd.f32 %v6641_v7, %v2189_v11 }
 0x176   : > { %v2188_v20 = vadd.f32 %v2067_v3, %v8947_v54  ;;  %v2806_v9 = vpop.f32.mrf.mxu0 }
 0x177   : > { %v6611_v60 = vpop.f32.mrf.mxu1  ;;  %v9263_v22 = vadd.f32 %v2806_v9, %v2187_v44  ;;  %v10009_v9 = vld [vmem:[#allocation24_spill] sm:$0xff] }
 0x178   : > { %v2193_v28 = vadd.f32 %v6611_v60, %v8968_v45  ;;  %v6642_v1 = vpop.f32.mrf.mxu0 }
 0x179   : > { %v2080_v40 = vpop.f32.mrf.mxu1  ;;  %v9266_v47 = vadd.f32 %v6642_v1, %v2190_v32 }
 0x17a   : > { %v2191_v8 = vadd.f32 %v2080_v40, %v9009_v17  ;;  %v2809_v4 = vpop.f32.mrf.mxu0 }
 0x17b   : > { %v6612_v13 = vpop.f32.mrf.mxu1  ;;  %v9269_v23 = vadd.f32 %v2809_v4, %v2188_v20 }
 0x17c   : > { %v2194_v55 = vadd.f32 %v6612_v13, %v9012_v31  ;;  %v6645_v54 = vpop.f32.mrf.mxu0 }
 0x17d   : > { %v2083_v57 = vpop.f32.mrf.mxu1  ;;  %v9273_v34 = vadd.f32 %v6645_v54, %v2193_v28 }
 0x17e   : > { %v2192_v2 = vadd.f32 %v2083_v57, %v9015_v29  ;;  %v2822_v45 = vpop.f32.mrf.mxu0 }
 0x17f   : > { %v6615_v36 = vpop.f32.mrf.mxu1  ;;  %v9276_v33 = vadd.f32 %v2822_v45, %v2191_v8  ;;  %v10010_v8 = vld [vmem:[#allocation25_spill] sm:$0xff] }
 0x180   : > { %v2197_v10 = vadd.f32 %v6615_v36, %v9038_v0  ;;  %v6646_v17 = vpop.f32.mrf.mxu0  ;;  %v10006_v0 = vld [vmem:[#allocation17_spill] sm:$0xff] }
 0x181   : > { %v2096_v6 = vpop.f32.mrf.mxu1  ;;  %v9279_v62 = vadd.f32 %v6646_v17, %v2194_v55 }
 0x182   : > { %v2195_v12 = vadd.f32 %v2096_v6, %v9078_v15  ;;  %v2825_v31 = vpop.f32.mrf.mxu0  ;;  %v10007_v15 = vld [vmem:[#allocation20_spill] sm:$0xff] }
 0x183   : > { %v6616_v46 = vpop.f32.mrf.mxu1  ;;  %v9282_v61 = vadd.f32 %v2825_v31, %v2192_v2 }
 0x184   : > { %v2198_v19 = vadd.f32 %v6616_v46, %v9081_v56  ;;  %v6649_v14 = vpop.f32.mrf.mxu0  ;;  %v10008_v56 = vld [vmem:[#allocation23_spill] sm:$0xff] }
 0x185   : > { %v2099_v29 = vpop.f32.mrf.mxu1  ;;  %v9286_v26 = vadd.f32 %v6649_v14, %v2197_v10 }
 0x186   : > { %v2196_v43 = vadd.f32 %v2099_v29, %v10005_v63  ;;  %v2838_v11 = vpop.f32.mrf.mxu0 }
 0x187   : > { %v6619_v51 = vpop.f32.mrf.mxu1  ;;  %v9289_v18 = vadd.f32 %v2838_v11, %v2195_v12 }
 0x188   : > { %v2201_v30 = vadd.f32 %v6619_v51, %v10006_v0  ;;  %v6650_v49 = vpop.f32.mrf.mxu0 }
 0x189   : > { %v2112_v35 = vpop.f32.mrf.mxu1  ;;  %v9292_v7 = vadd.f32 %v6650_v49, %v2198_v19 }
 0x18a   : > { %v2199_v42 = vadd.f32 %v2112_v35, %v10007_v15  ;;  %v2841_v20 = vpop.f32.mrf.mxu0 }
 0x18b   : > { %v6620_v44 = vpop.f32.mrf.mxu1  ;;  %v9295_v28 = vadd.f32 %v2841_v20, %v2196_v43 }
 0x18c   : > { %v2202_v32 = vadd.f32 %v6620_v44, %v10008_v56  ;;  %v6653_v40 = vpop.f32.mrf.mxu0 }
 0x18d   : > { %v2115_v3 = vpop.f32.mrf.mxu1  ;;  %v9298_v13 = vadd.f32 %v6653_v40, %v2201_v30 }
 0x18e   : > { %v2200_v60 = vadd.f32 %v2115_v3, %v10009_v9  ;;  %v2854_v57 = vpop.f32.mrf.mxu0 }
 0x18f   : > { %v6623_v1 = vpop.f32.mrf.mxu1  ;;  %v9301_v2 = vadd.f32 %v2854_v57, %v2199_v42 }
 0x190   : > { %v2205_v4 = vadd.f32 %v6623_v1, %v10010_v8  ;;  %v6654_v45 = vpop.f32.mrf.mxu0 }
 0x191   : > { %v2128_v55 = vpop.f32.mrf.mxu1  ;;  %v9304_v6 = vadd.f32 %v6654_v45, %v2202_v32 }
 0x192   : > { %v2203_v54 = vadd.f32 %v2128_v55, %v9212_v37  ;;  %v2857_v12 = vpop.f32.mrf.mxu0 }
 0x193   : > { %v6624_v36 = vpop.f32.mrf.mxu1  ;;  %v9307_v31 = vadd.f32 %v2857_v12, %v2200_v60 }
 0x194   : > { %v2206_v10 = vadd.f32 %v6624_v36, %v9215_v5  ;;  %v6657_v19 = vpop.f32.mrf.mxu0 }
 0x195   : > { %v2131_v17 = vpop.f32.mrf.mxu1  ;;  %v9309_v29 = vadd.f32 %v6657_v19, %v2205_v4 }
 0x196   : > { %v2204_v46 = vadd.f32 %v2131_v17, %v9218_v38  ;;  %v2870_v63 = vpop.f32.mrf.mxu0 }
 0x197   : > { %v9311_v43 = vadd.f32 %v2870_v63, %v2203_v54  ;;  %v6663_v37 = vpop.f32.mrf.mxu1 }
 0x198   : > { %v6658_v51 = vpop.f32.mrf.mxu0  ;;  %v3405_v14 = vadd.f32 %v6663_v37, %v9221_v21 }
 0x199   : > { %v9314_v0 = vadd.f32 %v6658_v51, %v2206_v10  ;;  %v3244_v5 = vpop.f32.mrf.mxu1 }
 0x19a   : > { %v2873_v30 = vpop.f32.mrf.mxu0  ;;  %v3403_v35 = vadd.f32 %v3244_v5, %v9223_v25 }
 0x19b   : > { %v9317_v11 = vadd.f32 %v2873_v30, %v2204_v46  ;;  %v9319_v38 = vpop.f32.mrf.mxu1 }
 0x19c   : > { %v6697_v15 = vpop.f32.mrf.mxu0 }
 0x19d   : > { %v9321_v42 = vadd.f32 %v6697_v15, %v3405_v14  ;;  %v9323_v44 = vpop.f32.mrf.mxu1 }
 0x19e   : > { %v3686_v49 = vpop.f32.mrf.mxu0 }
 0x19f   : > { %v9325_v56 = vadd.f32 %v3686_v49, %v3403_v35  ;;  %v6667_v21 = vpop.f32.mrf.mxu1 }
 0x1a0   : > { %v9327_v32 = vpop.f32.mrf.mxu0  ;;  %v3409_v3 = vadd.f32 %v6667_v21, %v9237_v27 }
 0x1a1   : > { %v3260_v25 = vpop.f32.mrf.mxu1 }
 0x1a2   : > { %v9330_v20 = vpop.f32.mrf.mxu0  ;;  %v3407_v9 = vadd.f32 %v3260_v25, %v9239_v58 }
 0x1a3   : > { %v9333_v1 = vpop.f32.mrf.mxu1 }
 0x1a4   : > { %v6701_v60 = vpop.f32.mrf.mxu0 }
 0x1a5   : > { %v9335_v40 = vadd.f32 %v6701_v60, %v3409_v3  ;;  %v9337_v4 = vpop.f32.mrf.mxu1 }
 0x1a6   : > { %v3702_v8 = vpop.f32.mrf.mxu0 }
 0x1a7   : > { %v9339_v55 = vadd.f32 %v3702_v8, %v3407_v9  ;;  %v6671_v54 = vpop.f32.mrf.mxu1 }
 0x1a8   : > { %v9341_v57 = vpop.f32.mrf.mxu0  ;;  %v3413_v27 = vadd.f32 %v6671_v54, %v9248_v24 }
 0x1a9   : > { %v3276_v45 = vpop.f32.mrf.mxu1 }
 0x1aa   : > { %v9344_v36 = vpop.f32.mrf.mxu0  ;;  %v3411_v58 = vadd.f32 %v3276_v45, %v9251_v50 }
 0x1ab   : > { %v9347_v17 = vpop.f32.mrf.mxu1 }
 0x1ac   : > { %v6705_v10 = vpop.f32.mrf.mxu0 }
 0x1ad   : > { %v9349_v12 = vadd.f32 %v6705_v10, %v3413_v27  ;;  %v9351_v19 = vpop.f32.mrf.mxu1 }
 0x1ae   : > { %v3718_v46 = vpop.f32.mrf.mxu0 }
 0x1af   : > { %v9353_v63 = vadd.f32 %v3718_v46, %v3411_v58  ;;  %v6675_v51 = vpop.f32.mrf.mxu1 }
 0x1b0   : > { %v9355_v37 = vpop.f32.mrf.mxu0  ;;  %v3417_v24 = vadd.f32 %v6675_v51, %v9260_v48 }
 0x1b1   : > { %v3292_v5 = vpop.f32.mrf.mxu1 }
 0x1b2   : > { %v9358_v14 = vpop.f32.mrf.mxu0  ;;  %v3415_v50 = vadd.f32 %v3292_v5, %v9263_v22 }
 0x1b3   : > { %v9361_v35 = vpop.f32.mrf.mxu1 }
 0x1b4   : > { %v6709_v30 = vpop.f32.mrf.mxu0 }
 0x1b5   : > { %v9363_v15 = vadd.f32 %v6709_v30, %v3417_v24  ;;  %v3295_v21 = vpop.f32.mrf.mxu1 }
 0x1b6   : > { %v3734_v49 = vpop.f32.mrf.mxu0  ;;  %v3416_v25 = vadd.f32 %v3295_v21, %v9269_v23 }
 0x1b7   : > { %v9365_v3 = vadd.f32 %v3734_v49, %v3415_v50  ;;  %v6679_v60 = vpop.f32.mrf.mxu1 }
 0x1b8   : > { %v9368_v9 = vpop.f32.mrf.mxu0  ;;  %v3421_v48 = vadd.f32 %v6679_v60, %v9273_v34 }
 0x1b9   : > { %v3308_v54 = vpop.f32.mrf.mxu1 }
 0x1ba   : > { %v3737_v8 = vpop.f32.mrf.mxu0  ;;  %v3419_v22 = vadd.f32 %v3308_v54, %v9276_v33 }
 0x1bb   : > { %v9371_v27 = vadd.f32 %v3737_v8, %v3416_v25  ;;  %v6680_v58 = vpop.f32.mrf.mxu1 }
 0x1bc   : > { %v6713_v45 = vpop.f32.mrf.mxu0  ;;  %v3422_v46 = vadd.f32 %v6680_v58, %v9279_v62 }
 0x1bd   : > { %v9374_v10 = vadd.f32 %v6713_v45, %v3421_v48  ;;  %v3311_v24 = vpop.f32.mrf.mxu1 }
 0x1be   : > { %v3750_v51 = vpop.f32.mrf.mxu0  ;;  %v3420_v5 = vadd.f32 %v3311_v24, %v9282_v61 }
 0x1bf   : > { %v9377_v23 = vadd.f32 %v3750_v51, %v3419_v22  ;;  %v6683_v34 = vpop.f32.mrf.mxu1 }
 0x1c0   : > { %v6714_v50 = vpop.f32.mrf.mxu0  ;;  %v3425_v49 = vadd.f32 %v6683_v34, %v9286_v26 }
 0x1c1   : > { %v9380_v30 = vadd.f32 %v6714_v50, %v3422_v46  ;;  %v3324_v33 = vpop.f32.mrf.mxu1 }
 0x1c2   : > { %v3753_v21 = vpop.f32.mrf.mxu0  ;;  %v3423_v60 = vadd.f32 %v3324_v33, %v9289_v18 }
 0x1c3   : > { %v9383_v25 = vadd.f32 %v3753_v21, %v3420_v5  ;;  %v6684_v62 = vpop.f32.mrf.mxu1 }
 0x1c4   : > { %v6717_v48 = vpop.f32.mrf.mxu0  ;;  %v3426_v54 = vadd.f32 %v6684_v62, %v9292_v7 }
 0x1c5   : > { %v9386_v8 = vadd.f32 %v6717_v48, %v3425_v49  ;;  %v3327_v61 = vpop.f32.mrf.mxu1 }
 0x1c6   : > { %v3766_v22 = vpop.f32.mrf.mxu0  ;;  %v3424_v58 = vadd.f32 %v3327_v61, %v9295_v28 }
 0x1c7   : > { %v9389_v45 = vadd.f32 %v3766_v22, %v3423_v60  ;;  %v6687_v26 = vpop.f32.mrf.mxu1 }
 0x1c8   : > { %v6718_v46 = vpop.f32.mrf.mxu0  ;;  %v3429_v24 = vadd.f32 %v6687_v26, %v9298_v13 }
 0x1c9   : > { %v9392_v51 = vadd.f32 %v6718_v46, %v3426_v54  ;;  %v3340_v18 = vpop.f32.mrf.mxu1 }
 0x1ca   : > { %v3769_v5 = vpop.f32.mrf.mxu0  ;;  %v3427_v34 = vadd.f32 %v3340_v18, %v9301_v2 }
 0x1cb   : > { %v9395_v50 = vadd.f32 %v3769_v5, %v3424_v58  ;;  %v6688_v7 = vpop.f32.mrf.mxu1 }
 0x1cc   : > { %v6721_v49 = vpop.f32.mrf.mxu0  ;;  %v3430_v33 = vadd.f32 %v6688_v7, %v9304_v6 }
 0x1cd   : > { %v9398_v21 = vadd.f32 %v6721_v49, %v3429_v24  ;;  %v3343_v28 = vpop.f32.mrf.mxu1  ;;  %v3406_v49 = vadd.f32 %v9319_v38, %v9232_v52 }
 0x1ce   : > { %v3782_v60 = vpop.f32.mrf.mxu0  ;;  %v3428_v62 = vadd.f32 %v3343_v28, %v9307_v31 }
 0x1cf   : > { %v9401_v48 = vadd.f32 %v3782_v60, %v3427_v34  ;;  %v6691_v13 = vpop.f32.mrf.mxu1 }
 0x1d0   : > { %v6722_v54 = vpop.f32.mrf.mxu0  ;;  %v3433_v61 = vadd.f32 %v6691_v13, %v9309_v29  ;;  %v3848_v13 = vadd.f32 %v9327_v32, %v3406_v49 }
 0x1d1   : > { %v9404_v22 = vadd.f32 %v6722_v54, %v3430_v33  ;;  %v3356_v2 = vpop.f32.mrf.mxu1 }
 0x1d2   : > { %v3785_v58 = vpop.f32.mrf.mxu0  ;;  %v3431_v26 = vadd.f32 %v3356_v2, %v9311_v43  ;;  %v3404_v43 = vadd.f32 %v9323_v44, %v9234_v53 }
 0x1d3   : > { %v9407_v46 = vadd.f32 %v3785_v58, %v3428_v62  ;;  %v6692_v6 = vpop.f32.mrf.mxu1 }
 0x1d4   : > { %v6725_v24 = vpop.f32.mrf.mxu0  ;;  %v3434_v18 = vadd.f32 %v6692_v6, %v9314_v0  ;;  %v3846_v53 = vadd.f32 %v9330_v20, %v3404_v43 }
 0x1d5   : > { %v9410_v5 = vadd.f32 %v6725_v24, %v3433_v61  ;;  %v3359_v31 = vpop.f32.mrf.mxu1 }
 0x1d6   : > { %v3798_v34 = vpop.f32.mrf.mxu0  ;;  %v3432_v29 = vadd.f32 %v3359_v31, %v9317_v11  ;;  %v9430_v11 = vld [vmem:[%s9713_s2] ss:$0 sm:$0xff] }
 0x1d7   : > { %v9415_v7 = vadd.f32 %v3798_v34, %v3431_v26  ;;  %v6731_v60 = vpop.f32.mrf.mxu1 }
 0x1d8   : > { %v6726_v33 = vpop.f32.mrf.mxu0  ;;  %v4589_v62 = vadd.f32 %v6731_v60, %v9321_v42 }
 0x1d9   : > { %v9420_v28 = vadd.f32 %v6726_v33, %v3434_v18  ;;  %v4428_v0 = vpop.f32.mrf.mxu1  ;;  %v3408_v33 = vadd.f32 %v9337_v4, %v9245_v16 }
 0x1da   : > { %v3801_v54 = vpop.f32.mrf.mxu0  ;;  %v4587_v52 = vadd.f32 %v4428_v0, %v9325_v56  ;;  %v3410_v56 = vadd.f32 %v9333_v1, %v9242_v39 }
 0x1db   : > { %v9424_v61 = vadd.f32 %v3801_v54, %v3432_v29  ;;  %v6732_v58 = vpop.f32.mrf.mxu1 }
 0x1dc   : > { %v6765_v38 = vpop.f32.mrf.mxu0  ;;  %v4590_v2 = vadd.f32 %v6732_v58, %v3848_v13  ;;  %v3852_v54 = vadd.f32 %v9341_v57, %v3410_v56 }
 0x1dd   : > { %v5075_v44 = vadd.f32 %v6765_v38, %v4589_v62  ;;  %v4431_v26 = vpop.f32.mrf.mxu1  ;;  %v3850_v38 = vadd.f32 %v9344_v36, %v3408_v33 }
 0x1de   : > { %v4914_v42 = vpop.f32.mrf.mxu0  ;;  %v4588_v6 = vadd.f32 %v4431_v26, %v3846_v53 }
 0x1df   : > { %v9434_v24 = vadd.f32 %v9430_v11, %v5075_v44  ;;  %v5073_v32 = vadd.f32 %v4914_v42, %v4587_v52  ;;  %v6735_v34 = vpop.f32.mrf.mxu1  ;;  %v3414_v42 = vadd.f32 %v9347_v17, %v9254_v59  ;;  %v3412_v17 = vadd.f32 %v9351_v19, %v9257_v41 }
 0x1e0   : > { %v6766_v18 = vpop.f32.mrf.mxu0  ;;  %v4593_v29 = vadd.f32 %v6735_v34, %v9335_v40 }
 0x1e1   : > { %v6141_v31 = vmul.f32 -1.442695, %v9434_v24  ;;  %v9440_v49 = vadd.f32 %v9430_v11, %v5073_v32  ;;  %v5076_v20 = vadd.f32 %v6766_v18, %v4590_v2  ;;  %v4444_v43 = vpop.f32.mrf.mxu1  ;;  %v3856_v59 = vadd.f32 %v9355_v37, %v3414_v42 }
 0x1e2   : > { %v4917_v60 = vpop.f32.mrf.mxu0  ;;  %v4591_v13 = vadd.f32 %v4444_v43, %v9339_v55 }
 0x1e3   : > { %6913 = vpow2.f32 %v6141_v31  ;;  %v6139_v62 = vmul.f32 -1.442695, %v9440_v49  ;;  %v9447_v39 = vadd.f32 %v9430_v11, %v5076_v20  ;;  %v5074_v1 = vadd.f32 %v4917_v60, %v4588_v6  ;;  %v6736_v52 = vpop.f32.mrf.mxu1 }
 0x1e4   : > { %v6769_v0 = vpop.f32.mrf.mxu0  ;;  %v4594_v53 = vadd.f32 %v6736_v52, %v3852_v54 }
 0x1e5   : > { %6915 = vpow2.f32 %v6139_v62  ;;  %v6142_v40 = vmul.f32 -1.442695, %v9447_v39  ;;  %v9453_v16 = vadd.f32 %v9430_v11, %v5074_v1  ;;  %v5079_v4 = vadd.f32 %v6769_v0, %v4593_v29  ;;  %v4447_v44 = vpop.f32.mrf.mxu1 }
 0x1e6   : > { %v4930_v58 = vpop.f32.mrf.mxu0  ;;  %v4592_v32 = vadd.f32 %v4447_v44, %v3850_v38 }
 0x1e7   : > { %6917 = vpow2.f32 %v6142_v40  ;;  %v6140_v2 = vmul.f32 -1.442695, %v9453_v16  ;;  %v9458_v57 = vadd.f32 %v9430_v11, %v5079_v4  ;;  %v5077_v55 = vadd.f32 %v4930_v58, %v4591_v13 }
 0x1e8   : > { %v6770_v26 = vpop.f32.mrf.mxu0  ;;  %v6739_v34 = vpop.f32.mrf.mxu1 }
 0x1e9   : > { %6919 = vpow2.f32 %v6140_v2  ;;  %v6145_v6 = vmul.f32 -1.442695, %v9458_v57  ;;  %v9464_v36 = vadd.f32 %v9430_v11, %v5077_v55  ;;  %v5080_v56 = vadd.f32 %v6770_v26, %v4594_v53 }
 0x1ea   : > { %v4933_v18 = vpop.f32.mrf.mxu0  ;;  %v4597_v33 = vadd.f32 %v6739_v34, %v9349_v12  ;;  %v4460_v43 = vpop.f32.mrf.mxu1  ;;  %v3854_v12 = vadd.f32 %v9358_v14, %v3412_v17  ;;  %v3418_v55 = vadd.f32 %v9361_v35, %v9266_v47 }
 0x1eb   : > { %6921 = vpow2.f32 %v6145_v6  ;;  %v6143_v31 = vmul.f32 -1.442695, %v9464_v36  ;;  %v9468_v20 = vadd.f32 %v9430_v11, %v5080_v56  ;;  %v5078_v29 = vadd.f32 %v4933_v18, %v4592_v32 }
 0x1ec   : > { %v6773_v60 = vpop.f32.mrf.mxu0  ;;  %v4595_v54 = vadd.f32 %v4460_v43, %v9353_v63  ;;  %v6740_v52 = vpop.f32.mrf.mxu1 }
 0x1ed   : > { %6923 = vpow2.f32 %v6143_v31  ;;  %v6146_v62 = vmul.f32 -1.442695, %v9468_v20  ;;  %v9476_v1 = vadd.f32 %v9430_v11, %v5078_v29  ;;  %v5083_v0 = vadd.f32 %v6773_v60, %v4597_v33 }
 0x1ee   : > { %v4946_v13 = vpop.f32.mrf.mxu0  ;;  %v4598_v41 = vadd.f32 %v6740_v52, %v3856_v59  ;;  %v4463_v58 = vpop.f32.mrf.mxu1  ;;  %v3860_v60 = vadd.f32 %v9368_v9, %v3418_v55 }
 0x1ef   : > { %6925 = vpow2.f32 %v6146_v62  ;;  %v6144_v37 = vmul.f32 -1.442695, %v9476_v1  ;;  %v5081_v40 = vadd.f32 %v4946_v13, %v4595_v54  ;;  %v9482_v4 = vadd.f32 %v9430_v11, %v5083_v0 }
 0x1f0   : > { %v6914_v19 = vpop.eup %6913  ;;  %v6774_v38 = vpop.f32.mrf.mxu0  ;;  %v4596_v26 = vadd.f32 %v4463_v58, %v3854_v12 }
 0x1f1   : > { %v5306_v53 = vadd.f32 1.0, %v6914_v19  ;;  %6927 = vpow2.f32 %v6144_v37  ;;  %v9485_v63 = vadd.f32 %v9430_v11, %v5081_v40  ;;  %v5084_v44 = vadd.f32 %v6774_v38, %v4598_v41 }
 0x1f2   : > { %v6916_v2 = vpop.eup %6915  ;;  %v6149_v42 = vmul.f32 -1.442695, %v9482_v4  ;;  %v4949_v32 = vpop.f32.mrf.mxu0 }
 0x1f3   : > { %6929 = vrcp.f32 %v5306_v53  ;;  %v5304_v14 = vadd.f32 1.0, %v6916_v2  ;;  %v6147_v6 = vmul.f32 -1.442695, %v9485_v63  ;;  %v9492_v56 = vadd.f32 %v9430_v11, %v5084_v44 }
 0x1f4   : > { %v6918_v18 = vpop.eup %6917  ;;  %6931 = vpow2.f32 %v6149_v42  ;;  %v5082_v34 = vadd.f32 %v4949_v32, %v4596_v26 }
 0x1f5   : > { %6933 = vrcp.f32 %v5304_v14  ;;  %v5307_v31 = vadd.f32 1.0, %v6918_v18  ;;  %v6150_v29 = vmul.f32 -1.442695, %v9492_v56  ;;  %v6743_v59 = vpop.f32.mrf.mxu1  ;;  %v6777_v47 = vpop.f32.mrf.mxu0 }
 0x1f6   : > { %v6920_v35 = vpop.eup %6919  ;;  %6935 = vpow2.f32 %v6147_v6  ;;  %v9496_v17 = vadd.f32 %v9430_v11, %v5082_v34  ;;  %v4601_v33 = vadd.f32 %v6743_v59, %v9363_v15 }
 0x1f7   : > { %6937 = vrcp.f32 %v5307_v31  ;;  %v5305_v43 = vadd.f32 1.0, %v6920_v35  ;;  %v4476_v62 = vpop.f32.mrf.mxu1  ;;  %v4962_v54 = vpop.f32.mrf.mxu0 }
 0x1f8   : > { %v6922_v0 = vpop.eup %6921  ;;  %6939 = vpow2.f32 %v6150_v29  ;;  %v6148_v13 = vmul.f32 -1.442695, %v9496_v17  ;;  %v5087_v52 = vadd.f32 %v6777_v47, %v4601_v33  ;;  %v4599_v37 = vadd.f32 %v4476_v62, %v9365_v3 }
 0x1f9   : > { %6941 = vrcp.f32 %v5305_v43  ;;  %v5310_v40 = vadd.f32 1.0, %v6922_v0  ;;  %v6744_v41 = vpop.f32.mrf.mxu1  ;;  %v6778_v19 = vpop.f32.mrf.mxu0 }
 0x1fa   : > { %v6924_v12 = vpop.eup %6923  ;;  %6943 = vpow2.f32 %v6148_v13  ;;  %v9503_v15 = vadd.f32 %v9430_v11, %v5087_v52  ;;  %v5085_v9 = vadd.f32 %v4962_v54, %v4599_v37  ;;  %v4602_v38 = vadd.f32 %v6744_v41, %v3860_v60 }
 0x1fb   : > { %6945 = vrcp.f32 %v5310_v40  ;;  %v5308_v58 = vadd.f32 1.0, %v6924_v12  ;;  %v4479_v53 = vpop.f32.mrf.mxu1  ;;  %v4965_v26 = vpop.f32.mrf.mxu0 }
 0x1fc   : > { %v6926_v44 = vpop.eup %6925  ;;  %v6153_v2 = vmul.f32 -1.442695, %v9503_v15  ;;  %v9507_v3 = vadd.f32 %v9430_v11, %v5085_v9  ;;  %v5088_v55 = vadd.f32 %v6778_v19, %v4602_v38  ;;  %v4600_v42 = vadd.f32 %v4479_v53, %v9371_v27 }
 0x1fd   : > { %6947 = vrcp.f32 %v5308_v58  ;;  %v5311_v32 = vadd.f32 1.0, %v6926_v44 }
 0x1fe   : > { %v6928_v14 = vpop.eup %6927  ;;  %6949 = vpow2.f32 %v6153_v2  ;;  %v6151_v6 = vmul.f32 -1.442695, %v9507_v3  ;;  %v9512_v18 = vadd.f32 %v9430_v11, %v5088_v55  ;;  %v5086_v34 = vadd.f32 %v4965_v26, %v4600_v42 }
 0x1ff   : > { %6951 = vrcp.f32 %v5311_v32  ;;  %v5309_v31 = vadd.f32 1.0, %v6928_v14 }
 0x200   : > { %v6930_v29 = vpop.eup %6929  ;;  %6953 = vpow2.f32 %v6151_v6  ;;  %v6154_v59 = vmul.f32 -1.442695, %v9512_v18  ;;  %v9517_v27 = vadd.f32 %v9430_v11, %v5086_v34 }
 0x201   : > { %v6747_v47 = vpop.f32.mrf.mxu1  ;;  %v6932_v33 = vpop.eup %6931  ;;  %6955 = vrcp.f32 %v5309_v31  ;;  %v5402_v19 = vmul.f32 %v6930_v29, %v9434_v24 }
 0x202   : > { %v6781_v35 = vpop.f32.mrf.mxu0  ;;  %v4605_v60 = vadd.f32 %v6747_v47, %v9374_v10  ;;  %v6934_v43 = vpop.eup %6933  ;;  %v5314_v62 = vadd.f32 1.0, %v6932_v33  ;;  %6957 = vpow2.f32 %v6154_v59  ;;  %v6152_v54 = vmul.f32 -1.442695, %v9517_v27 }
 0x203   : > { %v4492_v0 = vpop.f32.mrf.mxu1  ;;  %v6936_v52 = vpop.eup %6935  ;;  %v5400_v55 = vmul.f32 %v6934_v43, %v9440_v49 }
 0x204   : > { %v4978_v13 = vpop.f32.mrf.mxu0  ;;  %v5091_v37 = vadd.f32 %v6781_v35, %v4605_v60  ;;  %v4603_v40 = vadd.f32 %v4492_v0, %v9377_v23  ;;  %v6938_v41 = vpop.eup %6937  ;;  %6959 = vrcp.f32 %v5314_v62  ;;  %v5312_v12 = vadd.f32 1.0, %v6936_v52 }
 0x205   : > { %v6748_v10 = vpop.f32.mrf.mxu1  ;;  %v6940_v38 = vpop.eup %6939  ;;  %v5403_v58 = vmul.f32 %v6938_v41, %v9447_v39  ;;  %6961 = vpow2.f32 %v6152_v54 }
 0x206   : > { %v6782_v9 = vpop.f32.mrf.mxu0  ;;  %v9529_v53 = vadd.f32 %v9430_v11, %v5091_v37  ;;  %v5089_v44 = vadd.f32 %v4978_v13, %v4603_v40  ;;  %v6942_v2 = vpop.eup %6941  ;;  %6963 = vrcp.f32 %v5312_v12  ;;  %v5315_v23 = vadd.f32 1.0, %v6940_v38 }
 0x207   : > { %v4606_v24 = vadd.f32 %v6748_v10, %v9380_v30  ;;  %v4495_v42 = vpop.f32.mrf.mxu1  ;;  %v6944_v32 = vpop.eup %6943  ;;  %v6249_v14 = vpack.c.bf16 %v5403_v58, %v5402_v19  ;;  %v5401_v6 = vmul.f32 %v6942_v2, %v9453_v16 }
 0x208   : > { %v4981_v26 = vpop.f32.mrf.mxu0  ;;  %v6157_v39 = vmul.f32 -1.442695, %v9529_v53  ;;  %v9536_v34 = vadd.f32 %v9430_v11, %v5089_v44  ;;  %v6946_v31 = vpop.eup %6945  ;;  %6965 = vrcp.f32 %v5315_v23  ;;  %v5313_v29 = vadd.f32 1.0, %v6944_v32 }
 0x209   : > { %v5092_v49 = vadd.f32 %v6782_v9, %v4606_v24  ;;  %v4604_v59 = vadd.f32 %v4495_v42, %v9383_v25  ;;  %6321 = vst [vmem:[%s9540_s9 + $0x8] sm:$0xff] %v6249_v14   ;;  %v6244_v30 = vpack.c.bf16 %v5401_v6, %v5400_v55  ;;  %v5406_v41 = vmul.f32 %v6946_v31, %v9458_v57 }
 0x20a   : > { %6967 = vpow2.f32 %v6157_v39  ;;  %v6155_v16 = vmul.f32 -1.442695, %v9536_v34  ;;  %v6948_v47 = vpop.eup %6947 }
 0x20b   : > { %6969 = vrcp.f32 %v5313_v29  ;;  %v9545_v35 = vadd.f32 %v9430_v11, %v5092_v49  ;;  %v5090_v33 = vadd.f32 %v4981_v26, %v4604_v59  ;;  %v6950_v43 = vpop.eup %6949  ;;  %6245 = vst [vmem:[%s9540_s9] sm:$0xff] %v6244_v30   ;;  %v5404_v19 = vmul.f32 %v6948_v47, %v9464_v36 }
 0x20c   : > { %6971 = vpow2.f32 %v6155_v16  ;;  %v6952_v62 = vpop.eup %6951  ;;  %v5318_v54 = vadd.f32 1.0, %v6950_v43 }
 0x20d   : > { %v6158_v0 = vmul.f32 -1.442695, %v9545_v35  ;;  %v9550_v13 = vadd.f32 %v9430_v11, %v5090_v33  ;;  %v6954_v40 = vpop.eup %6953  ;;  %v5407_v12 = vmul.f32 %v6952_v62, %v9468_v20 }
 0x20e   : > { %v6785_v60 = vpop.f32.mrf.mxu0  ;;  %v6751_v25 = vpop.f32.mrf.mxu1  ;;  %6973 = vrcp.f32 %v5318_v54  ;;  %v5316_v38 = vadd.f32 1.0, %v6954_v40 }
 0x20f   : > { %v4609_v52 = vadd.f32 %v6751_v25, %v9386_v8  ;;  %v6956_v9 = vpop.eup %6955  ;;  %v6156_v58 = vmul.f32 -1.442695, %v9550_v13  ;;  %v6259_v23 = vpack.c.bf16 %v5407_v12, %v5406_v41  ;;  %6975 = vpow2.f32 %v6158_v0 }
 0x210   : > { %v4994_v37 = vpop.f32.mrf.mxu0  ;;  %v4508_v10 = vpop.f32.mrf.mxu1  ;;  %v5405_v8 = vmul.f32 %v6956_v9, %v9476_v1  ;;  %6977 = vrcp.f32 %v5316_v38 }
 0x211   : > { %v5095_v44 = vadd.f32 %v6785_v60, %v4609_v52  ;;  %v6958_v55 = vpop.eup %6957  ;;  %v4607_v57 = vadd.f32 %v4508_v10, %v9389_v45  ;;  %6323 = vst [vmem:[%s9540_s9 + $0x18] sm:$0xff] %v6259_v23   ;;  %6979 = vpow2.f32 %v6156_v58 }
 0x212   : > { %v6786_v2 = vpop.f32.mrf.mxu0  ;;  %v6752_v24 = vpop.f32.mrf.mxu1  ;;  %v5319_v36 = vadd.f32 1.0, %v6958_v55  ;;  %v6254_v32 = vpack.c.bf16 %v5405_v8, %v5404_v19 }
 0x213   : > { %v9560_v20 = vadd.f32 %v9430_v11, %v5095_v44  ;;  %v4610_v42 = vadd.f32 %v6752_v24, %v9392_v51  ;;  %v6960_v26 = vpop.eup %6959  ;;  %v5093_v14 = vadd.f32 %v4994_v37, %v4607_v57 }
 0x214   : > { %v4511_v6 = vpop.f32.mrf.mxu1  ;;  %v4997_v39 = vpop.f32.mrf.mxu0  ;;  %6981 = vrcp.f32 %v5319_v36  ;;  %6322 = vst [vmem:[%s9540_s9 + $0x10] sm:$0xff] %v6254_v32   ;;  %v5410_v62 = vmul.f32 %v6960_v26, %v9482_v4 }
 0x215   : > { %v6962_v1 = vpop.eup %6961  ;;  %v6161_v45 = vmul.f32 -1.442695, %v9560_v20  ;;  %v5096_v31 = vadd.f32 %v6786_v2, %v4610_v42  ;;  %v9567_v59 = vadd.f32 %v9430_v11, %v5093_v14  ;;  %v4608_v51 = vadd.f32 %v4511_v6, %v9395_v50 }
 0x216   : > { %v6964_v29 = vpop.eup %6963  ;;  %v5317_v49 = vadd.f32 1.0, %v6962_v1 }
 0x217   : > { %6983 = vpow2.f32 %v6161_v45  ;;  %v9571_v30 = vadd.f32 %v9430_v11, %v5096_v31  ;;  %v6966_v16 = vpop.eup %6965  ;;  %v6159_v47 = vmul.f32 -1.442695, %v9567_v59  ;;  %v5094_v33 = vadd.f32 %v4997_v39, %v4608_v51 }
 0x218   : > { %6985 = vrcp.f32 %v5317_v49  ;;  %v6968_v25 = vpop.eup %6967  ;;  %v5411_v54 = vmul.f32 %v6966_v16, %v9492_v56  ;;  %v5408_v37 = vmul.f32 %v6964_v29, %v9485_v63 }
 0x219   : > { %v6162_v0 = vmul.f32 -1.442695, %v9571_v30  ;;  %v6970_v52 = vpop.eup %6969  ;;  %v5322_v40 = vadd.f32 1.0, %v6968_v25  ;;  %6987 = vpow2.f32 %v6159_v47  ;;  %v9580_v41 = vadd.f32 %v9430_v11, %v5094_v33 }
 0x21a   : > { %v6755_v60 = vpop.f32.mrf.mxu1  ;;  %v6789_v43 = vpop.f32.mrf.mxu0  ;;  %v6269_v9 = vpack.c.bf16 %v5411_v54, %v5410_v62  ;;  %v5409_v4 = vmul.f32 %v6970_v52, %v9496_v17 }
 0x21b   : > { %v4613_v50 = vadd.f32 %v6755_v60, %v9398_v21  ;;  %v6972_v10 = vpop.eup %6971  ;;  %6989 = vpow2.f32 %v6162_v0  ;;  %v6160_v21 = vmul.f32 -1.442695, %v9580_v41 }
 0x21c   : > { %v4524_v19 = vpop.f32.mrf.mxu1  ;;  %v5010_v12 = vpop.f32.mrf.mxu0  ;;  %v5320_v38 = vadd.f32 1.0, %v6972_v10  ;;  %6325 = vst [vmem:[%s9540_s9 + $0x28] sm:$0xff] %v6269_v9   ;;  %v6264_v2 = vpack.c.bf16 %v5409_v4, %v5408_v37  ;;  %6991 = vrcp.f32 %v5322_v40 }
 0x21d   : > { %v5099_v56 = vadd.f32 %v6789_v43, %v4613_v50  ;;  %v4611_v63 = vadd.f32 %v4524_v19, %v9401_v48  ;;  %v6974_v8 = vpop.eup %6973  ;;  %6993 = vpow2.f32 %v6160_v21 }
 0x21e   : > { %v6756_v58 = vpop.f32.mrf.mxu1  ;;  %v6790_v44 = vpop.f32.mrf.mxu0  ;;  %6324 = vst [vmem:[%s9540_s9 + $0x20] sm:$0xff] %v6264_v2   ;;  %6995 = vrcp.f32 %v5320_v38  ;;  %v5414_v49 = vmul.f32 %v6974_v8, %v9503_v15 }
 0x21f   : > { %v9587_v55 = vadd.f32 %v9430_v11, %v5099_v56  ;;  %v4614_v23 = vadd.f32 %v6756_v58, %v9404_v22  ;;  %v5097_v17 = vadd.f32 %v5010_v12, %v4611_v63  ;;  %v6976_v24 = vpop.eup %6975 }
 0x220   : > { %v4527_v57 = vpop.f32.mrf.mxu1  ;;  %v5013_v48 = vpop.f32.mrf.mxu0  ;;  %v5323_v32 = vadd.f32 1.0, %v6976_v24 }
 0x221   : > { %v6165_v36 = vmul.f32 -1.442695, %v9587_v55  ;;  %v5100_v42 = vadd.f32 %v6790_v44, %v4614_v23  ;;  %v6978_v26 = vpop.eup %6977  ;;  %v9593_v14 = vadd.f32 %v9430_v11, %v5097_v17  ;;  %v4612_v6 = vadd.f32 %v4527_v57, %v9407_v46 }
 0x222   : > { %v6980_v22 = vpop.eup %6979  ;;  %v5412_v62 = vmul.f32 %v6978_v26, %v9507_v3 }
 0x223   : > { %6997 = vpow2.f32 %v6165_v36  ;;  %v9597_v39 = vadd.f32 %v9430_v11, %v5100_v42  ;;  %v6982_v1 = vpop.eup %6981  ;;  %v5321_v45 = vadd.f32 1.0, %v6980_v22  ;;  %v6163_v31 = vmul.f32 -1.442695, %v9593_v14 }
 0x224   : > { %6999 = vrcp.f32 %v5323_v32  ;;  %v5098_v29 = vadd.f32 %v5013_v48, %v4612_v6  ;;  %v5415_v51 = vmul.f32 %v6982_v1, %v9512_v18  ;;  %v6984_v46 = vpop.eup %6983 }
 0x225   : > { %v6166_v16 = vmul.f32 -1.442695, %v9597_v39  ;;  %7001 = vrcp.f32 %v5321_v45  ;;  %v6986_v25 = vpop.eup %6985  ;;  %v5326_v0 = vadd.f32 1.0, %v6984_v46 }
 0x226   : > { %v6759_v47 = vpop.f32.mrf.mxu1  ;;  %v6793_v33 = vpop.f32.mrf.mxu0  ;;  %v9604_v60 = vadd.f32 %v9430_v11, %v5098_v29  ;;  %v6279_v54 = vpack.c.bf16 %v5415_v51, %v5414_v49  ;;  %7003 = vpow2.f32 %v6163_v31  ;;  %v5413_v50 = vmul.f32 %v6986_v25, %v9517_v27 }
 0x227   : > { %v4617_v43 = vadd.f32 %v6759_v47, %v9410_v5  ;;  %7005 = vpow2.f32 %v6166_v16  ;;  %v6988_v40 = vpop.eup %6987 }
 0x228   : > { %v4540_v15 = vpop.f32.mrf.mxu1  ;;  %v5026_v18 = vpop.f32.mrf.mxu0  ;;  %v6164_v52 = vmul.f32 -1.442695, %v9604_v60  ;;  %6327 = vst [vmem:[%s9540_s9 + $0x38] sm:$0xff] %v6279_v54   ;;  %7007 = vrcp.f32 %v5326_v0  ;;  %v6274_v10 = vpack.c.bf16 %v5413_v50, %v5412_v62  ;;  %v5324_v4 = vadd.f32 1.0, %v6988_v40 }
 0x229   : > { %v5103_v37 = vadd.f32 %v6793_v33, %v4617_v43  ;;  %v4615_v5 = vadd.f32 %v4540_v15, %v9415_v7  ;;  %v6990_v3 = vpop.eup %6989 }
 0x22a   : > { %v6760_v19 = vpop.f32.mrf.mxu1  ;;  %v6794_v12 = vpop.f32.mrf.mxu0  ;;  %7009 = vpow2.f32 %v6164_v52  ;;  %v5327_v27 = vadd.f32 1.0, %v6990_v3  ;;  %6326 = vst [vmem:[%s9540_s9 + $0x30] sm:$0xff] %v6274_v10  }
 0x22b   : > { %v9613_v9 = vadd.f32 %v9430_v11, %v5103_v37  ;;  %v5101_v56 = vadd.f32 %v5026_v18, %v4615_v5  ;;  %v4618_v38 = vadd.f32 %v6760_v19, %v9420_v28  ;;  %v6992_v7 = vpop.eup %6991 }
 0x22c   : > { %v4543_v21 = vpop.f32.mrf.mxu1  ;;  %7011 = vrcp.f32 %v5327_v27  ;;  %v5029_v23 = vpop.f32.mrf.mxu0  ;;  %v5418_v26 = vmul.f32 %v6992_v7, %v9529_v53 }
 0x22d   : > { %v6169_v63 = vmul.f32 -1.442695, %v9613_v9  ;;  %v4616_v58 = vadd.f32 %v4543_v21, %v9424_v61  ;;  %v9620_v44 = vadd.f32 %v9430_v11, %v5101_v56  ;;  %v5104_v2 = vadd.f32 %v6794_v12, %v4618_v38  ;;  %v6994_v8 = vpop.eup %6993 }
 0x22e   : > { %v6996_v57 = vpop.eup %6995  ;;  %v5325_v24 = vadd.f32 1.0, %v6994_v8 }
 0x22f   : > { %7013 = vpow2.f32 %v6169_v63  ;;  %v5102_v17 = vadd.f32 %v5029_v23, %v4616_v58  ;;  %v6167_v28 = vmul.f32 -1.442695, %v9620_v44  ;;  %v9624_v36 = vadd.f32 %v9430_v11, %v5104_v2 }
 0x230   : > { %7015 = vrcp.f32 %v5324_v4  ;;  %v6998_v42 = vpop.eup %6997  ;;  %v5416_v29 = vmul.f32 %v6996_v57, %v9536_v34 }
 0x231   : > { %v9627_v61 = vadd.f32 %v9430_v11, %v5102_v17  ;;  %v7000_v48 = vpop.eup %6999  ;;  %7017 = vrcp.f32 %v5325_v24  ;;  %v6170_v32 = vmul.f32 -1.442695, %v9624_v36  ;;  %v5330_v22 = vadd.f32 1.0, %v6998_v42 }
 0x232   : > { %v5419_v6 = vmul.f32 %v7000_v48, %v9545_v35  ;;  %7019 = vpow2.f32 %v6167_v28  ;;  %v7002_v45 = vpop.eup %7001 }
 0x233   : > { %v6168_v1 = vmul.f32 -1.442695, %v9627_v61  ;;  %v7004_v31 = vpop.eup %7003  ;;  %v5417_v49 = vmul.f32 %v7002_v45, %v9550_v13  ;;  %7021 = vpow2.f32 %v6170_v32 }
 0x234   : > { %v6289_v11 = vpack.c.bf16 %v5419_v6, %v5418_v26  ;;  %v7006_v53 = vpop.eup %7005  ;;  %v5328_v51 = vadd.f32 1.0, %v7004_v31 }
 0x235   : > { %7023 = vpow2.f32 %v6168_v1  ;;  %v7008_v16 = vpop.eup %7007  ;;  %v6284_v47 = vpack.c.bf16 %v5417_v49, %v5416_v29  ;;  %v5331_v35 = vadd.f32 1.0, %v7006_v53 }
 0x236   : > { %6329 = vst [vmem:[%s9540_s9 + $0x48] sm:$0xff] %v6289_v11   ;;  %7025 = vrcp.f32 %v5330_v22  ;;  %v5422_v13 = vmul.f32 %v7008_v16, %v9560_v20 }
 0x237   : > { %v7010_v33 = vpop.eup %7009  ;;  %7027 = vrcp.f32 %v5328_v51  ;;  %6328 = vst [vmem:[%s9540_s9 + $0x40] sm:$0xff] %v6284_v47  }
 0x238   : > { %7029 = vrcp.f32 %v5331_v35  ;;  %v5329_v46 = vadd.f32 1.0, %v7010_v33 }
 0x239   : > { %v7012_v43 = vpop.eup %7011 }
 0x23a   : > { %7031 = vrcp.f32 %v5329_v46  ;;  %v5423_v25 = vmul.f32 %v7012_v43, %v9571_v30 }
 0x23c   : > { %v7014_v34 = vpop.eup %7013  ;;  %v6299_v54 = vpack.c.bf16 %v5423_v25, %v5422_v13 }
 0x23d   : > { %v7016_v62 = vpop.eup %7015  ;;  %v5334_v15 = vadd.f32 1.0, %v7014_v34 }
 0x23e   : > { %v7018_v0 = vpop.eup %7017  ;;  %v5420_v50 = vmul.f32 %v7016_v62, %v9567_v59  ;;  %6331 = vst [vmem:[%s9540_s9 + $0x58] sm:$0xff] %v6299_v54  }
 0x23f   : > { %v7020_v18 = vpop.eup %7019  ;;  %v5421_v52 = vmul.f32 %v7018_v0, %v9580_v41  ;;  %7033 = vrcp.f32 %v5334_v15 }
 0x240   : > { %v5332_v37 = vadd.f32 1.0, %v7020_v18  ;;  %v7022_v40 = vpop.eup %7021 }
 0x241   : > { %v6294_v5 = vpack.c.bf16 %v5421_v52, %v5420_v50  ;;  %v5335_v20 = vadd.f32 1.0, %v7022_v40 }
 0x242   : > { %v7024_v19 = vpop.eup %7023  ;;  %7035 = vrcp.f32 %v5332_v37 }
 0x243   : > { %v7026_v12 = vpop.eup %7025  ;;  %6330 = vst [vmem:[%s9540_s9 + $0x50] sm:$0xff] %v6294_v5   ;;  %v5333_v30 = vadd.f32 1.0, %v7024_v19  ;;  %7037 = vrcp.f32 %v5335_v20 }
 0x244   : > { %v7028_v3 = vpop.eup %7027  ;;  %v5426_v41 = vmul.f32 %v7026_v12, %v9587_v55 }
 0x245   : > { %v7030_v59 = vpop.eup %7029  ;;  %7039 = vrcp.f32 %v5333_v30  ;;  %v5424_v27 = vmul.f32 %v7028_v3, %v9593_v14 }
 0x246   : > { %v5427_v10 = vmul.f32 %v7030_v59, %v9597_v39 }
 0x247   : > { %v7032_v4 = vpop.eup %7031 }
 0x248   : > { %v6309_v56 = vpack.c.bf16 %v5427_v10, %v5426_v41  ;;  %v5425_v38 = vmul.f32 %v7032_v4, %v9604_v60 }
 0x24a   : > { %6333 = vst [vmem:[%s9540_s9 + $0x68] sm:$0xff] %v6309_v56   ;;  %v6304_v21 = vpack.c.bf16 %v5425_v38, %v5424_v27 }
 0x24c   : > { %6332 = vst [vmem:[%s9540_s9 + $0x60] sm:$0xff] %v6304_v21   ;;  %v7034_v63 = vpop.eup %7033 }
 0x24d   : > { %v5430_v39 = vmul.f32 %v7034_v63, %v9613_v9 }
 0x24f   : > { %v7036_v58 = vpop.eup %7035 }
 0x250   : > { %v7038_v7 = vpop.eup %7037  ;;  %v5428_v2 = vmul.f32 %v7036_v58, %v9620_v44 }
 0x251   : > { %v5431_v14 = vmul.f32 %v7038_v7, %v9624_v36 }
 0x252   : > { %v7040_v55 = vpop.eup %7039 }
 0x253   : > { %v5429_v60 = vmul.f32 %v7040_v55, %v9627_v61  ;;  %v6319_v23 = vpack.c.bf16 %v5431_v14, %v5430_v39 }
 0x255   : > { %v6314_v8 = vpack.c.bf16 %v5429_v60, %v5428_v2  ;;  %6335 = vst [vmem:[%s9540_s9 + $0x78] sm:$0xff] %v6319_v23  }
 0x257   : > { %6334 = vst [vmem:[%s9540_s9 + $0x70] sm:$0xff] %v6314_v8  }
 0x258   : > { %7054 = shalt.err (!%p7051_p5)
}
 0x259   : > { %s7055_s29 = scalar_lea.hbm %s9658_s21, 2048  ;;  %s7059_s5 = scalar_lea.hbm %s9714_s3, 4096 }
 0x25a   : > { %p7056_p6 = scmp.ne.s32.totalorder %s9658_s21, %s7055_s29  ;;  %p7060_p10 = scmp.lt.s32.totalorder %s9658_s21, %s9714_s3 }
 0x25b   : > { %p7061_p11 = scmp.lt.s32.totalorder %s7059_s5, %s7055_s29 }
 0x25c   : > { %p7057_p7 = pnand %p7056_p6, %p7182_p4 }
 0x25d   : > { %p7062_p12 = por %p7061_p11, %p7060_p10 }
 0x25e   : > { %p7058_p9 = pneg %p7057_p7 }
 0x260   : > { %p7063_p13 = pnand %p7062_p12, %p7058_p9 }
 0x262   : > { %7066 = shalt.err (!%p7063_p13)
}
 0x263   : > { %s7120_s8 = smov 64   ;;  %s7121_s9 = smov 4  }
 0x264   : > { %6808 = dma.vmem_to_hbm [thread:$0]  (%p7182_p4), %s9660_s11, 2048, %s9658_s21, %s9666_s15, %s7120_s8, %s7120_s8, %s7121_s9  }
 0x265 PF: > { %p6814_p0 = scmp.ge.s32.totalorder %s7117_s17, 2  ;;  %s5623_s10 = sand.u32 1, %s7097_s12  }
 0x266   : > { %s5624_s18 = scalar_lea.sflag [#allocation4], %s5623_s10 }
 0x267   : > { %p6811_p1 = pnand %p6814_p0, %p7189_p8 }
 0x269   : > { %p6812_p2 = pneg %p6811_p1 }
 0x26b   : > { %7092 = dma.done.wait (%p6812_p2), %s5624_s18, 2048  }
 0x26c   : > { %7094 = vsyncadd (%p6812_p2), %s5624_s18, 4294965248  ;;  %s16_s17 = sadd.s32 1, %s7117_s17   ;;  %s10011_s12 = smov %s7101_s13 }
 0x26d   : > { %p13_p3 = scmp.ge.s32.totalorder %s16_s17, 4   ;;  %s10012_s13 = smov %s7105_s14 }
 0x26e   : > { %s10013_s14 = smov %s7195_s25  ;;  %s10014_s15 = smov %s7113_s16 }
 0x26f   : > { %s10015_s16 = smov %s10017_s20  ;;  %15 = sbr.rel (!%p13_p3) target bundleno = 4 (0x4), region = 78 }
 0x274   :  { %5629 = vsyncpa [#allocation4], 1 }
 0x275   :  { %5631 = vsyncpa [#allocation4 + $0x1], 1 }

// kernel: tpu_custom_call.1
= control target key start
LH: loop header
LB: loop body
LE: loop exit
PB: predicated region body
PF: predicated region fallthrough
CT: control target
= control target key end

     0   :  { %8 = vsyncpa [#allocation4], 0  ;;  %s9711_s0 = inlined_call_operand.vmem [shape: bf16[2,18,18,8], index: 0, kind: input, shape index: {}]   ;;  %s9712_s1 = inlined_call_operand.vmem [shape: bf16[9,8,128], index: 1, kind: input, shape index: {}]   ;;  %s9713_s2 = inlined_call_operand.vmem [shape: f32[1,128], index: 2, kind: input, shape index: {}]   ;;  %s9714_s3 = inlined_call_operand.hbm [shape: bf16[2,1,256,128], index: 3, kind: output, shape index: {}]  }
   0x1   :  { %10 = vsyncpa [#allocation4 + $0x1], 0  ;;  %s7142_s12 = smov 0   ;;  %s7144_s13 = smov 0  }
   0x2   :  { %s7146_s14 = smov 0   ;;  %s7148_s15 = smov 0  }
   0x3   :  { %s7150_s16 = smov 0   ;;  %s7152_s17 = smov 0  }
   0x4 LB: > { %s5691_s18 = sadd.s32 4294967295, %s7117_s17   ;;  %s5692_s19 = sadd.s32 4294967294, %s7117_s17   ;;  %s7117_s17 = sphi %s7152_s17, %s16_s17   ;;  %s7113_s16 = sphi %s7150_s16, %s10015_s16   ;;  %s7109_s15 = sphi %s7148_s15, %s10014_s15   ;;  %s7105_s14 = sphi %s7146_s14, %s10013_s14   ;;  %s7101_s13 = sphi %s7144_s13, %s10012_s13   ;;  %s7097_s12 = sphi %s7142_s12, %s10011_s12  }
   0x5   : > { %s28_s20 = sadd.s32 1, %s7113_s16  ;;  %s105_s21 = sadd.s32 1, %s7105_s14 }
   0x6   : > { %p30_p0 = scmp.ge.s32.totalorder %s28_s20, 2  ;;  %p115_p1 = scmp.ne.s32.totalorder %s7105_s14, %s7101_s13 }
   0x7   : > { %p116_p2 = scmp.eq.s32.totalorder %s5691_s18, 1  ;;  %p121_p3 = scmp.ne.s32.totalorder %s7101_s13, %s7097_s12 }
   0x8   : > { %s10017_s20 = smov (%p30_p0, %s28_s20), 0  ;;  %p122_p5 = scmp.eq.s32.totalorder %s5692_s19, 1 }
   0x9   : > { %p7182_p4 = por %p116_p2, %p115_p1  ;;  %s100_s23 = ssub.s32 %s7113_s16, %s10017_s20 }
   0xa   : > { %p5695_p6 = scmp.ge.s32.totalorder %s7117_s17, 1  ;;  %p103_p7 = scmp.eq.s32.totalorder %s100_s23, 0 }
   0xb   : > { %p7189_p8 = por %p122_p5, %p121_p3  ;;  %p154_p9 = scmp.lt.s32.totalorder %s7117_s17, 3 }
   0xc   : > { %s7195_s25 = scalar_select %p103_p7, %s7105_s14, %s105_s21  }
   0xd   : > { %p155_p10 = pnand %p5695_p6, %p154_p9 }
   0xf   : > { %158 = sbr.rel (%p155_p10) target bundleno = 613 (0x265), region = 32 }
  0x14   : > { %v236_v0 = vld [vmem:[%s9712_s1] sm:$0xf]  ;;  %vm366_vm0 = vcmask 1043456   ;;  %p178_p11 = scmp.lt.s32.totalorder %s7109_s15, 1  ;;  %v5730_v2 = vld [vmem:[%s9712_s1 + $0x4] sm:$0xf] }
  0x15   : > { %6798 = vmatprep.subr.msk.bf16.mxu1 %vm366_vm0, %v236_v0  ;;  %6797 = vmatprep.subr.msk.bf16.mxu0 %vm366_vm0, %v236_v0  ;;  %v368_v1 = vsel %vm366_vm0, %v236_v0, 0  ;;  %v5779_v3 = vld [vmem:[%s9712_s1 + $0x8] sm:$0xf]  ;;  %v7216_v4 = vld [vmem:[%s9712_s1 + $0xc] sm:$0xf]  ;;  %vm317_vm1 = vcmask 64512  }
  0x16   : > { %6796 = vmatpush3.bf16.msra.mxu1 %v368_v1  ;;  %6490 = vmatpush3.bf16.msra.mxu0 %v368_v1  ;;  %s179_s5 = scalar_select %p178_p11, %s7109_s15, 1  ;;  %v7221_v5 = vld [vmem:[%s9712_s1 + $0x10] sm:$0xf]  ;;  %v7226_v6 = vld [vmem:[%s9712_s1 + $0x14] sm:$0xf]  ;;  %v7229_v7 = vsel %vm366_vm0, %v5730_v2, 0 }
  0x17   : > { %6799 = vmatprep.subr.msk.bf16.mxu1 %vm366_vm0, %v5730_v2  ;;  %6800 = vmatprep.subr.msk.bf16.mxu0 %vm366_vm0, %v5779_v3  ;;  %v7232_v8 = vsel %vm366_vm0, %v5779_v3, 0  ;;  %v7237_v9 = vld [vmem:[%s9712_s1 + $0x18] sm:$0xf]  ;;  %v7246_v10 = vsel %vm366_vm0, %v7216_v4, 0  ;;  %v7250_v11 = vsel %vm366_vm0, %v7221_v5, 0  ;;  %v7254_v12 = vsel %vm366_vm0, %v7226_v6, 0 }
  0x18   : > { %s6807_s10 = smul.u32 216, %s179_s5  ;;  %9767 = vst [vmem:[#allocation6_spill] sm:$0xff] %v7254_v12  ;;  %v7258_v13 = vsel %vm366_vm0, %v7237_v9, 0  ;;  %vm1324_vm2 = vcmask 1042432   ;;  %vm1325_vm3 = vcmask 1046532   ;;  %s175_s7 = sand.u32 1, %s7101_s13  }
  0x19   : > { %9768 = vst [vmem:[#allocation7_spill] sm:$0xff] %v7258_v13  ;;  %vm563_vm4 = vsmask.f32 3328  ;;  %vm564_vm5 = vsmask.f32 7440  ;;  %vm7428_vm6 = vmor %vm1324_vm2, %vm1325_vm3  ;;  %s9523_s8 = sshll.u32 %s175_s7, 7 }
  0x1a   : > { %s7242_s27 = scalar_lea.vmem %s9711_s0, %s6807_s10  ;;  %vm7442_vm7 = vmor %vm563_vm4, %vm564_vm5  ;;  %s9540_s9 = scalar_lea.vmem [#allocation3], %s9523_s8 }
  0x1b   : > { %v7261_v14 = vld [vmem:[%s7242_s27] sm:$0xf]  ;;  %v7264_v15 = vld [vmem:[%s7242_s27 + $0x4] sm:$0xf]  ;;  %v7287_v30 = vld [vmem:[%s7242_s27 + $0xc] sm:$0xf] }
  0x1c   : > { %v7267_v16 = vld [vmem:[%s7242_s27 + $0x60] sm:$0xf]  ;;  %v5698_v17 = vcombine.low %v7261_v14, %v7264_v15  ;;  %v567_v18 = vshrl.u32 %v7261_v14, 16  ;;  %v570_v19 = vshll.u32 %v7261_v14, 16  ;;  %v576_v20 = vshll.u32 %v7264_v15, 16  ;;  %s6240_s10 = sshll.u32 %s7109_s15, 11 }
  0x1d   : > { %v7275_v21 = vld [vmem:[%s7242_s27 + $0x64] sm:$0xf]  ;;  %v580_v22 = vshrl.u32 %v7264_v15, 16  ;;  %v5763_v23 = vrot.slane %v7261_v14, 9  ;;  %v1329_v24 = vrot.slane %v7264_v15, 5  ;;  %v759_v29 = vshrl.u32 %v7267_v16, 16  ;;  %s9658_s21 = scalar_lea.hbm %s9714_s3, %s6240_s10 }
  0x1e   : > { %v5706_v25 = vcombine.low %v7267_v16, %v7275_v21  ;;  %6491 = vmatprep.mubr.msk.bf16.mxu0 %vm317_vm1, %v5698_v17  ;;  %v569_v26 = vrot.slane %v567_v18, 4  ;;  %v572_v27 = vrot.slane %v570_v19, 5  ;;  %v7283_v28 = vrot.slane %v576_v20, 5  ;;  %v7297_v35 = vld [vmem:[%s7242_s27 + $0x10] sm:$0xf]  ;;  %s5608_s11 = sshll.u32 %s9540_s9, 4  ;;  %s9660_s11 = int_to_ptr.vmem [resolvable:$true] %s5608_s11 }
  0x1f   : > { %v582_v31 = vrot.slane %v580_v22, 4  ;;  %v7291_v32 = vrot.slane %v1329_v24, 4  ;;  %v762_v33 = vshll.u32 %v7267_v16, 16  ;;  %v768_v34 = vshll.u32 %v7275_v21, 16  ;;  %v7306_v44 = vld [vmem:[%s7242_s27 + $0x6c] sm:$0xf] }
  0x20   : > { %6507 = vmatprep.mubr.msk.bf16.mxu1 %vm317_vm1, %v5706_v25  ;;  %v573_v36 = vor.u32 %v572_v27, %v569_v26  ;;  %v761_v37 = vrot.slane %v759_v29, 4  ;;  %v772_v38 = vshrl.u32 %v7275_v21, 16  ;;  %v5771_v39 = vrot.slane %v7267_v16, 9  ;;  %v7314_v49 = vld [vmem:[%s7242_s27 + $0x70] sm:$0xf]  ;;  %s9666_s15 = scalar_lea.sflag [#allocation4], %s175_s7 }
  0x21   : > { %v583_v40 = vor.u32 %v582_v31, %v7283_v28  ;;  %v764_v41 = vrot.slane %v762_v33, 5  ;;  %v7302_v42 = vrot.slane %v768_v34, 5  ;;  %v1385_v43 = vrot.slane %v7275_v21, 5  ;;  %v7324_v54 = vld [vmem:[%s7242_s27 + $0x18] sm:$0xf]  ;;  %s7041_s23 = scalar_lea.vmem %s9660_s11, 2048 }
  0x22   : > { %v7308_v45 = vrot.slane %v573_v36, 4  ;;  %v774_v46 = vrot.slane %v772_v38, 4  ;;  %v5699_v47 = vcombine.low %v7287_v30, %v7297_v35  ;;  %v591_v48 = vshrl.u32 %v7287_v30, 16  ;;  %v7327_v55 = vld [vmem:[%s7242_s27 + $0x1c] sm:$0xf]  ;;  %p7042_p12 = scmp.ne.s32.totalorder %s9660_s11, %s7041_s23  ;;  %s7119_s26 = smov [#allocation3]  }
  0x23   : > { %v7316_v50 = vrot.slane %v583_v40, 4  ;;  %v765_v51 = vor.u32 %v764_v41, %v761_v37  ;;  %v7320_v52 = vrot.slane %v1385_v43, 4  ;;  %v594_v53 = vshll.u32 %v7287_v30, 16  ;;  %v7334_v60 = vld [vmem:[%s7242_s27 + $0x78] sm:$0xf] }
  0x24   : > { %v775_v56 = vor.u32 %v774_v46, %v7302_v42  ;;  %6492 = vmatmul.mubr.msk.bf16.vlgmr.msra.gmra.mxu0 %vm317_vm1, %v5699_v47  ;;  %v593_v57 = vrot.slane %v591_v48, 4  ;;  %v600_v58 = vshll.u32 %v7297_v35, 16  ;;  %v604_v59 = vshrl.u32 %v7297_v35, 16  ;;  %v7342_v1 = vld [vmem:[%s7242_s27 + $0x7c] sm:$0xf]  ;;  %p7043_p13 = pnand %p7042_p12, %p7182_p4 }
  0x25   : > { %v7336_v61 = vrot.slane %v765_v51, 4  ;;  %v596_v62 = vrot.slane %v594_v53, 5  ;;  %v5764_v63 = vrot.slane %v7287_v30, 9  ;;  %v1336_v0 = vrot.slane %v7297_v35, 5  ;;  %6558 = vmatpush3.bf16.msra.mxu0 %v7232_v8  ;;  %v7351_v19 = vld [vmem:[%s7242_s27 + $0x24] sm:$0xf] }
  0x26   : > { %v7344_v2 = vrot.slane %v775_v56, 4  ;;  %v7346_v3 = vrot.slane %v600_v58, 5  ;;  %v606_v17 = vrot.slane %v604_v59, 4  ;;  %v5707_v18 = vcombine.low %v7306_v44, %v7314_v49  ;;  %v7354_v20 = vld [vmem:[%s7242_s27 + $0x28] sm:$0xf]  ;;  %6802 = vmatprep.subr.msk.bf16.mxu0 %vm366_vm0, %v7221_v5  ;;  %p7044_p0 = pneg %p7043_p13 }
  0x27   : > { %v597_v8 = vor.u32 %v596_v62, %v593_v57  ;;  %v7360_v22 = vrot.slane %v1336_v0, 4  ;;  %v7365_v27 = vld [vmem:[%s7242_s27 + $0x84] sm:$0xf]  ;;  %v5700_v5 = vcombine.low %v7324_v54, %v7327_v55  ;;  %v7374_v34 = vld [vmem:[%s7242_s27 + $0x88] sm:$0xf]  ;;  %v5708_v41 = vcombine.low %v7334_v60, %v7342_v1 }
  0x28   : > { %v607_v29 = vor.u32 %v606_v17, %v7346_v3  ;;  %6508 = vmatmul.mubr.msk.bf16.vlgmr.msra.gmra.mxu1 %vm317_vm1, %v5707_v18  ;;  %v7377_v36 = vld [vmem:[%s7242_s27 + $0x30] sm:$0xf]  ;;  %v7387_v46 = vld [vmem:[%s7242_s27 + $0x34] sm:$0xf]  ;;  %v5701_v56 = vcombine.low %v7351_v19, %v7354_v20  ;;  %v5709_v17 = vcombine.low %v7365_v27, %v7374_v34  ;;  %v7424_v48 = vld [vmem:[%s7242_s27 + $0x40] sm:$0xf]  ;;  %v579_v59 = vsel %vm7442_vm7, %v7308_v45, %v7283_v28 }
  0x29   : > { %v7379_v37 = vrot.slane %v597_v8, 4  ;;  %6524 = vmatpush3.bf16.msra.mxu1 %v7229_v7  ;;  %6495 = vmatprep.mubr.msk.bf16.mxu0 %vm317_vm1, %v5700_v5  ;;  %v7396_v53 = vld [vmem:[%s7242_s27 + $0x90] sm:$0xf]  ;;  %v7407_v62 = vld [vmem:[%s7242_s27 + $0x94] sm:$0xf]  ;;  %v5702_v5 = vcombine.low %v7377_v36, %v7387_v46  ;;  %v7512_v28 = vsel %vm7428_vm6, %v5764_v63, %v1336_v0  ;;  %v9775_v21 = vshrl.u32 %v7324_v54, 16 }
  0x2a   : > { %v7389_v47 = vrot.slane %v607_v29, 4  ;;  %6801 = vmatprep.subr.msk.bf16.mxu1 %vm366_vm0, %v7216_v4  ;;  %6511 = vmatprep.mubr.msk.bf16.mxu1 %vm317_vm1, %v5708_v41  ;;  %v7415_v29 = vld [vmem:[%s7242_s27 + $0x3c] sm:$0xf]  ;;  %v7453_v7 = vld [vmem:[%s7242_s27 + $0xa0] sm:$0xf]  ;;  %v9776_v13 = vshll.u32 %v7324_v54, 16 }
  0x2b   : > { %v7438_v26 = vld [vmem:[%s7242_s27 + $0x9c] sm:$0xf]  ;;  %v5703_v18 = vcombine.low %v7415_v29, %v7424_v48  ;;  %v7462_v51 = vld [vmem:[%s7242_s27 + $0x48] sm:$0xf]  ;;  %v7466_v31 = vld [vmem:[%s7242_s27 + $0x4c] sm:$0xf]  ;;  %v603_v45 = vsel %vm7442_vm7, %v7379_v37, %v7346_v3  ;;  %v7539_v37 = vsel %vm7428_vm6, %v5771_v39, %v1385_v43 }
  0x2c   : > { %6496 = vmatmul.mubr.msk.bf16.gmra.mxu0 %vm317_vm1, %v5701_v56  ;;  %v5710_v56 = vcombine.low %v7396_v53, %v7407_v62  ;;  %v5711_v41 = vcombine.low %v7438_v26, %v7453_v7  ;;  %v7471_v57 = vld [vmem:[%s7242_s27 + $0xa8] sm:$0xf]  ;;  %v5704_v58 = vcombine.low %v7462_v51, %v7466_v31  ;;  %v7520_v38 = vld [vmem:[%s7242_s27 + $0xb4] sm:$0xf]  ;;  %v7524_v30 = vld [vmem:[%s7242_s27 + $0xb8] sm:$0xf] }
  0x2d   : > { %6499 = vmatprep.mubr.msk.bf16.mxu0 %vm317_vm1, %v5702_v5  ;;  %9773 = vst [vmem:[#allocation8_spill] sm:$0xff] %v7520_v38  ;;  %9774 = vst [vmem:[#allocation9_spill] sm:$0xff] %v7524_v30  ;;  %v190_v0 = vld [vmem:[%s7242_s27 + $0x8] sm:$0x1]  ;;  %v193_v5 = vld [vmem:[%s7242_s27 + $0x14] sm:$0x1] }
  0x2e   : > { %v586_v35 = vshll.u32 %v190_v0, 16  ;;  %v1332_v40 = vrot.slane %v190_v0, 5  ;;  %v610_v4 = vshll.u32 %v193_v5, 16  ;;  %v1339_v3 = vrot.slane %v193_v5, 5  ;;  %v196_v33 = vld [vmem:[%s7242_s27 + $0x20] sm:$0x1] }
  0x2f   : > { %v617_v16 = vrot.slane %v9775_v21, 4  ;;  %v620_v39 = vrot.slane %v9776_v13, 5  ;;  %v624_v63 = vshll.u32 %v7327_v55, 16  ;;  %v9777_v0 = vshrl.u32 %v7327_v55, 16 }
  0x30   : > { %6512 = vmatmul.mubr.msk.bf16.gmra.mxu1 %vm317_vm1, %v5709_v17  ;;  %v7489_v17 = vld [vmem:[%s7242_s27 + $0xac] sm:$0xf]  ;;  %v588_v43 = vrot.slane %v586_v35, 5  ;;  %v612_v21 = vrot.slane %v610_v4, 5  ;;  %v1340_v13 = vsel %vm7428_vm6, %v7360_v22, %v1339_v3  ;;  %v5765_v4 = vrot.slane %v7324_v54, 9 }
  0x31   : > { %6515 = vmatprep.mubr.msk.bf16.mxu1 %vm317_vm1, %v5710_v56  ;;  %v7483_v56 = vsel %vm7428_vm6, %v5763_v23, %v1329_v24  ;;  %v5712_v14 = vcombine.low %v7471_v57, %v7489_v17  ;;  %v7497_v23 = vld [vmem:[%s7242_s27 + $0x54] sm:$0xf]  ;;  %v7500_v24 = vld [vmem:[%s7242_s27 + $0x58] sm:$0xf]  ;;  %v630_v12 = vrot.slane %v9777_v0, 4  ;;  %v626_v35 = vrot.slane %v624_v63, 5 }
  0x32   : > { %v5705_v15 = vcombine.low %v7497_v23, %v7500_v24  ;;  %v1343_v3 = vrot.slane %v7327_v55, 5 }
  0x34   : > { %6500 = vmatmul.mubr.msk.bf16.gmra.mxu0 %vm317_vm1, %v5703_v18  ;;  %v5713_v18 = vcombine.low %v7520_v38, %v7524_v30  ;;  %v634_v30 = vshll.u32 %v196_v33, 16  ;;  %v631_v38 = vor.u32 %v630_v12, %v626_v35  ;;  %v1344_v12 = vsel %vm7428_vm6, %v5765_v4, %v1343_v3  ;;  %v202_v4 = vld [vmem:[%s7242_s27 + $0x38] sm:$0x1] }
  0x35   : > { %6503 = vmatprep.mubr.msk.bf16.mxu0 %vm317_vm1, %v5704_v58  ;;  %v1333_v58 = vsel %vm7428_vm6, %v7291_v32, %v1332_v40  ;;  %v589_v32 = vsel %vm7442_vm7, %v7316_v50, %v588_v43  ;;  %v5781_v40 = vcombine.low %v7512_v28, %v1340_v13  ;;  %v1346_v28 = vrot.slane %v196_v33, 5 }
  0x36   : > { %v5780_v5 = vcombine.low %v7483_v56, %v1333_v58  ;;  %v5731_v0 = vcombine.low %v579_v59, %v589_v32  ;;  %v613_v56 = vsel %vm7442_vm7, %v7389_v47, %v612_v21  ;;  %v636_v22 = vrot.slane %v634_v30, 5 }
  0x37   : > { %v5732_v58 = vcombine.low %v603_v45, %v613_v56  ;;  %v9778_v59 = vshrl.u32 %v7351_v19, 16  ;;  %v9779_v47 = vshll.u32 %v7351_v19, 16  ;;  %v632_v54 = vrot.slane %v631_v38, 4 }
  0x38   : > { %6516 = vmatmul.mubr.msk.bf16.gmra.mxu1 %vm317_vm1, %v5711_v41  ;;  %v621_v41 = vor.u32 %v620_v39, %v617_v16  ;;  %v199_v16 = vld [vmem:[%s7242_s27 + $0x2c] sm:$0x1]  ;;  %v1345_v55 = vrot.slane %v1343_v3, 4  ;;  %v9780_v30 = vshrl.u32 %v7354_v20, 16  ;;  %v5766_v21 = vrot.slane %v7351_v19, 9 }
  0x39   : > { %6519 = vmatprep.mubr.msk.bf16.mxu1 %vm317_vm1, %v5712_v14  ;;  %v641_v63 = vrot.slane %v9778_v59, 4  ;;  %v644_v39 = vrot.slane %v9779_v47, 5  ;;  %v658_v43 = vshll.u32 %v199_v16, 16  ;;  %v1353_v59 = vrot.slane %v199_v16, 5 }
  0x3a   : > { %v622_v14 = vrot.slane %v621_v41, 4  ;;  %v654_v33 = vrot.slane %v9780_v30, 4  ;;  %v1347_v38 = vsel %vm7428_vm6, %v1345_v55, %v1346_v28  ;;  %v1350_v41 = vrot.slane %v7354_v20, 5 }
  0x3b   : > { %v645_v45 = vor.u32 %v644_v39, %v641_v63  ;;  %v9781_v28 = vshrl.u32 %v7377_v36, 16  ;;  %v682_v16 = vshll.u32 %v202_v4, 16  ;;  %v5767_v30 = vrot.slane %v7377_v36, 9 }
  0x3c   : > { %6504 = vmatmul.mubr.msk.bf16.gmra.mxu0 %vm317_vm1, %v5705_v15  ;;  %v627_v50 = vsel %vm7442_vm7, %v622_v14, %v626_v35  ;;  %v648_v15 = vshll.u32 %v7354_v20, 16  ;;  %v5782_v35 = vcombine.low %v1344_v12, %v1347_v38  ;;  %v660_v14 = vrot.slane %v658_v43, 5  ;;  %v205_v38 = vld [vmem:[%s7242_s27 + $0x44] sm:$0x1] }
  0x3d   : > { %6559 = vmatprep.mubr.msk.bf16.mxu0 %vm317_vm1, %v5780_v5  ;;  %v637_v5 = vsel %vm7442_vm7, %v632_v54, %v636_v22  ;;  %v646_v56 = vrot.slane %v645_v45, 4  ;;  %v1351_v19 = vsel %vm7428_vm6, %v5766_v21, %v1350_v41  ;;  %v665_v63 = vrot.slane %v9781_v28, 4 }
  0x3e   : > { %v650_v13 = vrot.slane %v648_v15, 5  ;;  %v5733_v32 = vcombine.low %v627_v50, %v637_v5  ;;  %v9782_v20 = vshll.u32 %v7377_v36, 16  ;;  %v672_v50 = vshll.u32 %v7387_v46, 16 }
  0x3f   : > { %v9783_v54 = vshrl.u32 %v7387_v46, 16  ;;  %v684_v43 = vrot.slane %v682_v16, 5  ;;  %v1357_v21 = vrot.slane %v7387_v46, 5  ;;  %v1360_v5 = vrot.slane %v202_v4, 5 }
  0x40   : > { %6520 = vmatmul.mubr.msk.bf16.gmra.mxu1 %vm317_vm1, %v5713_v18  ;;  %v655_v3 = vor.u32 %v654_v33, %v650_v13  ;;  %v1352_v18 = vrot.slane %v1350_v41, 4  ;;  %v651_v22 = vsel %vm7442_vm7, %v646_v56, %v650_v13  ;;  %v674_v45 = vrot.slane %v672_v50, 5 }
  0x41   : > { %6525 = vmatprep.mubr.msk.bf16.mxu1 %vm317_vm1, %v5731_v0  ;;  %v668_v0 = vrot.slane %v9782_v20, 5  ;;  %v678_v12 = vrot.slane %v9783_v54, 4  ;;  %v9784_v56 = vshrl.u32 %v7415_v29, 16  ;;  %v1359_v36 = vrot.slane %v1357_v21, 4 }
  0x42   : > { %v656_v47 = vrot.slane %v655_v3, 4  ;;  %v1354_v39 = vsel %vm7428_vm6, %v1352_v18, %v1353_v59  ;;  %v706_v18 = vshll.u32 %v205_v38, 16  ;;  %v1367_v54 = vrot.slane %v205_v38, 5 }
  0x43   : > { %v5783_v55 = vcombine.low %v1351_v19, %v1354_v39  ;;  %v669_v15 = vor.u32 %v668_v0, %v665_v63  ;;  %v689_v3 = vrot.slane %v9784_v56, 4  ;;  %v1361_v59 = vsel %vm7428_vm6, %v1359_v36, %v1360_v5 }
  0x44   : > { %6560 = vmatmul.mubr.msk.bf16.vlgmr.msra.gmra.mxu0 %vm317_vm1, %v5781_v40  ;;  %v661_v33 = vsel %vm7442_vm7, %v656_v47, %v660_v14  ;;  %v679_v40 = vor.u32 %v678_v12, %v674_v45  ;;  %v696_v14 = vshll.u32 %v7424_v48, 16  ;;  %v5768_v63 = vrot.slane %v7415_v29, 9  ;;  %v208_v12 = vld [vmem:[%s7242_s27 + $0x50] sm:$0x1] }
  0x45   : > { %6626 = vmatpush3.bf16.msra.mxu0 %v7250_v11  ;;  %6563 = vmatprep.mubr.msk.bf16.mxu0 %vm317_vm1, %v5782_v35  ;;  %v5734_v13 = vcombine.low %v651_v22, %v661_v33  ;;  %v670_v41 = vrot.slane %v669_v15, 4  ;;  %v1358_v11 = vsel %vm7428_vm6, %v5767_v30, %v1357_v21  ;;  %v9785_v35 = vshll.u32 %v7415_v29, 16 }
  0x46   : > { %6804 = vmatprep.subr.msk.bf16.mxu0 %vm366_vm0, %v7237_v9  ;;  %v680_v19 = vrot.slane %v679_v40, 4  ;;  %v9786_v9 = vshrl.u32 %v7424_v48, 16  ;;  %v698_v28 = vrot.slane %v696_v14, 5  ;;  %v708_v20 = vrot.slane %v706_v18, 5 }
  0x47   : > { %v692_v46 = vrot.slane %v9785_v35, 5  ;;  %v675_v4 = vsel %vm7442_vm7, %v670_v41, %v674_v45  ;;  %v1364_v0 = vrot.slane %v7424_v48, 5  ;;  %v9788_v45 = vshll.u32 %v7462_v51, 16 }
  0x48   : > { %6526 = vmatmul.mubr.msk.bf16.vlgmr.msra.gmra.mxu1 %vm317_vm1, %v5732_v58  ;;  %v702_v58 = vrot.slane %v9786_v9, 4  ;;  %v730_v41 = vshll.u32 %v208_v12, 16  ;;  %v5769_v40 = vrot.slane %v7462_v51, 9  ;;  %v1371_v36 = vrot.slane %v7466_v31, 5 }
  0x49   : > { %6592 = vmatpush3.bf16.msra.mxu1 %v7246_v10  ;;  %6529 = vmatprep.mubr.msk.bf16.mxu1 %vm317_vm1, %v5733_v32  ;;  %v693_v22 = vor.u32 %v692_v46, %v689_v3  ;;  %v685_v10 = vsel %vm7442_vm7, %v680_v19, %v684_v43  ;;  %v5784_v32 = vcombine.low %v1358_v11, %v1361_v59  ;;  %v1366_v16 = vrot.slane %v1364_v0, 4  ;;  %v211_v19 = vld [vmem:[%s7242_s27 + $0x5c] sm:$0x1] }
  0x4a   : > { %6803 = vmatprep.subr.msk.bf16.mxu1 %vm366_vm0, %v7226_v6  ;;  %v5735_v50 = vcombine.low %v675_v4, %v685_v10  ;;  %v703_v39 = vor.u32 %v702_v58, %v698_v28  ;;  %v1365_v29 = vsel %vm7428_vm6, %v5768_v63, %v1364_v0  ;;  %v9787_v6 = vshrl.u32 %v7462_v51, 16 }
  0x4b   : > { %v694_v47 = vrot.slane %v693_v22, 4  ;;  %v716_v30 = vrot.slane %v9788_v45, 5  ;;  %v720_v43 = vshll.u32 %v7466_v31, 16  ;;  %v1368_v5 = vsel %vm7428_vm6, %v1366_v16, %v1367_v54 }
  0x4c   : > { %6564 = vmatmul.mubr.msk.bf16.gmra.mxu0 %vm317_vm1, %v5783_v55  ;;  %v713_v15 = vrot.slane %v9787_v6, 4  ;;  %v704_v33 = vrot.slane %v703_v39, 4  ;;  %v9789_v55 = vshrl.u32 %v7466_v31, 16  ;;  %v5785_v3 = vcombine.low %v1365_v29, %v1368_v5 }
  0x4d   : > { %6567 = vmatprep.mubr.msk.bf16.mxu0 %vm317_vm1, %v5784_v32  ;;  %v699_v48 = vsel %vm7442_vm7, %v694_v47, %v698_v28  ;;  %v722_v11 = vrot.slane %v720_v43, 5  ;;  %v732_v14 = vrot.slane %v730_v41, 5  ;;  %v1374_v4 = vrot.slane %v208_v12, 5  ;;  %v214_v32 = vld [vmem:[%s7242_s27 + $0x68] sm:$0x1] }
  0x4e   : > { %v726_v21 = vrot.slane %v9789_v55, 4  ;;  %v717_v38 = vor.u32 %v716_v30, %v713_v15  ;;  %v709_v56 = vsel %vm7442_vm7, %v704_v33, %v708_v20  ;;  %v1372_v51 = vsel %vm7428_vm6, %v5769_v40, %v1371_v36  ;;  %v217_v40 = vld [vmem:[%s7242_s27 + $0x74] sm:$0x1] }
  0x4f   : > { %v5736_v35 = vcombine.low %v699_v48, %v709_v56  ;;  %v9790_v58 = vshrl.u32 %v7497_v23, 16  ;;  %v9791_v31 = vshll.u32 %v7497_v23, 16  ;;  %v744_v28 = vshll.u32 %v7500_v24, 16 }
  0x50   : > { %6530 = vmatmul.mubr.msk.bf16.gmra.mxu1 %vm317_vm1, %v5734_v13  ;;  %v718_v46 = vrot.slane %v717_v38, 4  ;;  %v727_v9 = vor.u32 %v726_v21, %v722_v11  ;;  %v1373_v13 = vrot.slane %v1371_v36, 4  ;;  %v9792_v63 = vshrl.u32 %v7500_v24, 16 }
  0x51   : > { %6533 = vmatprep.mubr.msk.bf16.mxu1 %vm317_vm1, %v5735_v50  ;;  %v737_v18 = vrot.slane %v9790_v58, 4  ;;  %v740_v22 = vrot.slane %v9791_v31, 5  ;;  %v754_v50 = vshll.u32 %v211_v19, 16  ;;  %v5770_v47 = vrot.slane %v7497_v23, 9 }
  0x52   : > { %v723_v59 = vsel %vm7442_vm7, %v718_v46, %v722_v11  ;;  %v750_v10 = vrot.slane %v9792_v63, 4  ;;  %v728_v20 = vrot.slane %v727_v9, 4  ;;  %v1375_v0 = vsel %vm7428_vm6, %v1373_v13, %v1374_v4  ;;  %v220_v63 = vld [vmem:[%s7242_s27 + $0x80] sm:$0x1] }
  0x53   : > { %v5786_v39 = vcombine.low %v1372_v51, %v1375_v0  ;;  %v741_v54 = vor.u32 %v740_v22, %v737_v18  ;;  %v746_v12 = vrot.slane %v744_v28, 5  ;;  %v1378_v29 = vrot.slane %v7500_v24, 5 }
  0x54   : > { %6568 = vmatmul.mubr.msk.bf16.gmra.mxu0 %vm317_vm1, %v5785_v3  ;;  %v733_v16 = vsel %vm7442_vm7, %v728_v20, %v732_v14  ;;  %v756_v6 = vrot.slane %v754_v50, 5  ;;  %v1381_v15 = vrot.slane %v211_v19, 5  ;;  %v778_v45 = vshll.u32 %v214_v32, 16 }
  0x55   : > { %v5737_v30 = vcombine.low %v723_v59, %v733_v16  ;;  %6571 = vmatprep.mubr.msk.bf16.mxu0 %vm317_vm1, %v5786_v39  ;;  %v742_v48 = vrot.slane %v741_v54, 4  ;;  %v751_v33 = vor.u32 %v750_v10, %v746_v12  ;;  %v1379_v23 = vsel %vm7428_vm6, %v5770_v47, %v1378_v29 }
  0x56   : > { %v1380_v43 = vrot.slane %v1378_v29, 4  ;;  %v780_v55 = vrot.slane %v778_v45, 5  ;;  %v1388_v24 = vrot.slane %v214_v32, 5  ;;  %v9793_v21 = vshrl.u32 %v7306_v44, 16 }
  0x57   : > { %v747_v38 = vsel %vm7442_vm7, %v742_v48, %v746_v12  ;;  %v752_v41 = vrot.slane %v751_v33, 4  ;;  %v9794_v56 = vshll.u32 %v7306_v44, 16  ;;  %v792_v11 = vshll.u32 %v7314_v49, 16 }
  0x58   : > { %6534 = vmatmul.mubr.msk.bf16.gmra.mxu1 %vm317_vm1, %v5736_v35  ;;  %v785_v5 = vrot.slane %v9793_v21, 4  ;;  %v1382_v36 = vsel %vm7428_vm6, %v1380_v43, %v1381_v15  ;;  %v781_v35 = vsel %vm7442_vm7, %v7344_v2, %v780_v55  ;;  %v1389_v46 = vsel %vm7428_vm6, %v7320_v52, %v1388_v24  ;;  %v223_v55 = vld [vmem:[%s7242_s27 + $0x8c] sm:$0x1] }
  0x59   : > { %6537 = vmatprep.mubr.msk.bf16.mxu1 %vm317_vm1, %v5737_v30  ;;  %v788_v3 = vrot.slane %v9794_v56, 5  ;;  %v9795_v14 = vshrl.u32 %v7314_v49, 16  ;;  %v757_v19 = vsel %vm7442_vm7, %v752_v41, %v756_v6  ;;  %v5787_v9 = vcombine.low %v1379_v23, %v1382_v36 }
  0x5a   : > { %v9796_v51 = vsel %vm7442_vm7, %v7336_v61, %v7302_v42  ;;  %v5788_v58 = vcombine.low %v7539_v37, %v1389_v46  ;;  %v5738_v2 = vcombine.low %v747_v38, %v757_v19  ;;  %v794_v59 = vrot.slane %v792_v11, 5 }
  0x5b   : > { %v798_v4 = vrot.slane %v9795_v14, 4  ;;  %v5739_v13 = vcombine.low %v9796_v51, %v781_v35  ;;  %v789_v18 = vor.u32 %v788_v3, %v785_v5  ;;  %v802_v31 = vshll.u32 %v217_v40, 16 }
  0x5c   : > { %6572 = vmatmul.mubr.msk.bf16.gmra.mxu0 %vm317_vm1, %v5787_v9  ;;  %v5772_v52 = vrot.slane %v7306_v44, 9  ;;  %v1392_v22 = vrot.slane %v7314_v49, 5  ;;  %v1395_v28 = vrot.slane %v217_v40, 5  ;;  %v9797_v10 = vshrl.u32 %v7334_v60, 16 }
  0x5d   : > { %6575 = vmatprep.mubr.msk.bf16.mxu0 %vm317_vm1, %v5788_v58  ;;  %v790_v42 = vrot.slane %v789_v18, 4  ;;  %v799_v61 = vor.u32 %v798_v4, %v794_v59  ;;  %v804_v37 = vrot.slane %v802_v31, 5  ;;  %v9798_v20 = vshll.u32 %v7334_v60, 16 }
  0x5e   : > { %v809_v32 = vrot.slane %v9797_v10, 4  ;;  %v1393_v50 = vsel %vm7428_vm6, %v5772_v52, %v1392_v22  ;;  %v1394_v47 = vrot.slane %v1392_v22, 4  ;;  %v816_v44 = vshll.u32 %v7342_v1, 16 }
  0x5f   : > { %v812_v0 = vrot.slane %v9798_v20, 5  ;;  %v9799_v49 = vshrl.u32 %v7342_v1, 16  ;;  %v795_v54 = vsel %vm7442_vm7, %v790_v42, %v794_v59  ;;  %v800_v12 = vrot.slane %v799_v61, 4  ;;  %v226_v59 = vld [vmem:[%s7242_s27 + $0x98] sm:$0x1] }
  0x60   : > { %6538 = vmatmul.mubr.msk.bf16.gmra.mxu1 %vm317_vm1, %v5738_v2  ;;  %v826_v16 = vshll.u32 %v220_v63, 16  ;;  %v1396_v6 = vsel %vm7428_vm6, %v1394_v47, %v1395_v28  ;;  %v818_v15 = vrot.slane %v816_v44, 5  ;;  %v5773_v45 = vrot.slane %v7334_v60, 9 }
  0x61   : > { %v822_v39 = vrot.slane %v9799_v49, 4  ;;  %v813_v29 = vor.u32 %v812_v0, %v809_v32  ;;  %6541 = vmatprep.mubr.msk.bf16.mxu1 %vm317_vm1, %v5739_v13  ;;  %v1399_v30 = vrot.slane %v7342_v1, 5  ;;  %v805_v48 = vsel %vm7442_vm7, %v800_v12, %v804_v37 }
  0x62   : > { %v5789_v33 = vcombine.low %v1393_v50, %v1396_v6  ;;  %v828_v43 = vrot.slane %v826_v16, 5  ;;  %v5740_v24 = vcombine.low %v795_v54, %v805_v48  ;;  %v1402_v40 = vrot.slane %v220_v63, 5 }
  0x63   : > { %v814_v23 = vrot.slane %v813_v29, 4  ;;  %v823_v21 = vor.u32 %v822_v39, %v818_v15  ;;  %v1400_v5 = vsel %vm7428_vm6, %v5773_v45, %v1399_v30  ;;  %v1401_v38 = vrot.slane %v1399_v30, 4  ;;  %v229_v30 = vld [vmem:[%s7242_s27 + $0xa4] sm:$0x1] }
  0x64   : > { %v9800_v60 = vshrl.u32 %v7365_v27, 16  ;;  %v9801_v56 = vshll.u32 %v7365_v27, 16  ;;  %6576 = vmatmul.mubr.msk.bf16.gmra.mxu0 %vm317_vm1, %v5789_v33  ;;  %v840_v36 = vshll.u32 %v7374_v34, 16  ;;  %v9802_v35 = vshrl.u32 %v7374_v34, 16 }
  0x65   : > { %v819_v41 = vsel %vm7442_vm7, %v814_v23, %v818_v15  ;;  %v824_v11 = vrot.slane %v823_v21, 4  ;;  %v850_v14 = vshll.u32 %v223_v55, 16  ;;  %v1403_v4 = vsel %vm7428_vm6, %v1401_v38, %v1402_v40 }
  0x66   : > { %v833_v1 = vrot.slane %v9800_v60, 4  ;;  %v836_v3 = vrot.slane %v9801_v56, 5  ;;  %v846_v46 = vrot.slane %v9802_v35, 4  ;;  %v5774_v9 = vrot.slane %v7365_v27, 9 }
  0x67   : > { %v1406_v51 = vrot.slane %v7374_v34, 5  ;;  %v829_v13 = vsel %vm7442_vm7, %v824_v11, %v828_v43  ;;  %v5790_v58 = vcombine.low %v1400_v5, %v1403_v4  ;;  %v842_v2 = vrot.slane %v840_v36, 5 }
  0x68   : > { %v837_v19 = vor.u32 %v836_v3, %v833_v1  ;;  %v852_v18 = vrot.slane %v850_v14, 5  ;;  %6542 = vmatmul.mubr.msk.bf16.gmra.mxu1 %vm317_vm1, %v5740_v24  ;;  %v5741_v31 = vcombine.low %v819_v41, %v829_v13  ;;  %v1409_v63 = vrot.slane %v223_v55, 5 }
  0x69   : > { %v1407_v22 = vsel %vm7428_vm6, %v5774_v9, %v1406_v51  ;;  %v1408_v28 = vrot.slane %v1406_v51, 4  ;;  %6579 = vmatprep.mubr.msk.bf16.mxu0 %vm317_vm1, %v5790_v58  ;;  %v847_v27 = vor.u32 %v846_v46, %v842_v2  ;;  %v9803_v34 = vshrl.u32 %v7396_v53, 16 }
  0x6a   : > { %v838_v52 = vrot.slane %v837_v19, 4  ;;  %v9804_v32 = vshll.u32 %v7396_v53, 16  ;;  %6545 = vmatprep.mubr.msk.bf16.mxu1 %vm317_vm1, %v5741_v31  ;;  %v864_v37 = vshll.u32 %v7407_v62, 16  ;;  %v9805_v20 = vshrl.u32 %v7407_v62, 16  ;;  %v232_v19 = vld [vmem:[%s7242_s27 + $0xb0] sm:$0x1] }
  0x6b   : > { %v857_v10 = vrot.slane %v9803_v34, 4  ;;  %v874_v50 = vshll.u32 %v226_v59, 16  ;;  %v848_v47 = vrot.slane %v847_v27, 4  ;;  %v1410_v44 = vsel %vm7428_vm6, %v1408_v28, %v1409_v63 }
  0x6c   : > { %v860_v42 = vrot.slane %v9804_v32, 5  ;;  %v843_v61 = vsel %vm7442_vm7, %v838_v52, %v842_v2  ;;  %v870_v0 = vrot.slane %v9805_v20, 4  ;;  %v5775_v39 = vrot.slane %v7396_v53, 9 }
  0x6d   : > { %v5791_v54 = vcombine.low %v1407_v22, %v1410_v44  ;;  %v866_v12 = vrot.slane %v864_v37, 5  ;;  %v876_v29 = vrot.slane %v874_v50, 5  ;;  %v1413_v16 = vrot.slane %v7407_v62, 5 }
  0x6e   : > { %v861_v49 = vor.u32 %v860_v42, %v857_v10  ;;  %v853_v6 = vsel %vm7442_vm7, %v848_v47, %v852_v18  ;;  %v1416_v45 = vrot.slane %v226_v59, 5  ;;  %v9806_v48 = vshrl.u32 %v7438_v26, 16  ;;  %v235_v47 = vld [vmem:[%s7242_s27 + $0xbc] sm:$0x1] }
  0x6f   : > { %v5742_v23 = vcombine.low %v843_v61, %v853_v6  ;;  %6580 = vmatmul.mubr.msk.bf16.gmra.mxu0 %vm317_vm1, %v5791_v54  ;;  %v871_v43 = vor.u32 %v870_v0, %v866_v12  ;;  %v1414_v53 = vsel %vm7428_vm6, %v5775_v39, %v1413_v16  ;;  %v1415_v55 = vrot.slane %v1413_v16, 4 }
  0x70   : > { %v862_v15 = vrot.slane %v861_v49, 4  ;;  %v881_v33 = vrot.slane %v9806_v48, 4  ;;  %v9807_v24 = vshll.u32 %v7438_v26, 16  ;;  %v888_v5 = vshll.u32 %v7453_v7, 16 }
  0x71   : > { %v9808_v38 = vshrl.u32 %v7453_v7, 16  ;;  %6546 = vmatmul.mubr.msk.bf16.gmra.mxu1 %vm317_vm1, %v5742_v23  ;;  %v872_v40 = vrot.slane %v871_v43, 4  ;;  %v1417_v60 = vsel %vm7428_vm6, %v1415_v55, %v1416_v45  ;;  %v898_v1 = vshll.u32 %v229_v30, 16 }
  0x72   : > { %v867_v62 = vsel %vm7442_vm7, %v862_v15, %v866_v12  ;;  %v884_v21 = vrot.slane %v9807_v24, 5  ;;  %v5776_v56 = vrot.slane %v7438_v26, 9  ;;  %v5792_v3 = vcombine.low %v1414_v53, %v1417_v60  ;;  %v9812_v12 = vld [vmem:[#allocation8_spill] sm:$0xff]  ;;  %v9815_v15 = vld [vmem:[#allocation9_spill] sm:$0xff] }
  0x73   : > { %v894_v41 = vrot.slane %v9808_v38, 4  ;;  %v890_v36 = vrot.slane %v888_v5, 5  ;;  %v1420_v35 = vrot.slane %v7453_v7, 5  ;;  %v877_v46 = vsel %vm7442_vm7, %v872_v40, %v876_v29  ;;  %v7841_v60 = vld [vmem:[%s7242_s27 + $0x10] sm:$0xf] }
  0x74   : > { %v885_v11 = vor.u32 %v884_v21, %v881_v33  ;;  %v900_v14 = vrot.slane %v898_v1, 5  ;;  %v1423_v4 = vrot.slane %v229_v30, 5  ;;  %v9809_v9 = vshrl.u32 %v7471_v57, 16  ;;  %6583 = vmatprep.mubr.msk.bf16.mxu0 %vm317_vm1, %v5792_v3  ;;  %v7835_v21 = vld [vmem:[%s7242_s27 + $0xc] sm:$0xf] }
  0x75   : > { %v5743_v13 = vcombine.low %v867_v62, %v877_v46  ;;  %v895_v2 = vor.u32 %v894_v41, %v890_v36  ;;  %v1421_v26 = vsel %vm7428_vm6, %v5776_v56, %v1420_v35  ;;  %v1422_v18 = vrot.slane %v1420_v35, 4 }
  0x76   : > { %v905_v51 = vrot.slane %v9809_v9, 4  ;;  %v886_v58 = vrot.slane %v885_v11, 4  ;;  %v9810_v7 = vshll.u32 %v7471_v57, 16  ;;  %v912_v31 = vshll.u32 %v7489_v17, 16 }
  0x77   : > { %v9811_v52 = vshrl.u32 %v7489_v17, 16  ;;  %6549 = vmatprep.mubr.msk.bf16.mxu1 %vm317_vm1, %v5743_v13  ;;  %v896_v27 = vrot.slane %v895_v2, 4  ;;  %v922_v63 = vshll.u32 %v232_v19, 16  ;;  %v5777_v34 = vrot.slane %v7471_v57, 9 }
  0x78   : > { %v908_v59 = vrot.slane %v9810_v7, 5  ;;  %v891_v28 = vsel %vm7442_vm7, %v886_v58, %v890_v36  ;;  %v1424_v10 = vsel %vm7428_vm6, %v1422_v18, %v1423_v4  ;;  %v914_v42 = vrot.slane %v912_v31, 5  ;;  %v7844_v36 = vld [vmem:[%s7242_s27 + $0x14] sm:$0x1]  ;;  %v7858_v58 = vld [vmem:[%s7242_s27 + $0x18] sm:$0xf] }
  0x79   : > { %v918_v22 = vrot.slane %v9811_v52, 4  ;;  %v1427_v61 = vrot.slane %v7489_v17, 5  ;;  %v901_v37 = vsel %vm7442_vm7, %v896_v27, %v900_v14  ;;  %v5793_v20 = vcombine.low %v1421_v26, %v1424_v10  ;;  %v7870_v27 = vld [vmem:[%s7242_s27 + $0x20] sm:$0x1] }
  0x7a   : > { %v909_v32 = vor.u32 %v908_v59, %v905_v51  ;;  %v924_v0 = vrot.slane %v922_v63, 5  ;;  %v1430_v50 = vrot.slane %v232_v19, 5  ;;  %v5744_v44 = vcombine.low %v891_v28, %v901_v37  ;;  %v7865_v59 = vld [vmem:[%s7242_s27 + $0x1c] sm:$0xf] }
  0x7b   : > { %v919_v39 = vor.u32 %v918_v22, %v914_v42  ;;  %v1428_v57 = vsel %vm7428_vm6, %v5777_v34, %v1427_v61  ;;  %6584 = vmatmul.mubr.msk.bf16.gmra.mxu0 %vm317_vm1, %v5793_v20  ;;  %v1429_v54 = vrot.slane %v1427_v61, 4  ;;  %v9813_v29 = vshrl.u32 %v9812_v12, 16 }
  0x7c   : > { %v910_v49 = vrot.slane %v909_v32, 4  ;;  %v9814_v16 = vshll.u32 %v9812_v12, 16  ;;  %v936_v45 = vshll.u32 %v9815_v15, 16  ;;  %6550 = vmatmul.mubr.msk.bf16.gmra.mxu1 %vm317_vm1, %v5744_v44  ;;  %v9816_v33 = vshrl.u32 %v9815_v15, 16 }
  0x7d   : > { %v929_v17 = vrot.slane %v9813_v29, 4  ;;  %v920_v48 = vrot.slane %v919_v39, 4  ;;  %v946_v43 = vshll.u32 %v235_v47, 16  ;;  %v1431_v53 = vsel %vm7428_vm6, %v1429_v54, %v1430_v50  ;;  %v7882_v50 = vld [vmem:[%s7242_s27 + $0x28] sm:$0xf] }
  0x7e   : > { %v932_v6 = vrot.slane %v9814_v16, 5  ;;  %v915_v30 = vsel %vm7442_vm7, %v910_v49, %v914_v42  ;;  %v942_v23 = vrot.slane %v9816_v33, 4  ;;  %v938_v62 = vrot.slane %v936_v45, 5  ;;  %v7875_v42 = vld [vmem:[%s7242_s27 + $0x24] sm:$0xf] }
  0x7f   : > { %v5778_v24 = vrot.slane %v9812_v12, 9  ;;  %v925_v5 = vsel %vm7442_vm7, %v920_v48, %v924_v0  ;;  %v5794_v38 = vcombine.low %v1428_v57, %v1431_v53  ;;  %v948_v41 = vrot.slane %v946_v43, 5 }
  0x80   : > { %v933_v55 = vor.u32 %v932_v6, %v929_v17  ;;  %v1434_v40 = vrot.slane %v9815_v15, 5  ;;  %v5745_v1 = vcombine.low %v915_v30, %v925_v5  ;;  %v943_v3 = vor.u32 %v942_v23, %v938_v62  ;;  %v7896_v23 = vld [vmem:[%s7242_s27 + $0x2c] sm:$0x1] }
  0x81   : > { %v1437_v11 = vrot.slane %v235_v47, 5  ;;  %6587 = vmatprep.mubr.msk.bf16.mxu0 %vm317_vm1, %v5794_v38  ;;  %v5861_v14 = vcombine.low %v7835_v21, %v7841_v60  ;;  %v2240_v4 = vshrl.u32 %v7835_v21, 16  ;;  %v2243_v51 = vshll.u32 %v7835_v21, 16 }
  0x82   : > { %v934_v56 = vrot.slane %v933_v55, 4  ;;  %v1435_v35 = vsel %vm7428_vm6, %v5778_v24, %v1434_v40  ;;  %v1436_v46 = vrot.slane %v1434_v40, 4  ;;  %6553 = vmatprep.mubr.msk.bf16.mxu1 %vm317_vm1, %v5745_v1  ;;  %v944_v9 = vrot.slane %v943_v3, 4  ;;  %v7902_v24 = vld [vmem:[%s7242_s27 + $0x30] sm:$0xf] }
  0x83   : > { %v2253_v13 = vshrl.u32 %v7841_v60, 16  ;;  %v2242_v26 = vrot.slane %v2240_v4, 4  ;;  %v2249_v18 = vshll.u32 %v7841_v60, 16  ;;  %v2259_v7 = vshll.u32 %v7844_v36, 16  ;;  %v7905_v1 = vld [vmem:[%s7242_s27 + $0x34] sm:$0xf] }
  0x84   : > { %v939_v19 = vsel %vm7442_vm7, %v934_v56, %v938_v62  ;;  %v1438_v2 = vsel %vm7428_vm6, %v1436_v46, %v1437_v11  ;;  %v949_v31 = vsel %vm7442_vm7, %v944_v9, %v948_v41  ;;  %v2245_v22 = vrot.slane %v2243_v51, 5  ;;  %v7916_v9 = vld [vmem:[%s7242_s27 + $0x38] sm:$0x1]  ;;  %v7921_v51 = vld [vmem:[%s9712_s1 + $0x1c] sm:$0xf] }
  0x85   : > { %v5795_v52 = vcombine.low %v1435_v35, %v1438_v2  ;;  %v2255_v28 = vrot.slane %v2253_v13, 4  ;;  %v5746_v63 = vcombine.low %v939_v19, %v949_v31  ;;  %v2251_v34 = vrot.slane %v2249_v18, 5 }
  0x86   : > { %v2261_v10 = vrot.slane %v2259_v7, 5  ;;  %v5862_v32 = vcombine.low %v7858_v58, %v7865_v59  ;;  %v2246_v61 = vor.u32 %v2245_v22, %v2242_v26  ;;  %v2264_v37 = vshrl.u32 %v7858_v58, 16  ;;  %v7928_v7 = vld [vmem:[%s7242_s27 + $0x3c] sm:$0xf] }
  0x87   : > { %6588 = vmatmul.mubr.msk.bf16.gmra.mxu0 %vm317_vm1, %v5795_v52  ;;  %v2267_v20 = vshll.u32 %v7858_v58, 16  ;;  %v2277_v0 = vshrl.u32 %v7865_v59, 16  ;;  %6554 = vmatmul.mubr.msk.bf16.gmra.mxu1 %vm317_vm1, %v5746_v63  ;;  %v2256_v47 = vor.u32 %v2255_v28, %v2251_v34  ;;  %v2273_v44 = vshll.u32 %v7865_v59, 16  ;;  %v9817_v52 = vld [vmem:[#allocation6_spill] sm:$0xff] }
  0x88   : > { %v2283_v49 = vshll.u32 %v7870_v27, 16  ;;  %v5863_v39 = vcombine.low %v7875_v42, %v7882_v50  ;;  %6593 = vmatprep.mubr.msk.bf16.mxu1 %vm317_vm1, %v5861_v14  ;;  %v2247_v57 = vrot.slane %v2246_v61, 4  ;;  %v2266_v54 = vrot.slane %v2264_v37, 4 }
  0x89   : > { %v2269_v12 = vrot.slane %v2267_v20, 5  ;;  %v2279_v29 = vrot.slane %v2277_v0, 4  ;;  %v2257_v17 = vrot.slane %v2256_v47, 4  ;;  %v2275_v16 = vrot.slane %v2273_v44, 5  ;;  %v7942_v20 = vld [vmem:[%s9712_s1 + $0x20] sm:$0xf] }
  0x8a   : > { %v2285_v6 = vrot.slane %v2283_v49, 5  ;;  %v2288_v15 = vshrl.u32 %v7875_v42, 16  ;;  %v2252_v45 = vsel %vm7442_vm7, %v2247_v57, %v2251_v34  ;;  %v2291_v48 = vshll.u32 %v7875_v42, 16  ;;  %v7933_v34 = vld [vmem:[%s7242_s27 + $0x40] sm:$0xf]  ;;  %v9818_v57 = vld [vmem:[#allocation7_spill] sm:$0xff] }
  0x8b   : > { %v2270_v30 = vor.u32 %v2269_v12, %v2266_v54  ;;  %v2301_v33 = vshrl.u32 %v7882_v50, 16  ;;  %v2262_v43 = vsel %vm7442_vm7, %v2257_v17, %v2261_v10  ;;  %v2280_v53 = vor.u32 %v2279_v29, %v2275_v16 }
  0x8c   : > { %v2290_v55 = vrot.slane %v2288_v15, 4  ;;  %v2297_v62 = vshll.u32 %v7882_v50, 16  ;;  %v5894_v5 = vcombine.low %v2252_v45, %v2262_v43  ;;  %v2293_v41 = vrot.slane %v2291_v48, 5 }
  0x8d   : > { %v2271_v38 = vrot.slane %v2270_v30, 4  ;;  %v2303_v40 = vrot.slane %v2301_v33, 4  ;;  %v2281_v56 = vrot.slane %v2280_v53, 4  ;;  %v2307_v11 = vshll.u32 %v7896_v23, 16 }
  0x8e   : > { %v2299_v3 = vrot.slane %v2297_v62, 5  ;;  %v5864_v35 = vcombine.low %v7902_v24, %v7905_v1  ;;  %6627 = vmatprep.mubr.msk.bf16.mxu0 %vm317_vm1, %v5894_v5  ;;  %v2294_v14 = vor.u32 %v2293_v41, %v2290_v55  ;;  %v2312_v4 = vshrl.u32 %v7902_v24, 16  ;;  %v7966_v55 = vld [vmem:[%s7242_s27 + $0x4c] sm:$0xf] }
  0x8f   : > { %v2276_v46 = vsel %vm7442_vm7, %v2271_v38, %v2275_v16  ;;  %v2315_v19 = vshll.u32 %v7902_v24, 16  ;;  %6594 = vmatmul.mubr.msk.bf16.vlgmr.msra.gmra.mxu1 %vm317_vm1, %v5862_v32  ;;  %v2286_v13 = vsel %vm7442_vm7, %v2281_v56, %v2285_v6  ;;  %v2309_v26 = vrot.slane %v2307_v11, 5  ;;  %v7958_v16 = vld [vmem:[%s7242_s27 + $0x48] sm:$0xf] }
  0x90   : > { %v2304_v2 = vor.u32 %v2303_v40, %v2299_v3  ;;  %v2325_v18 = vshrl.u32 %v7905_v1, 16  ;;  %v5895_v31 = vcombine.low %v2276_v46, %v2286_v13  ;;  %6660 = vmatpush3.bf16.msra.mxu1 %v9817_v52  ;;  %6597 = vmatprep.mubr.msk.bf16.mxu1 %vm317_vm1, %v5863_v39  ;;  %v2295_v22 = vrot.slane %v2294_v14, 4  ;;  %v7951_v39 = vld [vmem:[%s7242_s27 + $0x44] sm:$0x1]  ;;  %v7975_v40 = vld [vmem:[%s7242_s27 + $0x50] sm:$0x1] }
  0x91   : > { %v2314_v28 = vrot.slane %v2312_v4, 4  ;;  %v2317_v63 = vrot.slane %v2315_v19, 5  ;;  %v2321_v32 = vshll.u32 %v7905_v1, 16  ;;  %v2331_v37 = vshll.u32 %v7916_v9, 16  ;;  %6805 = vmatprep.subr.msk.bf16.mxu1 %vm366_vm0, %v7921_v51  ;;  %v7989_v52 = vld [vmem:[%s7242_s27 + $0x58] sm:$0xf] }
  0x92   : > { %v2305_v10 = vrot.slane %v2304_v2, 4  ;;  %v2327_v61 = vrot.slane %v2325_v18, 4  ;;  %6628 = vmatmul.mubr.msk.bf16.vlgmr.msra.gmra.mxu0 %vm317_vm1, %v5895_v31  ;;  %v2300_v0 = vsel %vm7442_vm7, %v2295_v22, %v2299_v3  ;;  %v5865_v44 = vcombine.low %v7928_v7, %v7933_v34  ;;  %v7986_v31 = vld [vmem:[%s7242_s27 + $0x54] sm:$0xf] }
  0x93   : > { %v2318_v47 = vor.u32 %v2317_v63, %v2314_v28  ;;  %v2336_v49 = vshrl.u32 %v7928_v7, 16  ;;  %6694 = vmatpush3.bf16.msra.mxu0 %v9818_v57  ;;  %v2323_v12 = vrot.slane %v2321_v32, 5  ;;  %v2333_v29 = vrot.slane %v2331_v37, 5  ;;  %v7992_v32 = vld [vmem:[%s7242_s27 + $0x5c] sm:$0x1] }
  0x94   : > { %v2310_v54 = vsel %vm7442_vm7, %v2305_v10, %v2309_v26  ;;  %v2339_v17 = vshll.u32 %v7928_v7, 16  ;;  %v2349_v45 = vshrl.u32 %v7933_v34, 16  ;;  %6806 = vmatprep.subr.msk.bf16.mxu0 %vm366_vm0, %v7942_v20  ;;  %v2345_v43 = vshll.u32 %v7933_v34, 16 }
  0x95   : > { %v5896_v6 = vcombine.low %v2300_v0, %v2310_v54  ;;  %v2319_v15 = vrot.slane %v2318_v47, 4  ;;  %v2338_v30 = vrot.slane %v2336_v49, 4  ;;  %v2328_v48 = vor.u32 %v2327_v61, %v2323_v12 }
  0x96   : > { %v2341_v33 = vrot.slane %v2339_v17, 5  ;;  %v2355_v53 = vshll.u32 %v7951_v39, 16  ;;  %v2351_v5 = vrot.slane %v2349_v45, 4  ;;  %v5866_v38 = vcombine.low %v7958_v16, %v7966_v55 }
  0x97   : > { %6631 = vmatprep.mubr.msk.bf16.mxu0 %vm317_vm1, %v5896_v6  ;;  %v2324_v62 = vsel %vm7442_vm7, %v2319_v15, %v2323_v12  ;;  %v2360_v41 = vshrl.u32 %v7958_v16, 16  ;;  %6598 = vmatmul.mubr.msk.bf16.gmra.mxu1 %vm317_vm1, %v5864_v35  ;;  %v2329_v56 = vrot.slane %v2328_v48, 4  ;;  %v2347_v11 = vrot.slane %v2345_v43, 5  ;;  %v8007_v15 = vld [vmem:[%s7242_s27 + $0x60] sm:$0xf] }
  0x98   : > { %v2342_v3 = vor.u32 %v2341_v33, %v2338_v30  ;;  %v2357_v46 = vrot.slane %v2355_v53, 5  ;;  %6601 = vmatprep.mubr.msk.bf16.mxu1 %vm317_vm1, %v5865_v44  ;;  %v2363_v14 = vshll.u32 %v7958_v16, 16  ;;  %v2373_v4 = vshrl.u32 %v7966_v55, 16  ;;  %v8010_v43 = vld [vmem:[%s7242_s27 + $0x64] sm:$0xf] }
  0x99   : > { %v2362_v19 = vrot.slane %v2360_v41, 4  ;;  %v2369_v13 = vshll.u32 %v7966_v55, 16  ;;  %v2334_v2 = vsel %vm7442_vm7, %v2329_v56, %v2333_v29  ;;  %v2352_v18 = vor.u32 %v2351_v5, %v2347_v11  ;;  %v8014_v56 = vld [vmem:[%s7242_s27 + $0x68] sm:$0x1] }
  0x9a   : > { %v2343_v26 = vrot.slane %v2342_v3, 4  ;;  %v2379_v35 = vshll.u32 %v7975_v40, 16  ;;  %v5897_v22 = vcombine.low %v2324_v62, %v2334_v2  ;;  %v2365_v28 = vrot.slane %v2363_v14, 5  ;;  %v8027_v2 = vld [vmem:[%s7242_s27 + $0x6c] sm:$0xf] }
  0x9b   : > { %v2371_v63 = vrot.slane %v2369_v13, 5  ;;  %v2375_v10 = vrot.slane %v2373_v4, 4  ;;  %v2353_v37 = vrot.slane %v2352_v18, 4  ;;  %v5867_v47 = vcombine.low %v7986_v31, %v7989_v52 }
  0x9c   : > { %v2348_v61 = vsel %vm7442_vm7, %v2343_v26, %v2347_v11  ;;  %v2381_v0 = vrot.slane %v2379_v35, 5  ;;  %6632 = vmatmul.mubr.msk.bf16.gmra.mxu0 %vm317_vm1, %v5897_v22  ;;  %v2366_v44 = vor.u32 %v2365_v28, %v2362_v19  ;;  %v2384_v57 = vshrl.u32 %v7986_v31, 16  ;;  %v8033_v28 = vld [vmem:[%s7242_s27 + $0x70] sm:$0xf] }
  0x9d   : > { %v2376_v49 = vor.u32 %v2375_v10, %v2371_v63  ;;  %v2387_v54 = vshll.u32 %v7986_v31, 16  ;;  %v2358_v12 = vsel %vm7442_vm7, %v2353_v37, %v2357_v46  ;;  %v2397_v29 = vshrl.u32 %v7989_v52, 16 }
  0x9e   : > { %v2393_v17 = vshll.u32 %v7989_v52, 16  ;;  %v2403_v6 = vshll.u32 %v7992_v32, 16  ;;  %v5898_v45 = vcombine.low %v2348_v61, %v2358_v12  ;;  %v2367_v30 = vrot.slane %v2366_v44, 4 }
  0x9f   : > { %v2377_v48 = vrot.slane %v2376_v49, 4  ;;  %v2386_v33 = vrot.slane %v2384_v57, 4  ;;  %6602 = vmatmul.mubr.msk.bf16.gmra.mxu1 %vm317_vm1, %v5866_v38  ;;  %v2389_v53 = vrot.slane %v2387_v54, 5  ;;  %v2399_v5 = vrot.slane %v2397_v29, 4  ;;  %v8040_v57 = vld [vmem:[%s7242_s27 + $0x74] sm:$0x1] }
  0xa0   : > { %v2395_v62 = vrot.slane %v2393_v17, 5  ;;  %v2405_v41 = vrot.slane %v2403_v6, 5  ;;  %6635 = vmatprep.mubr.msk.bf16.mxu0 %vm317_vm1, %v5898_v45  ;;  %v2372_v3 = vsel %vm7442_vm7, %v2367_v30, %v2371_v63  ;;  %6605 = vmatprep.mubr.msk.bf16.mxu1 %vm317_vm1, %v5867_v47  ;;  %v5868_v38 = vcombine.low %v8007_v15, %v8010_v43  ;;  %v8048_v6 = vld [vmem:[%s7242_s27 + $0x78] sm:$0xf] }
  0xa1   : > { %v2382_v11 = vsel %vm7442_vm7, %v2377_v48, %v2381_v0  ;;  %v2408_v46 = vshrl.u32 %v8007_v15, 16  ;;  %v2390_v4 = vor.u32 %v2389_v53, %v2386_v33  ;;  %v2411_v13 = vshll.u32 %v8007_v15, 16 }
  0xa2   : > { %v5899_v14 = vcombine.low %v2372_v3, %v2382_v11  ;;  %v2400_v19 = vor.u32 %v2399_v5, %v2395_v62  ;;  %v2421_v26 = vshrl.u32 %v8010_v43, 16  ;;  %v2417_v35 = vshll.u32 %v8010_v43, 16 }
  0xa3   : > { %v2410_v18 = vrot.slane %v2408_v46, 4  ;;  %v2427_v22 = vshll.u32 %v8014_v56, 16  ;;  %v2391_v63 = vrot.slane %v2390_v4, 4  ;;  %v2413_v61 = vrot.slane %v2411_v13, 5 }
  0xa4   : > { %v2401_v10 = vrot.slane %v2400_v19, 4  ;;  %v5869_v37 = vcombine.low %v8027_v2, %v8033_v28  ;;  %6636 = vmatmul.mubr.msk.bf16.gmra.mxu0 %vm317_vm1, %v5899_v14  ;;  %v2419_v0 = vrot.slane %v2417_v35, 5  ;;  %v2423_v47 = vrot.slane %v2421_v26, 4 }
  0xa5   : > { %v2429_v44 = vrot.slane %v2427_v22, 5  ;;  %v2432_v49 = vshrl.u32 %v8027_v2, 16  ;;  %v2396_v54 = vsel %vm7442_vm7, %v2391_v63, %v2395_v62  ;;  %v2414_v29 = vor.u32 %v2413_v61, %v2410_v18  ;;  %v8065_v18 = vld [vmem:[%s7242_s27 + $0x80] sm:$0x1]  ;;  %v8072_v61 = vld [vmem:[%s7242_s27 + $0x84] sm:$0xf] }
  0xa6   : > { %v2406_v12 = vsel %vm7442_vm7, %v2401_v10, %v2405_v41  ;;  %v2435_v17 = vshll.u32 %v8027_v2, 16  ;;  %v2424_v30 = vor.u32 %v2423_v47, %v2419_v0  ;;  %v2445_v48 = vshrl.u32 %v8033_v28, 16  ;;  %v8055_v41 = vld [vmem:[%s7242_s27 + $0x7c] sm:$0xf] }
  0xa7   : > { %v5900_v45 = vcombine.low %v2396_v54, %v2406_v12  ;;  %v2434_v33 = vrot.slane %v2432_v49, 4  ;;  %6606 = vmatmul.mubr.msk.bf16.gmra.mxu1 %vm317_vm1, %v5868_v38  ;;  %v2415_v53 = vrot.slane %v2414_v29, 4  ;;  %v2441_v62 = vshll.u32 %v8033_v28, 16  ;;  %v8076_v54 = vld [vmem:[%s7242_s27 + $0x88] sm:$0xf] }
  0xa8   : > { %v2437_v5 = vrot.slane %v2435_v17, 5  ;;  %v2451_v3 = vshll.u32 %v8040_v57, 16  ;;  %v2425_v11 = vrot.slane %v2424_v30, 4  ;;  %6609 = vmatprep.mubr.msk.bf16.mxu1 %vm317_vm1, %v5869_v37  ;;  %v2447_v46 = vrot.slane %v2445_v48, 4 }
  0xa9   : > { %6639 = vmatprep.mubr.msk.bf16.mxu0 %vm317_vm1, %v5900_v45  ;;  %v5870_v14 = vcombine.low %v8048_v6, %v8055_v41  ;;  %v2456_v38 = vshrl.u32 %v8048_v6, 16  ;;  %v2420_v4 = vsel %vm7442_vm7, %v2415_v53, %v2419_v0  ;;  %v2443_v13 = vrot.slane %v2441_v62, 5 }
  0xaa   : > { %v2438_v19 = vor.u32 %v2437_v5, %v2434_v33  ;;  %v2453_v26 = vrot.slane %v2451_v3, 5  ;;  %v2430_v35 = vsel %vm7442_vm7, %v2425_v11, %v2429_v44  ;;  %v2459_v22 = vshll.u32 %v8048_v6, 16  ;;  %v8088_v11 = vld [vmem:[%s7242_s27 + $0x8c] sm:$0x1] }
  0xab   : > { %v2469_v63 = vshrl.u32 %v8055_v41, 16  ;;  %v2458_v10 = vrot.slane %v2456_v38, 4  ;;  %v5901_v37 = vcombine.low %v2420_v4, %v2430_v35  ;;  %v2448_v49 = vor.u32 %v2447_v46, %v2443_v13 }
  0xac   : > { %v2439_v47 = vrot.slane %v2438_v19, 4  ;;  %v2465_v0 = vshll.u32 %v8055_v41, 16  ;;  %v2461_v12 = vrot.slane %v2459_v22, 5  ;;  %v2475_v17 = vshll.u32 %v8065_v18, 16 }
  0xad   : > { %v2471_v29 = vrot.slane %v2469_v63, 4  ;;  %v5871_v44 = vcombine.low %v8072_v61, %v8076_v54  ;;  %6640 = vmatmul.mubr.msk.bf16.gmra.mxu0 %vm317_vm1, %v5901_v37  ;;  %v2449_v30 = vrot.slane %v2448_v49, 4  ;;  %v2480_v33 = vshrl.u32 %v8072_v61, 16  ;;  %v8099_v37 = vld [vmem:[%s7242_s27 + $0x94] sm:$0xf] }
  0xae   : > { %v2444_v45 = vsel %vm7442_vm7, %v2439_v47, %v2443_v13  ;;  %v2467_v48 = vrot.slane %v2465_v0, 5  ;;  %v2462_v53 = vor.u32 %v2461_v12, %v2458_v10  ;;  %v2477_v5 = vrot.slane %v2475_v17, 5  ;;  %v8095_v13 = vld [vmem:[%s7242_s27 + $0x90] sm:$0xf]  ;;  %9819 = vst [vmem:[#allocation8_spill] sm:$0xff] %v8099_v37 }
  0xaf   : > { %v2483_v62 = vshll.u32 %v8072_v61, 16  ;;  %v2493_v3 = vshrl.u32 %v8076_v54, 16  ;;  %v2454_v46 = vsel %vm7442_vm7, %v2449_v30, %v2453_v26  ;;  %6610 = vmatmul.mubr.msk.bf16.gmra.mxu1 %vm317_vm1, %v5870_v14  ;;  %v2482_v4 = vrot.slane %v2480_v33, 4 }
  0xb0   : > { %v2472_v38 = vor.u32 %v2471_v29, %v2467_v48  ;;  %v2489_v19 = vshll.u32 %v8076_v54, 16  ;;  %v5902_v35 = vcombine.low %v2444_v45, %v2454_v46  ;;  %v2463_v22 = vrot.slane %v2462_v53, 4  ;;  %6613 = vmatprep.mubr.msk.bf16.mxu1 %vm317_vm1, %v5871_v44  ;;  %v8110_v44 = vld [vmem:[%s7242_s27 + $0x98] sm:$0x1] }
  0xb1   : > { %v2485_v63 = vrot.slane %v2483_v62, 5  ;;  %v2495_v10 = vrot.slane %v2493_v3, 4  ;;  %v2499_v14 = vshll.u32 %v8088_v11, 16  ;;  %v5872_v49 = vcombine.low %v8095_v13, %v8099_v37  ;;  %9820 = vst [vmem:[#allocation9_spill] sm:$0xff] %v8110_v44  ;;  %v8116_v62 = vld [vmem:[%s7242_s27 + $0x9c] sm:$0xf] }
  0xb2   : > { %v2473_v47 = vrot.slane %v2472_v38, 4  ;;  %v2491_v26 = vrot.slane %v2489_v19, 5  ;;  %6643 = vmatprep.mubr.msk.bf16.mxu0 %vm317_vm1, %v5902_v35  ;;  %v2468_v0 = vsel %vm7442_vm7, %v2463_v22, %v2467_v48  ;;  %v2504_v29 = vshrl.u32 %v8095_v13, 16  ;;  %9821 = vst [vmem:[#allocation6_spill] sm:$0xff] %v8116_v62 }
  0xb3   : > { %v2486_v12 = vor.u32 %v2485_v63, %v2482_v4  ;;  %v2507_v17 = vshll.u32 %v8095_v13, 16  ;;  %v2501_v33 = vrot.slane %v2499_v14, 5  ;;  %v2517_v53 = vshrl.u32 %v8099_v37, 16  ;;  %v8121_v63 = vld [vmem:[%s7242_s27 + $0xa0] sm:$0xf] }
  0xb4   : > { %v2478_v45 = vsel %vm7442_vm7, %v2473_v47, %v2477_v5  ;;  %v2496_v30 = vor.u32 %v2495_v10, %v2491_v26  ;;  %v2506_v46 = vrot.slane %v2504_v29, 4  ;;  %v2513_v19 = vshll.u32 %v8099_v37, 16  ;;  %9822 = vst [vmem:[#allocation7_spill] sm:$0xff] %v8121_v63  ;;  %v8162_v37 = vld [vmem:[%s7242_s27 + $0xb4] sm:$0xf] }
  0xb5   : > { %v5903_v3 = vcombine.low %v2468_v0, %v2478_v45  ;;  %v2487_v48 = vrot.slane %v2486_v12, 4  ;;  %v2509_v38 = vrot.slane %v2507_v17, 5  ;;  %v2519_v35 = vrot.slane %v2517_v53, 4  ;;  %v8130_v0 = vld [vmem:[%s7242_s27 + $0xa4] sm:$0x1]  ;;  %9826 = vst [vmem:[#allocation13_spill] sm:$0xff] %v8162_v37 }
  0xb6   : > { %v2497_v4 = vrot.slane %v2496_v30, 4  ;;  %v2523_v22 = vshll.u32 %v8110_v44, 16  ;;  %v5873_v47 = vcombine.low %v8116_v62, %v8121_v63  ;;  %v2528_v14 = vshrl.u32 %v8116_v62, 16  ;;  %9823 = vst [vmem:[#allocation10_spill] sm:$0xff] %v8130_v0  ;;  %v8137_v30 = vld [vmem:[%s7242_s27 + $0xa8] sm:$0xf] }
  0xb7   : > { %6644 = vmatmul.mubr.msk.bf16.gmra.mxu0 %vm317_vm1, %v5903_v3  ;;  %v2492_v5 = vsel %vm7442_vm7, %v2487_v48, %v2491_v26  ;;  %v2510_v10 = vor.u32 %v2509_v38, %v2506_v46  ;;  %6614 = vmatmul.mubr.msk.bf16.gmra.mxu1 %vm317_vm1, %v5872_v49  ;;  %v2515_v29 = vrot.slane %v2513_v19, 5  ;;  %v2531_v45 = vshll.u32 %v8116_v62, 16  ;;  %9824 = vst [vmem:[#allocation11_spill] sm:$0xff] %v8137_v30 }
  0xb8   : > { %v2502_v12 = vsel %vm7442_vm7, %v2497_v4, %v2501_v33  ;;  %v2525_v17 = vrot.slane %v2523_v22, 5  ;;  %6617 = vmatprep.mubr.msk.bf16.mxu1 %vm317_vm1, %v5873_v47  ;;  %v2541_v3 = vshrl.u32 %v8121_v63, 16  ;;  %v2530_v48 = vrot.slane %v2528_v14, 4  ;;  %v8144_v4 = vld [vmem:[%s7242_s27 + $0xac] sm:$0xf] }
  0xb9   : > { %v5904_v26 = vcombine.low %v2492_v5, %v2502_v12  ;;  %v2511_v53 = vrot.slane %v2510_v10, 4  ;;  %v2520_v46 = vor.u32 %v2519_v35, %v2515_v29  ;;  %v2533_v38 = vrot.slane %v2531_v45, 5  ;;  %9825 = vst [vmem:[#allocation12_spill] sm:$0xff] %v8144_v4  ;;  %v8153_v10 = vld [vmem:[%s7242_s27 + $0xb0] sm:$0x1] }
  0xba   : > { %v2537_v33 = vshll.u32 %v8121_v63, 16  ;;  %v2547_v49 = vshll.u32 %v8130_v0, 16  ;;  %v2543_v22 = vrot.slane %v2541_v3, 4  ;;  %v5874_v5 = vcombine.low %v8137_v30, %v8144_v4 }
  0xbb   : > { %6647 = vmatprep.mubr.msk.bf16.mxu0 %vm317_vm1, %v5904_v26  ;;  %v2516_v19 = vsel %vm7442_vm7, %v2511_v53, %v2515_v29  ;;  %v2552_v35 = vshrl.u32 %v8137_v30, 16  ;;  %v2521_v47 = vrot.slane %v2520_v46, 4  ;;  %v2534_v14 = vor.u32 %v2533_v38, %v2530_v48  ;;  %v8165_v48 = vld [vmem:[%s7242_s27 + $0xb8] sm:$0xf] }
  0xbc   : > { %v2539_v12 = vrot.slane %v2537_v33, 5  ;;  %v2549_v45 = vrot.slane %v2547_v49, 5  ;;  %v2555_v26 = vshll.u32 %v8137_v30, 16  ;;  %v2565_v0 = vshrl.u32 %v8144_v4, 16  ;;  %v8168_v30 = vld [vmem:[%s7242_s27 + $0xbc] sm:$0x1] }
  0xbd   : > { %v2554_v29 = vrot.slane %v2552_v35, 4  ;;  %v2561_v53 = vshll.u32 %v8144_v4, 16  ;;  %v2526_v3 = vsel %vm7442_vm7, %v2521_v47, %v2525_v17  ;;  %v2535_v63 = vrot.slane %v2534_v14, 4  ;;  %9827 = vst [vmem:[#allocation14_spill] sm:$0xff] %v8168_v30 }
  0xbe   : > { %v2544_v62 = vor.u32 %v2543_v22, %v2539_v12  ;;  %v2571_v44 = vshll.u32 %v8153_v10, 16  ;;  %v5905_v46 = vcombine.low %v2516_v19, %v2526_v3  ;;  %v2557_v38 = vrot.slane %v2555_v26, 5 }
  0xbf   : > { %v2563_v33 = vrot.slane %v2561_v53, 5  ;;  %v2567_v49 = vrot.slane %v2565_v0, 4  ;;  %v2540_v35 = vsel %vm7442_vm7, %v2535_v63, %v2539_v12  ;;  %6618 = vmatmul.mubr.msk.bf16.gmra.mxu1 %vm317_vm1, %v5874_v5  ;;  %v5875_v22 = vcombine.low %v8162_v37, %v8165_v48  ;;  %v8185_v12 = vld [vmem:[%s7242_s27 + $0xc0] sm:$0xf] }
  0xc0   : > { %v2545_v4 = vrot.slane %v2544_v62, 4  ;;  %v2573_v17 = vrot.slane %v2571_v44, 5  ;;  %6648 = vmatmul.mubr.msk.bf16.gmra.mxu0 %vm317_vm1, %v5905_v46  ;;  %v2558_v19 = vor.u32 %v2557_v38, %v2554_v29  ;;  %v2576_v0 = vshrl.u32 %v8162_v37, 16  ;;  %v8188_v46 = vld [vmem:[%s7242_s27 + $0xc4] sm:$0xf] }
  0xc1   : > { %v2568_v47 = vor.u32 %v2567_v49, %v2563_v33  ;;  %v2579_v14 = vshll.u32 %v8162_v37, 16  ;;  %6621 = vmatprep.mubr.msk.bf16.mxu1 %vm317_vm1, %v5875_v22  ;;  %v2589_v44 = vshrl.u32 %v8165_v48, 16  ;;  %v2585_v62 = vshll.u32 %v8165_v48, 16 }
  0xc2   : > { %v2550_v63 = vsel %vm7442_vm7, %v2545_v4, %v2549_v45  ;;  %v2595_v5 = vshll.u32 %v8168_v30, 16  ;;  %v2559_v29 = vrot.slane %v2558_v19, 4  ;;  %v2578_v3 = vrot.slane %v2576_v0, 4  ;;  %v8191_v45 = vld [vmem:[%s7242_s27 + $0xc8] sm:$0x1] }
  0xc3   : > { %v5906_v26 = vcombine.low %v2540_v35, %v2550_v63  ;;  %v2569_v53 = vrot.slane %v2568_v47, 4  ;;  %v2581_v38 = vrot.slane %v2579_v14, 5  ;;  %v2587_v49 = vrot.slane %v2585_v62, 5  ;;  %9828 = vst [vmem:[#allocation15_spill] sm:$0xff] %v8191_v45 }
  0xc4   : > { %v2591_v37 = vrot.slane %v2589_v44, 4  ;;  %v2597_v4 = vrot.slane %v2595_v5, 5  ;;  %v2564_v22 = vsel %vm7442_vm7, %v2559_v29, %v2563_v33  ;;  %v5876_v35 = vcombine.low %v8185_v12, %v8188_v46 }
  0xc5   : > { %6651 = vmatprep.mubr.msk.bf16.mxu0 %vm317_vm1, %v5906_v26  ;;  %v2574_v30 = vsel %vm7442_vm7, %v2569_v53, %v2573_v17  ;;  %v2600_v19 = vshrl.u32 %v8185_v12, 16  ;;  %v2582_v0 = vor.u32 %v2581_v38, %v2578_v3  ;;  %v2603_v63 = vshll.u32 %v8185_v12, 16 }
  0xc6   : > { %v5907_v47 = vcombine.low %v2564_v22, %v2574_v30  ;;  %v2592_v14 = vor.u32 %v2591_v37, %v2587_v49  ;;  %v2613_v44 = vshrl.u32 %v8188_v46, 16  ;;  %v2609_v33 = vshll.u32 %v8188_v46, 16  ;;  %v8208_v30 = vld [vmem:[%s7242_s27 + $0x18] sm:$0xf] }
  0xc7   : > { %v2602_v62 = vrot.slane %v2600_v19, 4  ;;  %v2619_v5 = vshll.u32 %v8191_v45, 16  ;;  %v2583_v17 = vrot.slane %v2582_v0, 4  ;;  %6622 = vmatmul.mubr.msk.bf16.gmra.mxu1 %vm317_vm1, %v5876_v35  ;;  %v2605_v29 = vrot.slane %v2603_v63, 5  ;;  %v8213_v19 = vld [vmem:[%s7242_s27 + $0x1c] sm:$0xf] }
  0xc8   : > { %v2593_v26 = vrot.slane %v2592_v14, 4  ;;  %v5926_v53 = vrot.slane %v7835_v21, 9  ;;  %6652 = vmatmul.mubr.msk.bf16.gmra.mxu0 %vm317_vm1, %v5907_v47  ;;  %v2611_v37 = vrot.slane %v2609_v33, 5  ;;  %v2615_v3 = vrot.slane %v2613_v44, 4  ;;  %v8223_v33 = vld [vmem:[%s7242_s27 + $0x24] sm:$0xf] }
  0xc9   : > { %v2621_v38 = vrot.slane %v2619_v5, 5  ;;  %v2999_v22 = vrot.slane %v7841_v60, 5  ;;  %v2588_v0 = vsel %vm7442_vm7, %v2583_v17, %v2587_v49  ;;  %v2606_v21 = vor.u32 %v2605_v29, %v2602_v62  ;;  %v8368_v17 = vld [vmem:[%s7242_s27 + $0x64] sm:$0xf]  ;;  %v8417_v49 = vld [vmem:[%s7242_s27 + $0x7c] sm:$0xf] }
  0xca   : > { %v2598_v35 = vsel %vm7442_vm7, %v2593_v26, %v2597_v4  ;;  %v3002_v14 = vrot.slane %v7844_v36, 5  ;;  %v2616_v45 = vor.u32 %v2615_v3, %v2611_v37  ;;  %v6024_v5 = vcombine.low %v8208_v30, %v8213_v19  ;;  %v8230_v4 = vld [vmem:[%s7242_s27 + $0x28] sm:$0xf]  ;;  %9830 = vst [vmem:[#allocation17_spill] sm:$0xff] %v8368_v17  ;;  %9835 = vst [vmem:[#allocation22_spill] sm:$0xff] %v8417_v49 }
  0xcb   : > { %v5908_v63 = vcombine.low %v2588_v0, %v2598_v35  ;;  %v3000_v47 = vsel %vm7428_vm6, %v5926_v53, %v2999_v22  ;;  %v3001_v44 = vrot.slane %v2999_v22, 4  ;;  %v2607_v60 = vrot.slane %v2606_v21, 4 }
  0xcc   : > { %v2617_v36 = vrot.slane %v2616_v45, 4  ;;  %v5927_v29 = vrot.slane %v7858_v58, 9  ;;  %v3006_v22 = vrot.slane %v7865_v59, 5  ;;  %v3009_v0 = vrot.slane %v7870_v27, 5 }
  0xcd   : > { %6655 = vmatprep.mubr.msk.bf16.mxu0 %vm317_vm1, %v5908_v63  ;;  %v3003_v62 = vsel %vm7428_vm6, %v3001_v44, %v3002_v14  ;;  %v2612_v53 = vsel %vm7442_vm7, %v2607_v60, %v2611_v37  ;;  %v6025_v45 = vcombine.low %v8223_v33, %v8230_v4  ;;  %v3934_v21 = vshrl.u32 %v8223_v33, 16  ;;  %v8254_v60 = vld [vmem:[%s7242_s27 + $0x30] sm:$0xf] }
  0xce   : > { %v5943_v3 = vcombine.low %v3000_v47, %v3003_v62  ;;  %v2622_v35 = vsel %vm7442_vm7, %v2617_v36, %v2621_v38  ;;  %v3937_v14 = vshll.u32 %v8223_v33, 16  ;;  %v3007_v37 = vsel %vm7428_vm6, %v5927_v29, %v3006_v22 }
  0xcf   : > { %v5909_v58 = vcombine.low %v2612_v53, %v2622_v35  ;;  %v3008_v59 = vrot.slane %v3006_v22, 4  ;;  %v3943_v27 = vshll.u32 %v8230_v4, 16  ;;  %v3936_v63 = vrot.slane %v3934_v21, 4 }
  0xd0   : > { %6661 = vmatprep.mubr.msk.bf16.mxu1 %vm317_vm1, %v5943_v3  ;;  %v3939_v47 = vrot.slane %v3937_v14, 5  ;;  %v3947_v38 = vshrl.u32 %v8230_v4, 16  ;;  %v9729_v29 = vrot.slane %v8230_v4, 5  ;;  %v4392_v53 = vsel %vm366_vm0, %v7921_v51, 0  ;;  %v8265_v3 = vld [vmem:[%s7242_s27 + $0x34] sm:$0xf] }
  0xd1   : > { %6656 = vmatmul.mubr.msk.bf16.gmra.mxu0 %vm317_vm1, %v5909_v58  ;;  %v3010_v36 = vsel %vm7428_vm6, %v3008_v59, %v3009_v0  ;;  %v8259_v62 = vrot.slane %v3943_v27, 5  ;;  %v4878_v14 = vsel %vm366_vm0, %v7942_v20, 0  ;;  %v5928_v58 = vrot.slane %v7875_v42, 9  ;;  %v8309_v20 = vld [vmem:[%s7242_s27 + $0x48] sm:$0xf] }
  0xd2   : > { %6695 = vmatprep.mubr.msk.bf16.mxu0 %vm317_vm1, %v6024_v5  ;;  %v5944_v22 = vcombine.low %v3007_v37, %v3010_v36  ;;  %v3940_v35 = vor.u32 %v3939_v47, %v3936_v63  ;;  %v3949_v21 = vrot.slane %v3947_v38, 4  ;;  %v8272_v0 = vrot.slane %v9729_v29, 4  ;;  %v8285_v63 = vld [vmem:[%s7242_s27 + $0x3c] sm:$0xf]  ;;  %v8288_v47 = vld [vmem:[%s7242_s27 + $0x40] sm:$0xf] }
  0xd3   : > { %v3013_v51 = vrot.slane %v7882_v50, 5  ;;  %v3016_v59 = vrot.slane %v7896_v23, 5  ;;  %v6026_v37 = vcombine.low %v8254_v60, %v8265_v3  ;;  %v3985_v23 = vshll.u32 %v8285_v63, 16  ;;  %v8337_v29 = vld [vmem:[%s7242_s27 + $0x58] sm:$0xf] }
  0xd4   : > { %6662 = vmatmul.mubr.msk.bf16.vlgmr.msra.gmra.mxu1 %vm317_vm1, %v5944_v22  ;;  %v8278_v27 = vrot.slane %v3940_v35, 4  ;;  %v3950_v5 = vor.u32 %v3949_v21, %v8259_v62  ;;  %v5929_v22 = vrot.slane %v7902_v24, 9  ;;  %v3020_v35 = vrot.slane %v7905_v1, 5 }
  0xd5   : > { %6728 = vmatpush3.bf16.msra.mxu1 %v4392_v53  ;;  %v3014_v42 = vsel %vm7428_vm6, %v5928_v58, %v3013_v51  ;;  %v3015_v50 = vrot.slane %v3013_v51, 4  ;;  %v3023_v21 = vrot.slane %v7916_v9, 5  ;;  %v6027_v58 = vcombine.low %v8285_v63, %v8288_v47 }
  0xd6   : > { %v8294_v36 = vrot.slane %v3950_v5, 4  ;;  %v3982_v51 = vshrl.u32 %v8285_v63, 16  ;;  %v3021_v5 = vsel %vm7428_vm6, %v5929_v22, %v3020_v35  ;;  %v3022_v24 = vrot.slane %v3020_v35, 4 }
  0xd7   : > { %v3017_v53 = vsel %vm7428_vm6, %v3015_v50, %v3016_v59  ;;  %v3991_v1 = vshll.u32 %v8288_v47, 16  ;;  %v8314_v59 = vrot.slane %v3985_v23, 5  ;;  %v3995_v50 = vshrl.u32 %v8288_v47, 16 }
  0xd8   : > { %v5945_v38 = vcombine.low %v3014_v42, %v3017_v53  ;;  %v8312_v9 = vrot.slane %v3982_v51, 4  ;;  %v8319_v53 = vld [vmem:[%s7242_s27 + $0x4c] sm:$0xf]  ;;  %v3024_v22 = vsel %vm7428_vm6, %v3022_v24, %v3023_v21  ;;  %v5930_v23 = vrot.slane %v7928_v7, 9  ;;  %v8329_v51 = vld [vmem:[%s7242_s27 + $0x54] sm:$0xf] }
  0xd9   : > { %6696 = vmatmul.mubr.msk.bf16.vlgmr.msra.gmra.mxu0 %vm317_vm1, %v6025_v45  ;;  %v8324_v35 = vrot.slane %v3991_v1, 5  ;;  %v5946_v44 = vcombine.low %v3021_v5, %v3024_v22  ;;  %v8332_v42 = vrot.slane %v3995_v50, 4  ;;  %v6028_v21 = vcombine.low %v8309_v20, %v8319_v53 }
  0xda   : > { %6762 = vmatpush3.bf16.msra.mxu0 %v4878_v14  ;;  %6665 = vmatprep.mubr.msk.bf16.mxu1 %vm317_vm1, %v5945_v38  ;;  %v3027_v14 = vrot.slane %v7933_v34, 5  ;;  %v3030_v38 = vrot.slane %v7951_v39, 5  ;;  %v5931_v39 = vrot.slane %v7958_v16, 9  ;;  %v3034_v5 = vrot.slane %v7966_v55, 5  ;;  %v8360_v55 = vld [vmem:[%s7242_s27 + $0x60] sm:$0xf] }
  0xdb   : > { %6699 = vmatprep.mubr.msk.bf16.mxu0 %vm317_vm1, %v6026_v37  ;;  %v3037_v50 = vrot.slane %v7975_v40, 5  ;;  %v6029_v22 = vcombine.low %v8329_v51, %v8337_v29  ;;  %v4030_v7 = vshrl.u32 %v8329_v51, 16  ;;  %v4033_v1 = vshll.u32 %v8329_v51, 16  ;;  %9829 = vst [vmem:[#allocation16_spill] sm:$0xff] %v8360_v55 }
  0xdc   : > { %6666 = vmatmul.mubr.msk.bf16.gmra.mxu1 %vm317_vm1, %v5946_v44  ;;  %v3028_v37 = vsel %vm7428_vm6, %v5930_v23, %v3027_v14  ;;  %v3029_v34 = vrot.slane %v3027_v14, 4  ;;  %v3035_v23 = vsel %vm7428_vm6, %v5931_v39, %v3034_v5  ;;  %v3036_v14 = vrot.slane %v3034_v5, 4 }
  0xdd   : > { %v4039_v16 = vshll.u32 %v8337_v29, 16  ;;  %v8362_v24 = vrot.slane %v4030_v7, 4  ;;  %v8364_v45 = vrot.slane %v4033_v1, 5  ;;  %v4043_v26 = vshrl.u32 %v8337_v29, 16  ;;  %v8378_v7 = vld [vmem:[%s7242_s27 + $0x6c] sm:$0xf] }
  0xde   : > { %v3031_v44 = vsel %vm7428_vm6, %v3029_v34, %v3030_v38  ;;  %v3038_v38 = vsel %vm7428_vm6, %v3036_v14, %v3037_v50  ;;  %9831 = vst [vmem:[#allocation18_spill] sm:$0xff] %v8378_v7  ;;  %v8387_v50 = vld [vmem:[%s7242_s27 + $0x70] sm:$0xf]  ;;  %v3044_v14 = vrot.slane %v7992_v32, 5  ;;  %v3048_v32 = vrot.slane %v8010_v43, 5 }
  0xdf   : > { %v5947_v40 = vcombine.low %v3028_v37, %v3031_v44  ;;  %v8373_v34 = vrot.slane %v4039_v16, 5  ;;  %v5948_v1 = vcombine.low %v3035_v23, %v3038_v38  ;;  %v8382_v5 = vrot.slane %v4043_v26, 4  ;;  %9832 = vst [vmem:[#allocation19_spill] sm:$0xff] %v8387_v50  ;;  %v8414_v37 = vld [vmem:[%s7242_s27 + $0x78] sm:$0xf] }
  0xe0   : > { %v3041_v44 = vrot.slane %v7989_v52, 5  ;;  %v6030_v16 = vcombine.low %v8360_v55, %v8368_v17  ;;  %v5933_v52 = vrot.slane %v8007_v15, 9  ;;  %v3051_v23 = vrot.slane %v8014_v56, 5  ;;  %9834 = vst [vmem:[#allocation21_spill] sm:$0xff] %v8414_v37 }
  0xe1   : > { %6700 = vmatmul.mubr.msk.bf16.gmra.mxu0 %vm317_vm1, %v6027_v58  ;;  %6669 = vmatprep.mubr.msk.bf16.mxu1 %vm317_vm1, %v5947_v40  ;;  %v5932_v58 = vrot.slane %v7986_v31, 9  ;;  %v4078_v40 = vshrl.u32 %v8378_v7, 16  ;;  %v4087_v31 = vshll.u32 %v8387_v50, 16  ;;  %v4091_v15 = vshrl.u32 %v8387_v50, 16 }
  0xe2   : > { %6703 = vmatprep.mubr.msk.bf16.mxu0 %vm317_vm1, %v6028_v21  ;;  %v3043_v26 = vrot.slane %v3041_v44, 4  ;;  %v3049_v43 = vsel %vm7428_vm6, %v5933_v52, %v3048_v32  ;;  %v3050_v56 = vrot.slane %v3048_v32, 4  ;;  %v5934_v32 = vrot.slane %v8027_v2, 9 }
  0xe3   : > { %v3042_v21 = vsel %vm7428_vm6, %v5932_v58, %v3041_v44  ;;  %v4081_v44 = vshll.u32 %v8378_v7, 16  ;;  %v8411_v39 = vrot.slane %v4078_v40, 4  ;;  %v8425_v17 = vrot.slane %v4091_v15, 4 }
  0xe4   : > { %6670 = vmatmul.mubr.msk.bf16.gmra.mxu1 %vm317_vm1, %v5948_v1  ;;  %v3045_v58 = vsel %vm7428_vm6, %v3043_v26, %v3044_v14  ;;  %v8419_v38 = vpop.f32.mrf.mxu0  ;;  %v8423_v26 = vrot.slane %v4087_v31, 5  ;;  %v3052_v40 = vsel %vm7428_vm6, %v3050_v56, %v3051_v23  ;;  %v3055_v31 = vrot.slane %v8033_v28, 5 }
  0xe5   : > { %v5949_v1 = vcombine.low %v3042_v21, %v3045_v58  ;;  %9833 = vst [vmem:[#allocation20_spill] sm:$0xff] %v8411_v39  ;;  %v8421_v14 = vrot.slane %v4081_v44, 5  ;;  %9838 = vst [vmem:[#allocation25_spill] sm:$0xff] %v8425_v17  ;;  %v8429_v58 = vld [vmem:[%s7242_s27 + $0x84] sm:$0xf]  ;;  %v5950_v21 = vcombine.low %v3049_v43, %v3052_v40  ;;  %v3065_v43 = vrot.slane %v8065_v18, 5 }
  0xe6   : > { %9837 = vst [vmem:[#allocation24_spill] sm:$0xff] %v8423_v26  ;;  %9839 = vst [vmem:[#allocation26_spill] sm:$0xff] %v8429_v58  ;;  %v8439_v44 = vld [vmem:[%s7242_s27 + $0x88] sm:$0xf]  ;;  %v8441_v15 = vpop.f32.mrf.mxu0  ;;  %v3056_v56 = vsel %vm7428_vm6, %v5934_v32, %v3055_v31  ;;  %v3057_v2 = vrot.slane %v3055_v31, 4  ;;  %v4126_v31 = vshrl.u32 %v8429_v58, 16 }
  0xe7   : > { %9836 = vst [vmem:[#allocation23_spill] sm:$0xff] %v8421_v14  ;;  %6673 = vmatprep.mubr.msk.bf16.mxu1 %vm317_vm1, %v5949_v1  ;;  %9840 = vst [vmem:[#allocation27_spill] sm:$0xff] %v8439_v44  ;;  %v6032_v1 = vcombine.low %v8414_v37, %v8417_v49  ;;  %v4129_v52 = vshll.u32 %v8429_v58, 16  ;;  %v4135_v28 = vshll.u32 %v8439_v44, 16  ;;  %v9868_v14 = vld [vmem:[#allocation10_spill] sm:$0xff] }
  0xe8   : > { %v8452_v17 = vpop.f32.mrf.mxu1  ;;  %v8454_v26 = vpop.f32.mrf.mxu0  ;;  %v3086_v39 = vrot.slane %v9868_v14, 5 }
  0xe9   : > { %6704 = vmatmul.mubr.msk.bf16.gmra.mxu0 %vm317_vm1, %v6029_v22  ;;  %v3058_v22 = vrot.slane %v8040_v57, 5  ;;  %9841 = vst [vmem:[#allocation28_spill] sm:$0xff] %v8452_v17  ;;  %v5935_v57 = vrot.slane %v8048_v6, 9  ;;  %v8475_v17 = vld [vmem:[%s7242_s27 + $0x90] sm:$0xf]  ;;  %v8482_v49 = vrot.slane %v4129_v52, 5 }
  0xea   : > { %6707 = vmatprep.mubr.msk.bf16.mxu0 %vm317_vm1, %v6030_v16  ;;  %v3062_v16 = vrot.slane %v8055_v41, 5  ;;  %v8467_v6 = vpop.f32.mrf.mxu1  ;;  %v8469_v23 = vpop.f32.mrf.mxu0  ;;  %9843 = vst [vmem:[#allocation30_spill] sm:$0xff] %v8475_v17  ;;  %v8484_v37 = vrot.slane %v4135_v28, 5  ;;  %v5936_v52 = vrot.slane %v8072_v61, 9  ;;  %v9850_v28 = vcombine.low %v8378_v7, %v8387_v50  ;;  %v8512_v61 = vld [vmem:[%s7242_s27 + $0xa0] sm:$0xf] }
  0xeb   : > { %v3059_v32 = vsel %vm7428_vm6, %v3057_v2, %v3058_v22  ;;  %9842 = vst [vmem:[#allocation29_spill] sm:$0xff] %v8467_v6  ;;  %v8478_v22 = vld [vmem:[%s7242_s27 + $0x94] sm:$0xf]  ;;  %v8480_v2 = vrot.slane %v4126_v31, 4  ;;  %9846 = vst [vmem:[#allocation33_spill] sm:$0xff] %v8482_v49  ;;  %v4183_v31 = vshll.u32 %v8512_v61, 16 }
  0xec   : > { %6674 = vmatmul.mubr.msk.bf16.gmra.mxu1 %vm317_vm1, %v5950_v21  ;;  %v5951_v41 = vcombine.low %v3056_v56, %v3059_v32  ;;  %v3063_v18 = vsel %vm7428_vm6, %v5935_v57, %v3062_v16  ;;  %v3064_v40 = vrot.slane %v3062_v16, 4  ;;  %v4139_v21 = vshrl.u32 %v8439_v44, 16  ;;  %9844 = vst [vmem:[#allocation31_spill] sm:$0xff] %v8478_v22  ;;  %9847 = vst [vmem:[#allocation34_spill] sm:$0xff] %v8484_v37  ;;  %v8487_v32 = vpop.f32.mrf.mxu1  ;;  %v8496_v6 = vpop.f32.mrf.mxu0  ;;  %v9855_v37 = vld [vmem:[#allocation8_spill] sm:$0xff] }
  0xed   : > { %9845 = vst [vmem:[#allocation32_spill] sm:$0xff] %v8480_v2  ;;  %9848 = vst [vmem:[#allocation35_spill] sm:$0xff] %v8487_v32  ;;  %v3076_v49 = vrot.slane %v9855_v37, 5 }
  0xee   : > { %6677 = vmatprep.mubr.msk.bf16.mxu1 %vm317_vm1, %v5951_v41  ;;  %v3066_v57 = vsel %vm7428_vm6, %v3064_v40, %v3065_v43  ;;  %v8492_v16 = vrot.slane %v4139_v21, 4  ;;  %v8502_v32 = vpop.f32.mrf.mxu1  ;;  %v3069_v41 = vrot.slane %v8076_v54, 5  ;;  %v3072_v43 = vrot.slane %v8088_v11, 5  ;;  %v8509_v21 = vld [vmem:[%s7242_s27 + $0x9c] sm:$0xf]  ;;  %9853 = vst [vmem:[#allocation39_spill] sm:$0xff] %v8512_v61  ;;  %v8519_v54 = vpop.f32.mrf.mxu0 }
  0xef   : > { %v5952_v56 = vcombine.low %v3063_v18, %v3066_v57  ;;  %9851 = vst [vmem:[#allocation37_spill] sm:$0xff] %v8502_v32  ;;  %v6034_v40 = vcombine.low %v8475_v17, %v8478_v22  ;;  %9852 = vst [vmem:[#allocation38_spill] sm:$0xff] %v8509_v21  ;;  %v5937_v57 = vrot.slane %v8095_v13, 9  ;;  %v4174_v18 = vshrl.u32 %v8509_v21, 16 }
  0xf0   : > { %9849 = vst [vmem:[#allocation36_spill] sm:$0xff] %v8492_v16  ;;  %v3070_v11 = vsel %vm7428_vm6, %v5936_v52, %v3069_v41  ;;  %v3071_v32 = vrot.slane %v3069_v41, 4  ;;  %v8523_v16 = vpop.f32.mrf.mxu1  ;;  %v4177_v13 = vshll.u32 %v8509_v21, 16  ;;  %v8532_v22 = vpop.f32.mrf.mxu0  ;;  %v3078_v41 = vrot.slane %v3076_v49, 4 }
  0xf1   : > { %6708 = vmatmul.mubr.msk.bf16.gmra.mxu0 %vm317_vm1, %v9850_v28  ;;  %9854 = vst [vmem:[#allocation40_spill] sm:$0xff] %v8523_v16  ;;  %v3077_v37 = vsel %vm7428_vm6, %v5937_v57, %v3076_v49  ;;  %v8543_v16 = vld [vmem:[%s7242_s27 + $0xa8] sm:$0xf]  ;;  %v8545_v7 = vrot.slane %v4174_v18, 4 }
  0xf2   : > { %6711 = vmatprep.mubr.msk.bf16.mxu0 %vm317_vm1, %v6032_v1  ;;  %v9856_v1 = vld [vmem:[#allocation9_spill] sm:$0xff]  ;;  %v3073_v52 = vsel %vm7428_vm6, %v3071_v32, %v3072_v43  ;;  %v8540_v28 = vpop.f32.mrf.mxu1  ;;  %v8547_v50 = vrot.slane %v4177_v13, 5  ;;  %v8551_v32 = vpop.f32.mrf.mxu0  ;;  %v8554_v43 = vld [vmem:[%s7242_s27 + $0xac] sm:$0xf]  ;;  %v8565_v13 = vld [vmem:[%s7242_s27 + $0xb4] sm:$0xf] }
  0xf3   : > { %v3079_v2 = vrot.slane %v9856_v1, 5  ;;  %v4187_v1 = vshrl.u32 %v8512_v61, 16  ;;  %9857 = vst [vmem:[#allocation8_spill] sm:$0xff] %v8540_v28  ;;  %9858 = vst [vmem:[#allocation9_spill] sm:$0xff] %v8543_v16  ;;  %v5953_v17 = vcombine.low %v3070_v11, %v3073_v52  ;;  %v9866_v52 = vld [vmem:[#allocation6_spill] sm:$0xff]  ;;  %v9871_v11 = vld [vmem:[#allocation11_spill] sm:$0xff] }
  0xf4   : > { %6678 = vmatmul.mubr.msk.bf16.gmra.mxu1 %vm317_vm1, %v5952_v56  ;;  %9859 = vst [vmem:[#allocation41_spill] sm:$0xff] %v8545_v7  ;;  %9860 = vst [vmem:[#allocation42_spill] sm:$0xff] %v8547_v50  ;;  %v8549_v56 = vrot.slane %v4183_v31, 5  ;;  %v8562_v18 = vpop.f32.mrf.mxu1  ;;  %v9867_v50 = vld [vmem:[#allocation7_spill] sm:$0xff] }
  0xf5   : > { %9862 = vst [vmem:[#allocation44_spill] sm:$0xff] %v8554_v43  ;;  %v3080_v49 = vsel %vm7428_vm6, %v3078_v41, %v3079_v2  ;;  %v8558_v57 = vrot.slane %v4187_v1, 4  ;;  %9864 = vst [vmem:[#allocation46_spill] sm:$0xff] %v8562_v18  ;;  %6681 = vmatprep.mubr.msk.bf16.mxu1 %vm317_vm1, %v5953_v17  ;;  %v3083_v7 = vrot.slane %v9867_v50, 5  ;;  %v8571_v2 = vpop.f32.mrf.mxu0  ;;  %v8574_v41 = vld [vmem:[%s7242_s27 + $0xb8] sm:$0xf]  ;;  %v9869_v1 = vcombine.low %v8429_v58, %v8439_v44 }
  0xf6   : > { %9861 = vst [vmem:[#allocation43_spill] sm:$0xff] %v8549_v56  ;;  %9865 = vst [vmem:[#allocation47_spill] sm:$0xff] %v8565_v13  ;;  %v5954_v31 = vcombine.low %v3077_v37, %v3080_v49  ;;  %v5938_v56 = vrot.slane %v9866_v52, 9  ;;  %v8580_v28 = vpop.f32.mrf.mxu1  ;;  %v6036_v17 = vcombine.low %v8543_v16, %v8554_v43  ;;  %v9872_v18 = vld [vmem:[#allocation12_spill] sm:$0xff]  ;;  %v3093_v37 = vrot.slane %v8153_v10, 5 }
  0xf7   : > { %9863 = vst [vmem:[#allocation45_spill] sm:$0xff] %v8558_v57  ;;  %9870 = vst [vmem:[#allocation6_spill] sm:$0xff] %v8580_v28  ;;  %v3085_v52 = vrot.slane %v3083_v7, 4  ;;  %v3090_v28 = vrot.slane %v9872_v18, 5  ;;  %v8592_v57 = vpop.f32.mrf.mxu0  ;;  %v4225_v50 = vshll.u32 %v8565_v13, 16  ;;  %v4231_v18 = vshll.u32 %v8574_v41, 16 }
  0xf8   : > { %v3084_v49 = vsel %vm7428_vm6, %v5938_v56, %v3083_v7  ;;  %v8594_v58 = vpop.f32.mrf.mxu1  ;;  %v8609_v10 = vld [vmem:[%s7242_s27 + $0xc0] sm:$0xf] }
  0xf9   : > { %6712 = vmatmul.mubr.msk.bf16.gmra.mxu0 %vm317_vm1, %v9869_v1  ;;  %v5939_v1 = vrot.slane %v9871_v11, 9  ;;  %9873 = vst [vmem:[#allocation7_spill] sm:$0xff] %v8594_v58  ;;  %v3087_v7 = vsel %vm7428_vm6, %v3085_v52, %v3086_v39  ;;  %v3092_v11 = vrot.slane %v3090_v28, 4  ;;  %v8606_v58 = vpop.f32.mrf.mxu0  ;;  %9874 = vst [vmem:[#allocation10_spill] sm:$0xff] %v8609_v10  ;;  %v8614_v16 = vrot.slane %v4225_v50, 5 }
  0xfa   : > { %6715 = vmatprep.mubr.msk.bf16.mxu0 %vm317_vm1, %v6034_v40  ;;  %v4222_v40 = vshrl.u32 %v8565_v13, 16  ;;  %v5955_v14 = vcombine.low %v3084_v49, %v3087_v7  ;;  %v4235_v39 = vshrl.u32 %v8574_v41, 16  ;;  %v8617_v52 = vpop.f32.mrf.mxu1  ;;  %v8624_v44 = vrot.slane %v4231_v18, 5  ;;  %v8631_v50 = vld [vmem:[%s7242_s27 + $0xcc] sm:$0xf]  ;;  %v9883_v18 = vld [vmem:[#allocation14_spill] sm:$0xff] }
  0xfb   : > { %v3091_v56 = vsel %vm7428_vm6, %v5939_v1, %v3090_v28  ;;  %9876 = vst [vmem:[#allocation12_spill] sm:$0xff] %v8614_v16  ;;  %9877 = vst [vmem:[#allocation48_spill] sm:$0xff] %v8617_v52  ;;  %v8620_v28 = vld [vmem:[%s7242_s27 + $0xc4] sm:$0xf]  ;;  %v3094_v1 = vsel %vm7428_vm6, %v3092_v11, %v3093_v37  ;;  %v8628_v49 = vpop.f32.mrf.mxu0  ;;  %v9882_v16 = vld [vmem:[#allocation13_spill] sm:$0xff]  ;;  %v3097_v37 = vrot.slane %v8165_v48, 5 }
  0xfc   : > { %6682 = vmatmul.mubr.msk.bf16.gmra.mxu1 %vm317_vm1, %v5954_v31  ;;  %v8612_v43 = vrot.slane %v4222_v40, 4  ;;  %9878 = vst [vmem:[#allocation49_spill] sm:$0xff] %v8620_v28  ;;  %9879 = vst [vmem:[#allocation50_spill] sm:$0xff] %v8624_v44  ;;  %v5956_v40 = vcombine.low %v3091_v56, %v3094_v1  ;;  %v8634_v7 = vrot.slane %v4235_v39, 4  ;;  %v8636_v52 = vpop.f32.mrf.mxu1  ;;  %v8641_v11 = vld [vmem:[%s7242_s27 + $0xd0] sm:$0xf]  ;;  %v6038_v31 = vcombine.low %v8609_v10, %v8620_v28 }
  0xfd   : > { %6685 = vmatprep.mubr.msk.bf16.mxu1 %vm317_vm1, %v5955_v14  ;;  %9881 = vst [vmem:[#allocation52_spill] sm:$0xff] %v8636_v52  ;;  %v3100_v55 = vrot.slane %v9883_v18, 5  ;;  %v8648_v56 = vpop.f32.mrf.mxu0  ;;  %v9884_v39 = vcombine.low %v8509_v21, %v8512_v61  ;;  %v3099_v1 = vrot.slane %v3097_v37, 4  ;;  %v5941_v52 = vrot.slane %v8185_v12, 9  ;;  %v9886_v44 = vld [vmem:[#allocation15_spill] sm:$0xff] }
  0xfe   : > { %9875 = vst [vmem:[#allocation11_spill] sm:$0xff] %v8612_v43  ;;  %9880 = vst [vmem:[#allocation51_spill] sm:$0xff] %v8634_v7  ;;  %v5940_v43 = vrot.slane %v9882_v16, 9  ;;  %v8654_v16 = vpop.f32.mrf.mxu1  ;;  %v3104_v14 = vrot.slane %v8188_v46, 5  ;;  %v3107_v10 = vrot.slane %v9886_v44, 5  ;;  %v4273_v12 = vshll.u32 %v8631_v50, 16 }
  0xff   : > { %9885 = vst [vmem:[#allocation13_spill] sm:$0xff] %v8654_v16  ;;  %v4270_v16 = vshrl.u32 %v8631_v50, 16  ;;  %v8666_v7 = vpop.f32.mrf.mxu0  ;;  %v4283_v46 = vshrl.u32 %v8641_v11, 16  ;;  %v5977_v61 = vld [vmem:[%s7242_s27 + $0x20] sm:$0x1] }
 0x100   : > { %v3098_v48 = vsel %vm7428_vm6, %v5940_v43, %v3097_v37  ;;  %v3101_v43 = vsel %vm7428_vm6, %v3099_v1, %v3100_v55  ;;  %v8670_v37 = vpop.f32.mrf.mxu1  ;;  %v3105_v44 = vsel %vm7428_vm6, %v5941_v52, %v3104_v14  ;;  %v8683_v55 = vrot.slane %v4273_v12, 5 }
 0x101   : > { %6716 = vmatmul.mubr.msk.bf16.gmra.mxu0 %vm317_vm1, %v9884_v39  ;;  %9887 = vst [vmem:[#allocation14_spill] sm:$0xff] %v8670_v37  ;;  %v5957_v18 = vcombine.low %v3098_v48, %v3101_v43  ;;  %v3106_v39 = vrot.slane %v3104_v14, 4  ;;  %v8677_v28 = vrot.slane %v4270_v16, 4  ;;  %v8679_v21 = vpop.f32.mrf.mxu0  ;;  %v8687_v37 = vrot.slane %v4283_v46, 4 }
 0x102   : > { %6719 = vmatprep.mubr.msk.bf16.mxu0 %vm317_vm1, %v6036_v17  ;;  %v4279_v17 = vshll.u32 %v8641_v11, 16  ;;  %9889 = vst [vmem:[#allocation53_spill] sm:$0xff] %v8683_v55  ;;  %v8690_v43 = vpop.f32.mrf.mxu1  ;;  %v6089_v14 = vrot.slane %v8208_v30, 9 }
 0x103   : > { %9888 = vst [vmem:[#allocation15_spill] sm:$0xff] %v8677_v28  ;;  %9891 = vst [vmem:[#allocation55_spill] sm:$0xff] %v8687_v37  ;;  %v3108_v52 = vsel %vm7428_vm6, %v3106_v39, %v3107_v10  ;;  %v8696_v16 = vpop.f32.mrf.mxu0  ;;  %v5980_v37 = vld [vmem:[%s7242_s27 + $0x2c] sm:$0x1]  ;;  %v3929_v10 = vshll.u32 %v5977_v61, 16  ;;  %v4669_v28 = vrot.slane %v8213_v19, 5 }
 0x104   : > { %6686 = vmatmul.mubr.msk.bf16.gmra.mxu1 %vm317_vm1, %v5956_v40  ;;  %v8685_v1 = vrot.slane %v4279_v17, 5  ;;  %9892 = vst [vmem:[#allocation56_spill] sm:$0xff] %v8690_v43  ;;  %9893 = vst [vmem:[#allocation57_spill] sm:$0xff] %v8696_v16  ;;  %v9894_v40 = vshrl.u32 %v8208_v30, 16  ;;  %v9895_v17 = vshll.u32 %v8208_v30, 16  ;;  %v8703_v48 = vpop.f32.mrf.mxu1  ;;  %v3919_v43 = vshll.u32 %v8213_v19, 16 }
 0x105   : > { %6689 = vmatprep.mubr.msk.bf16.mxu1 %vm317_vm1, %v5957_v18  ;;  %9896 = vst [vmem:[#allocation58_spill] sm:$0xff] %v8703_v48  ;;  %v9897_v18 = vshrl.u32 %v8213_v19, 16  ;;  %v4672_v16 = vrot.slane %v5977_v61, 5  ;;  %v3931_v48 = vrot.slane %v3929_v10, 5  ;;  %v4670_v19 = vsel %vm7428_vm6, %v6089_v14, %v4669_v28 }
 0x106   : > { %9890 = vst [vmem:[#allocation54_spill] sm:$0xff] %v8685_v1  ;;  %v3912_v12 = vrot.slane %v9894_v40, 4  ;;  %v3915_v46 = vrot.slane %v9895_v17, 5  ;;  %v5958_v1 = vcombine.low %v3105_v44, %v3108_v52  ;;  %v6561_v40 = vpop.f32.mrf.mxu0  ;;  %v9898_v17 = vcombine.low %v8565_v13, %v8574_v41  ;;  %v8714_v44 = vpop.f32.mrf.mxu1 }
 0x107   : > { %v3925_v55 = vrot.slane %v9897_v18, 4  ;;  %9899 = vst [vmem:[#allocation59_spill] sm:$0xff] %v8714_v44  ;;  %v3921_v52 = vrot.slane %v3919_v43, 5  ;;  %v4671_v61 = vrot.slane %v4669_v28, 4  ;;  %v9900_v18 = vrot.slane %v8230_v4, 5 }
 0x108   : > { %v3916_v39 = vor.u32 %v3915_v46, %v3912_v12  ;;  %v3946_v12 = vsel %vm7442_vm7, %v8278_v27, %v8259_v62  ;;  %v3953_v46 = vshll.u32 %v5980_v37, 16  ;;  %v1574_v10 = vpop.f32.mrf.mxu0  ;;  %v6527_v62 = vpop.f32.mrf.mxu1  ;;  %v4679_v13 = vrot.slane %v5980_v37, 5 }
 0x109   : > { %6720 = vmatmul.mubr.msk.bf16.gmra.mxu0 %vm317_vm1, %v9898_v17  ;;  %v9901_v17 = vrot.slane %v8223_v33, 9  ;;  %v3926_v44 = vor.u32 %v3925_v55, %v3921_v52  ;;  %v4673_v4 = vsel %vm7428_vm6, %v4671_v61, %v4672_v16  ;;  %v1246_v33 = vadd.f32 %v6527_v62, %v8419_v38 }
 0x10a   : > { %6723 = vmatprep.mubr.msk.bf16.mxu0 %vm317_vm1, %v6038_v31  ;;  %v3917_v30 = vrot.slane %v3916_v39, 4  ;;  %v3955_v27 = vrot.slane %v3953_v46, 5  ;;  %v9902_v31 = vshrl.u32 %v8254_v60, 16  ;;  %v6562_v14 = vpop.f32.mrf.mxu0  ;;  %v6106_v46 = vcombine.low %v4670_v19, %v4673_v4  ;;  %v1085_v16 = vpop.f32.mrf.mxu1 }
 0x10b   : > { %v8729_v43 = vsel %vm7428_vm6, %v9901_v17, %v9900_v18  ;;  %v9903_v18 = vshll.u32 %v8254_v60, 16  ;;  %v3927_v55 = vrot.slane %v3926_v44, 4  ;;  %v8750_v38 = vadd.f32 %v6561_v40, %v1246_v33 }
 0x10c   : > { %v3960_v39 = vrot.slane %v9902_v31, 4  ;;  %v3922_v28 = vsel %vm7442_vm7, %v3917_v30, %v3921_v52  ;;  %6690 = vmatmul.mubr.msk.bf16.gmra.mxu1 %vm317_vm1, %v5958_v1  ;;  %v3956_v37 = vsel %vm7442_vm7, %v8294_v36, %v3955_v27  ;;  %v8747_v52 = vsel %vm7428_vm6, %v8272_v0, %v4679_v13  ;;  %v5983_v30 = vld [vmem:[%s7242_s27 + $0x38] sm:$0x1]  ;;  %v1577_v44 = vpop.f32.mrf.mxu0  ;;  %v6528_v36 = vpop.f32.mrf.mxu1 }
 0x10d   : > { %v3963_v17 = vrot.slane %v9903_v18, 5  ;;  %v6058_v61 = vcombine.low %v3946_v12, %v3956_v37  ;;  %v6107_v62 = vcombine.low %v8729_v43, %v8747_v52  ;;  %v1244_v1 = vadd.f32 %v1085_v16, %v8441_v15  ;;  %v5986_v52 = vld [vmem:[%s7242_s27 + $0x44] sm:$0x1] }
 0x10e   : > { %v3932_v19 = vsel %vm7442_vm7, %v3927_v55, %v3931_v48  ;;  %v3967_v31 = vshll.u32 %v8265_v3, 16  ;;  %v9904_v0 = vshrl.u32 %v8265_v3, 16  ;;  %v1247_v12 = vadd.f32 %v6528_v36, %v8454_v26  ;;  %v6565_v33 = vpop.f32.mrf.mxu0  ;;  %v1088_v48 = vpop.f32.mrf.mxu1 }
 0x10f   : > { %v3964_v27 = vor.u32 %v3963_v17, %v3960_v39  ;;  %v6057_v4 = vcombine.low %v3922_v28, %v3932_v19  ;;  %v8760_v40 = vadd.f32 %v1574_v10, %v1244_v1  ;;  %v3977_v43 = vshll.u32 %v5983_v30, 16 }
 0x110   : > { %v3973_v13 = vrot.slane %v9904_v0, 4  ;;  %v9905_v15 = vcombine.low %v8631_v50, %v8641_v11  ;;  %v3969_v18 = vrot.slane %v3967_v31, 5  ;;  %v6091_v17 = vrot.slane %v8254_v60, 9  ;;  %v1590_v16 = vpop.f32.mrf.mxu0  ;;  %v6531_v36 = vpop.f32.mrf.mxu1 }
 0x111   : > { %v3965_v39 = vrot.slane %v3964_v27, 4  ;;  %v4683_v55 = vrot.slane %v8265_v3, 5  ;;  %6729 = vmatprep.mubr.msk.bf16.mxu1 %vm317_vm1, %v6057_v4  ;;  %v8771_v10 = vadd.f32 %v6562_v14, %v1247_v12  ;;  %v1245_v26 = vadd.f32 %v1088_v48, %v8469_v23 }
 0x112   : > { %6724 = vmatmul.mubr.msk.bf16.gmra.mxu0 %vm317_vm1, %v9905_v15  ;;  %v3979_v28 = vrot.slane %v3977_v43, 5  ;;  %v4686_v37 = vrot.slane %v5983_v30, 5  ;;  %v3974_v19 = vor.u32 %v3973_v13, %v3969_v18  ;;  %v1250_v14 = vadd.f32 %v6531_v36, %v8496_v6  ;;  %v6566_v30 = vpop.f32.mrf.mxu0 }
 0x113   : > { %6763 = vmatprep.mubr.msk.bf16.mxu0 %vm317_vm1, %v6106_v46  ;;  %v3970_v1 = vsel %vm7442_vm7, %v3965_v39, %v3969_v18  ;;  %v4684_v60 = vsel %vm7428_vm6, %v6091_v17, %v4683_v55  ;;  %v4685_v3 = vrot.slane %v4683_v55, 4  ;;  %v8779_v27 = vadd.f32 %v1577_v44, %v1245_v26 }
 0x114   : > { %v3988_v23 = vor.u32 %v8314_v59, %v8312_v9  ;;  %v3998_v46 = vor.u32 %v8332_v42, %v8324_v35  ;;  %6730 = vmatmul.mubr.msk.bf16.vlgmr.msra.gmra.mxu1 %vm317_vm1, %v6058_v61  ;;  %v3975_v31 = vrot.slane %v3974_v19, 4  ;;  %v4001_v13 = vshll.u32 %v5986_v52, 16  ;;  %v1101_v9 = vpop.f32.mrf.mxu1  ;;  %v1593_v61 = vpop.f32.mrf.mxu0 }
 0x115   : > { %v4687_v0 = vsel %vm7428_vm6, %v4685_v3, %v4686_v37  ;;  %v9906_v4 = vrot.slane %v8288_v47, 5  ;;  %v9907_v44 = vrot.slane %v8285_v63, 9  ;;  %v8797_v12 = vadd.f32 %v6565_v33, %v1250_v14 }
 0x116   : > { %v6108_v59 = vcombine.low %v4684_v60, %v4687_v0  ;;  %v3989_v42 = vrot.slane %v3988_v23, 4  ;;  %v3999_v43 = vrot.slane %v3998_v46, 4  ;;  %v3980_v15 = vsel %vm7442_vm7, %v3975_v31, %v3979_v28  ;;  %v6532_v17 = vpop.f32.mrf.mxu1  ;;  %v6569_v19 = vpop.f32.mrf.mxu0  ;;  %v5989_v60 = vld [vmem:[%s7242_s27 + $0x50] sm:$0x1] }
 0x117   : > { %v8795_v6 = vsel %vm7428_vm6, %v9907_v44, %v9906_v4  ;;  %v4003_v48 = vrot.slane %v4001_v13, 5  ;;  %v9908_v39 = vmov %v9906_v4  ;;  %v4693_v63 = vrot.slane %v5986_v52, 5 }
 0x118   : > { %v4692_v18 = vrot.slane %v9908_v39, 4  ;;  %v6059_v55 = vcombine.low %v3970_v1, %v3980_v15  ;;  %v3994_v26 = vsel %vm7442_vm7, %v3989_v42, %v8324_v35  ;;  %v1248_v33 = vadd.f32 %v1101_v9, %v8519_v54  ;;  %v1104_v52 = vpop.f32.mrf.mxu1  ;;  %v1606_v23 = vpop.f32.mrf.mxu0 }
 0x119   : > { %v1251_v37 = vadd.f32 %v6532_v17, %v8532_v22  ;;  %v4004_v28 = vsel %vm7442_vm7, %v3999_v43, %v4003_v48  ;;  %v9909_v1 = vshrl.u32 %v8309_v20, 16  ;;  %v9910_v35 = vshll.u32 %v8309_v20, 16  ;;  %v5992_v48 = vld [vmem:[%s7242_s27 + $0x5c] sm:$0x1] }
 0x11a   : > { %6764 = vmatmul.mubr.msk.bf16.vlgmr.msra.gmra.mxu0 %vm317_vm1, %v6107_v62  ;;  %v4694_v47 = vsel %vm7428_vm6, %v4692_v18, %v4693_v63  ;;  %6733 = vmatprep.mubr.msk.bf16.mxu1 %vm317_vm1, %v6059_v55  ;;  %v6060_v22 = vcombine.low %v3994_v26, %v4004_v28  ;;  %v8821_v62 = vadd.f32 %v1590_v16, %v1248_v33  ;;  %v4015_v14 = vshll.u32 %v8319_v53, 16  ;;  %v6535_v44 = vpop.f32.mrf.mxu1 }
 0x11b   : > { %v4008_v3 = vrot.slane %v9909_v1, 4  ;;  %v4011_v36 = vrot.slane %v9910_v35, 5  ;;  %6767 = vmatprep.mubr.msk.bf16.mxu0 %vm317_vm1, %v6108_v59  ;;  %v6109_v54 = vcombine.low %v8795_v6, %v4694_v47  ;;  %v8824_v46 = vadd.f32 %v6566_v30, %v1251_v37  ;;  %v6570_v6 = vpop.f32.mrf.mxu0 }
 0x11c   : > { %v1249_v31 = vadd.f32 %v1104_v52, %v8551_v32  ;;  %v9911_v13 = vshrl.u32 %v8319_v53, 16  ;;  %v4017_v9 = vrot.slane %v4015_v14, 5  ;;  %v4025_v59 = vshll.u32 %v5989_v60, 16  ;;  %6734 = vmatmul.mubr.msk.bf16.gmra.mxu1 %vm317_vm1, %v6060_v22  ;;  %v1117_v39 = vpop.f32.mrf.mxu1 }
 0x11d   : > { %v4012_v0 = vor.u32 %v4011_v36, %v4008_v3  ;;  %v6093_v42 = vrot.slane %v8309_v20, 9  ;;  %v4697_v16 = vrot.slane %v8319_v53, 5  ;;  %v4700_v15 = vrot.slane %v5989_v60, 5  ;;  %v1609_v20 = vpop.f32.mrf.mxu0 }
 0x11e   : > { %v4021_v4 = vrot.slane %v9911_v13, 4  ;;  %v8832_v43 = vadd.f32 %v1593_v61, %v1249_v31  ;;  %v1254_v32 = vadd.f32 %v6535_v44, %v8571_v2  ;;  %v4027_v63 = vrot.slane %v4025_v59, 5  ;;  %v6536_v33 = vpop.f32.mrf.mxu1  ;;  %v5995_v44 = vld [vmem:[%s7242_s27 + $0x68] sm:$0x1] }
 0x11f   : > { %v4013_v30 = vrot.slane %v4012_v0, 4  ;;  %v4698_v17 = vsel %vm7428_vm6, %v6093_v42, %v4697_v16  ;;  %v4699_v55 = vrot.slane %v4697_v16, 4  ;;  %v4036_v61 = vor.u32 %v8364_v45, %v8362_v24  ;;  %v6573_v1 = vpop.f32.mrf.mxu0  ;;  %v9915_v16 = vld [vmem:[#allocation16_spill] sm:$0xff] }
 0x120   : > { %v4022_v18 = vor.u32 %v4021_v4, %v4017_v9  ;;  %v8840_v26 = vadd.f32 %v6569_v19, %v1254_v32  ;;  %v4046_v2 = vor.u32 %v8382_v5, %v8373_v34  ;;  %v4049_v47 = vshll.u32 %v5992_v48, 16  ;;  %v1120_v36 = vpop.f32.mrf.mxu1 }
 0x121   : > { %v4018_v53 = vsel %vm7442_vm7, %v4013_v30, %v4017_v9  ;;  %v4701_v28 = vsel %vm7428_vm6, %v4699_v55, %v4700_v15  ;;  %v9912_v52 = vrot.slane %v8337_v29, 5  ;;  %v9913_v60 = vrot.slane %v8329_v51, 9  ;;  %v8860_v0 = vpop.f32.mrf.mxu0 }
 0x122   : > { %v4023_v37 = vrot.slane %v4022_v18, 4  ;;  %6768 = vmatmul.mubr.msk.bf16.gmra.mxu0 %vm317_vm1, %v6109_v54  ;;  %v6110_v45 = vcombine.low %v4698_v17, %v4701_v28  ;;  %v4037_v24 = vrot.slane %v4036_v61, 4  ;;  %v4047_v5 = vrot.slane %v4046_v2, 4  ;;  %v6539_v9 = vpop.f32.mrf.mxu1  ;;  %v5998_v28 = vld [vmem:[%s7242_s27 + $0x74] sm:$0x1] }
 0x123   : > { %v4705_v19 = vsel %vm7428_vm6, %v9913_v60, %v9912_v52  ;;  %v9914_v3 = vmov %v9912_v52  ;;  %v4051_v14 = vrot.slane %v4049_v47, 5  ;;  %v4707_v31 = vrot.slane %v5992_v48, 5  ;;  %v8877_v32 = vpop.f32.mrf.mxu0 }
 0x124   : > { %v4706_v35 = vrot.slane %v9914_v3, 4  ;;  %v4028_v22 = vsel %vm7442_vm7, %v4023_v37, %v4027_v63  ;;  %v1252_v51 = vadd.f32 %v1117_v39, %v8592_v57  ;;  %6771 = vmatprep.mubr.msk.bf16.mxu0 %vm317_vm1, %v6110_v45  ;;  %v4042_v54 = vsel %vm7442_vm7, %v4037_v24, %v8373_v34  ;;  %v1133_v39 = vpop.f32.mrf.mxu1  ;;  %v9920_v45 = vld [vmem:[#allocation20_spill] sm:$0xff]  ;;  %v9921_v24 = vld [vmem:[#allocation23_spill] sm:$0xff] }
 0x125   : > { %v6061_v13 = vcombine.low %v4018_v53, %v4028_v22  ;;  %v1255_v29 = vadd.f32 %v6536_v33, %v8606_v58  ;;  %v1253_v4 = vadd.f32 %v1120_v36, %v8628_v49  ;;  %v4052_v59 = vsel %vm7442_vm7, %v4047_v5, %v4051_v14  ;;  %v1625_v2 = vpop.f32.mrf.mxu0  ;;  %v9922_v14 = vld [vmem:[#allocation24_spill] sm:$0xff] }
 0x126   : > { %v4708_v57 = vsel %vm7428_vm6, %v4706_v35, %v4707_v31  ;;  %v8873_v42 = vadd.f32 %v1606_v23, %v1252_v51  ;;  %v9916_v30 = vshrl.u32 %v9915_v16, 16  ;;  %v6062_v34 = vcombine.low %v4042_v54, %v4052_v59  ;;  %v9918_v23 = vld [vmem:[#allocation17_spill] sm:$0xff]  ;;  %v6540_v47 = vpop.f32.mrf.mxu1 }
 0x127   : > { %6737 = vmatprep.mubr.msk.bf16.mxu1 %vm317_vm1, %v6061_v13  ;;  %v6111_v58 = vcombine.low %v4705_v19, %v4708_v57  ;;  %v8880_v49 = vadd.f32 %v6570_v6, %v1255_v29  ;;  %v8882_v48 = vadd.f32 %v1609_v20, %v1253_v4  ;;  %v9917_v18 = vshll.u32 %v9915_v16, 16  ;;  %v8896_v3 = vpop.f32.mrf.mxu0  ;;  %v9924_v57 = vld [vmem:[#allocation19_spill] sm:$0xff] }
 0x128   : > { %v4056_v15 = vrot.slane %v9916_v30, 4  ;;  %v4063_v17 = vshll.u32 %v9918_v23, 16  ;;  %v9919_v55 = vshrl.u32 %v9918_v23, 16  ;;  %v4073_v61 = vshll.u32 %v5995_v44, 16  ;;  %6738 = vmatmul.mubr.msk.bf16.gmra.mxu1 %vm317_vm1, %v6062_v34  ;;  %v1136_v51 = vpop.f32.mrf.mxu1  ;;  %v9926_v30 = vld [vmem:[#allocation18_spill] sm:$0xff] }
 0x129   : > { %v4059_v63 = vrot.slane %v9917_v18, 5  ;;  %v6095_v33 = vrot.slane %v9915_v16, 9  ;;  %v4711_v6 = vrot.slane %v9918_v23, 5  ;;  %v4714_v37 = vrot.slane %v5995_v44, 5  ;;  %v8905_v44 = vpop.f32.mrf.mxu0 }
 0x12a   : > { %v4069_v53 = vrot.slane %v9919_v55, 4  ;;  %v1258_v20 = vadd.f32 %v6539_v9, %v8648_v56  ;;  %v4065_v60 = vrot.slane %v4063_v17, 5  ;;  %v4075_v19 = vrot.slane %v4073_v61, 5  ;;  %6772 = vmatmul.mubr.msk.bf16.gmra.mxu0 %vm317_vm1, %v6111_v58  ;;  %v9923_v56 = vld [vmem:[#allocation25_spill] sm:$0xff]  ;;  %v6543_v18 = vpop.f32.mrf.mxu1 }
 0x12b   : > { %v4060_v52 = vor.u32 %v4059_v63, %v4056_v15  ;;  %v4084_v5 = vor.u32 %v9921_v24, %v9920_v45  ;;  %v4712_v35 = vsel %vm7428_vm6, %v6095_v33, %v4711_v6  ;;  %v4713_v36 = vrot.slane %v4711_v6, 4  ;;  %v6001_v24 = vld [vmem:[%s7242_s27 + $0x80] sm:$0x1] }
 0x12c   : > { %v8901_v22 = vadd.f32 %v6573_v1, %v1258_v20  ;;  %v4094_v31 = vor.u32 %v9923_v56, %v9922_v14  ;;  %v4070_v54 = vor.u32 %v4069_v53, %v4065_v60  ;;  %v4097_v4 = vshll.u32 %v5998_v28, 16  ;;  %v8922_v53 = vpop.f32.mrf.mxu0  ;;  %v1149_v20 = vpop.f32.mrf.mxu1 }
 0x12d   : > { %v4061_v13 = vrot.slane %v4060_v52, 4  ;;  %v4085_v29 = vrot.slane %v4084_v5, 4  ;;  %v4715_v9 = vsel %vm7428_vm6, %v4713_v36, %v4714_v37  ;;  %v9925_v16 = vrot.slane %v9924_v57, 5  ;;  %v9930_v5 = vld [vmem:[#allocation21_spill] sm:$0xff] }
 0x12e   : > { %v4095_v59 = vrot.slane %v4094_v31, 4  ;;  %v9927_v15 = vrot.slane %v9926_v30, 9  ;;  %v4071_v23 = vrot.slane %v4070_v54, 4  ;;  %v6112_v17 = vcombine.low %v4712_v35, %v4715_v9 }
 0x12f   : > { %v9928_v34 = vmov %v9925_v16  ;;  %v4066_v63 = vsel %vm7442_vm7, %v4061_v13, %v4065_v60  ;;  %v4090_v55 = vsel %vm7442_vm7, %v4085_v29, %v9922_v14  ;;  %v4099_v61 = vrot.slane %v4097_v4, 5  ;;  %v9929_v60 = vld [vmem:[#allocation57_spill] sm:$0xff]  ;;  %v9933_v4 = vld [vmem:[#allocation22_spill] sm:$0xff] }
 0x130   : > { %v4719_v1 = vsel %vm7428_vm6, %v9927_v15, %v9925_v16  ;;  %v4720_v58 = vrot.slane %v9928_v34, 4  ;;  %v4721_v33 = vrot.slane %v5998_v28, 5  ;;  %v1256_v6 = vadd.f32 %v1133_v39, %v8666_v7  ;;  %6775 = vmatprep.mubr.msk.bf16.mxu0 %vm317_vm1, %v6112_v17  ;;  %v8935_v28 = vpop.f32.mrf.mxu0 }
 0x131   : > { %v1259_v37 = vadd.f32 %v6540_v47, %v8679_v21  ;;  %v4076_v52 = vsel %vm7442_vm7, %v4071_v23, %v4075_v19  ;;  %v1257_v45 = vadd.f32 %v1136_v51, %v9929_v60  ;;  %v9931_v35 = vshrl.u32 %v9930_v5, 16  ;;  %v6544_v19 = vpop.f32.mrf.mxu1 }
 0x132   : > { %v9932_v14 = vshll.u32 %v9930_v5, 16  ;;  %v6063_v7 = vcombine.low %v4066_v63, %v4076_v52  ;;  %v4100_v21 = vsel %vm7442_vm7, %v4095_v59, %v4099_v61  ;;  %v4722_v39 = vsel %vm7428_vm6, %v4720_v58, %v4721_v33  ;;  %v8953_v30 = vpop.f32.mrf.mxu0  ;;  %v6004_v58 = vld [vmem:[%s7242_s27 + $0x8c] sm:$0x1]  ;;  %v9937_v61 = vld [vmem:[#allocation33_spill] sm:$0xff] }
 0x133   : > { %v4104_v36 = vrot.slane %v9931_v35, 4  ;;  %v8942_v47 = vadd.f32 %v8860_v0, %v1256_v6  ;;  %v6064_v31 = vcombine.low %v4090_v55, %v4100_v21  ;;  %v6113_v51 = vcombine.low %v4719_v1, %v4722_v39  ;;  %v1152_v0 = vpop.f32.mrf.mxu1  ;;  %v9935_v1 = vld [vmem:[#allocation28_spill] sm:$0xff] }
 0x134   : > { %v4107_v56 = vrot.slane %v9932_v14, 5  ;;  %v8945_v13 = vadd.f32 %v8877_v32, %v1259_v37  ;;  %v8947_v54 = vadd.f32 %v1625_v2, %v1257_v45  ;;  %6741 = vmatprep.mubr.msk.bf16.mxu1 %vm317_vm1, %v6063_v7  ;;  %v4111_v9 = vshll.u32 %v9933_v4, 16  ;;  %v9936_v55 = vld [vmem:[#allocation32_spill] sm:$0xff]  ;;  %v8963_v37 = vpop.f32.mrf.mxu0 }
 0x135   : > { %v9934_v59 = vshrl.u32 %v9933_v4, 16  ;;  %v4121_v16 = vshll.u32 %v6001_v24, 16  ;;  %6742 = vmatmul.mubr.msk.bf16.gmra.mxu1 %vm317_vm1, %v6064_v31  ;;  %6776 = vmatmul.mubr.msk.bf16.gmra.mxu0 %vm317_vm1, %v6113_v51  ;;  %v6097_v32 = vrot.slane %v9930_v5, 9  ;;  %v4725_v2 = vrot.slane %v9933_v4, 5  ;;  %v6547_v6 = vpop.f32.mrf.mxu1  ;;  %v9939_v5 = vld [vmem:[#allocation36_spill] sm:$0xff]  ;;  %v9940_v51 = vld [vmem:[#allocation27_spill] sm:$0xff] }
 0x136   : > { %v4108_v29 = vor.u32 %v4107_v56, %v4104_v36  ;;  %v4728_v15 = vrot.slane %v6001_v24, 5  ;;  %v1262_v34 = vadd.f32 %v6543_v18, %v9935_v1  ;;  %v4113_v23 = vrot.slane %v4111_v9, 5  ;;  %v9938_v24 = vld [vmem:[#allocation34_spill] sm:$0xff]  ;;  %v8976_v21 = vpop.f32.mrf.mxu0 }
 0x137   : > { %v4117_v57 = vrot.slane %v9934_v59, 4  ;;  %v4123_v17 = vrot.slane %v4121_v16, 5  ;;  %v4132_v33 = vor.u32 %v9937_v61, %v9936_v55  ;;  %v4726_v52 = vsel %vm7428_vm6, %v6097_v32, %v4725_v2  ;;  %v8974_v7 = vpop.f32.mrf.mxu1  ;;  %v9946_v55 = vld [vmem:[#allocation35_spill] sm:$0xff] }
 0x138   : > { %v4109_v63 = vrot.slane %v4108_v29, 4  ;;  %v4727_v60 = vrot.slane %v4725_v2, 4  ;;  %v8968_v45 = vadd.f32 %v8896_v3, %v1262_v34  ;;  %v4142_v18 = vor.u32 %v9939_v5, %v9938_v24  ;;  %v9942_v29 = vld [vmem:[#allocation26_spill] sm:$0xff]  ;;  %v8994_v5 = vpop.f32.mrf.mxu0 }
 0x139   : > { %v4118_v36 = vor.u32 %v4117_v57, %v4113_v23  ;;  %v4133_v14 = vrot.slane %v4132_v33, 4  ;;  %v4145_v56 = vshll.u32 %v6004_v58, 16  ;;  %v9941_v3 = vrot.slane %v9940_v51, 5  ;;  %v9947_v33 = vld [vmem:[#allocation37_spill] sm:$0xff] }
 0x13a   : > { %v4114_v35 = vsel %vm7442_vm7, %v4109_v63, %v4113_v23  ;;  %v4729_v39 = vsel %vm7428_vm6, %v4727_v60, %v4728_v15  ;;  %v4143_v31 = vrot.slane %v4142_v18, 4  ;;  %v9943_v4 = vrot.slane %v9942_v29, 9  ;;  %v6548_v15 = vpop.f32.mrf.mxu1  ;;  %v9945_v63 = vld [vmem:[#allocation29_spill] sm:$0xff] }
 0x13b   : > { %v9944_v59 = vmov %v9941_v3  ;;  %v4119_v16 = vrot.slane %v4118_v36, 4  ;;  %v6114_v32 = vcombine.low %v4726_v52, %v4729_v39  ;;  %v4138_v2 = vsel %vm7442_vm7, %v4133_v14, %v9938_v24  ;;  %v6007_v24 = vld [vmem:[%s7242_s27 + $0x98] sm:$0x1]  ;;  %v9948_v36 = vld [vmem:[#allocation30_spill] sm:$0xff] }
 0x13c   : > { %v4733_v9 = vsel %vm7428_vm6, %v9943_v4, %v9941_v3  ;;  %v4734_v57 = vrot.slane %v9944_v59, 4  ;;  %v4147_v1 = vrot.slane %v4145_v56, 5  ;;  %v4735_v34 = vrot.slane %v6004_v58, 5  ;;  %v1168_v56 = vpop.f32.mrf.mxu1  ;;  %v9951_v59 = vld [vmem:[#allocation31_spill] sm:$0xff] }
 0x13d   : > { %v1260_v23 = vadd.f32 %v1149_v20, %v9945_v63  ;;  %v1263_v61 = vadd.f32 %v6544_v19, %v9946_v55  ;;  %v1261_v60 = vadd.f32 %v1152_v0, %v9947_v33  ;;  %v4124_v18 = vsel %vm7442_vm7, %v4119_v16, %v4123_v17  ;;  %6779 = vmatprep.mubr.msk.bf16.mxu0 %vm317_vm1, %v6114_v32  ;;  %v9954_v33 = vld [vmem:[#allocation41_spill] sm:$0xff] }
 0x13e   : > { %v4148_v52 = vsel %vm7442_vm7, %v4143_v31, %v4147_v1  ;;  %v9949_v14 = vshrl.u32 %v9948_v36, 16  ;;  %v9950_v20 = vshll.u32 %v9948_v36, 16  ;;  %v6065_v0 = vcombine.low %v4114_v35, %v4124_v18  ;;  %v9023_v1 = vpop.f32.mrf.mxu0 }
 0x13f   : > { %v6066_v39 = vcombine.low %v4138_v2, %v4148_v52  ;;  %v4736_v51 = vsel %vm7428_vm6, %v4734_v57, %v4735_v34  ;;  %v9009_v17 = vadd.f32 %v8905_v44, %v1260_v23  ;;  %v9012_v31 = vadd.f32 %v8922_v53, %v1263_v61  ;;  %v6010_v44 = vld [vmem:[%s7242_s27 + $0xa4] sm:$0x1]  ;;  %v9953_v34 = vld [vmem:[#allocation40_spill] sm:$0xff]  ;;  %v6551_v23 = vpop.f32.mrf.mxu1  ;;  %v9956_v52 = vld [vmem:[#allocation43_spill] sm:$0xff] }
 0x140   : > { %v4152_v58 = vrot.slane %v9949_v14, 4  ;;  %v4155_v19 = vrot.slane %v9950_v20, 5  ;;  %v6115_v3 = vcombine.low %v4733_v9, %v4736_v51  ;;  %v9015_v29 = vadd.f32 %v8935_v28, %v1261_v60  ;;  %6745 = vmatprep.mubr.msk.bf16.mxu1 %vm317_vm1, %v6065_v0  ;;  %v9955_v60 = vld [vmem:[#allocation42_spill] sm:$0xff] }
 0x141   : > { %v4159_v16 = vshll.u32 %v9951_v59, 16  ;;  %v9952_v35 = vshrl.u32 %v9951_v59, 16  ;;  %v4169_v2 = vshll.u32 %v6007_v24, 16  ;;  %v6099_v57 = vrot.slane %v9948_v36, 9  ;;  %6746 = vmatmul.mubr.msk.bf16.gmra.mxu1 %vm317_vm1, %v6066_v39  ;;  %v9957_v36 = vld [vmem:[#allocation45_spill] sm:$0xff] }
 0x142   : > { %v4156_v4 = vor.u32 %v4155_v19, %v4152_v58  ;;  %6780 = vmatmul.mubr.msk.bf16.gmra.mxu0 %vm317_vm1, %v6115_v3  ;;  %v4739_v28 = vrot.slane %v9951_v59, 5  ;;  %v4742_v9 = vrot.slane %v6007_v24, 5  ;;  %v1266_v63 = vadd.f32 %v6547_v6, %v9953_v34  ;;  %v9033_v58 = vpop.f32.mrf.mxu0  ;;  %v9040_v6 = vpop.f32.mrf.mxu1 }
 0x143   : > { %v4165_v32 = vrot.slane %v9952_v35, 4  ;;  %v4161_v55 = vrot.slane %v4159_v16, 5  ;;  %v4171_v61 = vrot.slane %v4169_v2, 5  ;;  %v4180_v18 = vor.u32 %v9955_v60, %v9954_v33  ;;  %v9958_v2 = vld [vmem:[#allocation39_spill] sm:$0xff] }
 0x144   : > { %v4157_v53 = vrot.slane %v4156_v4, 4  ;;  %v4190_v14 = vor.u32 %v9957_v36, %v9956_v52  ;;  %v4740_v20 = vsel %vm7428_vm6, %v6099_v57, %v4739_v28  ;;  %v4741_v19 = vrot.slane %v4739_v28, 4  ;;  %v9044_v59 = vpop.f32.mrf.mxu0  ;;  %v9960_v28 = vld [vmem:[#allocation38_spill] sm:$0xff] }
 0x145   : > { %v9038_v0 = vadd.f32 %v8953_v30, %v1266_v63  ;;  %v4193_v24 = vshll.u32 %v6010_v44, 16  ;;  %v4166_v51 = vor.u32 %v4165_v32, %v4161_v55  ;;  %v4181_v3 = vrot.slane %v4180_v18, 4  ;;  %v9056_v32 = vpop.f32.mrf.mxu1 }
 0x146   : > { %v4162_v39 = vsel %vm7442_vm7, %v4157_v53, %v4161_v55  ;;  %v4191_v4 = vrot.slane %v4190_v14, 4  ;;  %v4743_v16 = vsel %vm7428_vm6, %v4741_v19, %v4742_v9  ;;  %v9959_v57 = vrot.slane %v9958_v2, 5  ;;  %v9061_v18 = vpop.f32.mrf.mxu0  ;;  %v9963_v14 = vld [vmem:[#allocation8_spill] sm:$0xff] }
 0x147   : > { %v4195_v35 = vrot.slane %v4193_v24, 5  ;;  %v9961_v30 = vrot.slane %v9960_v28, 9  ;;  %v4167_v53 = vrot.slane %v4166_v51, 4  ;;  %v6116_v55 = vcombine.low %v4740_v20, %v4743_v16  ;;  %v9964_v24 = vld [vmem:[#allocation46_spill] sm:$0xff]  ;;  %v6013_v51 = vld [vmem:[%s7242_s27 + $0xb0] sm:$0x1] }
 0x148   : > { %v9962_v63 = vmov %v9959_v57  ;;  %v4186_v9 = vsel %vm7442_vm7, %v4181_v3, %v9956_v52  ;;  %v4749_v60 = vrot.slane %v6010_v44, 5  ;;  %v1264_v19 = vadd.f32 %v8974_v7, %v9963_v14  ;;  %v9966_v3 = vld [vmem:[#allocation9_spill] sm:$0xff] }
 0x149   : > { %v4747_v34 = vsel %vm7428_vm6, %v9961_v30, %v9959_v57  ;;  %v4748_v33 = vrot.slane %v9962_v63, 4  ;;  %v4196_v36 = vsel %vm7442_vm7, %v4191_v4, %v4195_v35  ;;  %v1267_v2 = vadd.f32 %v6548_v15, %v9964_v24  ;;  %v9965_v57 = vld [vmem:[#allocation6_spill] sm:$0xff]  ;;  %v1184_v30 = vpop.f32.mrf.mxu1  ;;  %6783 = vmatprep.mubr.msk.bf16.mxu0 %vm317_vm1, %v6116_v55  ;;  %v9972_v24 = vld [vmem:[#allocation7_spill] sm:$0xff] }
 0x14a   : > { %v1265_v28 = vadd.f32 %v1168_v56, %v9965_v57  ;;  %v4172_v20 = vsel %vm7442_vm7, %v4167_v53, %v4171_v61  ;;  %v6068_v52 = vcombine.low %v4186_v9, %v4196_v36  ;;  %v9967_v4 = vshrl.u32 %v9966_v3, 16  ;;  %v6016_v57 = vld [vmem:[%s7242_s27 + $0xbc] sm:$0x1] }
 0x14b   : > { %v4750_v44 = vsel %vm7428_vm6, %v4748_v33, %v4749_v60  ;;  %v6067_v35 = vcombine.low %v4162_v39, %v4172_v20  ;;  %v9078_v15 = vadd.f32 %v8963_v37, %v1264_v19  ;;  %v9081_v56 = vadd.f32 %v8976_v21, %v1267_v2  ;;  %v9970_v33 = vld [vmem:[#allocation44_spill] sm:$0xff]  ;;  %v9091_v39 = vpop.f32.mrf.mxu0  ;;  %v6555_v36 = vpop.f32.mrf.mxu1 }
 0x14c   : > { %v4200_v16 = vrot.slane %v9967_v4, 4  ;;  %v6117_v7 = vcombine.low %v4747_v34, %v4750_v44  ;;  %v9084_v61 = vadd.f32 %v8994_v5, %v1265_v28  ;;  %v9969_v63 = vshll.u32 %v9966_v3, 16  ;;  %v9973_v28 = vld [vmem:[#allocation11_spill] sm:$0xff]  ;;  %v9974_v20 = vld [vmem:[#allocation12_spill] sm:$0xff] }
 0x14d   : > { %v4207_v55 = vshll.u32 %v9970_v33, 16  ;;  %v9971_v9 = vshrl.u32 %v9970_v33, 16  ;;  %6749 = vmatprep.mubr.msk.bf16.mxu1 %vm317_vm1, %v6067_v35  ;;  %v4217_v37 = vshll.u32 %v6013_v51, 16  ;;  %v6101_v21 = vrot.slane %v9966_v3, 9  ;;  %v9102_v4 = vpop.f32.mrf.mxu0 }
 0x14e   : > { %9968 = vst [vmem:[#allocation16_spill] sm:$0xff] %v9084_v61  ;;  %v4203_v53 = vrot.slane %v9969_v63, 5  ;;  %6784 = vmatmul.mubr.msk.bf16.gmra.mxu0 %vm317_vm1, %v6117_v7  ;;  %v4753_v5 = vrot.slane %v9970_v33, 5  ;;  %v4756_v34 = vrot.slane %v6013_v51, 5  ;;  %6750 = vmatmul.mubr.msk.bf16.gmra.mxu1 %vm317_vm1, %v6068_v52  ;;  %v1270_v2 = vadd.f32 %v6551_v23, %v9972_v24  ;;  %v9975_v63 = vld [vmem:[#allocation50_spill] sm:$0xff]  ;;  %v9976_v51 = vld [vmem:[#allocation51_spill] sm:$0xff] }
 0x14f   : > { %v4213_v60 = vrot.slane %v9971_v9, 4  ;;  %v4209_v19 = vrot.slane %v4207_v55, 5  ;;  %v4228_v44 = vor.u32 %v9974_v20, %v9973_v28  ;;  %v4219_v35 = vrot.slane %v4217_v37, 5  ;;  %v9108_v9 = vpop.f32.mrf.mxu1  ;;  %v9113_v55 = vpop.f32.mrf.mxu0 }
 0x150   : > { %v4204_v14 = vor.u32 %v4203_v53, %v4200_v16  ;;  %v4754_v3 = vsel %vm7428_vm6, %v6101_v21, %v4753_v5  ;;  %v4755_v7 = vrot.slane %v4753_v5, 4  ;;  %v4238_v33 = vor.u32 %v9976_v51, %v9975_v63  ;;  %v9979_v5 = vld [vmem:[#allocation47_spill] sm:$0xff] }
 0x151   : > { %v4214_v16 = vor.u32 %v4213_v60, %v4209_v19  ;;  %v9111_v23 = vadd.f32 %v9023_v1, %v1270_v2  ;;  %v4229_v53 = vrot.slane %v4228_v44, 4  ;;  %v4241_v28 = vshll.u32 %v6016_v57, 16  ;;  %v9123_v60 = vpop.f32.mrf.mxu1 }
 0x152   : > { %v4205_v52 = vrot.slane %v4204_v14, 4  ;;  %v4757_v37 = vsel %vm7428_vm6, %v4755_v7, %v4756_v34  ;;  %v4239_v24 = vrot.slane %v4238_v33, 4  ;;  %v9978_v21 = vrot.slane %v8574_v41, 5 }
 0x153   : > { %9977 = vst [vmem:[#allocation17_spill] sm:$0xff] %v9111_v23  ;;  %v9980_v20 = vrot.slane %v9979_v5, 9  ;;  %v4215_v2 = vrot.slane %v4214_v16, 4  ;;  %v6118_v44 = vcombine.low %v4754_v3, %v4757_v37  ;;  %v4234_v34 = vsel %vm7442_vm7, %v4229_v53, %v9975_v63  ;;  %v9982_v23 = vld [vmem:[#allocation48_spill] sm:$0xff]  ;;  %v6019_v16 = vld [vmem:[%s7242_s27 + $0xc8] sm:$0x1] }
 0x154   : > { %v4210_v1 = vsel %vm7442_vm7, %v4205_v52, %v4209_v19  ;;  %v4243_v7 = vrot.slane %v4241_v28, 5  ;;  %v9981_v51 = vmov %v9978_v21  ;;  %v4763_v5 = vrot.slane %v6016_v57, 5  ;;  %v9983_v19 = vld [vmem:[#allocation52_spill] sm:$0xff]  ;;  %v9984_v52 = vld [vmem:[#allocation13_spill] sm:$0xff]  ;;  %v9985_v53 = vld [vmem:[#allocation10_spill] sm:$0xff]  ;;  %v9145_v57 = vpop.f32.mrf.mxu0 }
 0x155   : > { %v4761_v14 = vsel %vm7428_vm6, %v9980_v20, %v9978_v21  ;;  %v4762_v33 = vrot.slane %v9981_v51, 4  ;;  %v1268_v61 = vadd.f32 %v9040_v6, %v9982_v23  ;;  %v9134_v21 = vpop.f32.mrf.mxu1  ;;  %v4220_v20 = vsel %vm7442_vm7, %v4215_v2, %v4219_v35  ;;  %6787 = vmatprep.mubr.msk.bf16.mxu0 %vm317_vm1, %v6118_v44 }
 0x156   : > { %v1271_v3 = vadd.f32 %v9056_v32, %v9983_v19  ;;  %v1269_v63 = vadd.f32 %v1184_v30, %v9984_v52  ;;  %v9986_v41 = vshrl.u32 %v9985_v53, 16  ;;  %v6069_v28 = vcombine.low %v4210_v1, %v4220_v20  ;;  %v9993_v20 = vld [vmem:[#allocation14_spill] sm:$0xff]  ;;  %v6629_v52 = vpop.f32.mrf.mxu0 }
 0x157   : > { %v4244_v6 = vsel %vm7442_vm7, %v4239_v24, %v4243_v7  ;;  %v4764_v35 = vsel %vm7428_vm6, %v4762_v33, %v4763_v5  ;;  %v9152_v23 = vadd.f32 %v9033_v58, %v1268_v61  ;;  %v6595_v2 = vpop.f32.mrf.mxu1  ;;  %v9990_v24 = vshll.u32 %v9985_v53, 16  ;;  %v9991_v7 = vld [vmem:[#allocation49_spill] sm:$0xff] }
 0x158   : > { %v4248_v37 = vrot.slane %v9986_v41, 4  ;;  %v6070_v32 = vcombine.low %v4234_v34, %v4244_v6  ;;  %v6119_v30 = vcombine.low %v4761_v14, %v4764_v35  ;;  %v9155_v44 = vadd.f32 %v9044_v59, %v1271_v3  ;;  %6753 = vmatprep.mubr.msk.bf16.mxu1 %vm317_vm1, %v6069_v28  ;;  %v6022_v3 = vld [vmem:[%s7242_s27 + $0xd4] sm:$0x1]  ;;  %v9994_v6 = vld [vmem:[#allocation15_spill] sm:$0xff]  ;;  %v9995_v35 = vld [vmem:[#allocation53_spill] sm:$0xff]  ;;  %s7045_s27 = sshll.u32 %s7119_s26, 4  ;;  %s7046_s27 = int_to_ptr.vmem [resolvable:$false] %s7045_s27 }
 0x159   : > { %9987 = vst [vmem:[#allocation20_spill] sm:$0xff] %v9152_v23  ;;  %v9158_v51 = vadd.f32 %v9061_v18, %v1269_v63  ;;  %v4251_v1 = vrot.slane %v9990_v24, 5  ;;  %v4255_v33 = vshll.u32 %v9991_v7, 16  ;;  %v9992_v58 = vshrl.u32 %v9991_v7, 16  ;;  %v2016_v34 = vpop.f32.mrf.mxu1  ;;  %s7047_s28 = scalar_lea.vmem %s7046_s27, 4096  ;;  %p7048_p1 = scmp.lt.s32.totalorder %s9660_s11, %s7046_s27 }
 0x15a   : > { %9988 = vst [vmem:[#allocation23_spill] sm:$0xff] %v9155_v44  ;;  %v4265_v5 = vshll.u32 %v6019_v16, 16  ;;  %6754 = vmatmul.mubr.msk.bf16.gmra.mxu1 %vm317_vm1, %v6070_v32  ;;  %6788 = vmatmul.mubr.msk.bf16.gmra.mxu0 %vm317_vm1, %v6119_v30  ;;  %v6103_v59 = vrot.slane %v9985_v53, 9  ;;  %v4767_v18 = vrot.slane %v9991_v7, 5  ;;  %v4770_v14 = vrot.slane %v6019_v16, 5  ;;  %v9997_v7 = vld [vmem:[#allocation54_spill] sm:$0xff]  ;;  %p7049_p2 = scmp.lt.s32.totalorder %s7047_s28, %s7041_s23 }
 0x15b   : > { %9989 = vst [vmem:[#allocation24_spill] sm:$0xff] %v9158_v51  ;;  %v4261_v61 = vrot.slane %v9992_v58, 4  ;;  %v1274_v19 = vadd.f32 %v6555_v36, %v9993_v20  ;;  %v4252_v63 = vor.u32 %v4251_v1, %v4248_v37  ;;  %v4257_v41 = vrot.slane %v4255_v33, 5  ;;  %v6596_v58 = vpop.f32.mrf.mxu1  ;;  %v9998_v16 = vld [vmem:[#allocation55_spill] sm:$0xff]  ;;  %v2758_v36 = vpop.f32.mrf.mxu0 }
 0x15c   : > { %v4267_v28 = vrot.slane %v4265_v5, 5  ;;  %v4276_v24 = vor.u32 %v9995_v35, %v9994_v6  ;;  %v4768_v32 = vsel %vm7428_vm6, %v6103_v59, %v4767_v18  ;;  %v4769_v30 = vrot.slane %v4767_v18, 4  ;;  %p7050_p3 = por %p7049_p2, %p7048_p1 }
 0x15d   : > { %v9177_v53 = vadd.f32 %v9091_v39, %v1274_v19  ;;  %v4286_v51 = vor.u32 %v9998_v16, %v9997_v7  ;;  %v4253_v20 = vrot.slane %v4252_v63, 4  ;;  %v4262_v44 = vor.u32 %v4261_v61, %v4257_v41  ;;  %v2019_v33 = vpop.f32.mrf.mxu1  ;;  %v6630_v16 = vpop.f32.mrf.mxu0 }
 0x15e   : > { %v4277_v37 = vrot.slane %v4276_v24, 4  ;;  %v4289_v1 = vshll.u32 %v6022_v3, 16  ;;  %v4771_v5 = vsel %vm7428_vm6, %v4769_v30, %v4770_v14  ;;  %v9999_v35 = vrot.slane %v8641_v11, 5  ;;  %p7051_p5 = pnand %p7050_p3, %p7044_p0 }
 0x15f   : > { %9996 = vst [vmem:[#allocation25_spill] sm:$0xff] %v9177_v53  ;;  %v4287_v6 = vrot.slane %v4286_v51, 4  ;;  %v10000_v59 = vrot.slane %v8631_v50, 9  ;;  %v4258_v61 = vsel %vm7442_vm7, %v4253_v20, %v4257_v41  ;;  %v4263_v63 = vrot.slane %v4262_v44, 4  ;;  %v6599_v14 = vpop.f32.mrf.mxu1  ;;  %v10002_v50 = vld [vmem:[#allocation56_spill] sm:$0xff]  ;;  %v10004_v44 = vld [vmem:[#allocation59_spill] sm:$0xff] }
 0x160   : > { %v10001_v18 = vmov %v9999_v35  ;;  %v6120_v24 = vcombine.low %v4768_v32, %v4771_v5  ;;  %v4282_v51 = vsel %vm7442_vm7, %v4277_v37, %v9997_v7  ;;  %v4291_v30 = vrot.slane %v4289_v1, 5 }
 0x161   : > { %v4775_v39 = vsel %vm7428_vm6, %v10000_v59, %v9999_v35  ;;  %v4776_v19 = vrot.slane %v10001_v18, 4  ;;  %v4777_v53 = vrot.slane %v6022_v3, 5  ;;  %v1272_v23 = vadd.f32 %v9108_v9, %v10002_v50  ;;  %v10003_v35 = vld [vmem:[#allocation58_spill] sm:$0xff]  ;;  %v2761_v59 = vpop.f32.mrf.mxu0  ;;  %v2032_v3 = vpop.f32.mrf.mxu1 }
 0x162   : > { %v1275_v11 = vadd.f32 %v9123_v60, %v10003_v35  ;;  %v4268_v18 = vsel %vm7442_vm7, %v4263_v63, %v4267_v28  ;;  %6791 = vmatprep.mubr.msk.bf16.mxu0 %vm317_vm1, %v6120_v24  ;;  %v1273_v41 = vadd.f32 %v9134_v21, %v10004_v44  ;;  %v2177_v32 = vadd.f32 %v6595_v2, %v8750_v38 }
 0x163   : > { %v2175_v7 = vadd.f32 %v2016_v34, %v8760_v40  ;;  %v6071_v20 = vcombine.low %v4258_v61, %v4268_v18  ;;  %v4292_v9 = vsel %vm7442_vm7, %v4287_v6, %v4291_v30  ;;  %v4778_v60 = vsel %vm7428_vm6, %v4776_v19, %v4777_v53  ;;  %v6600_v40 = vpop.f32.mrf.mxu1 }
 0x164   : > { %v9212_v37 = vadd.f32 %v9102_v4, %v1272_v23  ;;  %v6072_v28 = vcombine.low %v4282_v51, %v4292_v9  ;;  %v6121_v1 = vcombine.low %v4775_v39, %v4778_v60  ;;  %v9215_v5 = vadd.f32 %v9113_v55, %v1275_v11  ;;  %v6633_v23 = vpop.f32.mrf.mxu0 }
 0x165   : > { %v9218_v38 = vadd.f32 %v9145_v57, %v1273_v41  ;;  %6757 = vmatprep.mubr.msk.bf16.mxu1 %vm317_vm1, %v6071_v20  ;;  %v9221_v21 = vadd.f32 %v6629_v52, %v2177_v32  ;;  %v9223_v25 = vadd.f32 %v2758_v36, %v2175_v7  ;;  %v2178_v8 = vadd.f32 %v6596_v58, %v8771_v10  ;;  %v2035_v34 = vpop.f32.mrf.mxu1 }
 0x166   : > { %v2176_v4 = vadd.f32 %v2019_v33, %v8779_v27  ;;  %6758 = vmatmul.mubr.msk.bf16.gmra.mxu1 %vm317_vm1, %v6072_v28  ;;  %6792 = vmatmul.mubr.msk.bf16.gmra.mxu0 %vm317_vm1, %v6121_v1  ;;  %v2181_v55 = vadd.f32 %v6599_v14, %v8797_v12  ;;  %v2179_v57 = vadd.f32 %v2032_v3, %v8821_v62  ;;  %v2774_v36 = vpop.f32.mrf.mxu0 }
 0x167   : > { %v2182_v2 = vadd.f32 %v6600_v40, %v8824_v46  ;;  %v9232_v52 = vadd.f32 %v6630_v16, %v2178_v8  ;;  %v2180_v10 = vadd.f32 %v2035_v34, %v8832_v43  ;;  %v6603_v33 = vpop.f32.mrf.mxu1 }
 0x168   : > { %v9234_v53 = vadd.f32 %v2761_v59, %v2176_v4  ;;  %v9237_v27 = vadd.f32 %v6633_v23, %v2181_v55  ;;  %v9239_v58 = vadd.f32 %v2774_v36, %v2179_v57  ;;  %v6634_v6 = vpop.f32.mrf.mxu0  ;;  %v2185_v12 = vadd.f32 %v6603_v33, %v8840_v26 }
 0x169   : > { %v9242_v39 = vadd.f32 %v6634_v6, %v2182_v2  ;;  %v2048_v62 = vpop.f32.mrf.mxu1 }
 0x16a   : > { %v2777_v46 = vpop.f32.mrf.mxu0  ;;  %v2183_v19 = vadd.f32 %v2048_v62, %v8873_v42 }
 0x16b   : > { %v9245_v16 = vadd.f32 %v2777_v46, %v2180_v10  ;;  %v6604_v61 = vpop.f32.mrf.mxu1 }
 0x16c   : > { %v6637_v63 = vpop.f32.mrf.mxu0  ;;  %v2186_v43 = vadd.f32 %v6604_v61, %v8880_v49 }
 0x16d   : > { %v9248_v24 = vadd.f32 %v6637_v63, %v2185_v12  ;;  %v2051_v51 = vpop.f32.mrf.mxu1  ;;  %v10005_v63 = vld [vmem:[#allocation16_spill] sm:$0xff] }
 0x16e   : > { %v2790_v14 = vpop.f32.mrf.mxu0  ;;  %v2184_v30 = vadd.f32 %v2051_v51, %v8882_v48 }
 0x16f   : > { %v9251_v50 = vadd.f32 %v2790_v14, %v2183_v19  ;;  %v6607_v26 = vpop.f32.mrf.mxu1 }
 0x170   : > { %v6638_v35 = vpop.f32.mrf.mxu0  ;;  %v2189_v11 = vadd.f32 %v6607_v26, %v8901_v22 }
 0x171   : > { %v9254_v59 = vadd.f32 %v6638_v35, %v2186_v43  ;;  %v2064_v42 = vpop.f32.mrf.mxu1 }
 0x172   : > { %v2793_v18 = vpop.f32.mrf.mxu0  ;;  %v2187_v44 = vadd.f32 %v2064_v42, %v8942_v47 }
 0x173   : > { %v9257_v41 = vadd.f32 %v2793_v18, %v2184_v30  ;;  %v6608_v49 = vpop.f32.mrf.mxu1 }
 0x174   : > { %v2190_v32 = vadd.f32 %v6608_v49, %v8945_v13  ;;  %v6641_v7 = vpop.f32.mrf.mxu0 }
 0x175   : > { %v2067_v3 = vpop.f32.mrf.mxu1  ;;  %v9260_v48 = vadd.f32 %v6641_v7, %v2189_v11 }
 0x176   : > { %v2188_v20 = vadd.f32 %v2067_v3, %v8947_v54  ;;  %v2806_v9 = vpop.f32.mrf.mxu0 }
 0x177   : > { %v6611_v60 = vpop.f32.mrf.mxu1  ;;  %v9263_v22 = vadd.f32 %v2806_v9, %v2187_v44  ;;  %v10009_v9 = vld [vmem:[#allocation24_spill] sm:$0xff] }
 0x178   : > { %v2193_v28 = vadd.f32 %v6611_v60, %v8968_v45  ;;  %v6642_v1 = vpop.f32.mrf.mxu0 }
 0x179   : > { %v2080_v40 = vpop.f32.mrf.mxu1  ;;  %v9266_v47 = vadd.f32 %v6642_v1, %v2190_v32 }
 0x17a   : > { %v2191_v8 = vadd.f32 %v2080_v40, %v9009_v17  ;;  %v2809_v4 = vpop.f32.mrf.mxu0 }
 0x17b   : > { %v6612_v13 = vpop.f32.mrf.mxu1  ;;  %v9269_v23 = vadd.f32 %v2809_v4, %v2188_v20 }
 0x17c   : > { %v2194_v55 = vadd.f32 %v6612_v13, %v9012_v31  ;;  %v6645_v54 = vpop.f32.mrf.mxu0 }
 0x17d   : > { %v2083_v57 = vpop.f32.mrf.mxu1  ;;  %v9273_v34 = vadd.f32 %v6645_v54, %v2193_v28 }
 0x17e   : > { %v2192_v2 = vadd.f32 %v2083_v57, %v9015_v29  ;;  %v2822_v45 = vpop.f32.mrf.mxu0 }
 0x17f   : > { %v6615_v36 = vpop.f32.mrf.mxu1  ;;  %v9276_v33 = vadd.f32 %v2822_v45, %v2191_v8  ;;  %v10010_v8 = vld [vmem:[#allocation25_spill] sm:$0xff] }
 0x180   : > { %v2197_v10 = vadd.f32 %v6615_v36, %v9038_v0  ;;  %v6646_v17 = vpop.f32.mrf.mxu0  ;;  %v10006_v0 = vld [vmem:[#allocation17_spill] sm:$0xff] }
 0x181   : > { %v2096_v6 = vpop.f32.mrf.mxu1  ;;  %v9279_v62 = vadd.f32 %v6646_v17, %v2194_v55 }
 0x182   : > { %v2195_v12 = vadd.f32 %v2096_v6, %v9078_v15  ;;  %v2825_v31 = vpop.f32.mrf.mxu0  ;;  %v10007_v15 = vld [vmem:[#allocation20_spill] sm:$0xff] }
 0x183   : > { %v6616_v46 = vpop.f32.mrf.mxu1  ;;  %v9282_v61 = vadd.f32 %v2825_v31, %v2192_v2 }
 0x184   : > { %v2198_v19 = vadd.f32 %v6616_v46, %v9081_v56  ;;  %v6649_v14 = vpop.f32.mrf.mxu0  ;;  %v10008_v56 = vld [vmem:[#allocation23_spill] sm:$0xff] }
 0x185   : > { %v2099_v29 = vpop.f32.mrf.mxu1  ;;  %v9286_v26 = vadd.f32 %v6649_v14, %v2197_v10 }
 0x186   : > { %v2196_v43 = vadd.f32 %v2099_v29, %v10005_v63  ;;  %v2838_v11 = vpop.f32.mrf.mxu0 }
 0x187   : > { %v6619_v51 = vpop.f32.mrf.mxu1  ;;  %v9289_v18 = vadd.f32 %v2838_v11, %v2195_v12 }
 0x188   : > { %v2201_v30 = vadd.f32 %v6619_v51, %v10006_v0  ;;  %v6650_v49 = vpop.f32.mrf.mxu0 }
 0x189   : > { %v2112_v35 = vpop.f32.mrf.mxu1  ;;  %v9292_v7 = vadd.f32 %v6650_v49, %v2198_v19 }
 0x18a   : > { %v2199_v42 = vadd.f32 %v2112_v35, %v10007_v15  ;;  %v2841_v20 = vpop.f32.mrf.mxu0 }
 0x18b   : > { %v6620_v44 = vpop.f32.mrf.mxu1  ;;  %v9295_v28 = vadd.f32 %v2841_v20, %v2196_v43 }
 0x18c   : > { %v2202_v32 = vadd.f32 %v6620_v44, %v10008_v56  ;;  %v6653_v40 = vpop.f32.mrf.mxu0 }
 0x18d   : > { %v2115_v3 = vpop.f32.mrf.mxu1  ;;  %v9298_v13 = vadd.f32 %v6653_v40, %v2201_v30 }
 0x18e   : > { %v2200_v60 = vadd.f32 %v2115_v3, %v10009_v9  ;;  %v2854_v57 = vpop.f32.mrf.mxu0 }
 0x18f   : > { %v6623_v1 = vpop.f32.mrf.mxu1  ;;  %v9301_v2 = vadd.f32 %v2854_v57, %v2199_v42 }
 0x190   : > { %v2205_v4 = vadd.f32 %v6623_v1, %v10010_v8  ;;  %v6654_v45 = vpop.f32.mrf.mxu0 }
 0x191   : > { %v2128_v55 = vpop.f32.mrf.mxu1  ;;  %v9304_v6 = vadd.f32 %v6654_v45, %v2202_v32 }
 0x192   : > { %v2203_v54 = vadd.f32 %v2128_v55, %v9212_v37  ;;  %v2857_v12 = vpop.f32.mrf.mxu0 }
 0x193   : > { %v6624_v36 = vpop.f32.mrf.mxu1  ;;  %v9307_v31 = vadd.f32 %v2857_v12, %v2200_v60 }
 0x194   : > { %v2206_v10 = vadd.f32 %v6624_v36, %v9215_v5  ;;  %v6657_v19 = vpop.f32.mrf.mxu0 }
 0x195   : > { %v2131_v17 = vpop.f32.mrf.mxu1  ;;  %v9309_v29 = vadd.f32 %v6657_v19, %v2205_v4 }
 0x196   : > { %v2204_v46 = vadd.f32 %v2131_v17, %v9218_v38  ;;  %v2870_v63 = vpop.f32.mrf.mxu0 }
 0x197   : > { %v9311_v43 = vadd.f32 %v2870_v63, %v2203_v54  ;;  %v6663_v37 = vpop.f32.mrf.mxu1 }
 0x198   : > { %v6658_v51 = vpop.f32.mrf.mxu0  ;;  %v3405_v14 = vadd.f32 %v6663_v37, %v9221_v21 }
 0x199   : > { %v9314_v0 = vadd.f32 %v6658_v51, %v2206_v10  ;;  %v3244_v5 = vpop.f32.mrf.mxu1 }
 0x19a   : > { %v2873_v30 = vpop.f32.mrf.mxu0  ;;  %v3403_v35 = vadd.f32 %v3244_v5, %v9223_v25 }
 0x19b   : > { %v9317_v11 = vadd.f32 %v2873_v30, %v2204_v46  ;;  %v9319_v38 = vpop.f32.mrf.mxu1 }
 0x19c   : > { %v6697_v15 = vpop.f32.mrf.mxu0 }
 0x19d   : > { %v9321_v42 = vadd.f32 %v6697_v15, %v3405_v14  ;;  %v9323_v44 = vpop.f32.mrf.mxu1 }
 0x19e   : > { %v3686_v49 = vpop.f32.mrf.mxu0 }
 0x19f   : > { %v9325_v56 = vadd.f32 %v3686_v49, %v3403_v35  ;;  %v6667_v21 = vpop.f32.mrf.mxu1 }
 0x1a0   : > { %v9327_v32 = vpop.f32.mrf.mxu0  ;;  %v3409_v3 = vadd.f32 %v6667_v21, %v9237_v27 }
 0x1a1   : > { %v3260_v25 = vpop.f32.mrf.mxu1 }
 0x1a2   : > { %v9330_v20 = vpop.f32.mrf.mxu0  ;;  %v3407_v9 = vadd.f32 %v3260_v25, %v9239_v58 }
 0x1a3   : > { %v9333_v1 = vpop.f32.mrf.mxu1 }
 0x1a4   : > { %v6701_v60 = vpop.f32.mrf.mxu0 }
 0x1a5   : > { %v9335_v40 = vadd.f32 %v6701_v60, %v3409_v3  ;;  %v9337_v4 = vpop.f32.mrf.mxu1 }
 0x1a6   : > { %v3702_v8 = vpop.f32.mrf.mxu0 }
 0x1a7   : > { %v9339_v55 = vadd.f32 %v3702_v8, %v3407_v9  ;;  %v6671_v54 = vpop.f32.mrf.mxu1 }
 0x1a8   : > { %v9341_v57 = vpop.f32.mrf.mxu0  ;;  %v3413_v27 = vadd.f32 %v6671_v54, %v9248_v24 }
 0x1a9   : > { %v3276_v45 = vpop.f32.mrf.mxu1 }
 0x1aa   : > { %v9344_v36 = vpop.f32.mrf.mxu0  ;;  %v3411_v58 = vadd.f32 %v3276_v45, %v9251_v50 }
 0x1ab   : > { %v9347_v17 = vpop.f32.mrf.mxu1 }
 0x1ac   : > { %v6705_v10 = vpop.f32.mrf.mxu0 }
 0x1ad   : > { %v9349_v12 = vadd.f32 %v6705_v10, %v3413_v27  ;;  %v9351_v19 = vpop.f32.mrf.mxu1 }
 0x1ae   : > { %v3718_v46 = vpop.f32.mrf.mxu0 }
 0x1af   : > { %v9353_v63 = vadd.f32 %v3718_v46, %v3411_v58  ;;  %v6675_v51 = vpop.f32.mrf.mxu1 }
 0x1b0   : > { %v9355_v37 = vpop.f32.mrf.mxu0  ;;  %v3417_v24 = vadd.f32 %v6675_v51, %v9260_v48 }
 0x1b1   : > { %v3292_v5 = vpop.f32.mrf.mxu1 }
 0x1b2   : > { %v9358_v14 = vpop.f32.mrf.mxu0  ;;  %v3415_v50 = vadd.f32 %v3292_v5, %v9263_v22 }
 0x1b3   : > { %v9361_v35 = vpop.f32.mrf.mxu1 }
 0x1b4   : > { %v6709_v30 = vpop.f32.mrf.mxu0 }
 0x1b5   : > { %v9363_v15 = vadd.f32 %v6709_v30, %v3417_v24  ;;  %v3295_v21 = vpop.f32.mrf.mxu1 }
 0x1b6   : > { %v3734_v49 = vpop.f32.mrf.mxu0  ;;  %v3416_v25 = vadd.f32 %v3295_v21, %v9269_v23 }
 0x1b7   : > { %v9365_v3 = vadd.f32 %v3734_v49, %v3415_v50  ;;  %v6679_v60 = vpop.f32.mrf.mxu1 }
 0x1b8   : > { %v9368_v9 = vpop.f32.mrf.mxu0  ;;  %v3421_v48 = vadd.f32 %v6679_v60, %v9273_v34 }
 0x1b9   : > { %v3308_v54 = vpop.f32.mrf.mxu1 }
 0x1ba   : > { %v3737_v8 = vpop.f32.mrf.mxu0  ;;  %v3419_v22 = vadd.f32 %v3308_v54, %v9276_v33 }
 0x1bb   : > { %v9371_v27 = vadd.f32 %v3737_v8, %v3416_v25  ;;  %v6680_v58 = vpop.f32.mrf.mxu1 }
 0x1bc   : > { %v6713_v45 = vpop.f32.mrf.mxu0  ;;  %v3422_v46 = vadd.f32 %v6680_v58, %v9279_v62 }
 0x1bd   : > { %v9374_v10 = vadd.f32 %v6713_v45, %v3421_v48  ;;  %v3311_v24 = vpop.f32.mrf.mxu1 }
 0x1be   : > { %v3750_v51 = vpop.f32.mrf.mxu0  ;;  %v3420_v5 = vadd.f32 %v3311_v24, %v9282_v61 }
 0x1bf   : > { %v9377_v23 = vadd.f32 %v3750_v51, %v3419_v22  ;;  %v6683_v34 = vpop.f32.mrf.mxu1 }
 0x1c0   : > { %v6714_v50 = vpop.f32.mrf.mxu0  ;;  %v3425_v49 = vadd.f32 %v6683_v34, %v9286_v26 }
 0x1c1   : > { %v9380_v30 = vadd.f32 %v6714_v50, %v3422_v46  ;;  %v3324_v33 = vpop.f32.mrf.mxu1 }
 0x1c2   : > { %v3753_v21 = vpop.f32.mrf.mxu0  ;;  %v3423_v60 = vadd.f32 %v3324_v33, %v9289_v18 }
 0x1c3   : > { %v9383_v25 = vadd.f32 %v3753_v21, %v3420_v5  ;;  %v6684_v62 = vpop.f32.mrf.mxu1 }
 0x1c4   : > { %v6717_v48 = vpop.f32.mrf.mxu0  ;;  %v3426_v54 = vadd.f32 %v6684_v62, %v9292_v7 }
 0x1c5   : > { %v9386_v8 = vadd.f32 %v6717_v48, %v3425_v49  ;;  %v3327_v61 = vpop.f32.mrf.mxu1 }
 0x1c6   : > { %v3766_v22 = vpop.f32.mrf.mxu0  ;;  %v3424_v58 = vadd.f32 %v3327_v61, %v9295_v28 }
 0x1c7   : > { %v9389_v45 = vadd.f32 %v3766_v22, %v3423_v60  ;;  %v6687_v26 = vpop.f32.mrf.mxu1 }
 0x1c8   : > { %v6718_v46 = vpop.f32.mrf.mxu0  ;;  %v3429_v24 = vadd.f32 %v6687_v26, %v9298_v13 }
 0x1c9   : > { %v9392_v51 = vadd.f32 %v6718_v46, %v3426_v54  ;;  %v3340_v18 = vpop.f32.mrf.mxu1 }
 0x1ca   : > { %v3769_v5 = vpop.f32.mrf.mxu0  ;;  %v3427_v34 = vadd.f32 %v3340_v18, %v9301_v2 }
 0x1cb   : > { %v9395_v50 = vadd.f32 %v3769_v5, %v3424_v58  ;;  %v6688_v7 = vpop.f32.mrf.mxu1 }
 0x1cc   : > { %v6721_v49 = vpop.f32.mrf.mxu0  ;;  %v3430_v33 = vadd.f32 %v6688_v7, %v9304_v6 }
 0x1cd   : > { %v9398_v21 = vadd.f32 %v6721_v49, %v3429_v24  ;;  %v3343_v28 = vpop.f32.mrf.mxu1  ;;  %v3406_v49 = vadd.f32 %v9319_v38, %v9232_v52 }
 0x1ce   : > { %v3782_v60 = vpop.f32.mrf.mxu0  ;;  %v3428_v62 = vadd.f32 %v3343_v28, %v9307_v31 }
 0x1cf   : > { %v9401_v48 = vadd.f32 %v3782_v60, %v3427_v34  ;;  %v6691_v13 = vpop.f32.mrf.mxu1 }
 0x1d0   : > { %v6722_v54 = vpop.f32.mrf.mxu0  ;;  %v3433_v61 = vadd.f32 %v6691_v13, %v9309_v29  ;;  %v3848_v13 = vadd.f32 %v9327_v32, %v3406_v49 }
 0x1d1   : > { %v9404_v22 = vadd.f32 %v6722_v54, %v3430_v33  ;;  %v3356_v2 = vpop.f32.mrf.mxu1 }
 0x1d2   : > { %v3785_v58 = vpop.f32.mrf.mxu0  ;;  %v3431_v26 = vadd.f32 %v3356_v2, %v9311_v43  ;;  %v3404_v43 = vadd.f32 %v9323_v44, %v9234_v53 }
 0x1d3   : > { %v9407_v46 = vadd.f32 %v3785_v58, %v3428_v62  ;;  %v6692_v6 = vpop.f32.mrf.mxu1 }
 0x1d4   : > { %v6725_v24 = vpop.f32.mrf.mxu0  ;;  %v3434_v18 = vadd.f32 %v6692_v6, %v9314_v0  ;;  %v3846_v53 = vadd.f32 %v9330_v20, %v3404_v43 }
 0x1d5   : > { %v9410_v5 = vadd.f32 %v6725_v24, %v3433_v61  ;;  %v3359_v31 = vpop.f32.mrf.mxu1 }
 0x1d6   : > { %v3798_v34 = vpop.f32.mrf.mxu0  ;;  %v3432_v29 = vadd.f32 %v3359_v31, %v9317_v11  ;;  %v9430_v11 = vld [vmem:[%s9713_s2] ss:$0 sm:$0xff] }
 0x1d7   : > { %v9415_v7 = vadd.f32 %v3798_v34, %v3431_v26  ;;  %v6731_v60 = vpop.f32.mrf.mxu1 }
 0x1d8   : > { %v6726_v33 = vpop.f32.mrf.mxu0  ;;  %v4589_v62 = vadd.f32 %v6731_v60, %v9321_v42 }
 0x1d9   : > { %v9420_v28 = vadd.f32 %v6726_v33, %v3434_v18  ;;  %v4428_v0 = vpop.f32.mrf.mxu1  ;;  %v3408_v33 = vadd.f32 %v9337_v4, %v9245_v16 }
 0x1da   : > { %v3801_v54 = vpop.f32.mrf.mxu0  ;;  %v4587_v52 = vadd.f32 %v4428_v0, %v9325_v56  ;;  %v3410_v56 = vadd.f32 %v9333_v1, %v9242_v39 }
 0x1db   : > { %v9424_v61 = vadd.f32 %v3801_v54, %v3432_v29  ;;  %v6732_v58 = vpop.f32.mrf.mxu1 }
 0x1dc   : > { %v6765_v38 = vpop.f32.mrf.mxu0  ;;  %v4590_v2 = vadd.f32 %v6732_v58, %v3848_v13  ;;  %v3852_v54 = vadd.f32 %v9341_v57, %v3410_v56 }
 0x1dd   : > { %v5075_v44 = vadd.f32 %v6765_v38, %v4589_v62  ;;  %v4431_v26 = vpop.f32.mrf.mxu1  ;;  %v3850_v38 = vadd.f32 %v9344_v36, %v3408_v33 }
 0x1de   : > { %v4914_v42 = vpop.f32.mrf.mxu0  ;;  %v4588_v6 = vadd.f32 %v4431_v26, %v3846_v53 }
 0x1df   : > { %v9434_v24 = vadd.f32 %v9430_v11, %v5075_v44  ;;  %v5073_v32 = vadd.f32 %v4914_v42, %v4587_v52  ;;  %v6735_v34 = vpop.f32.mrf.mxu1  ;;  %v3414_v42 = vadd.f32 %v9347_v17, %v9254_v59  ;;  %v3412_v17 = vadd.f32 %v9351_v19, %v9257_v41 }
 0x1e0   : > { %v6766_v18 = vpop.f32.mrf.mxu0  ;;  %v4593_v29 = vadd.f32 %v6735_v34, %v9335_v40 }
 0x1e1   : > { %v6141_v31 = vmul.f32 -1.442695, %v9434_v24  ;;  %v9440_v49 = vadd.f32 %v9430_v11, %v5073_v32  ;;  %v5076_v20 = vadd.f32 %v6766_v18, %v4590_v2  ;;  %v4444_v43 = vpop.f32.mrf.mxu1  ;;  %v3856_v59 = vadd.f32 %v9355_v37, %v3414_v42 }
 0x1e2   : > { %v4917_v60 = vpop.f32.mrf.mxu0  ;;  %v4591_v13 = vadd.f32 %v4444_v43, %v9339_v55 }
 0x1e3   : > { %6913 = vpow2.f32 %v6141_v31  ;;  %v6139_v62 = vmul.f32 -1.442695, %v9440_v49  ;;  %v9447_v39 = vadd.f32 %v9430_v11, %v5076_v20  ;;  %v5074_v1 = vadd.f32 %v4917_v60, %v4588_v6  ;;  %v6736_v52 = vpop.f32.mrf.mxu1 }
 0x1e4   : > { %v6769_v0 = vpop.f32.mrf.mxu0  ;;  %v4594_v53 = vadd.f32 %v6736_v52, %v3852_v54 }
 0x1e5   : > { %6915 = vpow2.f32 %v6139_v62  ;;  %v6142_v40 = vmul.f32 -1.442695, %v9447_v39  ;;  %v9453_v16 = vadd.f32 %v9430_v11, %v5074_v1  ;;  %v5079_v4 = vadd.f32 %v6769_v0, %v4593_v29  ;;  %v4447_v44 = vpop.f32.mrf.mxu1 }
 0x1e6   : > { %v4930_v58 = vpop.f32.mrf.mxu0  ;;  %v4592_v32 = vadd.f32 %v4447_v44, %v3850_v38 }
 0x1e7   : > { %6917 = vpow2.f32 %v6142_v40  ;;  %v6140_v2 = vmul.f32 -1.442695, %v9453_v16  ;;  %v9458_v57 = vadd.f32 %v9430_v11, %v5079_v4  ;;  %v5077_v55 = vadd.f32 %v4930_v58, %v4591_v13 }
 0x1e8   : > { %v6770_v26 = vpop.f32.mrf.mxu0  ;;  %v6739_v34 = vpop.f32.mrf.mxu1 }
 0x1e9   : > { %6919 = vpow2.f32 %v6140_v2  ;;  %v6145_v6 = vmul.f32 -1.442695, %v9458_v57  ;;  %v9464_v36 = vadd.f32 %v9430_v11, %v5077_v55  ;;  %v5080_v56 = vadd.f32 %v6770_v26, %v4594_v53 }
 0x1ea   : > { %v4933_v18 = vpop.f32.mrf.mxu0  ;;  %v4597_v33 = vadd.f32 %v6739_v34, %v9349_v12  ;;  %v4460_v43 = vpop.f32.mrf.mxu1  ;;  %v3854_v12 = vadd.f32 %v9358_v14, %v3412_v17  ;;  %v3418_v55 = vadd.f32 %v9361_v35, %v9266_v47 }
 0x1eb   : > { %6921 = vpow2.f32 %v6145_v6  ;;  %v6143_v31 = vmul.f32 -1.442695, %v9464_v36  ;;  %v9468_v20 = vadd.f32 %v9430_v11, %v5080_v56  ;;  %v5078_v29 = vadd.f32 %v4933_v18, %v4592_v32 }
 0x1ec   : > { %v6773_v60 = vpop.f32.mrf.mxu0  ;;  %v4595_v54 = vadd.f32 %v4460_v43, %v9353_v63  ;;  %v6740_v52 = vpop.f32.mrf.mxu1 }
 0x1ed   : > { %6923 = vpow2.f32 %v6143_v31  ;;  %v6146_v62 = vmul.f32 -1.442695, %v9468_v20  ;;  %v9476_v1 = vadd.f32 %v9430_v11, %v5078_v29  ;;  %v5083_v0 = vadd.f32 %v6773_v60, %v4597_v33 }
 0x1ee   : > { %v4946_v13 = vpop.f32.mrf.mxu0  ;;  %v4598_v41 = vadd.f32 %v6740_v52, %v3856_v59  ;;  %v4463_v58 = vpop.f32.mrf.mxu1  ;;  %v3860_v60 = vadd.f32 %v9368_v9, %v3418_v55 }
 0x1ef   : > { %6925 = vpow2.f32 %v6146_v62  ;;  %v6144_v37 = vmul.f32 -1.442695, %v9476_v1  ;;  %v5081_v40 = vadd.f32 %v4946_v13, %v4595_v54  ;;  %v9482_v4 = vadd.f32 %v9430_v11, %v5083_v0 }
 0x1f0   : > { %v6914_v19 = vpop.eup %6913  ;;  %v6774_v38 = vpop.f32.mrf.mxu0  ;;  %v4596_v26 = vadd.f32 %v4463_v58, %v3854_v12 }
 0x1f1   : > { %v5306_v53 = vadd.f32 1.0, %v6914_v19  ;;  %6927 = vpow2.f32 %v6144_v37  ;;  %v9485_v63 = vadd.f32 %v9430_v11, %v5081_v40  ;;  %v5084_v44 = vadd.f32 %v6774_v38, %v4598_v41 }
 0x1f2   : > { %v6916_v2 = vpop.eup %6915  ;;  %v6149_v42 = vmul.f32 -1.442695, %v9482_v4  ;;  %v4949_v32 = vpop.f32.mrf.mxu0 }
 0x1f3   : > { %6929 = vrcp.f32 %v5306_v53  ;;  %v5304_v14 = vadd.f32 1.0, %v6916_v2  ;;  %v6147_v6 = vmul.f32 -1.442695, %v9485_v63  ;;  %v9492_v56 = vadd.f32 %v9430_v11, %v5084_v44 }
 0x1f4   : > { %v6918_v18 = vpop.eup %6917  ;;  %6931 = vpow2.f32 %v6149_v42  ;;  %v5082_v34 = vadd.f32 %v4949_v32, %v4596_v26 }
 0x1f5   : > { %6933 = vrcp.f32 %v5304_v14  ;;  %v5307_v31 = vadd.f32 1.0, %v6918_v18  ;;  %v6150_v29 = vmul.f32 -1.442695, %v9492_v56  ;;  %v6743_v59 = vpop.f32.mrf.mxu1  ;;  %v6777_v47 = vpop.f32.mrf.mxu0 }
 0x1f6   : > { %v6920_v35 = vpop.eup %6919  ;;  %6935 = vpow2.f32 %v6147_v6  ;;  %v9496_v17 = vadd.f32 %v9430_v11, %v5082_v34  ;;  %v4601_v33 = vadd.f32 %v6743_v59, %v9363_v15 }
 0x1f7   : > { %6937 = vrcp.f32 %v5307_v31  ;;  %v5305_v43 = vadd.f32 1.0, %v6920_v35  ;;  %v4476_v62 = vpop.f32.mrf.mxu1  ;;  %v4962_v54 = vpop.f32.mrf.mxu0 }
 0x1f8   : > { %v6922_v0 = vpop.eup %6921  ;;  %6939 = vpow2.f32 %v6150_v29  ;;  %v6148_v13 = vmul.f32 -1.442695, %v9496_v17  ;;  %v5087_v52 = vadd.f32 %v6777_v47, %v4601_v33  ;;  %v4599_v37 = vadd.f32 %v4476_v62, %v9365_v3 }
 0x1f9   : > { %6941 = vrcp.f32 %v5305_v43  ;;  %v5310_v40 = vadd.f32 1.0, %v6922_v0  ;;  %v6744_v41 = vpop.f32.mrf.mxu1  ;;  %v6778_v19 = vpop.f32.mrf.mxu0 }
 0x1fa   : > { %v6924_v12 = vpop.eup %6923  ;;  %6943 = vpow2.f32 %v6148_v13  ;;  %v9503_v15 = vadd.f32 %v9430_v11, %v5087_v52  ;;  %v5085_v9 = vadd.f32 %v4962_v54, %v4599_v37  ;;  %v4602_v38 = vadd.f32 %v6744_v41, %v3860_v60 }
 0x1fb   : > { %6945 = vrcp.f32 %v5310_v40  ;;  %v5308_v58 = vadd.f32 1.0, %v6924_v12  ;;  %v4479_v53 = vpop.f32.mrf.mxu1  ;;  %v4965_v26 = vpop.f32.mrf.mxu0 }
 0x1fc   : > { %v6926_v44 = vpop.eup %6925  ;;  %v6153_v2 = vmul.f32 -1.442695, %v9503_v15  ;;  %v9507_v3 = vadd.f32 %v9430_v11, %v5085_v9  ;;  %v5088_v55 = vadd.f32 %v6778_v19, %v4602_v38  ;;  %v4600_v42 = vadd.f32 %v4479_v53, %v9371_v27 }
 0x1fd   : > { %6947 = vrcp.f32 %v5308_v58  ;;  %v5311_v32 = vadd.f32 1.0, %v6926_v44 }
 0x1fe   : > { %v6928_v14 = vpop.eup %6927  ;;  %6949 = vpow2.f32 %v6153_v2  ;;  %v6151_v6 = vmul.f32 -1.442695, %v9507_v3  ;;  %v9512_v18 = vadd.f32 %v9430_v11, %v5088_v55  ;;  %v5086_v34 = vadd.f32 %v4965_v26, %v4600_v42 }
 0x1ff   : > { %6951 = vrcp.f32 %v5311_v32  ;;  %v5309_v31 = vadd.f32 1.0, %v6928_v14 }
 0x200   : > { %v6930_v29 = vpop.eup %6929  ;;  %6953 = vpow2.f32 %v6151_v6  ;;  %v6154_v59 = vmul.f32 -1.442695, %v9512_v18  ;;  %v9517_v27 = vadd.f32 %v9430_v11, %v5086_v34 }
 0x201   : > { %v6747_v47 = vpop.f32.mrf.mxu1  ;;  %v6932_v33 = vpop.eup %6931  ;;  %6955 = vrcp.f32 %v5309_v31  ;;  %v5402_v19 = vmul.f32 %v6930_v29, %v9434_v24 }
 0x202   : > { %v6781_v35 = vpop.f32.mrf.mxu0  ;;  %v4605_v60 = vadd.f32 %v6747_v47, %v9374_v10  ;;  %v6934_v43 = vpop.eup %6933  ;;  %v5314_v62 = vadd.f32 1.0, %v6932_v33  ;;  %6957 = vpow2.f32 %v6154_v59  ;;  %v6152_v54 = vmul.f32 -1.442695, %v9517_v27 }
 0x203   : > { %v4492_v0 = vpop.f32.mrf.mxu1  ;;  %v6936_v52 = vpop.eup %6935  ;;  %v5400_v55 = vmul.f32 %v6934_v43, %v9440_v49 }
 0x204   : > { %v4978_v13 = vpop.f32.mrf.mxu0  ;;  %v5091_v37 = vadd.f32 %v6781_v35, %v4605_v60  ;;  %v4603_v40 = vadd.f32 %v4492_v0, %v9377_v23  ;;  %v6938_v41 = vpop.eup %6937  ;;  %6959 = vrcp.f32 %v5314_v62  ;;  %v5312_v12 = vadd.f32 1.0, %v6936_v52 }
 0x205   : > { %v6748_v10 = vpop.f32.mrf.mxu1  ;;  %v6940_v38 = vpop.eup %6939  ;;  %v5403_v58 = vmul.f32 %v6938_v41, %v9447_v39  ;;  %6961 = vpow2.f32 %v6152_v54 }
 0x206   : > { %v6782_v9 = vpop.f32.mrf.mxu0  ;;  %v9529_v53 = vadd.f32 %v9430_v11, %v5091_v37  ;;  %v5089_v44 = vadd.f32 %v4978_v13, %v4603_v40  ;;  %v6942_v2 = vpop.eup %6941  ;;  %6963 = vrcp.f32 %v5312_v12  ;;  %v5315_v23 = vadd.f32 1.0, %v6940_v38 }
 0x207   : > { %v4606_v24 = vadd.f32 %v6748_v10, %v9380_v30  ;;  %v4495_v42 = vpop.f32.mrf.mxu1  ;;  %v6944_v32 = vpop.eup %6943  ;;  %v6249_v14 = vpack.c.bf16 %v5403_v58, %v5402_v19  ;;  %v5401_v6 = vmul.f32 %v6942_v2, %v9453_v16 }
 0x208   : > { %v4981_v26 = vpop.f32.mrf.mxu0  ;;  %v6157_v39 = vmul.f32 -1.442695, %v9529_v53  ;;  %v9536_v34 = vadd.f32 %v9430_v11, %v5089_v44  ;;  %v6946_v31 = vpop.eup %6945  ;;  %6965 = vrcp.f32 %v5315_v23  ;;  %v5313_v29 = vadd.f32 1.0, %v6944_v32 }
 0x209   : > { %v5092_v49 = vadd.f32 %v6782_v9, %v4606_v24  ;;  %v4604_v59 = vadd.f32 %v4495_v42, %v9383_v25  ;;  %6321 = vst [vmem:[%s9540_s9 + $0x8] sm:$0xff] %v6249_v14   ;;  %v6244_v30 = vpack.c.bf16 %v5401_v6, %v5400_v55  ;;  %v5406_v41 = vmul.f32 %v6946_v31, %v9458_v57 }
 0x20a   : > { %6967 = vpow2.f32 %v6157_v39  ;;  %v6155_v16 = vmul.f32 -1.442695, %v9536_v34  ;;  %v6948_v47 = vpop.eup %6947 }
 0x20b   : > { %6969 = vrcp.f32 %v5313_v29  ;;  %v9545_v35 = vadd.f32 %v9430_v11, %v5092_v49  ;;  %v5090_v33 = vadd.f32 %v4981_v26, %v4604_v59  ;;  %v6950_v43 = vpop.eup %6949  ;;  %6245 = vst [vmem:[%s9540_s9] sm:$0xff] %v6244_v30   ;;  %v5404_v19 = vmul.f32 %v6948_v47, %v9464_v36 }
 0x20c   : > { %6971 = vpow2.f32 %v6155_v16  ;;  %v6952_v62 = vpop.eup %6951  ;;  %v5318_v54 = vadd.f32 1.0, %v6950_v43 }
 0x20d   : > { %v6158_v0 = vmul.f32 -1.442695, %v9545_v35  ;;  %v9550_v13 = vadd.f32 %v9430_v11, %v5090_v33  ;;  %v6954_v40 = vpop.eup %6953  ;;  %v5407_v12 = vmul.f32 %v6952_v62, %v9468_v20 }
 0x20e   : > { %v6785_v60 = vpop.f32.mrf.mxu0  ;;  %v6751_v25 = vpop.f32.mrf.mxu1  ;;  %6973 = vrcp.f32 %v5318_v54  ;;  %v5316_v38 = vadd.f32 1.0, %v6954_v40 }
 0x20f   : > { %v4609_v52 = vadd.f32 %v6751_v25, %v9386_v8  ;;  %v6956_v9 = vpop.eup %6955  ;;  %v6156_v58 = vmul.f32 -1.442695, %v9550_v13  ;;  %v6259_v23 = vpack.c.bf16 %v5407_v12, %v5406_v41  ;;  %6975 = vpow2.f32 %v6158_v0 }
 0x210   : > { %v4994_v37 = vpop.f32.mrf.mxu0  ;;  %v4508_v10 = vpop.f32.mrf.mxu1  ;;  %v5405_v8 = vmul.f32 %v6956_v9, %v9476_v1  ;;  %6977 = vrcp.f32 %v5316_v38 }
 0x211   : > { %v5095_v44 = vadd.f32 %v6785_v60, %v4609_v52  ;;  %v6958_v55 = vpop.eup %6957  ;;  %v4607_v57 = vadd.f32 %v4508_v10, %v9389_v45  ;;  %6323 = vst [vmem:[%s9540_s9 + $0x18] sm:$0xff] %v6259_v23   ;;  %6979 = vpow2.f32 %v6156_v58 }
 0x212   : > { %v6786_v2 = vpop.f32.mrf.mxu0  ;;  %v6752_v24 = vpop.f32.mrf.mxu1  ;;  %v5319_v36 = vadd.f32 1.0, %v6958_v55  ;;  %v6254_v32 = vpack.c.bf16 %v5405_v8, %v5404_v19 }
 0x213   : > { %v9560_v20 = vadd.f32 %v9430_v11, %v5095_v44  ;;  %v4610_v42 = vadd.f32 %v6752_v24, %v9392_v51  ;;  %v6960_v26 = vpop.eup %6959  ;;  %v5093_v14 = vadd.f32 %v4994_v37, %v4607_v57 }
 0x214   : > { %v4511_v6 = vpop.f32.mrf.mxu1  ;;  %v4997_v39 = vpop.f32.mrf.mxu0  ;;  %6981 = vrcp.f32 %v5319_v36  ;;  %6322 = vst [vmem:[%s9540_s9 + $0x10] sm:$0xff] %v6254_v32   ;;  %v5410_v62 = vmul.f32 %v6960_v26, %v9482_v4 }
 0x215   : > { %v6962_v1 = vpop.eup %6961  ;;  %v6161_v45 = vmul.f32 -1.442695, %v9560_v20  ;;  %v5096_v31 = vadd.f32 %v6786_v2, %v4610_v42  ;;  %v9567_v59 = vadd.f32 %v9430_v11, %v5093_v14  ;;  %v4608_v51 = vadd.f32 %v4511_v6, %v9395_v50 }
 0x216   : > { %v6964_v29 = vpop.eup %6963  ;;  %v5317_v49 = vadd.f32 1.0, %v6962_v1 }
 0x217   : > { %6983 = vpow2.f32 %v6161_v45  ;;  %v9571_v30 = vadd.f32 %v9430_v11, %v5096_v31  ;;  %v6966_v16 = vpop.eup %6965  ;;  %v6159_v47 = vmul.f32 -1.442695, %v9567_v59  ;;  %v5094_v33 = vadd.f32 %v4997_v39, %v4608_v51 }
 0x218   : > { %6985 = vrcp.f32 %v5317_v49  ;;  %v6968_v25 = vpop.eup %6967  ;;  %v5411_v54 = vmul.f32 %v6966_v16, %v9492_v56  ;;  %v5408_v37 = vmul.f32 %v6964_v29, %v9485_v63 }
 0x219   : > { %v6162_v0 = vmul.f32 -1.442695, %v9571_v30  ;;  %v6970_v52 = vpop.eup %6969  ;;  %v5322_v40 = vadd.f32 1.0, %v6968_v25  ;;  %6987 = vpow2.f32 %v6159_v47  ;;  %v9580_v41 = vadd.f32 %v9430_v11, %v5094_v33 }
 0x21a   : > { %v6755_v60 = vpop.f32.mrf.mxu1  ;;  %v6789_v43 = vpop.f32.mrf.mxu0  ;;  %v6269_v9 = vpack.c.bf16 %v5411_v54, %v5410_v62  ;;  %v5409_v4 = vmul.f32 %v6970_v52, %v9496_v17 }
 0x21b   : > { %v4613_v50 = vadd.f32 %v6755_v60, %v9398_v21  ;;  %v6972_v10 = vpop.eup %6971  ;;  %6989 = vpow2.f32 %v6162_v0  ;;  %v6160_v21 = vmul.f32 -1.442695, %v9580_v41 }
 0x21c   : > { %v4524_v19 = vpop.f32.mrf.mxu1  ;;  %v5010_v12 = vpop.f32.mrf.mxu0  ;;  %v5320_v38 = vadd.f32 1.0, %v6972_v10  ;;  %6325 = vst [vmem:[%s9540_s9 + $0x28] sm:$0xff] %v6269_v9   ;;  %v6264_v2 = vpack.c.bf16 %v5409_v4, %v5408_v37  ;;  %6991 = vrcp.f32 %v5322_v40 }
 0x21d   : > { %v5099_v56 = vadd.f32 %v6789_v43, %v4613_v50  ;;  %v4611_v63 = vadd.f32 %v4524_v19, %v9401_v48  ;;  %v6974_v8 = vpop.eup %6973  ;;  %6993 = vpow2.f32 %v6160_v21 }
 0x21e   : > { %v6756_v58 = vpop.f32.mrf.mxu1  ;;  %v6790_v44 = vpop.f32.mrf.mxu0  ;;  %6324 = vst [vmem:[%s9540_s9 + $0x20] sm:$0xff] %v6264_v2   ;;  %6995 = vrcp.f32 %v5320_v38  ;;  %v5414_v49 = vmul.f32 %v6974_v8, %v9503_v15 }
 0x21f   : > { %v9587_v55 = vadd.f32 %v9430_v11, %v5099_v56  ;;  %v4614_v23 = vadd.f32 %v6756_v58, %v9404_v22  ;;  %v5097_v17 = vadd.f32 %v5010_v12, %v4611_v63  ;;  %v6976_v24 = vpop.eup %6975 }
 0x220   : > { %v4527_v57 = vpop.f32.mrf.mxu1  ;;  %v5013_v48 = vpop.f32.mrf.mxu0  ;;  %v5323_v32 = vadd.f32 1.0, %v6976_v24 }
 0x221   : > { %v6165_v36 = vmul.f32 -1.442695, %v9587_v55  ;;  %v5100_v42 = vadd.f32 %v6790_v44, %v4614_v23  ;;  %v6978_v26 = vpop.eup %6977  ;;  %v9593_v14 = vadd.f32 %v9430_v11, %v5097_v17  ;;  %v4612_v6 = vadd.f32 %v4527_v57, %v9407_v46 }
 0x222   : > { %v6980_v22 = vpop.eup %6979  ;;  %v5412_v62 = vmul.f32 %v6978_v26, %v9507_v3 }
 0x223   : > { %6997 = vpow2.f32 %v6165_v36  ;;  %v9597_v39 = vadd.f32 %v9430_v11, %v5100_v42  ;;  %v6982_v1 = vpop.eup %6981  ;;  %v5321_v45 = vadd.f32 1.0, %v6980_v22  ;;  %v6163_v31 = vmul.f32 -1.442695, %v9593_v14 }
 0x224   : > { %6999 = vrcp.f32 %v5323_v32  ;;  %v5098_v29 = vadd.f32 %v5013_v48, %v4612_v6  ;;  %v5415_v51 = vmul.f32 %v6982_v1, %v9512_v18  ;;  %v6984_v46 = vpop.eup %6983 }
 0x225   : > { %v6166_v16 = vmul.f32 -1.442695, %v9597_v39  ;;  %7001 = vrcp.f32 %v5321_v45  ;;  %v6986_v25 = vpop.eup %6985  ;;  %v5326_v0 = vadd.f32 1.0, %v6984_v46 }
 0x226   : > { %v6759_v47 = vpop.f32.mrf.mxu1  ;;  %v6793_v33 = vpop.f32.mrf.mxu0  ;;  %v9604_v60 = vadd.f32 %v9430_v11, %v5098_v29  ;;  %v6279_v54 = vpack.c.bf16 %v5415_v51, %v5414_v49  ;;  %7003 = vpow2.f32 %v6163_v31  ;;  %v5413_v50 = vmul.f32 %v6986_v25, %v9517_v27 }
 0x227   : > { %v4617_v43 = vadd.f32 %v6759_v47, %v9410_v5  ;;  %7005 = vpow2.f32 %v6166_v16  ;;  %v6988_v40 = vpop.eup %6987 }
 0x228   : > { %v4540_v15 = vpop.f32.mrf.mxu1  ;;  %v5026_v18 = vpop.f32.mrf.mxu0  ;;  %v6164_v52 = vmul.f32 -1.442695, %v9604_v60  ;;  %6327 = vst [vmem:[%s9540_s9 + $0x38] sm:$0xff] %v6279_v54   ;;  %7007 = vrcp.f32 %v5326_v0  ;;  %v6274_v10 = vpack.c.bf16 %v5413_v50, %v5412_v62  ;;  %v5324_v4 = vadd.f32 1.0, %v6988_v40 }
 0x229   : > { %v5103_v37 = vadd.f32 %v6793_v33, %v4617_v43  ;;  %v4615_v5 = vadd.f32 %v4540_v15, %v9415_v7  ;;  %v6990_v3 = vpop.eup %6989 }
 0x22a   : > { %v6760_v19 = vpop.f32.mrf.mxu1  ;;  %v6794_v12 = vpop.f32.mrf.mxu0  ;;  %7009 = vpow2.f32 %v6164_v52  ;;  %v5327_v27 = vadd.f32 1.0, %v6990_v3  ;;  %6326 = vst [vmem:[%s9540_s9 + $0x30] sm:$0xff] %v6274_v10  }
 0x22b   : > { %v9613_v9 = vadd.f32 %v9430_v11, %v5103_v37  ;;  %v5101_v56 = vadd.f32 %v5026_v18, %v4615_v5  ;;  %v4618_v38 = vadd.f32 %v6760_v19, %v9420_v28  ;;  %v6992_v7 = vpop.eup %6991 }
 0x22c   : > { %v4543_v21 = vpop.f32.mrf.mxu1  ;;  %7011 = vrcp.f32 %v5327_v27  ;;  %v5029_v23 = vpop.f32.mrf.mxu0  ;;  %v5418_v26 = vmul.f32 %v6992_v7, %v9529_v53 }
 0x22d   : > { %v6169_v63 = vmul.f32 -1.442695, %v9613_v9  ;;  %v4616_v58 = vadd.f32 %v4543_v21, %v9424_v61  ;;  %v9620_v44 = vadd.f32 %v9430_v11, %v5101_v56  ;;  %v5104_v2 = vadd.f32 %v6794_v12, %v4618_v38  ;;  %v6994_v8 = vpop.eup %6993 }
 0x22e   : > { %v6996_v57 = vpop.eup %6995  ;;  %v5325_v24 = vadd.f32 1.0, %v6994_v8 }
 0x22f   : > { %7013 = vpow2.f32 %v6169_v63  ;;  %v5102_v17 = vadd.f32 %v5029_v23, %v4616_v58  ;;  %v6167_v28 = vmul.f32 -1.442695, %v9620_v44  ;;  %v9624_v36 = vadd.f32 %v9430_v11, %v5104_v2 }
 0x230   : > { %7015 = vrcp.f32 %v5324_v4  ;;  %v6998_v42 = vpop.eup %6997  ;;  %v5416_v29 = vmul.f32 %v6996_v57, %v9536_v34 }
 0x231   : > { %v9627_v61 = vadd.f32 %v9430_v11, %v5102_v17  ;;  %v7000_v48 = vpop.eup %6999  ;;  %7017 = vrcp.f32 %v5325_v24  ;;  %v6170_v32 = vmul.f32 -1.442695, %v9624_v36  ;;  %v5330_v22 = vadd.f32 1.0, %v6998_v42 }
 0x232   : > { %v5419_v6 = vmul.f32 %v7000_v48, %v9545_v35  ;;  %7019 = vpow2.f32 %v6167_v28  ;;  %v7002_v45 = vpop.eup %7001 }
 0x233   : > { %v6168_v1 = vmul.f32 -1.442695, %v9627_v61  ;;  %v7004_v31 = vpop.eup %7003  ;;  %v5417_v49 = vmul.f32 %v7002_v45, %v9550_v13  ;;  %7021 = vpow2.f32 %v6170_v32 }
 0x234   : > { %v6289_v11 = vpack.c.bf16 %v5419_v6, %v5418_v26  ;;  %v7006_v53 = vpop.eup %7005  ;;  %v5328_v51 = vadd.f32 1.0, %v7004_v31 }
 0x235   : > { %7023 = vpow2.f32 %v6168_v1  ;;  %v7008_v16 = vpop.eup %7007  ;;  %v6284_v47 = vpack.c.bf16 %v5417_v49, %v5416_v29  ;;  %v5331_v35 = vadd.f32 1.0, %v7006_v53 }
 0x236   : > { %6329 = vst [vmem:[%s9540_s9 + $0x48] sm:$0xff] %v6289_v11   ;;  %7025 = vrcp.f32 %v5330_v22  ;;  %v5422_v13 = vmul.f32 %v7008_v16, %v9560_v20 }
 0x237   : > { %v7010_v33 = vpop.eup %7009  ;;  %7027 = vrcp.f32 %v5328_v51  ;;  %6328 = vst [vmem:[%s9540_s9 + $0x40] sm:$0xff] %v6284_v47  }
 0x238   : > { %7029 = vrcp.f32 %v5331_v35  ;;  %v5329_v46 = vadd.f32 1.0, %v7010_v33 }
 0x239   : > { %v7012_v43 = vpop.eup %7011 }
 0x23a   : > { %7031 = vrcp.f32 %v5329_v46  ;;  %v5423_v25 = vmul.f32 %v7012_v43, %v9571_v30 }
 0x23c   : > { %v7014_v34 = vpop.eup %7013  ;;  %v6299_v54 = vpack.c.bf16 %v5423_v25, %v5422_v13 }
 0x23d   : > { %v7016_v62 = vpop.eup %7015  ;;  %v5334_v15 = vadd.f32 1.0, %v7014_v34 }
 0x23e   : > { %v7018_v0 = vpop.eup %7017  ;;  %v5420_v50 = vmul.f32 %v7016_v62, %v9567_v59  ;;  %6331 = vst [vmem:[%s9540_s9 + $0x58] sm:$0xff] %v6299_v54  }
 0x23f   : > { %v7020_v18 = vpop.eup %7019  ;;  %v5421_v52 = vmul.f32 %v7018_v0, %v9580_v41  ;;  %7033 = vrcp.f32 %v5334_v15 }
 0x240   : > { %v5332_v37 = vadd.f32 1.0, %v7020_v18  ;;  %v7022_v40 = vpop.eup %7021 }
 0x241   : > { %v6294_v5 = vpack.c.bf16 %v5421_v52, %v5420_v50  ;;  %v5335_v20 = vadd.f32 1.0, %v7022_v40 }
 0x242   : > { %v7024_v19 = vpop.eup %7023  ;;  %7035 = vrcp.f32 %v5332_v37 }
 0x243   : > { %v7026_v12 = vpop.eup %7025  ;;  %6330 = vst [vmem:[%s9540_s9 + $0x50] sm:$0xff] %v6294_v5   ;;  %v5333_v30 = vadd.f32 1.0, %v7024_v19  ;;  %7037 = vrcp.f32 %v5335_v20 }
 0x244   : > { %v7028_v3 = vpop.eup %7027  ;;  %v5426_v41 = vmul.f32 %v7026_v12, %v9587_v55 }
 0x245   : > { %v7030_v59 = vpop.eup %7029  ;;  %7039 = vrcp.f32 %v5333_v30  ;;  %v5424_v27 = vmul.f32 %v7028_v3, %v9593_v14 }
 0x246   : > { %v5427_v10 = vmul.f32 %v7030_v59, %v9597_v39 }
 0x247   : > { %v7032_v4 = vpop.eup %7031 }
 0x248   : > { %v6309_v56 = vpack.c.bf16 %v5427_v10, %v5426_v41  ;;  %v5425_v38 = vmul.f32 %v7032_v4, %v9604_v60 }
 0x24a   : > { %6333 = vst [vmem:[%s9540_s9 + $0x68] sm:$0xff] %v6309_v56   ;;  %v6304_v21 = vpack.c.bf16 %v5425_v38, %v5424_v27 }
 0x24c   : > { %6332 = vst [vmem:[%s9540_s9 + $0x60] sm:$0xff] %v6304_v21   ;;  %v7034_v63 = vpop.eup %7033 }
 0x24d   : > { %v5430_v39 = vmul.f32 %v7034_v63, %v9613_v9 }
 0x24f   : > { %v7036_v58 = vpop.eup %7035 }
 0x250   : > { %v7038_v7 = vpop.eup %7037  ;;  %v5428_v2 = vmul.f32 %v7036_v58, %v9620_v44 }
 0x251   : > { %v5431_v14 = vmul.f32 %v7038_v7, %v9624_v36 }
 0x252   : > { %v7040_v55 = vpop.eup %7039 }
 0x253   : > { %v5429_v60 = vmul.f32 %v7040_v55, %v9627_v61  ;;  %v6319_v23 = vpack.c.bf16 %v5431_v14, %v5430_v39 }
 0x255   : > { %v6314_v8 = vpack.c.bf16 %v5429_v60, %v5428_v2  ;;  %6335 = vst [vmem:[%s9540_s9 + $0x78] sm:$0xff] %v6319_v23  }
 0x257   : > { %6334 = vst [vmem:[%s9540_s9 + $0x70] sm:$0xff] %v6314_v8  }
 0x258   : > { %7054 = shalt.err (!%p7051_p5)
}
 0x259   : > { %s7055_s29 = scalar_lea.hbm %s9658_s21, 2048  ;;  %s7059_s5 = scalar_lea.hbm %s9714_s3, 4096 }
 0x25a   : > { %p7056_p6 = scmp.ne.s32.totalorder %s9658_s21, %s7055_s29  ;;  %p7060_p10 = scmp.lt.s32.totalorder %s9658_s21, %s9714_s3 }
 0x25b   : > { %p7061_p11 = scmp.lt.s32.totalorder %s7059_s5, %s7055_s29 }
 0x25c   : > { %p7057_p7 = pnand %p7056_p6, %p7182_p4 }
 0x25d   : > { %p7062_p12 = por %p7061_p11, %p7060_p10 }
 0x25e   : > { %p7058_p9 = pneg %p7057_p7 }
 0x260   : > { %p7063_p13 = pnand %p7062_p12, %p7058_p9 }
 0x262   : > { %7066 = shalt.err (!%p7063_p13)
}
 0x263   : > { %s7120_s8 = smov 64   ;;  %s7121_s9 = smov 4  }
 0x264   : > { %6808 = dma.vmem_to_hbm [thread:$0]  (%p7182_p4), %s9660_s11, 2048, %s9658_s21, %s9666_s15, %s7120_s8, %s7120_s8, %s7121_s9  }
 0x265 PF: > { %p6814_p0 = scmp.ge.s32.totalorder %s7117_s17, 2  ;;  %s5623_s10 = sand.u32 1, %s7097_s12  }
 0x266   : > { %s5624_s18 = scalar_lea.sflag [#allocation4], %s5623_s10 }
 0x267   : > { %p6811_p1 = pnand %p6814_p0, %p7189_p8 }
 0x269   : > { %p6812_p2 = pneg %p6811_p1 }
 0x26b   : > { %7092 = dma.done.wait (%p6812_p2), %s5624_s18, 2048  }
 0x26c   : > { %7094 = vsyncadd (%p6812_p2), %s5624_s18, 4294965248  ;;  %s16_s17 = sadd.s32 1, %s7117_s17   ;;  %s10011_s12 = smov %s7101_s13 }
 0x26d   : > { %p13_p3 = scmp.ge.s32.totalorder %s16_s17, 4   ;;  %s10012_s13 = smov %s7105_s14 }
 0x26e   : > { %s10013_s14 = smov %s7195_s25  ;;  %s10014_s15 = smov %s7113_s16 }
 0x26f   : > { %s10015_s16 = smov %s10017_s20  ;;  %15 = sbr.rel (!%p13_p3) target bundleno = 4 (0x4), region = 78 }
 0x274   :  { %5629 = vsyncpa [#allocation4], 1 }
 0x275   :  { %5631 = vsyncpa [#allocation4 + $0x1], 1 }

</bundles_post_ra>
